<compile_context>
chip_gen: v6e
topology: v6e:2x2x1
jax: 0.10.0
libtpu: 0.0.40
codegen_flags: <defaults>
</compile_context>

<pallas_src>
import functools
import math

import jax
import jax.numpy as jnp
from jax.experimental import pallas as pl
from jax.experimental.pallas import tpu as pltpu

LANE = 128
SUBLANE = 8
# Scoped VMEM limit: well under v7x's 64 MiB physical, raises v5e's 16 MiB default.
VMEM_LIMIT = 48 * 1024 * 1024


def _round_up(x, m):
    return (x + m - 1) // m * m


def _pad2(a, rows, cols):
    pr, pc = rows - a.shape[0], cols - a.shape[1]
    if pr == 0 and pc == 0:
        return a
    return jnp.pad(a, ((0, pr), (0, pc)))


# ----------------------------------------------------------------------------
# Pallas kernel 1a: fused matmul Y = act(X @ W + b), single K pass (K fits one
# block), bf16 operands, f32 accumulate, direct write to the output block.
# ----------------------------------------------------------------------------
def _matmul_kernel(x_ref, w_ref, b_ref, o_ref, *, act):
    y = jnp.dot(x_ref[...], w_ref[...],
                preferred_element_type=jnp.float32) + b_ref[...]
    if act == "relu":
        y = jnp.maximum(y, 0.0)
    o_ref[...] = y.astype(o_ref.dtype)


# Pallas kernel 1b: K-looped variant with f32 VMEM accumulator (large-K fallback).
def _matmul_kernel_kloop(x_ref, w_ref, b_ref, o_ref, acc_ref, *, act):
    k = pl.program_id(2)

    @pl.when(k == 0)
    def _():
        acc_ref[...] = jnp.zeros_like(acc_ref)

    acc_ref[...] += jnp.dot(x_ref[...], w_ref[...],
                            preferred_element_type=jnp.float32)

    @pl.when(k == pl.num_programs(2) - 1)
    def _():
        y = acc_ref[...] + b_ref[...]
        if act == "relu":
            y = jnp.maximum(y, 0.0)
        o_ref[...] = y.astype(o_ref.dtype)


def matmul_bias_act(x, w, bias, *, act="none", out_dtype=jnp.float32,
                    tm=512, tn=256, max_single_k=1024):
    """x: (M, K), w: (K, N), bias: (N,).  Returns (M, Np), Np = round_up(N, 128).

    Columns N..Np are exact zeros (zero-padded weights/bias), so callers keep a
    lane-dense padded layout flowing into the next kernel.  MXU operands are cast
    to bf16; accumulation, bias add and activation stay in f32.
    """
    M, K = x.shape
    K2, N = w.shape
    assert K == K2 and bias.shape == (N,)

    Np = _round_up(N, LANE)
    tn = min(tn, Np)
    if Np % tn != 0:
        tn = LANE

    Kp = _round_up(K, LANE)
    tm = min(tm, _round_up(M, SUBLANE))
    Mp = _round_up(M, tm)

    xp = _pad2(x, Mp, Kp).astype(jnp.bfloat16)
    wp = _pad2(w, Kp, Np).astype(jnp.bfloat16)
    bp_ = _pad2(bias.astype(jnp.float32).reshape(1, N), 1, Np)

    if Kp <= max_single_k:
        out = pl.pallas_call(
            functools.partial(_matmul_kernel, act=act),
            out_shape=jax.ShapeDtypeStruct((Mp, Np), out_dtype),
            grid=(Mp // tm, Np // tn),
            in_specs=[
                pl.BlockSpec((tm, Kp), lambda i, j: (i, 0)),
                pl.BlockSpec((Kp, tn), lambda i, j: (0, j)),
                pl.BlockSpec((1, tn), lambda i, j: (0, j)),
            ],
            out_specs=pl.BlockSpec((tm, tn), lambda i, j: (i, j)),
            compiler_params=pltpu.CompilerParams(
                dimension_semantics=("parallel", "parallel"),
                vmem_limit_bytes=VMEM_LIMIT),
        )(xp, wp, bp_)
    else:
        tk = 512 if Kp % 512 == 0 else LANE
        out = pl.pallas_call(
            functools.partial(_matmul_kernel_kloop, act=act),
            out_shape=jax.ShapeDtypeStruct((Mp, Np), out_dtype),
            grid=(Mp // tm, Np // tn, Kp // tk),
            in_specs=[
                pl.BlockSpec((tm, tk), lambda i, j, k: (i, k)),
                pl.BlockSpec((tk, tn), lambda i, j, k: (k, j)),
                pl.BlockSpec((1, tn), lambda i, j, k: (0, j)),
            ],
            out_specs=pl.BlockSpec((tm, tn), lambda i, j, k: (i, j)),
            scratch_shapes=[pltpu.VMEM((tm, tn), jnp.float32)],
            compiler_params=pltpu.CompilerParams(
                dimension_semantics=("parallel", "parallel", "arbitrary"),
                vmem_limit_bytes=VMEM_LIMIT),
        )(xp, wp, bp_)
    return out[:M] if Mp != M else out


# ----------------------------------------------------------------------------
# Pallas kernel 2: fused GRU layer.
#   Per grid step (chunk of tc timesteps):
#     * one MXU matmul projects the whole chunk: xg = x @ W_ih + (b_ih + b_hh[r,z])
#       (kept in a VMEM scratch, never written to HBM),
#     * an unrolled recurrence over the tc steps:
#         hg = h @ W_hh
#         r = sigmoid(xg_r + hg_r); z = sigmoid(xg_z + hg_z)
#         n = tanh(xg_n + r * (hg_n + b_hn)); h = (1-z)*n + z*h
#     * hn accumulated in the (constant-index, VMEM-resident) output block with a
#       lens-1 mask; optional bf16 hseq chunk written for the next layer.
# Gate order matches PyTorch (r, z, n); all gate blocks are lane-aligned (Hp=128k).
# ----------------------------------------------------------------------------
def _gru_kernel(lens_ref, x_ref, wih_ref, bcomb_ref, whh_ref, bhhn_ref,
                *refs, tc, bp, hp, emit_hseq):
    if emit_hseq:
        hseq_ref, hn_ref, h_scr, xg_scr, hc_scr = refs
    else:
        hn_ref, h_scr, xg_scr = refs
        hseq_ref = hc_scr = None

    c = pl.program_id(0)

    @pl.when(c == 0)
    def _():
        h_scr[...] = jnp.zeros_like(h_scr)
        hn_ref[...] = jnp.zeros_like(hn_ref)

    # Hoisted input projection for the whole chunk: (tc*B, Din) x (Din, 3Hp) on the MXU.
    xg_scr[...] = (jnp.dot(x_ref[...], wih_ref[...],
                           preferred_element_type=jnp.float32) + bcomb_ref[...])

    whh = whh_ref[...]            # (Hp, 3Hp) bf16, gate blocks lane-aligned
    bhh_n = bhhn_ref[...]         # (1, Hp) f32 (only the n-gate recurrent bias)
    lens_m1 = lens_ref[...] - 1   # (B, 1) int32
    t0 = c * tc

    def step(tt, h):
        row = pl.multiple_of(tt * bp, bp)
        xg = xg_scr[pl.ds(row, bp), :]                            # (B, 3Hp) f32
        hg = jnp.dot(h.astype(jnp.bfloat16), whh,
                     preferred_element_type=jnp.float32)          # (B, 3Hp) f32
        r = jax.nn.sigmoid(xg[:, 0 * hp:1 * hp] + hg[:, 0 * hp:1 * hp])
        z = jax.nn.sigmoid(xg[:, 1 * hp:2 * hp] + hg[:, 1 * hp:2 * hp])
        n = jnp.tanh(xg[:, 2 * hp:3 * hp] + r * (hg[:, 2 * hp:3 * hp] + bhh_n))
        h_new = (1.0 - z) * n + z * h
        if emit_hseq:
            hc_scr[pl.ds(row, bp), :] = h_new                     # f32, sublane-aligned
        # Packed-sequence hn: keep h at each sample's own last valid timestep.
        keep = lens_m1 == (t0 + tt)                               # (B, 1) bool
        hn_ref[...] = jnp.where(keep, h_new, hn_ref[...])
        return h_new

    h_scr[...] = jax.lax.fori_loop(0, tc, step, h_scr[...], unroll=True)

    if emit_hseq:
        # One lane-dense bf16 store per chunk (no per-step packed partial stores).
        hseq_ref[...] = hc_scr[...].astype(hseq_ref.dtype)


def gru_layer(x2d, wih, bcomb, whh, bhhn, lens_col, *, tc, bp, hp, emit_hseq):
    """x2d: (Tt*Bp, Din) time-major flattened bf16 input.

    Returns (hseq (Tt*Bp, Hp) bf16, hn (Bp, Hp) f32) or just hn for the last layer.
    """
    tbp, din = x2d.shape
    assert tbp % (tc * bp) == 0
    n_chunks = tbp // (tc * bp)
    g3 = whh.shape[1]
    assert g3 == 3 * hp and wih.shape == (din, g3)

    out_shapes, out_specs = [], []
    if emit_hseq:
        out_shapes.append(jax.ShapeDtypeStruct((tbp, hp), jnp.bfloat16))
        out_specs.append(pl.BlockSpec((tc * bp, hp), lambda c: (c, 0)))
    out_shapes.append(jax.ShapeDtypeStruct((bp, hp), jnp.float32))
    out_specs.append(pl.BlockSpec((bp, hp), lambda c: (0, 0)))

    scratch = [pltpu.VMEM((bp, hp), jnp.float32),           # h carry
               pltpu.VMEM((tc * bp, g3), jnp.float32)]      # xg chunk (never hits HBM)
    if emit_hseq:
        scratch.append(pltpu.VMEM((tc * bp, hp), jnp.float32))

    in_specs = [
        pl.BlockSpec((bp, 1), lambda c: (0, 0)),             # lens
        pl.BlockSpec((tc * bp, din), lambda c: (c, 0)),      # x chunk
        # TODO(synk): pipeline_mode=pl.Buffered(1) on the constant-index weights
        # would halve their resident VMEM at large H.
        pl.BlockSpec((din, g3), lambda c: (0, 0)),           # W_ih (bf16)
        pl.BlockSpec((1, g3), lambda c: (0, 0)),             # b_ih + b_hh(r,z)
        pl.BlockSpec((hp, g3), lambda c: (0, 0)),            # W_hh (bf16)
        pl.BlockSpec((1, hp), lambda c: (0, 0)),             # b_hh(n)
    ]

    outs = pl.pallas_call(
        functools.partial(_gru_kernel, tc=tc, bp=bp, hp=hp, emit_hseq=emit_hseq),
        out_shape=tuple(out_shapes) if emit_hseq else out_shapes[0],
        grid=(n_chunks,),
        in_specs=in_specs,
        out_specs=tuple(out_specs) if emit_hseq else out_specs[0],
        scratch_shapes=scratch,
        compiler_params=pltpu.CompilerParams(
            dimension_semantics=("arbitrary",),
            vmem_limit_bytes=VMEM_LIMIT),
    )(lens_col, x2d, wih, bcomb, whh, bhhn)
    return outs


# ----------------------------------------------------------------------------
# Conv1d (k=3, s=1, p=1) + ReLU via compact im2col + fused single-pass matmul.
# Patches are built from the real channels only (no lane padding in K).
# ----------------------------------------------------------------------------
def conv1d_relu(x_btc, w_mat, bias, *, c_real):
    B, T, _ = x_btc.shape
    xr = x_btc[..., :c_real]                             # drop lane padding before im2col
    xp = jnp.pad(xr, ((0, 0), (1, 1), (0, 0)))
    patches = jnp.concatenate(
        [xp[:, 0:T, :], xp[:, 1:T + 1, :], xp[:, 2:T + 2, :]], axis=-1)
    out = matmul_bias_act(patches.reshape(B * T, 3 * c_real), w_mat, bias,
                          act="relu", out_dtype=jnp.bfloat16)
    return out.reshape(B, T, -1)                         # (B, T, 128k), zeros beyond 32


# ----------------------------------------------------------------------------
# Parameters (deterministic synthetic init, PyTorch default-init style/shapes).
# ----------------------------------------------------------------------------
def init_params(key, n_mels, num_hidden, num_layers):
    H = num_hidden
    ks = iter(jax.random.split(key, 8 + 4 * num_layers))

    def unif(shape, bound):
        return jax.random.uniform(next(ks), shape, jnp.float32, -bound, bound)

    p = {}
    b1 = 1.0 / math.sqrt(n_mels * 3)
    p["conv1_w"] = unif((32, n_mels, 3), b1)     # PyTorch layout (Cout, Cin, k)
    p["conv1_b"] = unif((32,), b1)
    b2 = 1.0 / math.sqrt(32 * 3)
    p["conv2_w"] = unif((32, 32, 3), b2)         # shared module, applied 3x
    p["conv2_b"] = unif((32,), b2)

    kH = 1.0 / math.sqrt(H)
    p["gru"] = []
    for layer in range(num_layers):
        d_in = 32 if layer == 0 else H
        p["gru"].append({
            "w_ih": unif((3 * H, d_in), kH),     # gate order r, z, n
            "w_hh": unif((3 * H, H), kH),
            "b_ih": unif((3 * H,), kH),
            "b_hh": unif((3 * H,), kH),
        })
    return p


def _pad_gate_matrix(w, d_in, d_in_p, H, Hp):
    """PyTorch (3H, d_in) -> transposed, per-gate lane-padded (d_in_p, 3*Hp)."""
    w_t = w.T.reshape(d_in, 3, H)
    out = jnp.zeros((d_in_p, 3, Hp), w.dtype).at[:d_in, :, :H].set(w_t)
    return out.reshape(d_in_p, 3 * Hp)


def _pad_gate_bias(b, H, Hp):
    out = jnp.zeros((3, Hp), b.dtype).at[:, :H].set(b.reshape(3, H))
    return out.reshape(3 * Hp)


# ----------------------------------------------------------------------------
# Full Encoder.forward
# ----------------------------------------------------------------------------
def encoder_forward(params, x, lens, *, num_hidden, tc=16):
    """x: (B, T, n_mels) padded batch-first input; lens: (B,) int32 lengths.

    Returns hn: (num_layers, B, num_hidden) — the GRU final hidden states, as
    returned by `_, hn = self.l1(packed_inputs)`.
    """
    B, T, n_mels = x.shape
    H = num_hidden
    Hp = _round_up(H, LANE)
    Bp = _round_up(B, SUBLANE)          # full-sublane rows in the recurrence
    Tt = _round_up(T, tc)

    # --- CNN: Conv1d(n_mels->32)+ReLU, then the shared Conv1d(32->32)+ReLU x3. ---
    w1_mat = jnp.transpose(params["conv1_w"], (2, 1, 0)).reshape(3 * n_mels, 32)
    h = conv1d_relu(x, w1_mat, params["conv1_b"], c_real=n_mels)   # (B, T, 128) bf16
    w2_mat = jnp.transpose(params["conv2_w"], (2, 1, 0)).reshape(3 * 32, 32)
    for _ in range(3):
        h = conv1d_relu(h, w2_mat, params["conv2_b"], c_real=32)   # (B, T, 128) bf16

    # --- Time-major, pad T->Tt and B->Bp, flatten rows to (t, b). ---------------
    cin_p = h.shape[-1]                                            # 128
    h = jnp.transpose(h, (1, 0, 2))                                # (T, B, Cp)
    h = jnp.pad(h, ((0, Tt - T), (0, Bp - B), (0, 0)))
    x2d = h.reshape(Tt * Bp, cin_p)                                # bf16

    lens_p = jnp.pad(lens.astype(jnp.int32), (0, Bp - B), constant_values=1)
    lens_col = lens_p.reshape(Bp, 1)

    # --- GRU stack (input projection + hn extraction fused into the kernel). ----
    d_in_real, d_in_pad = 32, cin_p
    num_layers = len(params["gru"])
    hn_layers = []
    for li, lp in enumerate(params["gru"]):
        wih = _pad_gate_matrix(lp["w_ih"], d_in_real, d_in_pad, H, Hp).astype(jnp.bfloat16)
        whh = _pad_gate_matrix(lp["w_hh"], H, Hp, H, Hp).astype(jnp.bfloat16)
        # Fold b_hh's r/z components into the hoisted bias; keep only b_hn separate
        # (it must be added before the r-gate multiply).  Numerically identical.
        b_ih = lp["b_ih"].reshape(3, H)
        b_hh = lp["b_hh"].reshape(3, H)
        b_comb = jnp.concatenate([b_ih[0] + b_hh[0], b_ih[1] + b_hh[1], b_ih[2]])
        bcomb_p = _pad_gate_bias(b_comb, H, Hp).reshape(1, 3 * Hp)
        bhhn_p = jnp.zeros((1, Hp), jnp.float32).at[0, :H].set(b_hh[2])

        emit_hseq = li < num_layers - 1     # last layer: hn only, no hseq writeback
        outs = gru_layer(x2d, wih, bcomb_p, whh, bhhn_p, lens_col,
                         tc=tc, bp=Bp, hp=Hp, emit_hseq=emit_hseq)
        if emit_hseq:
            x2d, hn = outs                  # bf16 hseq feeds the next layer directly
        else:
            hn = outs
        hn_layers.append(hn)
        d_in_real, d_in_pad = H, Hp

    hn = jnp.stack(hn_layers, axis=0)[:, :B, :H]                   # (L, B, H) f32
    return hn


if __name__ == "__main__":
    # Small shapes consistent with the module.
    B, T, n_mels = 2, 24, 16
    num_hidden, num_layers = 32, 2

    key = jax.random.PRNGKey(0)
    k_param, k_data = jax.random.split(key)
    params = init_params(k_param, n_mels, num_hidden, num_layers)

    x = jax.random.normal(k_data, (B, T, n_mels), jnp.float32)     # (B, T, n_mels)
    lens = jnp.array([T, 17], dtype=jnp.int32)                     # ragged lengths
    # Zero padding beyond each sample's length, as pad_packed_sequence yields.
    t_idx = jnp.arange(T)[None, :, None]
    x = jnp.where(t_idx < lens[:, None, None], x, 0.0)

    fwd = jax.jit(functools.partial(encoder_forward, num_hidden=num_hidden))
    hn = fwd(params, x, lens)
    jax.block_until_ready(hn)

    assert hn.shape == (num_layers, B, num_hidden), hn.shape
    assert hn.dtype == jnp.float32
    assert bool(jnp.all(jnp.isfinite(hn)))
    print("KERNEL_OK")
</pallas_src>

<mosaic_0001>
module attributes {stable_mosaic.version = 11 : i64} {
  func.func @_matmul_kernel(%arg0: i32, %arg1: i32, %arg2: memref<48x128xbf16, #tpu.memory_space<vmem>>, %arg3: memref<128x128xbf16, #tpu.memory_space<vmem>>, %arg4: memref<1x128xf32, #tpu.memory_space<vmem>>, %arg5: memref<48x128xbf16, #tpu.memory_space<vmem>>) attributes {dimension_semantics = [#tpu.dimension_semantics<parallel>, #tpu.dimension_semantics<parallel>], iteration_bounds = array<i64: 1, 1>, scalar_prefetch = 0 : i64, scratch_operands = 0 : i64, tpu.core_type = #tpu.core_type<tc>, window_params = [{transform_indices = @transform_0, window_bounds = array<i64: 48, 128>}, {transform_indices = @transform_1, window_bounds = array<i64: 128, 128>}, {transform_indices = @transform_2, window_bounds = array<i64: 1, 128>}, {transform_indices = @transform_3, window_bounds = array<i64: 48, 128>}]} {
    %c0 = arith.constant 0 : index
    %c0_0 = arith.constant 0 : index
    %0 = vector.load %arg2[%c0, %c0_0] : memref<48x128xbf16, #tpu.memory_space<vmem>>, vector<48x128xbf16>
    %c0_1 = arith.constant 0 : index
    %c0_2 = arith.constant 0 : index
    %1 = vector.load %arg3[%c0_1, %c0_2] : memref<128x128xbf16, #tpu.memory_space<vmem>>, vector<128x128xbf16>
    %cst = arith.constant dense<0.000000e+00> : vector<48x128xf32>
    %2 = tpu.matmul %0, %1, %cst {dimension_numbers = #tpu.dot_dimension_numbers<[1], [0], [0], [1], [0, 0, 1, 1], [], []>} : vector<48x128xbf16>, vector<128x128xbf16>, vector<48x128xf32> -> vector<48x128xf32>
    %c0_3 = arith.constant 0 : index
    %c0_4 = arith.constant 0 : index
    %3 = vector.load %arg4[%c0_3, %c0_4] : memref<1x128xf32, #tpu.memory_space<vmem>>, vector<1x128xf32>
    %4 = vector.broadcast %3 : vector<1x128xf32> to vector<48x128xf32>
    %5 = arith.addf %2, %4 : vector<48x128xf32>
    %cst_5 = arith.constant 0.000000e+00 : f32
    %6 = vector.broadcast %cst_5 : f32 to vector<48x128xf32>
    %7 = arith.maximumf %5, %6 : vector<48x128xf32>
    %8 = arith.truncf %7 : vector<48x128xf32> to vector<48x128xbf16>
    %c0_6 = arith.constant 0 : index
    %c0_7 = arith.constant 0 : index
    %9 = vector.load %arg5[%c0_6, %c0_7] : memref<48x128xbf16, #tpu.memory_space<vmem>>, vector<48x128xbf16>
    tpu.vector_store %arg5[%c0_6, %c0_7], %8 {strides = array<i32>} : memref<48x128xbf16, #tpu.memory_space<vmem>>, vector<48x128xbf16>,
    return
  }
  func.func @transform_0(%arg0: i32, %arg1: i32) -> (i32, i32) {
    %c0_i32 = arith.constant 0 : i32
    %c0_i32_0 = arith.constant 0 : i32
    return %arg0, %c0_i32 : i32, i32
  }
  func.func @transform_1(%arg0: i32, %arg1: i32) -> (i32, i32) {
    %c0_i32 = arith.constant 0 : i32
    %c0_i32_0 = arith.constant 0 : i32
    return %c0_i32, %arg1 : i32, i32
  }
  func.func @transform_2(%arg0: i32, %arg1: i32) -> (i32, i32) {
    %c0_i32 = arith.constant 0 : i32
    %c0_i32_0 = arith.constant 0 : i32
    return %c0_i32, %arg1 : i32, i32
  }
  func.func @transform_3(%arg0: i32, %arg1: i32) -> (i32, i32) {
    %c0_i32 = arith.constant 0 : i32
    return %arg0, %arg1 : i32, i32
  }
}

module attributes {stable_mosaic.version = 11 : i64} {
  func.func @_gru_kernel(%arg0: i32, %arg1: memref<8x1xi32, #tpu.memory_space<vmem>>, %arg2: memref<128x128xbf16, #tpu.memory_space<vmem>>, %arg3: memref<128x384xbf16, #tpu.memory_space<vmem>>, %arg4: memref<1x384xf32, #tpu.memory_space<vmem>>, %arg5: memref<128x384xbf16, #tpu.memory_space<vmem>>, %arg6: memref<1x128xf32, #tpu.memory_space<vmem>>, %arg7: memref<8x128xf32, #tpu.memory_space<vmem>>, %arg8: memref<8x128xf32, #tpu.memory_space<vmem>>, %arg9: memref<128x384xf32, #tpu.memory_space<vmem>>) attributes {dimension_semantics = [#tpu.dimension_semantics<arbitrary>], iteration_bounds = array<i64: 2>, scalar_prefetch = 0 : i64, scratch_operands = 2 : i64, tpu.core_type = #tpu.core_type<tc>, window_params = [{pipeline_mode = #tpu.pipeline_mode<synchronous>, transform_indices = @transform_0, window_bounds = array<i64: 8, 1>}, {transform_indices = @transform_1, window_bounds = array<i64: 128, 128>}, {pipeline_mode = #tpu.pipeline_mode<synchronous>, transform_indices = @transform_2, window_bounds = array<i64: 128, 384>}, {pipeline_mode = #tpu.pipeline_mode<synchronous>, transform_indices = @transform_3, window_bounds = array<i64: 1, 384>}, {pipeline_mode = #tpu.pipeline_mode<synchronous>, transform_indices = @transform_4, window_bounds = array<i64: 128, 384>}, {pipeline_mode = #tpu.pipeline_mode<synchronous>, transform_indices = @transform_5, window_bounds = array<i64: 1, 128>}, {pipeline_mode = #tpu.pipeline_mode<synchronous>, transform_indices = @transform_6, window_bounds = array<i64: 8, 128>}]} {
    %c0_i32 = arith.constant 0 : i32
    %0 = arith.cmpi eq, %arg0, %c0_i32 : i32
    %1 = arith.extui %0 : i1 to i32
    %c0_i32_0 = arith.constant 0 : i32
    %2 = arith.cmpi ne, %1, %c0_i32_0 : i32
    scf.if %2 {
      %cst_181 = arith.constant 0.000000e+00 : f32
      %690 = vector.broadcast %cst_181 : f32 to vector<8x128xf32>
      %c0_182 = arith.constant 0 : index
      %c0_183 = arith.constant 0 : index
      %691 = vector.load %arg8[%c0_182, %c0_183] : memref<8x128xf32, #tpu.memory_space<vmem>>, vector<8x128xf32>
      tpu.vector_store %arg8[%c0_182, %c0_183], %690 {strides = array<i32>} : memref<8x128xf32, #tpu.memory_space<vmem>>, vector<8x128xf32>,
      %cst_184 = arith.constant 0.000000e+00 : f32
      %692 = vector.broadcast %cst_184 : f32 to vector<8x128xf32>
      %c0_185 = arith.constant 0 : index
      %c0_186 = arith.constant 0 : index
      %693 = vector.load %arg7[%c0_185, %c0_186] : memref<8x128xf32, #tpu.memory_space<vmem>>, vector<8x128xf32>
      tpu.vector_store %arg7[%c0_185, %c0_186], %692 {strides = array<i32>} : memref<8x128xf32, #tpu.memory_space<vmem>>, vector<8x128xf32>,
    } else {
    }
    %c0 = arith.constant 0 : index
    %c0_1 = arith.constant 0 : index
    %3 = vector.load %arg2[%c0, %c0_1] : memref<128x128xbf16, #tpu.memory_space<vmem>>, vector<128x128xbf16>
    %c0_2 = arith.constant 0 : index
    %c0_3 = arith.constant 0 : index
    %4 = vector.load %arg3[%c0_2, %c0_3] : memref<128x384xbf16, #tpu.memory_space<vmem>>, vector<128x384xbf16>
    %cst = arith.constant dense<0.000000e+00> : vector<128x384xf32>
    %5 = tpu.matmul %3, %4, %cst {dimension_numbers = #tpu.dot_dimension_numbers<[1], [0], [0], [1], [0, 0, 1, 1], [], []>} : vector<128x128xbf16>, vector<128x384xbf16>, vector<128x384xf32> -> vector<128x384xf32>
    %c0_4 = arith.constant 0 : index
    %c0_5 = arith.constant 0 : index
    %6 = vector.load %arg4[%c0_4, %c0_5] : memref<1x384xf32, #tpu.memory_space<vmem>>, vector<1x384xf32>
    %7 = vector.broadcast %6 : vector<1x384xf32> to vector<128x384xf32>
    %8 = arith.addf %5, %7 : vector<128x384xf32>
    %c0_6 = arith.constant 0 : index
    %c0_7 = arith.constant 0 : index
    %9 = vector.load %arg9[%c0_6, %c0_7] : memref<128x384xf32, #tpu.memory_space<vmem>>, vector<128x384xf32>
    tpu.vector_store %arg9[%c0_6, %c0_7], %8 {strides = array<i32>} : memref<128x384xf32, #tpu.memory_space<vmem>>, vector<128x384xf32>,
    %c0_8 = arith.constant 0 : index
    %c0_9 = arith.constant 0 : index
    %10 = vector.load %arg5[%c0_8, %c0_9] : memref<128x384xbf16, #tpu.memory_space<vmem>>, vector<128x384xbf16>
    %c0_10 = arith.constant 0 : index
    %c0_11 = arith.constant 0 : index
    %11 = vector.load %arg6[%c0_10, %c0_11] : memref<1x128xf32, #tpu.memory_space<vmem>>, vector<1x128xf32>
    %c0_12 = arith.constant 0 : index
    %c0_13 = arith.constant 0 : index
    %12 = vector.load %arg1[%c0_12, %c0_13] : memref<8x1xi32, #tpu.memory_space<vmem>>, vector<8x1xi32>
    %c1_i32 = arith.constant 1 : i32
    %13 = vector.broadcast %c1_i32 : i32 to vector<8x1xi32>
    %14 = arith.subi %12, %13 : vector<8x1xi32>
    %c16_i32 = arith.constant 16 : i32
    %15 = arith.muli %arg0, %c16_i32 : i32
    %c0_14 = arith.constant 0 : index
    %c0_15 = arith.constant 0 : index
    %16 = vector.load %arg8[%c0_14, %c0_15] : memref<8x128xf32, #tpu.memory_space<vmem>>, vector<8x128xf32>
    %c0_i32_16 = arith.constant 0 : i32
    %c8_i32 = arith.constant 8 : i32
    %17 = arith.muli %c0_i32_16, %c8_i32 : i32
    %18 = tpu.assume_multiple %17, 8 : i32
    %19 = arith.index_cast %18 : i32 to index
    %c0_17 = arith.constant 0 : index
    %20 = vector.load %arg9[%19, %c0_17] : memref<128x384xf32, #tpu.memory_space<vmem>>, vector<8x384xf32>
    %21 = arith.truncf %16 : vector<8x128xf32> to vector<8x128xbf16>
    %cst_18 = arith.constant dense<0.000000e+00> : vector<8x384xf32>
    %22 = tpu.matmul %21, %10, %cst_18 {dimension_numbers = #tpu.dot_dimension_numbers<[1], [0], [0], [1], [0, 0, 1, 1], [], []>} : vector<8x128xbf16>, vector<128x384xbf16>, vector<8x384xf32> -> vector<8x384xf32>
    %23 = vector.extract_strided_slice %20 {offsets = [0, 0], sizes = [8, 128], strides = [1, 1]} : vector<8x384xf32> to vector<8x128xf32>
    %24 = vector.extract_strided_slice %22 {offsets = [0, 0], sizes = [8, 128], strides = [1, 1]} : vector<8x384xf32> to vector<8x128xf32>
    %25 = arith.addf %23, %24 : vector<8x128xf32>
    %26 = arith.negf %25 : vector<8x128xf32>
    %27 = math.exp %26 : vector<8x128xf32>
    %cst_19 = arith.constant 1.000000e+00 : f32
    %28 = vector.broadcast %cst_19 : f32 to vector<8x128xf32>
    %29 = arith.addf %28, %27 : vector<8x128xf32>
    %30 = arith.divf %28, %29 : vector<8x128xf32>
    %31 = vector.extract_strided_slice %20 {offsets = [0, 128], sizes = [8, 128], strides = [1, 1]} : vector<8x384xf32> to vector<8x128xf32>
    %32 = vector.extract_strided_slice %22 {offsets = [0, 128], sizes = [8, 128], strides = [1, 1]} : vector<8x384xf32> to vector<8x128xf32>
    %33 = arith.addf %31, %32 : vector<8x128xf32>
    %34 = arith.negf %33 : vector<8x128xf32>
    %35 = math.exp %34 : vector<8x128xf32>
    %cst_20 = arith.constant 1.000000e+00 : f32
    %36 = vector.broadcast %cst_20 : f32 to vector<8x128xf32>
    %37 = arith.addf %36, %35 : vector<8x128xf32>
    %38 = arith.divf %36, %37 : vector<8x128xf32>
    %39 = vector.extract_strided_slice %20 {offsets = [0, 256], sizes = [8, 128], strides = [1, 1]} : vector<8x384xf32> to vector<8x128xf32>
    %40 = vector.extract_strided_slice %22 {offsets = [0, 256], sizes = [8, 128], strides = [1, 1]} : vector<8x384xf32> to vector<8x128xf32>
    %41 = vector.broadcast %11 : vector<1x128xf32> to vector<8x128xf32>
    %42 = arith.addf %40, %41 : vector<8x128xf32>
    %43 = arith.mulf %30, %42 : vector<8x128xf32>
    %44 = arith.addf %39, %43 : vector<8x128xf32>
    %45 = math.tanh %44 : vector<8x128xf32>
    %cst_21 = arith.constant 1.000000e+00 : f32
    %46 = vector.broadcast %cst_21 : f32 to vector<8x128xf32>
    %47 = arith.subf %46, %38 : vector<8x128xf32>
    %48 = arith.mulf %47, %45 : vector<8x128xf32>
    %49 = arith.mulf %38, %16 : vector<8x128xf32>
    %50 = arith.addf %48, %49 : vector<8x128xf32>
    %51 = arith.addi %15, %c0_i32_16 : i32
    %52 = vector.broadcast %51 : i32 to vector<8x1xi32>
    %53 = arith.cmpi eq, %14, %52 : vector<8x1xi32>
    %c0_22 = arith.constant 0 : index
    %c0_23 = arith.constant 0 : index
    %54 = vector.load %arg7[%c0_22, %c0_23] : memref<8x128xf32, #tpu.memory_space<vmem>>, vector<8x128xf32>
    %55 = vector.shape_cast %53 : vector<8x1xi1> to vector<8x1xi1>
    %56 = vector.broadcast %55 : vector<8x1xi1> to vector<8x128xi1>
    %57 = arith.select %56, %50, %54 : vector<8x128xi1>, vector<8x128xf32>
    %c0_24 = arith.constant 0 : index
    %c0_25 = arith.constant 0 : index
    %58 = vector.load %arg7[%c0_24, %c0_25] : memref<8x128xf32, #tpu.memory_space<vmem>>, vector<8x128xf32>
    tpu.vector_store %arg7[%c0_24, %c0_25], %57 {strides = array<i32>} : memref<8x128xf32, #tpu.memory_space<vmem>>, vector<8x128xf32>,
    %c1_i32_26 = arith.constant 1 : i32
    %c8_i32_27 = arith.constant 8 : i32
    %59 = arith.muli %c1_i32_26, %c8_i32_27 : i32
    %60 = tpu.assume_multiple %59, 8 : i32
    %61 = arith.index_cast %60 : i32 to index
    %c0_28 = arith.constant 0 : index
    %62 = vector.load %arg9[%61, %c0_28] : memref<128x384xf32, #tpu.memory_space<vmem>>, vector<8x384xf32>
    %63 = arith.truncf %50 : vector<8x128xf32> to vector<8x128xbf16>
    %cst_29 = arith.constant dense<0.000000e+00> : vector<8x384xf32>
    %64 = tpu.matmul %63, %10, %cst_29 {dimension_numbers = #tpu.dot_dimension_numbers<[1], [0], [0], [1], [0, 0, 1, 1], [], []>} : vector<8x128xbf16>, vector<128x384xbf16>, vector<8x384xf32> -> vector<8x384xf32>
    %65 = vector.extract_strided_slice %62 {offsets = [0, 0], sizes = [8, 128], strides = [1, 1]} : vector<8x384xf32> to vector<8x128xf32>
    %66 = vector.extract_strided_slice %64 {offsets = [0, 0], sizes = [8, 128], strides = [1, 1]} : vector<8x384xf32> to vector<8x128xf32>
    %67 = arith.addf %65, %66 : vector<8x128xf32>
    %68 = arith.negf %67 : vector<8x128xf32>
    %69 = math.exp %68 : vector<8x128xf32>
    %cst_30 = arith.constant 1.000000e+00 : f32
    %70 = vector.broadcast %cst_30 : f32 to vector<8x128xf32>
    %71 = arith.addf %70, %69 : vector<8x128xf32>
    %72 = arith.divf %70, %71 : vector<8x128xf32>
    %73 = vector.extract_strided_slice %62 {offsets = [0, 128], sizes = [8, 128], strides = [1, 1]} : vector<8x384xf32> to vector<8x128xf32>
    %74 = vector.extract_strided_slice %64 {offsets = [0, 128], sizes = [8, 128], strides = [1, 1]} : vector<8x384xf32> to vector<8x128xf32>
    %75 = arith.addf %73, %74 : vector<8x128xf32>
    %76 = arith.negf %75 : vector<8x128xf32>
    %77 = math.exp %76 : vector<8x128xf32>
    %cst_31 = arith.constant 1.000000e+00 : f32
    %78 = vector.broadcast %cst_31 : f32 to vector<8x128xf32>
    %79 = arith.addf %78, %77 : vector<8x128xf32>
    %80 = arith.divf %78, %79 : vector<8x128xf32>
    %81 = vector.extract_strided_slice %62 {offsets = [0, 256], sizes = [8, 128], strides = [1, 1]} : vector<8x384xf32> to vector<8x128xf32>
    %82 = vector.extract_strided_slice %64 {offsets = [0, 256], sizes = [8, 128], strides = [1, 1]} : vector<8x384xf32> to vector<8x128xf32>
    %83 = vector.broadcast %11 : vector<1x128xf32> to vector<8x128xf32>
    %84 = arith.addf %82, %83 : vector<8x128xf32>
    %85 = arith.mulf %72, %84 : vector<8x128xf32>
    %86 = arith.addf %81, %85 : vector<8x128xf32>
    %87 = math.tanh %86 : vector<8x128xf32>
    %cst_32 = arith.constant 1.000000e+00 : f32
    %88 = vector.broadcast %cst_32 : f32 to vector<8x128xf32>
    %89 = arith.subf %88, %80 : vector<8x128xf32>
    %90 = arith.mulf %89, %87 : vector<8x128xf32>
    %91 = arith.mulf %80, %50 : vector<8x128xf32>
    %92 = arith.addf %90, %91 : vector<8x128xf32>
    %93 = arith.addi %15, %c1_i32_26 : i32
    %94 = vector.broadcast %93 : i32 to vector<8x1xi32>
    %95 = arith.cmpi eq, %14, %94 : vector<8x1xi32>
    %c0_33 = arith.constant 0 : index
    %c0_34 = arith.constant 0 : index
    %96 = vector.load %arg7[%c0_33, %c0_34] : memref<8x128xf32, #tpu.memory_space<vmem>>, vector<8x128xf32>
    %97 = vector.shape_cast %95 : vector<8x1xi1> to vector<8x1xi1>
    %98 = vector.broadcast %97 : vector<8x1xi1> to vector<8x128xi1>
    %99 = arith.select %98, %92, %96 : vector<8x128xi1>, vector<8x128xf32>
    %c0_35 = arith.constant 0 : index
    %c0_36 = arith.constant 0 : index
    %100 = vector.load %arg7[%c0_35, %c0_36] : memref<8x128xf32, #tpu.memory_space<vmem>>, vector<8x128xf32>
    tpu.vector_store %arg7[%c0_35, %c0_36], %99 {strides = array<i32>} : memref<8x128xf32, #tpu.memory_space<vmem>>, vector<8x128xf32>,
    %c2_i32 = arith.constant 2 : i32
    %c8_i32_37 = arith.constant 8 : i32
    %101 = arith.muli %c2_i32, %c8_i32_37 : i32
    %102 = tpu.assume_multiple %101, 8 : i32
    %103 = arith.index_cast %102 : i32 to index
    %c0_38 = arith.constant 0 : index
    %104 = vector.load %arg9[%103, %c0_38] : memref<128x384xf32, #tpu.memory_space<vmem>>, vector<8x384xf32>
    %105 = arith.truncf %92 : vector<8x128xf32> to vector<8x128xbf16>
    %cst_39 = arith.constant dense<0.000000e+00> : vector<8x384xf32>
    %106 = tpu.matmul %105, %10, %cst_39 {dimension_numbers = #tpu.dot_dimension_numbers<[1], [0], [0], [1], [0, 0, 1, 1], [], []>} : vector<8x128xbf16>, vector<128x384xbf16>, vector<8x384xf32> -> vector<8x384xf32>
    %107 = vector.extract_strided_slice %104 {offsets = [0, 0], sizes = [8, 128], strides = [1, 1]} : vector<8x384xf32> to vector<8x128xf32>
    %108 = vector.extract_strided_slice %106 {offsets = [0, 0], sizes = [8, 128], strides = [1, 1]} : vector<8x384xf32> to vector<8x128xf32>
    %109 = arith.addf %107, %108 : vector<8x128xf32>
    %110 = arith.negf %109 : vector<8x128xf32>
    %111 = math.exp %110 : vector<8x128xf32>
    %cst_40 = arith.constant 1.000000e+00 : f32
    %112 = vector.broadcast %cst_40 : f32 to vector<8x128xf32>
    %113 = arith.addf %112, %111 : vector<8x128xf32>
    %114 = arith.divf %112, %113 : vector<8x128xf32>
    %115 = vector.extract_strided_slice %104 {offsets = [0, 128], sizes = [8, 128], strides = [1, 1]} : vector<8x384xf32> to vector<8x128xf32>
    %116 = vector.extract_strided_slice %106 {offsets = [0, 128], sizes = [8, 128], strides = [1, 1]} : vector<8x384xf32> to vector<8x128xf32>
    %117 = arith.addf %115, %116 : vector<8x128xf32>
    %118 = arith.negf %117 : vector<8x128xf32>
    %119 = math.exp %118 : vector<8x128xf32>
    %cst_41 = arith.constant 1.000000e+00 : f32
    %120 = vector.broadcast %cst_41 : f32 to vector<8x128xf32>
    %121 = arith.addf %120, %119 : vector<8x128xf32>
    %122 = arith.divf %120, %121 : vector<8x128xf32>
    %123 = vector.extract_strided_slice %104 {offsets = [0, 256], sizes = [8, 128], strides = [1, 1]} : vector<8x384xf32> to vector<8x128xf32>
    %124 = vector.extract_strided_slice %106 {offsets = [0, 256], sizes = [8, 128], strides = [1, 1]} : vector<8x384xf32> to vector<8x128xf32>
    %125 = vector.broadcast %11 : vector<1x128xf32> to vector<8x128xf32>
    %126 = arith.addf %124, %125 : vector<8x128xf32>
    %127 = arith.mulf %114, %126 : vector<8x128xf32>
    %128 = arith.addf %123, %127 : vector<8x128xf32>
    %129 = math.tanh %128 : vector<8x128xf32>
    %cst_42 = arith.constant 1.000000e+00 : f32
    %130 = vector.broadcast %cst_42 : f32 to vector<8x128xf32>
    %131 = arith.subf %130, %122 : vector<8x128xf32>
    %132 = arith.mulf %131, %129 : vector<8x128xf32>
    %133 = arith.mulf %122, %92 : vector<8x128xf32>
    %134 = arith.addf %132, %133 : vector<8x128xf32>
    %135 = arith.addi %15, %c2_i32 : i32
    %136 = vector.broadcast %135 : i32 to vector<8x1xi32>
    %137 = arith.cmpi eq, %14, %136 : vector<8x1xi32>
    %c0_43 = arith.constant 0 : index
    %c0_44 = arith.constant 0 : index
    %138 = vector.load %arg7[%c0_43, %c0_44] : memref<8x128xf32, #tpu.memory_space<vmem>>, vector<8x128xf32>
    %139 = vector.shape_cast %137 : vector<8x1xi1> to vector<8x1xi1>
    %140 = vector.broadcast %139 : vector<8x1xi1> to vector<8x128xi1>
    %141 = arith.select %140, %134, %138 : vector<8x128xi1>, vector<8x128xf32>
    %c0_45 = arith.constant 0 : index
    %c0_46 = arith.constant 0 : index
    %142 = vector.load %arg7[%c0_45, %c0_46] : memref<8x128xf32, #tpu.memory_space<vmem>>, vector<8x128xf32>
    tpu.vector_store %arg7[%c0_45, %c0_46], %141 {strides = array<i32>} : memref<8x128xf32, #tpu.memory_space<vmem>>, vector<8x128xf32>,
    %c3_i32 = arith.constant 3 : i32
    %c8_i32_47 = arith.constant 8 : i32
    %143 = arith.muli %c3_i32, %c8_i32_47 : i32
    %144 = tpu.assume_multiple %143, 8 : i32
    %145 = arith.index_cast %144 : i32 to index
    %c0_48 = arith.constant 0 : index
    %146 = vector.load %arg9[%145, %c0_48] : memref<128x384xf32, #tpu.memory_space<vmem>>, vector<8x384xf32>
    %147 = arith.truncf %134 : vector<8x128xf32> to vector<8x128xbf16>
    %cst_49 = arith.constant dense<0.000000e+00> : vector<8x384xf32>
    %148 = tpu.matmul %147, %10, %cst_49 {dimension_numbers = #tpu.dot_dimension_numbers<[1], [0], [0], [1], [0, 0, 1, 1], [], []>} : vector<8x128xbf16>, vector<128x384xbf16>, vector<8x384xf32> -> vector<8x384xf32>
    %149 = vector.extract_strided_slice %146 {offsets = [0, 0], sizes = [8, 128], strides = [1, 1]} : vector<8x384xf32> to vector<8x128xf32>
    %150 = vector.extract_strided_slice %148 {offsets = [0, 0], sizes = [8, 128], strides = [1, 1]} : vector<8x384xf32> to vector<8x128xf32>
    %151 = arith.addf %149, %150 : vector<8x128xf32>
    %152 = arith.negf %151 : vector<8x128xf32>
    %153 = math.exp %152 : vector<8x128xf32>
    %cst_50 = arith.constant 1.000000e+00 : f32
    %154 = vector.broadcast %cst_50 : f32 to vector<8x128xf32>
    %155 = arith.addf %154, %153 : vector<8x128xf32>
    %156 = arith.divf %154, %155 : vector<8x128xf32>
    %157 = vector.extract_strided_slice %146 {offsets = [0, 128], sizes = [8, 128], strides = [1, 1]} : vector<8x384xf32> to vector<8x128xf32>
    %158 = vector.extract_strided_slice %148 {offsets = [0, 128], sizes = [8, 128], strides = [1, 1]} : vector<8x384xf32> to vector<8x128xf32>
    %159 = arith.addf %157, %158 : vector<8x128xf32>
    %160 = arith.negf %159 : vector<8x128xf32>
    %161 = math.exp %160 : vector<8x128xf32>
    %cst_51 = arith.constant 1.000000e+00 : f32
    %162 = vector.broadcast %cst_51 : f32 to vector<8x128xf32>
    %163 = arith.addf %162, %161 : vector<8x128xf32>
    %164 = arith.divf %162, %163 : vector<8x128xf32>
    %165 = vector.extract_strided_slice %146 {offsets = [0, 256], sizes = [8, 128], strides = [1, 1]} : vector<8x384xf32> to vector<8x128xf32>
    %166 = vector.extract_strided_slice %148 {offsets = [0, 256], sizes = [8, 128], strides = [1, 1]} : vector<8x384xf32> to vector<8x128xf32>
    %167 = vector.broadcast %11 : vector<1x128xf32> to vector<8x128xf32>
    %168 = arith.addf %166, %167 : vector<8x128xf32>
    %169 = arith.mulf %156, %168 : vector<8x128xf32>
    %170 = arith.addf %165, %169 : vector<8x128xf32>
    %171 = math.tanh %170 : vector<8x128xf32>
    %cst_52 = arith.constant 1.000000e+00 : f32
    %172 = vector.broadcast %cst_52 : f32 to vector<8x128xf32>
    %173 = arith.subf %172, %164 : vector<8x128xf32>
    %174 = arith.mulf %173, %171 : vector<8x128xf32>
    %175 = arith.mulf %164, %134 : vector<8x128xf32>
    %176 = arith.addf %174, %175 : vector<8x128xf32>
    %177 = arith.addi %15, %c3_i32 : i32
    %178 = vector.broadcast %177 : i32 to vector<8x1xi32>
    %179 = arith.cmpi eq, %14, %178 : vector<8x1xi32>
    %c0_53 = arith.constant 0 : index
    %c0_54 = arith.constant 0 : index
    %180 = vector.load %arg7[%c0_53, %c0_54] : memref<8x128xf32, #tpu.memory_space<vmem>>, vector<8x128xf32>
    %181 = vector.shape_cast %179 : vector<8x1xi1> to vector<8x1xi1>
    %182 = vector.broadcast %181 : vector<8x1xi1> to vector<8x128xi1>
    %183 = arith.select %182, %176, %180 : vector<8x128xi1>, vector<8x128xf32>
    %c0_55 = arith.constant 0 : index
    %c0_56 = arith.constant 0 : index
    %184 = vector.load %arg7[%c0_55, %c0_56] : memref<8x128xf32, #tpu.memory_space<vmem>>, vector<8x128xf32>
    tpu.vector_store %arg7[%c0_55, %c0_56], %183 {strides = array<i32>} : memref<8x128xf32, #tpu.memory_space<vmem>>, vector<8x128xf32>,
    %c4_i32 = arith.constant 4 : i32
    %c8_i32_57 = arith.constant 8 : i32
    %185 = arith.muli %c4_i32, %c8_i32_57 : i32
    %186 = tpu.assume_multiple %185, 8 : i32
    %187 = arith.index_cast %186 : i32 to index
    %c0_58 = arith.constant 0 : index
    %188 = vector.load %arg9[%187, %c0_58] : memref<128x384xf32, #tpu.memory_space<vmem>>, vector<8x384xf32>
    %189 = arith.truncf %176 : vector<8x128xf32> to vector<8x128xbf16>
    %cst_59 = arith.constant dense<0.000000e+00> : vector<8x384xf32>
    %190 = tpu.matmul %189, %10, %cst_59 {dimension_numbers = #tpu.dot_dimension_numbers<[1], [0], [0], [1], [0, 0, 1, 1], [], []>} : vector<8x128xbf16>, vector<128x384xbf16>, vector<8x384xf32> -> vector<8x384xf32>
    %191 = vector.extract_strided_slice %188 {offsets = [0, 0], sizes = [8, 128], strides = [1, 1]} : vector<8x384xf32> to vector<8x128xf32>
    %192 = vector.extract_strided_slice %190 {offsets = [0, 0], sizes = [8, 128], strides = [1, 1]} : vector<8x384xf32> to vector<8x128xf32>
    %193 = arith.addf %191, %192 : vector<8x128xf32>
    %194 = arith.negf %193 : vector<8x128xf32>
    %195 = math.exp %194 : vector<8x128xf32>
    %cst_60 = arith.constant 1.000000e+00 : f32
    %196 = vector.broadcast %cst_60 : f32 to vector<8x128xf32>
    %197 = arith.addf %196, %195 : vector<8x128xf32>
    %198 = arith.divf %196, %197 : vector<8x128xf32>
    %199 = vector.extract_strided_slice %188 {offsets = [0, 128], sizes = [8, 128], strides = [1, 1]} : vector<8x384xf32> to vector<8x128xf32>
    %200 = vector.extract_strided_slice %190 {offsets = [0, 128], sizes = [8, 128], strides = [1, 1]} : vector<8x384xf32> to vector<8x128xf32>
    %201 = arith.addf %199, %200 : vector<8x128xf32>
    %202 = arith.negf %201 : vector<8x128xf32>
    %203 = math.exp %202 : vector<8x128xf32>
    %cst_61 = arith.constant 1.000000e+00 : f32
    %204 = vector.broadcast %cst_61 : f32 to vector<8x128xf32>
    %205 = arith.addf %204, %203 : vector<8x128xf32>
    %206 = arith.divf %204, %205 : vector<8x128xf32>
    %207 = vector.extract_strided_slice %188 {offsets = [0, 256], sizes = [8, 128], strides = [1, 1]} : vector<8x384xf32> to vector<8x128xf32>
    %208 = vector.extract_strided_slice %190 {offsets = [0, 256], sizes = [8, 128], strides = [1, 1]} : vector<8x384xf32> to vector<8x128xf32>
    %209 = vector.broadcast %11 : vector<1x128xf32> to vector<8x128xf32>
    %210 = arith.addf %208, %209 : vector<8x128xf32>
    %211 = arith.mulf %198, %210 : vector<8x128xf32>
    %212 = arith.addf %207, %211 : vector<8x128xf32>
    %213 = math.tanh %212 : vector<8x128xf32>
    %cst_62 = arith.constant 1.000000e+00 : f32
    %214 = vector.broadcast %cst_62 : f32 to vector<8x128xf32>
    %215 = arith.subf %214, %206 : vector<8x128xf32>
    %216 = arith.mulf %215, %213 : vector<8x128xf32>
    %217 = arith.mulf %206, %176 : vector<8x128xf32>
    %218 = arith.addf %216, %217 : vector<8x128xf32>
    %219 = arith.addi %15, %c4_i32 : i32
    %220 = vector.broadcast %219 : i32 to vector<8x1xi32>
    %221 = arith.cmpi eq, %14, %220 : vector<8x1xi32>
    %c0_63 = arith.constant 0 : index
    %c0_64 = arith.constant 0 : index
    %222 = vector.load %arg7[%c0_63, %c0_64] : memref<8x128xf32, #tpu.memory_space<vmem>>, vector<8x128xf32>
    %223 = vector.shape_cast %221 : vector<8x1xi1> to vector<8x1xi1>
    %224 = vector.broadcast %223 : vector<8x1xi1> to vector<8x128xi1>
    %225 = arith.select %224, %218, %222 : vector<8x128xi1>, vector<8x128xf32>
    %c0_65 = arith.constant 0 : index
    %c0_66 = arith.constant 0 : index
    %226 = vector.load %arg7[%c0_65, %c0_66] : memref<8x128xf32, #tpu.memory_space<vmem>>, vector<8x128xf32>
    tpu.vector_store %arg7[%c0_65, %c0_66], %225 {strides = array<i32>} : memref<8x128xf32, #tpu.memory_space<vmem>>, vector<8x128xf32>,
    %c5_i32 = arith.constant 5 : i32
    %c8_i32_67 = arith.constant 8 : i32
    %227 = arith.muli %c5_i32, %c8_i32_67 : i32
    %228 = tpu.assume_multiple %227, 8 : i32
    %229 = arith.index_cast %228 : i32 to index
    %c0_68 = arith.constant 0 : index
    %230 = vector.load %arg9[%229, %c0_68] : memref<128x384xf32, #tpu.memory_space<vmem>>, vector<8x384xf32>
    %231 = arith.truncf %218 : vector<8x128xf32> to vector<8x128xbf16>
    %cst_69 = arith.constant dense<0.000000e+00> : vector<8x384xf32>
    %232 = tpu.matmul %231, %10, %cst_69 {dimension_numbers = #tpu.dot_dimension_numbers<[1], [0], [0], [1], [0, 0, 1, 1], [], []>} : vector<8x128xbf16>, vector<128x384xbf16>, vector<8x384xf32> -> vector<8x384xf32>
    %233 = vector.extract_strided_slice %230 {offsets = [0, 0], sizes = [8, 128], strides = [1, 1]} : vector<8x384xf32> to vector<8x128xf32>
    %234 = vector.extract_strided_slice %232 {offsets = [0, 0], sizes = [8, 128], strides = [1, 1]} : vector<8x384xf32> to vector<8x128xf32>
    %235 = arith.addf %233, %234 : vector<8x128xf32>
    %236 = arith.negf %235 : vector<8x128xf32>
    %237 = math.exp %236 : vector<8x128xf32>
    %cst_70 = arith.constant 1.000000e+00 : f32
    %238 = vector.broadcast %cst_70 : f32 to vector<8x128xf32>
    %239 = arith.addf %238, %237 : vector<8x128xf32>
    %240 = arith.divf %238, %239 : vector<8x128xf32>
    %241 = vector.extract_strided_slice %230 {offsets = [0, 128], sizes = [8, 128], strides = [1, 1]} : vector<8x384xf32> to vector<8x128xf32>
    %242 = vector.extract_strided_slice %232 {offsets = [0, 128], sizes = [8, 128], strides = [1, 1]} : vector<8x384xf32> to vector<8x128xf32>
    %243 = arith.addf %241, %242 : vector<8x128xf32>
    %244 = arith.negf %243 : vector<8x128xf32>
    %245 = math.exp %244 : vector<8x128xf32>
    %cst_71 = arith.constant 1.000000e+00 : f32
    %246 = vector.broadcast %cst_71 : f32 to vector<8x128xf32>
    %247 = arith.addf %246, %245 : vector<8x128xf32>
    %248 = arith.divf %246, %247 : vector<8x128xf32>
    %249 = vector.extract_strided_slice %230 {offsets = [0, 256], sizes = [8, 128], strides = [1, 1]} : vector<8x384xf32> to vector<8x128xf32>
    %250 = vector.extract_strided_slice %232 {offsets = [0, 256], sizes = [8, 128], strides = [1, 1]} : vector<8x384xf32> to vector<8x128xf32>
    %251 = vector.broadcast %11 : vector<1x128xf32> to vector<8x128xf32>
    %252 = arith.addf %250, %251 : vector<8x128xf32>
    %253 = arith.mulf %240, %252 : vector<8x128xf32>
    %254 = arith.addf %249, %253 : vector<8x128xf32>
    %255 = math.tanh %254 : vector<8x128xf32>
    %cst_72 = arith.constant 1.000000e+00 : f32
    %256 = vector.broadcast %cst_72 : f32 to vector<8x128xf32>
    %257 = arith.subf %256, %248 : vector<8x128xf32>
    %258 = arith.mulf %257, %255 : vector<8x128xf32>
    %259 = arith.mulf %248, %218 : vector<8x128xf32>
    %260 = arith.addf %258, %259 : vector<8x128xf32>
    %261 = arith.addi %15, %c5_i32 : i32
    %262 = vector.broadcast %261 : i32 to vector<8x1xi32>
    %263 = arith.cmpi eq, %14, %262 : vector<8x1xi32>
    %c0_73 = arith.constant 0 : index
    %c0_74 = arith.constant 0 : index
    %264 = vector.load %arg7[%c0_73, %c0_74] : memref<8x128xf32, #tpu.memory_space<vmem>>, vector<8x128xf32>
    %265 = vector.shape_cast %263 : vector<8x1xi1> to vector<8x1xi1>
    %266 = vector.broadcast %265 : vector<8x1xi1> to vector<8x128xi1>
    %267 = arith.select %266, %260, %264 : vector<8x128xi1>, vector<8x128xf32>
    %c0_75 = arith.constant 0 : index
    %c0_76 = arith.constant 0 : index
    %268 = vector.load %arg7[%c0_75, %c0_76] : memref<8x128xf32, #tpu.memory_space<vmem>>, vector<8x128xf32>
    tpu.vector_store %arg7[%c0_75, %c0_76], %267 {strides = array<i32>} : memref<8x128xf32, #tpu.memory_space<vmem>>, vector<8x128xf32>,
    %c6_i32 = arith.constant 6 : i32
    %c8_i32_77 = arith.constant 8 : i32
    %269 = arith.muli %c6_i32, %c8_i32_77 : i32
    %270 = tpu.assume_multiple %269, 8 : i32
    %271 = arith.index_cast %270 : i32 to index
    %c0_78 = arith.constant 0 : index
    %272 = vector.load %arg9[%271, %c0_78] : memref<128x384xf32, #tpu.memory_space<vmem>>, vector<8x384xf32>
    %273 = arith.truncf %260 : vector<8x128xf32> to vector<8x128xbf16>
    %cst_79 = arith.constant dense<0.000000e+00> : vector<8x384xf32>
    %274 = tpu.matmul %273, %10, %cst_79 {dimension_numbers = #tpu.dot_dimension_numbers<[1], [0], [0], [1], [0, 0, 1, 1], [], []>} : vector<8x128xbf16>, vector<128x384xbf16>, vector<8x384xf32> -> vector<8x384xf32>
    %275 = vector.extract_strided_slice %272 {offsets = [0, 0], sizes = [8, 128], strides = [1, 1]} : vector<8x384xf32> to vector<8x128xf32>
    %276 = vector.extract_strided_slice %274 {offsets = [0, 0], sizes = [8, 128], strides = [1, 1]} : vector<8x384xf32> to vector<8x128xf32>
    %277 = arith.addf %275, %276 : vector<8x128xf32>
    %278 = arith.negf %277 : vector<8x128xf32>
    %279 = math.exp %278 : vector<8x128xf32>
    %cst_80 = arith.constant 1.000000e+00 : f32
    %280 = vector.broadcast %cst_80 : f32 to vector<8x128xf32>
    %281 = arith.addf %280, %279 : vector<8x128xf32>
    %282 = arith.divf %280, %281 : vector<8x128xf32>
    %283 = vector.extract_strided_slice %272 {offsets = [0, 128], sizes = [8, 128], strides = [1, 1]} : vector<8x384xf32> to vector<8x128xf32>
    %284 = vector.extract_strided_slice %274 {offsets = [0, 128], sizes = [8, 128], strides = [1, 1]} : vector<8x384xf32> to vector<8x128xf32>
    %285 = arith.addf %283, %284 : vector<8x128xf32>
    %286 = arith.negf %285 : vector<8x128xf32>
    %287 = math.exp %286 : vector<8x128xf32>
    %cst_81 = arith.constant 1.000000e+00 : f32
    %288 = vector.broadcast %cst_81 : f32 to vector<8x128xf32>
    %289 = arith.addf %288, %287 : vector<8x128xf32>
    %290 = arith.divf %288, %289 : vector<8x128xf32>
    %291 = vector.extract_strided_slice %272 {offsets = [0, 256], sizes = [8, 128], strides = [1, 1]} : vector<8x384xf32> to vector<8x128xf32>
    %292 = vector.extract_strided_slice %274 {offsets = [0, 256], sizes = [8, 128], strides = [1, 1]} : vector<8x384xf32> to vector<8x128xf32>
    %293 = vector.broadcast %11 : vector<1x128xf32> to vector<8x128xf32>
    %294 = arith.addf %292, %293 : vector<8x128xf32>
    %295 = arith.mulf %282, %294 : vector<8x128xf32>
    %296 = arith.addf %291, %295 : vector<8x128xf32>
    %297 = math.tanh %296 : vector<8x128xf32>
    %cst_82 = arith.constant 1.000000e+00 : f32
    %298 = vector.broadcast %cst_82 : f32 to vector<8x128xf32>
    %299 = arith.subf %298, %290 : vector<8x128xf32>
    %300 = arith.mulf %299, %297 : vector<8x128xf32>
    %301 = arith.mulf %290, %260 : vector<8x128xf32>
    %302 = arith.addf %300, %301 : vector<8x128xf32>
    %303 = arith.addi %15, %c6_i32 : i32
    %304 = vector.broadcast %303 : i32 to vector<8x1xi32>
    %305 = arith.cmpi eq, %14, %304 : vector<8x1xi32>
    %c0_83 = arith.constant 0 : index
    %c0_84 = arith.constant 0 : index
    %306 = vector.load %arg7[%c0_83, %c0_84] : memref<8x128xf32, #tpu.memory_space<vmem>>, vector<8x128xf32>
    %307 = vector.shape_cast %305 : vector<8x1xi1> to vector<8x1xi1>
    %308 = vector.broadcast %307 : vector<8x1xi1> to vector<8x128xi1>
    %309 = arith.select %308, %302, %306 : vector<8x128xi1>, vector<8x128xf32>
    %c0_85 = arith.constant 0 : index
    %c0_86 = arith.constant 0 : index
    %310 = vector.load %arg7[%c0_85, %c0_86] : memref<8x128xf32, #tpu.memory_space<vmem>>, vector<8x128xf32>
    tpu.vector_store %arg7[%c0_85, %c0_86], %309 {strides = array<i32>} : memref<8x128xf32, #tpu.memory_space<vmem>>, vector<8x128xf32>,
    %c7_i32 = arith.constant 7 : i32
    %c8_i32_87 = arith.constant 8 : i32
    %311 = arith.muli %c7_i32, %c8_i32_87 : i32
    %312 = tpu.assume_multiple %311, 8 : i32
    %313 = arith.index_cast %312 : i32 to index
    %c0_88 = arith.constant 0 : index
    %314 = vector.load %arg9[%313, %c0_88] : memref<128x384xf32, #tpu.memory_space<vmem>>, vector<8x384xf32>
    %315 = arith.truncf %302 : vector<8x128xf32> to vector<8x128xbf16>
    %cst_89 = arith.constant dense<0.000000e+00> : vector<8x384xf32>
    %316 = tpu.matmul %315, %10, %cst_89 {dimension_numbers = #tpu.dot_dimension_numbers<[1], [0], [0], [1], [0, 0, 1, 1], [], []>} : vector<8x128xbf16>, vector<128x384xbf16>, vector<8x384xf32> -> vector<8x384xf32>
    %317 = vector.extract_strided_slice %314 {offsets = [0, 0], sizes = [8, 128], strides = [1, 1]} : vector<8x384xf32> to vector<8x128xf32>
    %318 = vector.extract_strided_slice %316 {offsets = [0, 0], sizes = [8, 128], strides = [1, 1]} : vector<8x384xf32> to vector<8x128xf32>
    %319 = arith.addf %317, %318 : vector<8x128xf32>
    %320 = arith.negf %319 : vector<8x128xf32>
    %321 = math.exp %320 : vector<8x128xf32>
    %cst_90 = arith.constant 1.000000e+00 : f32
    %322 = vector.broadcast %cst_90 : f32 to vector<8x128xf32>
    %323 = arith.addf %322, %321 : vector<8x128xf32>
    %324 = arith.divf %322, %323 : vector<8x128xf32>
    %325 = vector.extract_strided_slice %314 {offsets = [0, 128], sizes = [8, 128], strides = [1, 1]} : vector<8x384xf32> to vector<8x128xf32>
    %326 = vector.extract_strided_slice %316 {offsets = [0, 128], sizes = [8, 128], strides = [1, 1]} : vector<8x384xf32> to vector<8x128xf32>
    %327 = arith.addf %325, %326 : vector<8x128xf32>
    %328 = arith.negf %327 : vector<8x128xf32>
    %329 = math.exp %328 : vector<8x128xf32>
    %cst_91 = arith.constant 1.000000e+00 : f32
    %330 = vector.broadcast %cst_91 : f32 to vector<8x128xf32>
    %331 = arith.addf %330, %329 : vector<8x128xf32>
    %332 = arith.divf %330, %331 : vector<8x128xf32>
    %333 = vector.extract_strided_slice %314 {offsets = [0, 256], sizes = [8, 128], strides = [1, 1]} : vector<8x384xf32> to vector<8x128xf32>
    %334 = vector.extract_strided_slice %316 {offsets = [0, 256], sizes = [8, 128], strides = [1, 1]} : vector<8x384xf32> to vector<8x128xf32>
    %335 = vector.broadcast %11 : vector<1x128xf32> to vector<8x128xf32>
    %336 = arith.addf %334, %335 : vector<8x128xf32>
    %337 = arith.mulf %324, %336 : vector<8x128xf32>
    %338 = arith.addf %333, %337 : vector<8x128xf32>
    %339 = math.tanh %338 : vector<8x128xf32>
    %cst_92 = arith.constant 1.000000e+00 : f32
    %340 = vector.broadcast %cst_92 : f32 to vector<8x128xf32>
    %341 = arith.subf %340, %332 : vector<8x128xf32>
    %342 = arith.mulf %341, %339 : vector<8x128xf32>
    %343 = arith.mulf %332, %302 : vector<8x128xf32>
    %344 = arith.addf %342, %343 : vector<8x128xf32>
    %345 = arith.addi %15, %c7_i32 : i32
    %346 = vector.broadcast %345 : i32 to vector<8x1xi32>
    %347 = arith.cmpi eq, %14, %346 : vector<8x1xi32>
    %c0_93 = arith.constant 0 : index
    %c0_94 = arith.constant 0 : index
    %348 = vector.load %arg7[%c0_93, %c0_94] : memref<8x128xf32, #tpu.memory_space<vmem>>, vector<8x128xf32>
    %349 = vector.shape_cast %347 : vector<8x1xi1> to vector<8x1xi1>
    %350 = vector.broadcast %349 : vector<8x1xi1> to vector<8x128xi1>
    %351 = arith.select %350, %344, %348 : vector<8x128xi1>, vector<8x128xf32>
    %c0_95 = arith.constant 0 : index
    %c0_96 = arith.constant 0 : index
    %352 = vector.load %arg7[%c0_95, %c0_96] : memref<8x128xf32, #tpu.memory_space<vmem>>, vector<8x128xf32>
    tpu.vector_store %arg7[%c0_95, %c0_96], %351 {strides = array<i32>} : memref<8x128xf32, #tpu.memory_space<vmem>>, vector<8x128xf32>,
    %c8_i32_97 = arith.constant 8 : i32
    %c8_i32_98 = arith.constant 8 : i32
    %353 = arith.muli %c8_i32_97, %c8_i32_98 : i32
    %354 = tpu.assume_multiple %353, 8 : i32
    %355 = arith.index_cast %354 : i32 to index
    %c0_99 = arith.constant 0 : index
    %356 = vector.load %arg9[%355, %c0_99] : memref<128x384xf32, #tpu.memory_space<vmem>>, vector<8x384xf32>
    %357 = arith.truncf %344 : vector<8x128xf32> to vector<8x128xbf16>
    %cst_100 = arith.constant dense<0.000000e+00> : vector<8x384xf32>
    %358 = tpu.matmul %357, %10, %cst_100 {dimension_numbers = #tpu.dot_dimension_numbers<[1], [0], [0], [1], [0, 0, 1, 1], [], []>} : vector<8x128xbf16>, vector<128x384xbf16>, vector<8x384xf32> -> vector<8x384xf32>
    %359 = vector.extract_strided_slice %356 {offsets = [0, 0], sizes = [8, 128], strides = [1, 1]} : vector<8x384xf32> to vector<8x128xf32>
    %360 = vector.extract_strided_slice %358 {offsets = [0, 0], sizes = [8, 128], strides = [1, 1]} : vector<8x384xf32> to vector<8x128xf32>
    %361 = arith.addf %359, %360 : vector<8x128xf32>
    %362 = arith.negf %361 : vector<8x128xf32>
    %363 = math.exp %362 : vector<8x128xf32>
    %cst_101 = arith.constant 1.000000e+00 : f32
    %364 = vector.broadcast %cst_101 : f32 to vector<8x128xf32>
    %365 = arith.addf %364, %363 : vector<8x128xf32>
    %366 = arith.divf %364, %365 : vector<8x128xf32>
    %367 = vector.extract_strided_slice %356 {offsets = [0, 128], sizes = [8, 128], strides = [1, 1]} : vector<8x384xf32> to vector<8x128xf32>
    %368 = vector.extract_strided_slice %358 {offsets = [0, 128], sizes = [8, 128], strides = [1, 1]} : vector<8x384xf32> to vector<8x128xf32>
    %369 = arith.addf %367, %368 : vector<8x128xf32>
    %370 = arith.negf %369 : vector<8x128xf32>
    %371 = math.exp %370 : vector<8x128xf32>
    %cst_102 = arith.constant 1.000000e+00 : f32
    %372 = vector.broadcast %cst_102 : f32 to vector<8x128xf32>
    %373 = arith.addf %372, %371 : vector<8x128xf32>
    %374 = arith.divf %372, %373 : vector<8x128xf32>
    %375 = vector.extract_strided_slice %356 {offsets = [0, 256], sizes = [8, 128], strides = [1, 1]} : vector<8x384xf32> to vector<8x128xf32>
    %376 = vector.extract_strided_slice %358 {offsets = [0, 256], sizes = [8, 128], strides = [1, 1]} : vector<8x384xf32> to vector<8x128xf32>
    %377 = vector.broadcast %11 : vector<1x128xf32> to vector<8x128xf32>
    %378 = arith.addf %376, %377 : vector<8x128xf32>
    %379 = arith.mulf %366, %378 : vector<8x128xf32>
    %380 = arith.addf %375, %379 : vector<8x128xf32>
    %381 = math.tanh %380 : vector<8x128xf32>
    %cst_103 = arith.constant 1.000000e+00 : f32
    %382 = vector.broadcast %cst_103 : f32 to vector<8x128xf32>
    %383 = arith.subf %382, %374 : vector<8x128xf32>
    %384 = arith.mulf %383, %381 : vector<8x128xf32>
    %385 = arith.mulf %374, %344 : vector<8x128xf32>
    %386 = arith.addf %384, %385 : vector<8x128xf32>
    %387 = arith.addi %15, %c8_i32_97 : i32
    %388 = vector.broadcast %387 : i32 to vector<8x1xi32>
    %389 = arith.cmpi eq, %14, %388 : vector<8x1xi32>
    %c0_104 = arith.constant 0 : index
    %c0_105 = arith.constant 0 : index
    %390 = vector.load %arg7[%c0_104, %c0_105] : memref<8x128xf32, #tpu.memory_space<vmem>>, vector<8x128xf32>
    %391 = vector.shape_cast %389 : vector<8x1xi1> to vector<8x1xi1>
    %392 = vector.broadcast %391 : vector<8x1xi1> to vector<8x128xi1>
    %393 = arith.select %392, %386, %390 : vector<8x128xi1>, vector<8x128xf32>
    %c0_106 = arith.constant 0 : index
    %c0_107 = arith.constant 0 : index
    %394 = vector.load %arg7[%c0_106, %c0_107] : memref<8x128xf32, #tpu.memory_space<vmem>>, vector<8x128xf32>
    tpu.vector_store %arg7[%c0_106, %c0_107], %393 {strides = array<i32>} : memref<8x128xf32, #tpu.memory_space<vmem>>, vector<8x128xf32>,
    %c9_i32 = arith.constant 9 : i32
    %c8_i32_108 = arith.constant 8 : i32
    %395 = arith.muli %c9_i32, %c8_i32_108 : i32
    %396 = tpu.assume_multiple %395, 8 : i32
    %397 = arith.index_cast %396 : i32 to index
    %c0_109 = arith.constant 0 : index
    %398 = vector.load %arg9[%397, %c0_109] : memref<128x384xf32, #tpu.memory_space<vmem>>, vector<8x384xf32>
    %399 = arith.truncf %386 : vector<8x128xf32> to vector<8x128xbf16>
    %cst_110 = arith.constant dense<0.000000e+00> : vector<8x384xf32>
    %400 = tpu.matmul %399, %10, %cst_110 {dimension_numbers = #tpu.dot_dimension_numbers<[1], [0], [0], [1], [0, 0, 1, 1], [], []>} : vector<8x128xbf16>, vector<128x384xbf16>, vector<8x384xf32> -> vector<8x384xf32>
    %401 = vector.extract_strided_slice %398 {offsets = [0, 0], sizes = [8, 128], strides = [1, 1]} : vector<8x384xf32> to vector<8x128xf32>
    %402 = vector.extract_strided_slice %400 {offsets = [0, 0], sizes = [8, 128], strides = [1, 1]} : vector<8x384xf32> to vector<8x128xf32>
    %403 = arith.addf %401, %402 : vector<8x128xf32>
    %404 = arith.negf %403 : vector<8x128xf32>
    %405 = math.exp %404 : vector<8x128xf32>
    %cst_111 = arith.constant 1.000000e+00 : f32
    %406 = vector.broadcast %cst_111 : f32 to vector<8x128xf32>
    %407 = arith.addf %406, %405 : vector<8x128xf32>
    %408 = arith.divf %406, %407 : vector<8x128xf32>
    %409 = vector.extract_strided_slice %398 {offsets = [0, 128], sizes = [8, 128], strides = [1, 1]} : vector<8x384xf32> to vector<8x128xf32>
    %410 = vector.extract_strided_slice %400 {offsets = [0, 128], sizes = [8, 128], strides = [1, 1]} : vector<8x384xf32> to vector<8x128xf32>
    %411 = arith.addf %409, %410 : vector<8x128xf32>
    %412 = arith.negf %411 : vector<8x128xf32>
    %413 = math.exp %412 : vector<8x128xf32>
    %cst_112 = arith.constant 1.000000e+00 : f32
    %414 = vector.broadcast %cst_112 : f32 to vector<8x128xf32>
    %415 = arith.addf %414, %413 : vector<8x128xf32>
    %416 = arith.divf %414, %415 : vector<8x128xf32>
    %417 = vector.extract_strided_slice %398 {offsets = [0, 256], sizes = [8, 128], strides = [1, 1]} : vector<8x384xf32> to vector<8x128xf32>
    %418 = vector.extract_strided_slice %400 {offsets = [0, 256], sizes = [8, 128], strides = [1, 1]} : vector<8x384xf32> to vector<8x128xf32>
    %419 = vector.broadcast %11 : vector<1x128xf32> to vector<8x128xf32>
    %420 = arith.addf %418, %419 : vector<8x128xf32>
    %421 = arith.mulf %408, %420 : vector<8x128xf32>
    %422 = arith.addf %417, %421 : vector<8x128xf32>
    %423 = math.tanh %422 : vector<8x128xf32>
    %cst_113 = arith.constant 1.000000e+00 : f32
    %424 = vector.broadcast %cst_113 : f32 to vector<8x128xf32>
    %425 = arith.subf %424, %416 : vector<8x128xf32>
    %426 = arith.mulf %425, %423 : vector<8x128xf32>
    %427 = arith.mulf %416, %386 : vector<8x128xf32>
    %428 = arith.addf %426, %427 : vector<8x128xf32>
    %429 = arith.addi %15, %c9_i32 : i32
    %430 = vector.broadcast %429 : i32 to vector<8x1xi32>
    %431 = arith.cmpi eq, %14, %430 : vector<8x1xi32>
    %c0_114 = arith.constant 0 : index
    %c0_115 = arith.constant 0 : index
    %432 = vector.load %arg7[%c0_114, %c0_115] : memref<8x128xf32, #tpu.memory_space<vmem>>, vector<8x128xf32>
    %433 = vector.shape_cast %431 : vector<8x1xi1> to vector<8x1xi1>
    %434 = vector.broadcast %433 : vector<8x1xi1> to vector<8x128xi1>
    %435 = arith.select %434, %428, %432 : vector<8x128xi1>, vector<8x128xf32>
    %c0_116 = arith.constant 0 : index
    %c0_117 = arith.constant 0 : index
    %436 = vector.load %arg7[%c0_116, %c0_117] : memref<8x128xf32, #tpu.memory_space<vmem>>, vector<8x128xf32>
    tpu.vector_store %arg7[%c0_116, %c0_117], %435 {strides = array<i32>} : memref<8x128xf32, #tpu.memory_space<vmem>>, vector<8x128xf32>,
    %c10_i32 = arith.constant 10 : i32
    %c8_i32_118 = arith.constant 8 : i32
    %437 = arith.muli %c10_i32, %c8_i32_118 : i32
    %438 = tpu.assume_multiple %437, 8 : i32
    %439 = arith.index_cast %438 : i32 to index
    %c0_119 = arith.constant 0 : index
    %440 = vector.load %arg9[%439, %c0_119] : memref<128x384xf32, #tpu.memory_space<vmem>>, vector<8x384xf32>
    %441 = arith.truncf %428 : vector<8x128xf32> to vector<8x128xbf16>
    %cst_120 = arith.constant dense<0.000000e+00> : vector<8x384xf32>
    %442 = tpu.matmul %441, %10, %cst_120 {dimension_numbers = #tpu.dot_dimension_numbers<[1], [0], [0], [1], [0, 0, 1, 1], [], []>} : vector<8x128xbf16>, vector<128x384xbf16>, vector<8x384xf32> -> vector<8x384xf32>
    %443 = vector.extract_strided_slice %440 {offsets = [0, 0], sizes = [8, 128], strides = [1, 1]} : vector<8x384xf32> to vector<8x128xf32>
    %444 = vector.extract_strided_slice %442 {offsets = [0, 0], sizes = [8, 128], strides = [1, 1]} : vector<8x384xf32> to vector<8x128xf32>
    %445 = arith.addf %443, %444 : vector<8x128xf32>
    %446 = arith.negf %445 : vector<8x128xf32>
    %447 = math.exp %446 : vector<8x128xf32>
    %cst_121 = arith.constant 1.000000e+00 : f32
    %448 = vector.broadcast %cst_121 : f32 to vector<8x128xf32>
    %449 = arith.addf %448, %447 : vector<8x128xf32>
    %450 = arith.divf %448, %449 : vector<8x128xf32>
    %451 = vector.extract_strided_slice %440 {offsets = [0, 128], sizes = [8, 128], strides = [1, 1]} : vector<8x384xf32> to vector<8x128xf32>
    %452 = vector.extract_strided_slice %442 {offsets = [0, 128], sizes = [8, 128], strides = [1, 1]} : vector<8x384xf32> to vector<8x128xf32>
    %453 = arith.addf %451, %452 : vector<8x128xf32>
    %454 = arith.negf %453 : vector<8x128xf32>
    %455 = math.exp %454 : vector<8x128xf32>
    %cst_122 = arith.constant 1.000000e+00 : f32
    %456 = vector.broadcast %cst_122 : f32 to vector<8x128xf32>
    %457 = arith.addf %456, %455 : vector<8x128xf32>
    %458 = arith.divf %456, %457 : vector<8x128xf32>
    %459 = vector.extract_strided_slice %440 {offsets = [0, 256], sizes = [8, 128], strides = [1, 1]} : vector<8x384xf32> to vector<8x128xf32>
    %460 = vector.extract_strided_slice %442 {offsets = [0, 256], sizes = [8, 128], strides = [1, 1]} : vector<8x384xf32> to vector<8x128xf32>
    %461 = vector.broadcast %11 : vector<1x128xf32> to vector<8x128xf32>
    %462 = arith.addf %460, %461 : vector<8x128xf32>
    %463 = arith.mulf %450, %462 : vector<8x128xf32>
    %464 = arith.addf %459, %463 : vector<8x128xf32>
    %465 = math.tanh %464 : vector<8x128xf32>
    %cst_123 = arith.constant 1.000000e+00 : f32
    %466 = vector.broadcast %cst_123 : f32 to vector<8x128xf32>
    %467 = arith.subf %466, %458 : vector<8x128xf32>
    %468 = arith.mulf %467, %465 : vector<8x128xf32>
    %469 = arith.mulf %458, %428 : vector<8x128xf32>
    %470 = arith.addf %468, %469 : vector<8x128xf32>
    %471 = arith.addi %15, %c10_i32 : i32
    %472 = vector.broadcast %471 : i32 to vector<8x1xi32>
    %473 = arith.cmpi eq, %14, %472 : vector<8x1xi32>
    %c0_124 = arith.constant 0 : index
    %c0_125 = arith.constant 0 : index
    %474 = vector.load %arg7[%c0_124, %c0_125] : memref<8x128xf32, #tpu.memory_space<vmem>>, vector<8x128xf32>
    %475 = vector.shape_cast %473 : vector<8x1xi1> to vector<8x1xi1>
    %476 = vector.broadcast %475 : vector<8x1xi1> to vector<8x128xi1>
    %477 = arith.select %476, %470, %474 : vector<8x128xi1>, vector<8x128xf32>
    %c0_126 = arith.constant 0 : index
    %c0_127 = arith.constant 0 : index
    %478 = vector.load %arg7[%c0_126, %c0_127] : memref<8x128xf32, #tpu.memory_space<vmem>>, vector<8x128xf32>
    tpu.vector_store %arg7[%c0_126, %c0_127], %477 {strides = array<i32>} : memref<8x128xf32, #tpu.memory_space<vmem>>, vector<8x128xf32>,
    %c11_i32 = arith.constant 11 : i32
    %c8_i32_128 = arith.constant 8 : i32
    %479 = arith.muli %c11_i32, %c8_i32_128 : i32
    %480 = tpu.assume_multiple %479, 8 : i32
    %481 = arith.index_cast %480 : i32 to index
    %c0_129 = arith.constant 0 : index
    %482 = vector.load %arg9[%481, %c0_129] : memref<128x384xf32, #tpu.memory_space<vmem>>, vector<8x384xf32>
    %483 = arith.truncf %470 : vector<8x128xf32> to vector<8x128xbf16>
    %cst_130 = arith.constant dense<0.000000e+00> : vector<8x384xf32>
    %484 = tpu.matmul %483, %10, %cst_130 {dimension_numbers = #tpu.dot_dimension_numbers<[1], [0], [0], [1], [0, 0, 1, 1], [], []>} : vector<8x128xbf16>, vector<128x384xbf16>, vector<8x384xf32> -> vector<8x384xf32>
    %485 = vector.extract_strided_slice %482 {offsets = [0, 0], sizes = [8, 128], strides = [1, 1]} : vector<8x384xf32> to vector<8x128xf32>
    %486 = vector.extract_strided_slice %484 {offsets = [0, 0], sizes = [8, 128], strides = [1, 1]} : vector<8x384xf32> to vector<8x128xf32>
    %487 = arith.addf %485, %486 : vector<8x128xf32>
    %488 = arith.negf %487 : vector<8x128xf32>
    %489 = math.exp %488 : vector<8x128xf32>
    %cst_131 = arith.constant 1.000000e+00 : f32
    %490 = vector.broadcast %cst_131 : f32 to vector<8x128xf32>
    %491 = arith.addf %490, %489 : vector<8x128xf32>
    %492 = arith.divf %490, %491 : vector<8x128xf32>
    %493 = vector.extract_strided_slice %482 {offsets = [0, 128], sizes = [8, 128], strides = [1, 1]} : vector<8x384xf32> to vector<8x128xf32>
    %494 = vector.extract_strided_slice %484 {offsets = [0, 128], sizes = [8, 128], strides = [1, 1]} : vector<8x384xf32> to vector<8x128xf32>
    %495 = arith.addf %493, %494 : vector<8x128xf32>
    %496 = arith.negf %495 : vector<8x128xf32>
    %497 = math.exp %496 : vector<8x128xf32>
    %cst_132 = arith.constant 1.000000e+00 : f32
    %498 = vector.broadcast %cst_132 : f32 to vector<8x128xf32>
    %499 = arith.addf %498, %497 : vector<8x128xf32>
    %500 = arith.divf %498, %499 : vector<8x128xf32>
    %501 = vector.extract_strided_slice %482 {offsets = [0, 256], sizes = [8, 128], strides = [1, 1]} : vector<8x384xf32> to vector<8x128xf32>
    %502 = vector.extract_strided_slice %484 {offsets = [0, 256], sizes = [8, 128], strides = [1, 1]} : vector<8x384xf32> to vector<8x128xf32>
    %503 = vector.broadcast %11 : vector<1x128xf32> to vector<8x128xf32>
    %504 = arith.addf %502, %503 : vector<8x128xf32>
    %505 = arith.mulf %492, %504 : vector<8x128xf32>
    %506 = arith.addf %501, %505 : vector<8x128xf32>
    %507 = math.tanh %506 : vector<8x128xf32>
    %cst_133 = arith.constant 1.000000e+00 : f32
    %508 = vector.broadcast %cst_133 : f32 to vector<8x128xf32>
    %509 = arith.subf %508, %500 : vector<8x128xf32>
    %510 = arith.mulf %509, %507 : vector<8x128xf32>
    %511 = arith.mulf %500, %470 : vector<8x128xf32>
    %512 = arith.addf %510, %511 : vector<8x128xf32>
    %513 = arith.addi %15, %c11_i32 : i32
    %514 = vector.broadcast %513 : i32 to vector<8x1xi32>
    %515 = arith.cmpi eq, %14, %514 : vector<8x1xi32>
    %c0_134 = arith.constant 0 : index
    %c0_135 = arith.constant 0 : index
    %516 = vector.load %arg7[%c0_134, %c0_135] : memref<8x128xf32, #tpu.memory_space<vmem>>, vector<8x128xf32>
    %517 = vector.shape_cast %515 : vector<8x1xi1> to vector<8x1xi1>
    %518 = vector.broadcast %517 : vector<8x1xi1> to vector<8x128xi1>
    %519 = arith.select %518, %512, %516 : vector<8x128xi1>, vector<8x128xf32>
    %c0_136 = arith.constant 0 : index
    %c0_137 = arith.constant 0 : index
    %520 = vector.load %arg7[%c0_136, %c0_137] : memref<8x128xf32, #tpu.memory_space<vmem>>, vector<8x128xf32>
    tpu.vector_store %arg7[%c0_136, %c0_137], %519 {strides = array<i32>} : memref<8x128xf32, #tpu.memory_space<vmem>>, vector<8x128xf32>,
    %c12_i32 = arith.constant 12 : i32
    %c8_i32_138 = arith.constant 8 : i32
    %521 = arith.muli %c12_i32, %c8_i32_138 : i32
    %522 = tpu.assume_multiple %521, 8 : i32
    %523 = arith.index_cast %522 : i32 to index
    %c0_139 = arith.constant 0 : index
    %524 = vector.load %arg9[%523, %c0_139] : memref<128x384xf32, #tpu.memory_space<vmem>>, vector<8x384xf32>
    %525 = arith.truncf %512 : vector<8x128xf32> to vector<8x128xbf16>
    %cst_140 = arith.constant dense<0.000000e+00> : vector<8x384xf32>
    %526 = tpu.matmul %525, %10, %cst_140 {dimension_numbers = #tpu.dot_dimension_numbers<[1], [0], [0], [1], [0, 0, 1, 1], [], []>} : vector<8x128xbf16>, vector<128x384xbf16>, vector<8x384xf32> -> vector<8x384xf32>
    %527 = vector.extract_strided_slice %524 {offsets = [0, 0], sizes = [8, 128], strides = [1, 1]} : vector<8x384xf32> to vector<8x128xf32>
    %528 = vector.extract_strided_slice %526 {offsets = [0, 0], sizes = [8, 128], strides = [1, 1]} : vector<8x384xf32> to vector<8x128xf32>
    %529 = arith.addf %527, %528 : vector<8x128xf32>
    %530 = arith.negf %529 : vector<8x128xf32>
    %531 = math.exp %530 : vector<8x128xf32>
    %cst_141 = arith.constant 1.000000e+00 : f32
    %532 = vector.broadcast %cst_141 : f32 to vector<8x128xf32>
    %533 = arith.addf %532, %531 : vector<8x128xf32>
    %534 = arith.divf %532, %533 : vector<8x128xf32>
    %535 = vector.extract_strided_slice %524 {offsets = [0, 128], sizes = [8, 128], strides = [1, 1]} : vector<8x384xf32> to vector<8x128xf32>
    %536 = vector.extract_strided_slice %526 {offsets = [0, 128], sizes = [8, 128], strides = [1, 1]} : vector<8x384xf32> to vector<8x128xf32>
    %537 = arith.addf %535, %536 : vector<8x128xf32>
    %538 = arith.negf %537 : vector<8x128xf32>
    %539 = math.exp %538 : vector<8x128xf32>
    %cst_142 = arith.constant 1.000000e+00 : f32
    %540 = vector.broadcast %cst_142 : f32 to vector<8x128xf32>
    %541 = arith.addf %540, %539 : vector<8x128xf32>
    %542 = arith.divf %540, %541 : vector<8x128xf32>
    %543 = vector.extract_strided_slice %524 {offsets = [0, 256], sizes = [8, 128], strides = [1, 1]} : vector<8x384xf32> to vector<8x128xf32>
    %544 = vector.extract_strided_slice %526 {offsets = [0, 256], sizes = [8, 128], strides = [1, 1]} : vector<8x384xf32> to vector<8x128xf32>
    %545 = vector.broadcast %11 : vector<1x128xf32> to vector<8x128xf32>
    %546 = arith.addf %544, %545 : vector<8x128xf32>
    %547 = arith.mulf %534, %546 : vector<8x128xf32>
    %548 = arith.addf %543, %547 : vector<8x128xf32>
    %549 = math.tanh %548 : vector<8x128xf32>
    %cst_143 = arith.constant 1.000000e+00 : f32
    %550 = vector.broadcast %cst_143 : f32 to vector<8x128xf32>
    %551 = arith.subf %550, %542 : vector<8x128xf32>
    %552 = arith.mulf %551, %549 : vector<8x128xf32>
    %553 = arith.mulf %542, %512 : vector<8x128xf32>
    %554 = arith.addf %552, %553 : vector<8x128xf32>
    %555 = arith.addi %15, %c12_i32 : i32
    %556 = vector.broadcast %555 : i32 to vector<8x1xi32>
    %557 = arith.cmpi eq, %14, %556 : vector<8x1xi32>
    %c0_144 = arith.constant 0 : index
    %c0_145 = arith.constant 0 : index
    %558 = vector.load %arg7[%c0_144, %c0_145] : memref<8x128xf32, #tpu.memory_space<vmem>>, vector<8x128xf32>
    %559 = vector.shape_cast %557 : vector<8x1xi1> to vector<8x1xi1>
    %560 = vector.broadcast %559 : vector<8x1xi1> to vector<8x128xi1>
    %561 = arith.select %560, %554, %558 : vector<8x128xi1>, vector<8x128xf32>
    %c0_146 = arith.constant 0 : index
    %c0_147 = arith.constant 0 : index
    %562 = vector.load %arg7[%c0_146, %c0_147] : memref<8x128xf32, #tpu.memory_space<vmem>>, vector<8x128xf32>
    tpu.vector_store %arg7[%c0_146, %c0_147], %561 {strides = array<i32>} : memref<8x128xf32, #tpu.memory_space<vmem>>, vector<8x128xf32>,
    %c13_i32 = arith.constant 13 : i32
    %c8_i32_148 = arith.constant 8 : i32
    %563 = arith.muli %c13_i32, %c8_i32_148 : i32
    %564 = tpu.assume_multiple %563, 8 : i32
    %565 = arith.index_cast %564 : i32 to index
    %c0_149 = arith.constant 0 : index
    %566 = vector.load %arg9[%565, %c0_149] : memref<128x384xf32, #tpu.memory_space<vmem>>, vector<8x384xf32>
    %567 = arith.truncf %554 : vector<8x128xf32> to vector<8x128xbf16>
    %cst_150 = arith.constant dense<0.000000e+00> : vector<8x384xf32>
    %568 = tpu.matmul %567, %10, %cst_150 {dimension_numbers = #tpu.dot_dimension_numbers<[1], [0], [0], [1], [0, 0, 1, 1], [], []>} : vector<8x128xbf16>, vector<128x384xbf16>, vector<8x384xf32> -> vector<8x384xf32>
    %569 = vector.extract_strided_slice %566 {offsets = [0, 0], sizes = [8, 128], strides = [1, 1]} : vector<8x384xf32> to vector<8x128xf32>
    %570 = vector.extract_strided_slice %568 {offsets = [0, 0], sizes = [8, 128], strides = [1, 1]} : vector<8x384xf32> to vector<8x128xf32>
    %571 = arith.addf %569, %570 : vector<8x128xf32>
    %572 = arith.negf %571 : vector<8x128xf32>
    %573 = math.exp %572 : vector<8x128xf32>
    %cst_151 = arith.constant 1.000000e+00 : f32
    %574 = vector.broadcast %cst_151 : f32 to vector<8x128xf32>
    %575 = arith.addf %574, %573 : vector<8x128xf32>
    %576 = arith.divf %574, %575 : vector<8x128xf32>
    %577 = vector.extract_strided_slice %566 {offsets = [0, 128], sizes = [8, 128], strides = [1, 1]} : vector<8x384xf32> to vector<8x128xf32>
    %578 = vector.extract_strided_slice %568 {offsets = [0, 128], sizes = [8, 128], strides = [1, 1]} : vector<8x384xf32> to vector<8x128xf32>
    %579 = arith.addf %577, %578 : vector<8x128xf32>
    %580 = arith.negf %579 : vector<8x128xf32>
    %581 = math.exp %580 : vector<8x128xf32>
    %cst_152 = arith.constant 1.000000e+00 : f32
    %582 = vector.broadcast %cst_152 : f32 to vector<8x128xf32>
    %583 = arith.addf %582, %581 : vector<8x128xf32>
    %584 = arith.divf %582, %583 : vector<8x128xf32>
    %585 = vector.extract_strided_slice %566 {offsets = [0, 256], sizes = [8, 128], strides = [1, 1]} : vector<8x384xf32> to vector<8x128xf32>
    %586 = vector.extract_strided_slice %568 {offsets = [0, 256], sizes = [8, 128], strides = [1, 1]} : vector<8x384xf32> to vector<8x128xf32>
    %587 = vector.broadcast %11 : vector<1x128xf32> to vector<8x128xf32>
    %588 = arith.addf %586, %587 : vector<8x128xf32>
    %589 = arith.mulf %576, %588 : vector<8x128xf32>
    %590 = arith.addf %585, %589 : vector<8x128xf32>
    %591 = math.tanh %590 : vector<8x128xf32>
    %cst_153 = arith.constant 1.000000e+00 : f32
    %592 = vector.broadcast %cst_153 : f32 to vector<8x128xf32>
    %593 = arith.subf %592, %584 : vector<8x128xf32>
    %594 = arith.mulf %593, %591 : vector<8x128xf32>
    %595 = arith.mulf %584, %554 : vector<8x128xf32>
    %596 = arith.addf %594, %595 : vector<8x128xf32>
    %597 = arith.addi %15, %c13_i32 : i32
    %598 = vector.broadcast %597 : i32 to vector<8x1xi32>
    %599 = arith.cmpi eq, %14, %598 : vector<8x1xi32>
    %c0_154 = arith.constant 0 : index
    %c0_155 = arith.constant 0 : index
    %600 = vector.load %arg7[%c0_154, %c0_155] : memref<8x128xf32, #tpu.memory_space<vmem>>, vector<8x128xf32>
    %601 = vector.shape_cast %599 : vector<8x1xi1> to vector<8x1xi1>
    %602 = vector.broadcast %601 : vector<8x1xi1> to vector<8x128xi1>
    %603 = arith.select %602, %596, %600 : vector<8x128xi1>, vector<8x128xf32>
    %c0_156 = arith.constant 0 : index
    %c0_157 = arith.constant 0 : index
    %604 = vector.load %arg7[%c0_156, %c0_157] : memref<8x128xf32, #tpu.memory_space<vmem>>, vector<8x128xf32>
    tpu.vector_store %arg7[%c0_156, %c0_157], %603 {strides = array<i32>} : memref<8x128xf32, #tpu.memory_space<vmem>>, vector<8x128xf32>,
    %c14_i32 = arith.constant 14 : i32
    %c8_i32_158 = arith.constant 8 : i32
    %605 = arith.muli %c14_i32, %c8_i32_158 : i32
    %606 = tpu.assume_multiple %605, 8 : i32
    %607 = arith.index_cast %606 : i32 to index
    %c0_159 = arith.constant 0 : index
    %608 = vector.load %arg9[%607, %c0_159] : memref<128x384xf32, #tpu.memory_space<vmem>>, vector<8x384xf32>
    %609 = arith.truncf %596 : vector<8x128xf32> to vector<8x128xbf16>
    %cst_160 = arith.constant dense<0.000000e+00> : vector<8x384xf32>
    %610 = tpu.matmul %609, %10, %cst_160 {dimension_numbers = #tpu.dot_dimension_numbers<[1], [0], [0], [1], [0, 0, 1, 1], [], []>} : vector<8x128xbf16>, vector<128x384xbf16>, vector<8x384xf32> -> vector<8x384xf32>
    %611 = vector.extract_strided_slice %608 {offsets = [0, 0], sizes = [8, 128], strides = [1, 1]} : vector<8x384xf32> to vector<8x128xf32>
    %612 = vector.extract_strided_slice %610 {offsets = [0, 0], sizes = [8, 128], strides = [1, 1]} : vector<8x384xf32> to vector<8x128xf32>
    %613 = arith.addf %611, %612 : vector<8x128xf32>
    %614 = arith.negf %613 : vector<8x128xf32>
    %615 = math.exp %614 : vector<8x128xf32>
    %cst_161 = arith.constant 1.000000e+00 : f32
    %616 = vector.broadcast %cst_161 : f32 to vector<8x128xf32>
    %617 = arith.addf %616, %615 : vector<8x128xf32>
    %618 = arith.divf %616, %617 : vector<8x128xf32>
    %619 = vector.extract_strided_slice %608 {offsets = [0, 128], sizes = [8, 128], strides = [1, 1]} : vector<8x384xf32> to vector<8x128xf32>
    %620 = vector.extract_strided_slice %610 {offsets = [0, 128], sizes = [8, 128], strides = [1, 1]} : vector<8x384xf32> to vector<8x128xf32>
    %621 = arith.addf %619, %620 : vector<8x128xf32>
    %622 = arith.negf %621 : vector<8x128xf32>
    %623 = math.exp %622 : vector<8x128xf32>
    %cst_162 = arith.constant 1.000000e+00 : f32
    %624 = vector.broadcast %cst_162 : f32 to vector<8x128xf32>
    %625 = arith.addf %624, %623 : vector<8x128xf32>
    %626 = arith.divf %624, %625 : vector<8x128xf32>
    %627 = vector.extract_strided_slice %608 {offsets = [0, 256], sizes = [8, 128], strides = [1, 1]} : vector<8x384xf32> to vector<8x128xf32>
    %628 = vector.extract_strided_slice %610 {offsets = [0, 256], sizes = [8, 128], strides = [1, 1]} : vector<8x384xf32> to vector<8x128xf32>
    %629 = vector.broadcast %11 : vector<1x128xf32> to vector<8x128xf32>
    %630 = arith.addf %628, %629 : vector<8x128xf32>
    %631 = arith.mulf %618, %630 : vector<8x128xf32>
    %632 = arith.addf %627, %631 : vector<8x128xf32>
    %633 = math.tanh %632 : vector<8x128xf32>
    %cst_163 = arith.constant 1.000000e+00 : f32
    %634 = vector.broadcast %cst_163 : f32 to vector<8x128xf32>
    %635 = arith.subf %634, %626 : vector<8x128xf32>
    %636 = arith.mulf %635, %633 : vector<8x128xf32>
    %637 = arith.mulf %626, %596 : vector<8x128xf32>
    %638 = arith.addf %636, %637 : vector<8x128xf32>
    %639 = arith.addi %15, %c14_i32 : i32
    %640 = vector.broadcast %639 : i32 to vector<8x1xi32>
    %641 = arith.cmpi eq, %14, %640 : vector<8x1xi32>
    %c0_164 = arith.constant 0 : index
    %c0_165 = arith.constant 0 : index
    %642 = vector.load %arg7[%c0_164, %c0_165] : memref<8x128xf32, #tpu.memory_space<vmem>>, vector<8x128xf32>
    %643 = vector.shape_cast %641 : vector<8x1xi1> to vector<8x1xi1>
    %644 = vector.broadcast %643 : vector<8x1xi1> to vector<8x128xi1>
    %645 = arith.select %644, %638, %642 : vector<8x128xi1>, vector<8x128xf32>
    %c0_166 = arith.constant 0 : index
    %c0_167 = arith.constant 0 : index
    %646 = vector.load %arg7[%c0_166, %c0_167] : memref<8x128xf32, #tpu.memory_space<vmem>>, vector<8x128xf32>
    tpu.vector_store %arg7[%c0_166, %c0_167], %645 {strides = array<i32>} : memref<8x128xf32, #tpu.memory_space<vmem>>, vector<8x128xf32>,
    %c15_i32 = arith.constant 15 : i32
    %c8_i32_168 = arith.constant 8 : i32
    %647 = arith.muli %c15_i32, %c8_i32_168 : i32
    %648 = tpu.assume_multiple %647, 8 : i32
    %649 = arith.index_cast %648 : i32 to index
    %c0_169 = arith.constant 0 : index
    %650 = vector.load %arg9[%649, %c0_169] : memref<128x384xf32, #tpu.memory_space<vmem>>, vector<8x384xf32>
    %651 = arith.truncf %638 : vector<8x128xf32> to vector<8x128xbf16>
    %cst_170 = arith.constant dense<0.000000e+00> : vector<8x384xf32>
    %652 = tpu.matmul %651, %10, %cst_170 {dimension_numbers = #tpu.dot_dimension_numbers<[1], [0], [0], [1], [0, 0, 1, 1], [], []>} : vector<8x128xbf16>, vector<128x384xbf16>, vector<8x384xf32> -> vector<8x384xf32>
    %653 = vector.extract_strided_slice %650 {offsets = [0, 0], sizes = [8, 128], strides = [1, 1]} : vector<8x384xf32> to vector<8x128xf32>
    %654 = vector.extract_strided_slice %652 {offsets = [0, 0], sizes = [8, 128], strides = [1, 1]} : vector<8x384xf32> to vector<8x128xf32>
    %655 = arith.addf %653, %654 : vector<8x128xf32>
    %656 = arith.negf %655 : vector<8x128xf32>
    %657 = math.exp %656 : vector<8x128xf32>
    %cst_171 = arith.constant 1.000000e+00 : f32
    %658 = vector.broadcast %cst_171 : f32 to vector<8x128xf32>
    %659 = arith.addf %658, %657 : vector<8x128xf32>
    %660 = arith.divf %658, %659 : vector<8x128xf32>
    %661 = vector.extract_strided_slice %650 {offsets = [0, 128], sizes = [8, 128], strides = [1, 1]} : vector<8x384xf32> to vector<8x128xf32>
    %662 = vector.extract_strided_slice %652 {offsets = [0, 128], sizes = [8, 128], strides = [1, 1]} : vector<8x384xf32> to vector<8x128xf32>
    %663 = arith.addf %661, %662 : vector<8x128xf32>
    %664 = arith.negf %663 : vector<8x128xf32>
    %665 = math.exp %664 : vector<8x128xf32>
    %cst_172 = arith.constant 1.000000e+00 : f32
    %666 = vector.broadcast %cst_172 : f32 to vector<8x128xf32>
    %667 = arith.addf %666, %665 : vector<8x128xf32>
    %668 = arith.divf %666, %667 : vector<8x128xf32>
    %669 = vector.extract_strided_slice %650 {offsets = [0, 256], sizes = [8, 128], strides = [1, 1]} : vector<8x384xf32> to vector<8x128xf32>
    %670 = vector.extract_strided_slice %652 {offsets = [0, 256], sizes = [8, 128], strides = [1, 1]} : vector<8x384xf32> to vector<8x128xf32>
    %671 = vector.broadcast %11 : vector<1x128xf32> to vector<8x128xf32>
    %672 = arith.addf %670, %671 : vector<8x128xf32>
    %673 = arith.mulf %660, %672 : vector<8x128xf32>
    %674 = arith.addf %669, %673 : vector<8x128xf32>
    %675 = math.tanh %674 : vector<8x128xf32>
    %cst_173 = arith.constant 1.000000e+00 : f32
    %676 = vector.broadcast %cst_173 : f32 to vector<8x128xf32>
    %677 = arith.subf %676, %668 : vector<8x128xf32>
    %678 = arith.mulf %677, %675 : vector<8x128xf32>
    %679 = arith.mulf %668, %638 : vector<8x128xf32>
    %680 = arith.addf %678, %679 : vector<8x128xf32>
    %681 = arith.addi %15, %c15_i32 : i32
    %682 = vector.broadcast %681 : i32 to vector<8x1xi32>
    %683 = arith.cmpi eq, %14, %682 : vector<8x1xi32>
    %c0_174 = arith.constant 0 : index
    %c0_175 = arith.constant 0 : index
    %684 = vector.load %arg7[%c0_174, %c0_175] : memref<8x128xf32, #tpu.memory_space<vmem>>, vector<8x128xf32>
    %685 = vector.shape_cast %683 : vector<8x1xi1> to vector<8x1xi1>
    %686 = vector.broadcast %685 : vector<8x1xi1> to vector<8x128xi1>
    %687 = arith.select %686, %680, %684 : vector<8x128xi1>, vector<8x128xf32>
    %c0_176 = arith.constant 0 : index
    %c0_177 = arith.constant 0 : index
    %688 = vector.load %arg7[%c0_176, %c0_177] : memref<8x128xf32, #tpu.memory_space<vmem>>, vector<8x128xf32>
    tpu.vector_store %arg7[%c0_176, %c0_177], %687 {strides = array<i32>} : memref<8x128xf32, #tpu.memory_space<vmem>>, vector<8x128xf32>,
    %c16_i32_178 = arith.constant 16 : i32
    %c0_179 = arith.constant 0 : index
    %c0_180 = arith.constant 0 : index
    %689 = vector.load %arg8[%c0_179, %c0_180] : memref<8x128xf32, #tpu.memory_space<vmem>>, vector<8x128xf32>
    tpu.vector_store %arg8[%c0_179, %c0_180], %680 {strides = array<i32>} : memref<8x128xf32, #tpu.memory_space<vmem>>, vector<8x128xf32>,
    return
  }
  func.func @transform_0(%arg0: i32) -> (i32, i32) {
    %c0_i32 = arith.constant 0 : i32
    %c0_i32_0 = arith.constant 0 : i32
    %c0_i32_1 = arith.constant 0 : i32
    return %c0_i32, %c0_i32_0 : i32, i32
  }
  func.func @transform_1(%arg0: i32) -> (i32, i32) {
    %c0_i32 = arith.constant 0 : i32
    %c0_i32_0 = arith.constant 0 : i32
    return %arg0, %c0_i32 : i32, i32
  }
  func.func @transform_2(%arg0: i32) -> (i32, i32) {
    %c0_i32 = arith.constant 0 : i32
    %c0_i32_0 = arith.constant 0 : i32
    %c0_i32_1 = arith.constant 0 : i32
    return %c0_i32, %c0_i32_0 : i32, i32
  }
  func.func @transform_3(%arg0: i32) -> (i32, i32) {
    %c0_i32 = arith.constant 0 : i32
    %c0_i32_0 = arith.constant 0 : i32
    %c0_i32_1 = arith.constant 0 : i32
    return %c0_i32, %c0_i32_0 : i32, i32
  }
  func.func @transform_4(%arg0: i32) -> (i32, i32) {
    %c0_i32 = arith.constant 0 : i32
    %c0_i32_0 = arith.constant 0 : i32
    %c0_i32_1 = arith.constant 0 : i32
    return %c0_i32, %c0_i32_0 : i32, i32
  }
  func.func @transform_5(%arg0: i32) -> (i32, i32) {
    %c0_i32 = arith.constant 0 : i32
    %c0_i32_0 = arith.constant 0 : i32
    %c0_i32_1 = arith.constant 0 : i32
    return %c0_i32, %c0_i32_0 : i32, i32
  }
  func.func @transform_6(%arg0: i32) -> (i32, i32) {
    %c0_i32 = arith.constant 0 : i32
    %c0_i32_0 = arith.constant 0 : i32
    %c0_i32_1 = arith.constant 0 : i32
    return %c0_i32, %c0_i32_0 : i32, i32
  }
}

module attributes {stable_mosaic.version = 11 : i64} {
  func.func @_gru_kernel(%arg0: i32, %arg1: memref<8x1xi32, #tpu.memory_space<vmem>>, %arg2: memref<128x128xbf16, #tpu.memory_space<vmem>>, %arg3: memref<128x384xbf16, #tpu.memory_space<vmem>>, %arg4: memref<1x384xf32, #tpu.memory_space<vmem>>, %arg5: memref<128x384xbf16, #tpu.memory_space<vmem>>, %arg6: memref<1x128xf32, #tpu.memory_space<vmem>>, %arg7: memref<128x128xbf16, #tpu.memory_space<vmem>>, %arg8: memref<8x128xf32, #tpu.memory_space<vmem>>, %arg9: memref<8x128xf32, #tpu.memory_space<vmem>>, %arg10: memref<128x384xf32, #tpu.memory_space<vmem>>, %arg11: memref<128x128xf32, #tpu.memory_space<vmem>>) attributes {dimension_semantics = [#tpu.dimension_semantics<arbitrary>], iteration_bounds = array<i64: 2>, scalar_prefetch = 0 : i64, scratch_operands = 3 : i64, tpu.core_type = #tpu.core_type<tc>, window_params = [{pipeline_mode = #tpu.pipeline_mode<synchronous>, transform_indices = @transform_0, window_bounds = array<i64: 8, 1>}, {transform_indices = @transform_1, window_bounds = array<i64: 128, 128>}, {pipeline_mode = #tpu.pipeline_mode<synchronous>, transform_indices = @transform_2, window_bounds = array<i64: 128, 384>}, {pipeline_mode = #tpu.pipeline_mode<synchronous>, transform_indices = @transform_3, window_bounds = array<i64: 1, 384>}, {pipeline_mode = #tpu.pipeline_mode<synchronous>, transform_indices = @transform_4, window_bounds = array<i64: 128, 384>}, {pipeline_mode = #tpu.pipeline_mode<synchronous>, transform_indices = @transform_5, window_bounds = array<i64: 1, 128>}, {transform_indices = @transform_6, window_bounds = array<i64: 128, 128>}, {pipeline_mode = #tpu.pipeline_mode<synchronous>, transform_indices = @transform_7, window_bounds = array<i64: 8, 128>}]} {
    %c0_i32 = arith.constant 0 : i32
    %0 = arith.cmpi eq, %arg0, %c0_i32 : i32
    %1 = arith.extui %0 : i1 to i32
    %c0_i32_0 = arith.constant 0 : i32
    %2 = arith.cmpi ne, %1, %c0_i32_0 : i32
    scf.if %2 {
      %cst_201 = arith.constant 0.000000e+00 : f32
      %725 = vector.broadcast %cst_201 : f32 to vector<8x128xf32>
      %c0_202 = arith.constant 0 : index
      %c0_203 = arith.constant 0 : index
      %726 = vector.load %arg9[%c0_202, %c0_203] : memref<8x128xf32, #tpu.memory_space<vmem>>, vector<8x128xf32>
      tpu.vector_store %arg9[%c0_202, %c0_203], %725 {strides = array<i32>} : memref<8x128xf32, #tpu.memory_space<vmem>>, vector<8x128xf32>,
      %cst_204 = arith.constant 0.000000e+00 : f32
      %727 = vector.broadcast %cst_204 : f32 to vector<8x128xf32>
      %c0_205 = arith.constant 0 : index
      %c0_206 = arith.constant 0 : index
      %728 = vector.load %arg8[%c0_205, %c0_206] : memref<8x128xf32, #tpu.memory_space<vmem>>, vector<8x128xf32>
      tpu.vector_store %arg8[%c0_205, %c0_206], %727 {strides = array<i32>} : memref<8x128xf32, #tpu.memory_space<vmem>>, vector<8x128xf32>,
    } else {
    }
    %c0 = arith.constant 0 : index
    %c0_1 = arith.constant 0 : index
    %3 = vector.load %arg2[%c0, %c0_1] : memref<128x128xbf16, #tpu.memory_space<vmem>>, vector<128x128xbf16>
    %c0_2 = arith.constant 0 : index
    %c0_3 = arith.constant 0 : index
    %4 = vector.load %arg3[%c0_2, %c0_3] : memref<128x384xbf16, #tpu.memory_space<vmem>>, vector<128x384xbf16>
    %cst = arith.constant dense<0.000000e+00> : vector<128x384xf32>
    %5 = tpu.matmul %3, %4, %cst {dimension_numbers = #tpu.dot_dimension_numbers<[1], [0], [0], [1], [0, 0, 1, 1], [], []>} : vector<128x128xbf16>, vector<128x384xbf16>, vector<128x384xf32> -> vector<128x384xf32>
    %c0_4 = arith.constant 0 : index
    %c0_5 = arith.constant 0 : index
    %6 = vector.load %arg4[%c0_4, %c0_5] : memref<1x384xf32, #tpu.memory_space<vmem>>, vector<1x384xf32>
    %7 = vector.broadcast %6 : vector<1x384xf32> to vector<128x384xf32>
    %8 = arith.addf %5, %7 : vector<128x384xf32>
    %c0_6 = arith.constant 0 : index
    %c0_7 = arith.constant 0 : index
    %9 = vector.load %arg10[%c0_6, %c0_7] : memref<128x384xf32, #tpu.memory_space<vmem>>, vector<128x384xf32>
    tpu.vector_store %arg10[%c0_6, %c0_7], %8 {strides = array<i32>} : memref<128x384xf32, #tpu.memory_space<vmem>>, vector<128x384xf32>,
    %c0_8 = arith.constant 0 : index
    %c0_9 = arith.constant 0 : index
    %10 = vector.load %arg5[%c0_8, %c0_9] : memref<128x384xbf16, #tpu.memory_space<vmem>>, vector<128x384xbf16>
    %c0_10 = arith.constant 0 : index
    %c0_11 = arith.constant 0 : index
    %11 = vector.load %arg6[%c0_10, %c0_11] : memref<1x128xf32, #tpu.memory_space<vmem>>, vector<1x128xf32>
    %c0_12 = arith.constant 0 : index
    %c0_13 = arith.constant 0 : index
    %12 = vector.load %arg1[%c0_12, %c0_13] : memref<8x1xi32, #tpu.memory_space<vmem>>, vector<8x1xi32>
    %c1_i32 = arith.constant 1 : i32
    %13 = vector.broadcast %c1_i32 : i32 to vector<8x1xi32>
    %14 = arith.subi %12, %13 : vector<8x1xi32>
    %c16_i32 = arith.constant 16 : i32
    %15 = arith.muli %arg0, %c16_i32 : i32
    %c0_14 = arith.constant 0 : index
    %c0_15 = arith.constant 0 : index
    %16 = vector.load %arg9[%c0_14, %c0_15] : memref<8x128xf32, #tpu.memory_space<vmem>>, vector<8x128xf32>
    %c0_i32_16 = arith.constant 0 : i32
    %c8_i32 = arith.constant 8 : i32
    %17 = arith.muli %c0_i32_16, %c8_i32 : i32
    %18 = tpu.assume_multiple %17, 8 : i32
    %19 = arith.index_cast %18 : i32 to index
    %c0_17 = arith.constant 0 : index
    %20 = vector.load %arg10[%19, %c0_17] : memref<128x384xf32, #tpu.memory_space<vmem>>, vector<8x384xf32>
    %21 = arith.truncf %16 : vector<8x128xf32> to vector<8x128xbf16>
    %cst_18 = arith.constant dense<0.000000e+00> : vector<8x384xf32>
    %22 = tpu.matmul %21, %10, %cst_18 {dimension_numbers = #tpu.dot_dimension_numbers<[1], [0], [0], [1], [0, 0, 1, 1], [], []>} : vector<8x128xbf16>, vector<128x384xbf16>, vector<8x384xf32> -> vector<8x384xf32>
    %23 = vector.extract_strided_slice %20 {offsets = [0, 0], sizes = [8, 128], strides = [1, 1]} : vector<8x384xf32> to vector<8x128xf32>
    %24 = vector.extract_strided_slice %22 {offsets = [0, 0], sizes = [8, 128], strides = [1, 1]} : vector<8x384xf32> to vector<8x128xf32>
    %25 = arith.addf %23, %24 : vector<8x128xf32>
    %26 = arith.negf %25 : vector<8x128xf32>
    %27 = math.exp %26 : vector<8x128xf32>
    %cst_19 = arith.constant 1.000000e+00 : f32
    %28 = vector.broadcast %cst_19 : f32 to vector<8x128xf32>
    %29 = arith.addf %28, %27 : vector<8x128xf32>
    %30 = arith.divf %28, %29 : vector<8x128xf32>
    %31 = vector.extract_strided_slice %20 {offsets = [0, 128], sizes = [8, 128], strides = [1, 1]} : vector<8x384xf32> to vector<8x128xf32>
    %32 = vector.extract_strided_slice %22 {offsets = [0, 128], sizes = [8, 128], strides = [1, 1]} : vector<8x384xf32> to vector<8x128xf32>
    %33 = arith.addf %31, %32 : vector<8x128xf32>
    %34 = arith.negf %33 : vector<8x128xf32>
    %35 = math.exp %34 : vector<8x128xf32>
    %cst_20 = arith.constant 1.000000e+00 : f32
    %36 = vector.broadcast %cst_20 : f32 to vector<8x128xf32>
    %37 = arith.addf %36, %35 : vector<8x128xf32>
    %38 = arith.divf %36, %37 : vector<8x128xf32>
    %39 = vector.extract_strided_slice %20 {offsets = [0, 256], sizes = [8, 128], strides = [1, 1]} : vector<8x384xf32> to vector<8x128xf32>
    %40 = vector.extract_strided_slice %22 {offsets = [0, 256], sizes = [8, 128], strides = [1, 1]} : vector<8x384xf32> to vector<8x128xf32>
    %41 = vector.broadcast %11 : vector<1x128xf32> to vector<8x128xf32>
    %42 = arith.addf %40, %41 : vector<8x128xf32>
    %43 = arith.mulf %30, %42 : vector<8x128xf32>
    %44 = arith.addf %39, %43 : vector<8x128xf32>
    %45 = math.tanh %44 : vector<8x128xf32>
    %cst_21 = arith.constant 1.000000e+00 : f32
    %46 = vector.broadcast %cst_21 : f32 to vector<8x128xf32>
    %47 = arith.subf %46, %38 : vector<8x128xf32>
    %48 = arith.mulf %47, %45 : vector<8x128xf32>
    %49 = arith.mulf %38, %16 : vector<8x128xf32>
    %50 = arith.addf %48, %49 : vector<8x128xf32>
    %51 = arith.index_cast %18 : i32 to index
    %c0_22 = arith.constant 0 : index
    %52 = vector.load %arg11[%51, %c0_22] : memref<128x128xf32, #tpu.memory_space<vmem>>, vector<8x128xf32>
    tpu.vector_store %arg11[%51, %c0_22], %50 {strides = array<i32>} : memref<128x128xf32, #tpu.memory_space<vmem>>, vector<8x128xf32>,
    %53 = arith.addi %15, %c0_i32_16 : i32
    %54 = vector.broadcast %53 : i32 to vector<8x1xi32>
    %55 = arith.cmpi eq, %14, %54 : vector<8x1xi32>
    %c0_23 = arith.constant 0 : index
    %c0_24 = arith.constant 0 : index
    %56 = vector.load %arg8[%c0_23, %c0_24] : memref<8x128xf32, #tpu.memory_space<vmem>>, vector<8x128xf32>
    %57 = vector.shape_cast %55 : vector<8x1xi1> to vector<8x1xi1>
    %58 = vector.broadcast %57 : vector<8x1xi1> to vector<8x128xi1>
    %59 = arith.select %58, %50, %56 : vector<8x128xi1>, vector<8x128xf32>
    %c0_25 = arith.constant 0 : index
    %c0_26 = arith.constant 0 : index
    %60 = vector.load %arg8[%c0_25, %c0_26] : memref<8x128xf32, #tpu.memory_space<vmem>>, vector<8x128xf32>
    tpu.vector_store %arg8[%c0_25, %c0_26], %59 {strides = array<i32>} : memref<8x128xf32, #tpu.memory_space<vmem>>, vector<8x128xf32>,
    %c1_i32_27 = arith.constant 1 : i32
    %c8_i32_28 = arith.constant 8 : i32
    %61 = arith.muli %c1_i32_27, %c8_i32_28 : i32
    %62 = tpu.assume_multiple %61, 8 : i32
    %63 = arith.index_cast %62 : i32 to index
    %c0_29 = arith.constant 0 : index
    %64 = vector.load %arg10[%63, %c0_29] : memref<128x384xf32, #tpu.memory_space<vmem>>, vector<8x384xf32>
    %65 = arith.truncf %50 : vector<8x128xf32> to vector<8x128xbf16>
    %cst_30 = arith.constant dense<0.000000e+00> : vector<8x384xf32>
    %66 = tpu.matmul %65, %10, %cst_30 {dimension_numbers = #tpu.dot_dimension_numbers<[1], [0], [0], [1], [0, 0, 1, 1], [], []>} : vector<8x128xbf16>, vector<128x384xbf16>, vector<8x384xf32> -> vector<8x384xf32>
    %67 = vector.extract_strided_slice %64 {offsets = [0, 0], sizes = [8, 128], strides = [1, 1]} : vector<8x384xf32> to vector<8x128xf32>
    %68 = vector.extract_strided_slice %66 {offsets = [0, 0], sizes = [8, 128], strides = [1, 1]} : vector<8x384xf32> to vector<8x128xf32>
    %69 = arith.addf %67, %68 : vector<8x128xf32>
    %70 = arith.negf %69 : vector<8x128xf32>
    %71 = math.exp %70 : vector<8x128xf32>
    %cst_31 = arith.constant 1.000000e+00 : f32
    %72 = vector.broadcast %cst_31 : f32 to vector<8x128xf32>
    %73 = arith.addf %72, %71 : vector<8x128xf32>
    %74 = arith.divf %72, %73 : vector<8x128xf32>
    %75 = vector.extract_strided_slice %64 {offsets = [0, 128], sizes = [8, 128], strides = [1, 1]} : vector<8x384xf32> to vector<8x128xf32>
    %76 = vector.extract_strided_slice %66 {offsets = [0, 128], sizes = [8, 128], strides = [1, 1]} : vector<8x384xf32> to vector<8x128xf32>
    %77 = arith.addf %75, %76 : vector<8x128xf32>
    %78 = arith.negf %77 : vector<8x128xf32>
    %79 = math.exp %78 : vector<8x128xf32>
    %cst_32 = arith.constant 1.000000e+00 : f32
    %80 = vector.broadcast %cst_32 : f32 to vector<8x128xf32>
    %81 = arith.addf %80, %79 : vector<8x128xf32>
    %82 = arith.divf %80, %81 : vector<8x128xf32>
    %83 = vector.extract_strided_slice %64 {offsets = [0, 256], sizes = [8, 128], strides = [1, 1]} : vector<8x384xf32> to vector<8x128xf32>
    %84 = vector.extract_strided_slice %66 {offsets = [0, 256], sizes = [8, 128], strides = [1, 1]} : vector<8x384xf32> to vector<8x128xf32>
    %85 = vector.broadcast %11 : vector<1x128xf32> to vector<8x128xf32>
    %86 = arith.addf %84, %85 : vector<8x128xf32>
    %87 = arith.mulf %74, %86 : vector<8x128xf32>
    %88 = arith.addf %83, %87 : vector<8x128xf32>
    %89 = math.tanh %88 : vector<8x128xf32>
    %cst_33 = arith.constant 1.000000e+00 : f32
    %90 = vector.broadcast %cst_33 : f32 to vector<8x128xf32>
    %91 = arith.subf %90, %82 : vector<8x128xf32>
    %92 = arith.mulf %91, %89 : vector<8x128xf32>
    %93 = arith.mulf %82, %50 : vector<8x128xf32>
    %94 = arith.addf %92, %93 : vector<8x128xf32>
    %95 = arith.index_cast %62 : i32 to index
    %c0_34 = arith.constant 0 : index
    %96 = vector.load %arg11[%95, %c0_34] : memref<128x128xf32, #tpu.memory_space<vmem>>, vector<8x128xf32>
    tpu.vector_store %arg11[%95, %c0_34], %94 {strides = array<i32>} : memref<128x128xf32, #tpu.memory_space<vmem>>, vector<8x128xf32>,
    %97 = arith.addi %15, %c1_i32_27 : i32
    %98 = vector.broadcast %97 : i32 to vector<8x1xi32>
    %99 = arith.cmpi eq, %14, %98 : vector<8x1xi32>
    %c0_35 = arith.constant 0 : index
    %c0_36 = arith.constant 0 : index
    %100 = vector.load %arg8[%c0_35, %c0_36] : memref<8x128xf32, #tpu.memory_space<vmem>>, vector<8x128xf32>
    %101 = vector.shape_cast %99 : vector<8x1xi1> to vector<8x1xi1>
    %102 = vector.broadcast %101 : vector<8x1xi1> to vector<8x128xi1>
    %103 = arith.select %102, %94, %100 : vector<8x128xi1>, vector<8x128xf32>
    %c0_37 = arith.constant 0 : index
    %c0_38 = arith.constant 0 : index
    %104 = vector.load %arg8[%c0_37, %c0_38] : memref<8x128xf32, #tpu.memory_space<vmem>>, vector<8x128xf32>
    tpu.vector_store %arg8[%c0_37, %c0_38], %103 {strides = array<i32>} : memref<8x128xf32, #tpu.memory_space<vmem>>, vector<8x128xf32>,
    %c2_i32 = arith.constant 2 : i32
    %c8_i32_39 = arith.constant 8 : i32
    %105 = arith.muli %c2_i32, %c8_i32_39 : i32
    %106 = tpu.assume_multiple %105, 8 : i32
    %107 = arith.index_cast %106 : i32 to index
    %c0_40 = arith.constant 0 : index
    %108 = vector.load %arg10[%107, %c0_40] : memref<128x384xf32, #tpu.memory_space<vmem>>, vector<8x384xf32>
    %109 = arith.truncf %94 : vector<8x128xf32> to vector<8x128xbf16>
    %cst_41 = arith.constant dense<0.000000e+00> : vector<8x384xf32>
    %110 = tpu.matmul %109, %10, %cst_41 {dimension_numbers = #tpu.dot_dimension_numbers<[1], [0], [0], [1], [0, 0, 1, 1], [], []>} : vector<8x128xbf16>, vector<128x384xbf16>, vector<8x384xf32> -> vector<8x384xf32>
    %111 = vector.extract_strided_slice %108 {offsets = [0, 0], sizes = [8, 128], strides = [1, 1]} : vector<8x384xf32> to vector<8x128xf32>
    %112 = vector.extract_strided_slice %110 {offsets = [0, 0], sizes = [8, 128], strides = [1, 1]} : vector<8x384xf32> to vector<8x128xf32>
    %113 = arith.addf %111, %112 : vector<8x128xf32>
    %114 = arith.negf %113 : vector<8x128xf32>
    %115 = math.exp %114 : vector<8x128xf32>
    %cst_42 = arith.constant 1.000000e+00 : f32
    %116 = vector.broadcast %cst_42 : f32 to vector<8x128xf32>
    %117 = arith.addf %116, %115 : vector<8x128xf32>
    %118 = arith.divf %116, %117 : vector<8x128xf32>
    %119 = vector.extract_strided_slice %108 {offsets = [0, 128], sizes = [8, 128], strides = [1, 1]} : vector<8x384xf32> to vector<8x128xf32>
    %120 = vector.extract_strided_slice %110 {offsets = [0, 128], sizes = [8, 128], strides = [1, 1]} : vector<8x384xf32> to vector<8x128xf32>
    %121 = arith.addf %119, %120 : vector<8x128xf32>
    %122 = arith.negf %121 : vector<8x128xf32>
    %123 = math.exp %122 : vector<8x128xf32>
    %cst_43 = arith.constant 1.000000e+00 : f32
    %124 = vector.broadcast %cst_43 : f32 to vector<8x128xf32>
    %125 = arith.addf %124, %123 : vector<8x128xf32>
    %126 = arith.divf %124, %125 : vector<8x128xf32>
    %127 = vector.extract_strided_slice %108 {offsets = [0, 256], sizes = [8, 128], strides = [1, 1]} : vector<8x384xf32> to vector<8x128xf32>
    %128 = vector.extract_strided_slice %110 {offsets = [0, 256], sizes = [8, 128], strides = [1, 1]} : vector<8x384xf32> to vector<8x128xf32>
    %129 = vector.broadcast %11 : vector<1x128xf32> to vector<8x128xf32>
    %130 = arith.addf %128, %129 : vector<8x128xf32>
    %131 = arith.mulf %118, %130 : vector<8x128xf32>
    %132 = arith.addf %127, %131 : vector<8x128xf32>
    %133 = math.tanh %132 : vector<8x128xf32>
    %cst_44 = arith.constant 1.000000e+00 : f32
    %134 = vector.broadcast %cst_44 : f32 to vector<8x128xf32>
    %135 = arith.subf %134, %126 : vector<8x128xf32>
    %136 = arith.mulf %135, %133 : vector<8x128xf32>
    %137 = arith.mulf %126, %94 : vector<8x128xf32>
    %138 = arith.addf %136, %137 : vector<8x128xf32>
    %139 = arith.index_cast %106 : i32 to index
    %c0_45 = arith.constant 0 : index
    %140 = vector.load %arg11[%139, %c0_45] : memref<128x128xf32, #tpu.memory_space<vmem>>, vector<8x128xf32>
    tpu.vector_store %arg11[%139, %c0_45], %138 {strides = array<i32>} : memref<128x128xf32, #tpu.memory_space<vmem>>, vector<8x128xf32>,
    %141 = arith.addi %15, %c2_i32 : i32
    %142 = vector.broadcast %141 : i32 to vector<8x1xi32>
    %143 = arith.cmpi eq, %14, %142 : vector<8x1xi32>
    %c0_46 = arith.constant 0 : index
    %c0_47 = arith.constant 0 : index
    %144 = vector.load %arg8[%c0_46, %c0_47] : memref<8x128xf32, #tpu.memory_space<vmem>>, vector<8x128xf32>
    %145 = vector.shape_cast %143 : vector<8x1xi1> to vector<8x1xi1>
    %146 = vector.broadcast %145 : vector<8x1xi1> to vector<8x128xi1>
    %147 = arith.select %146, %138, %144 : vector<8x128xi1>, vector<8x128xf32>
    %c0_48 = arith.constant 0 : index
    %c0_49 = arith.constant 0 : index
    %148 = vector.load %arg8[%c0_48, %c0_49] : memref<8x128xf32, #tpu.memory_space<vmem>>, vector<8x128xf32>
    tpu.vector_store %arg8[%c0_48, %c0_49], %147 {strides = array<i32>} : memref<8x128xf32, #tpu.memory_space<vmem>>, vector<8x128xf32>,
    %c3_i32 = arith.constant 3 : i32
    %c8_i32_50 = arith.constant 8 : i32
    %149 = arith.muli %c3_i32, %c8_i32_50 : i32
    %150 = tpu.assume_multiple %149, 8 : i32
    %151 = arith.index_cast %150 : i32 to index
    %c0_51 = arith.constant 0 : index
    %152 = vector.load %arg10[%151, %c0_51] : memref<128x384xf32, #tpu.memory_space<vmem>>, vector<8x384xf32>
    %153 = arith.truncf %138 : vector<8x128xf32> to vector<8x128xbf16>
    %cst_52 = arith.constant dense<0.000000e+00> : vector<8x384xf32>
    %154 = tpu.matmul %153, %10, %cst_52 {dimension_numbers = #tpu.dot_dimension_numbers<[1], [0], [0], [1], [0, 0, 1, 1], [], []>} : vector<8x128xbf16>, vector<128x384xbf16>, vector<8x384xf32> -> vector<8x384xf32>
    %155 = vector.extract_strided_slice %152 {offsets = [0, 0], sizes = [8, 128], strides = [1, 1]} : vector<8x384xf32> to vector<8x128xf32>
    %156 = vector.extract_strided_slice %154 {offsets = [0, 0], sizes = [8, 128], strides = [1, 1]} : vector<8x384xf32> to vector<8x128xf32>
    %157 = arith.addf %155, %156 : vector<8x128xf32>
    %158 = arith.negf %157 : vector<8x128xf32>
    %159 = math.exp %158 : vector<8x128xf32>
    %cst_53 = arith.constant 1.000000e+00 : f32
    %160 = vector.broadcast %cst_53 : f32 to vector<8x128xf32>
    %161 = arith.addf %160, %159 : vector<8x128xf32>
    %162 = arith.divf %160, %161 : vector<8x128xf32>
    %163 = vector.extract_strided_slice %152 {offsets = [0, 128], sizes = [8, 128], strides = [1, 1]} : vector<8x384xf32> to vector<8x128xf32>
    %164 = vector.extract_strided_slice %154 {offsets = [0, 128], sizes = [8, 128], strides = [1, 1]} : vector<8x384xf32> to vector<8x128xf32>
    %165 = arith.addf %163, %164 : vector<8x128xf32>
    %166 = arith.negf %165 : vector<8x128xf32>
    %167 = math.exp %166 : vector<8x128xf32>
    %cst_54 = arith.constant 1.000000e+00 : f32
    %168 = vector.broadcast %cst_54 : f32 to vector<8x128xf32>
    %169 = arith.addf %168, %167 : vector<8x128xf32>
    %170 = arith.divf %168, %169 : vector<8x128xf32>
    %171 = vector.extract_strided_slice %152 {offsets = [0, 256], sizes = [8, 128], strides = [1, 1]} : vector<8x384xf32> to vector<8x128xf32>
    %172 = vector.extract_strided_slice %154 {offsets = [0, 256], sizes = [8, 128], strides = [1, 1]} : vector<8x384xf32> to vector<8x128xf32>
    %173 = vector.broadcast %11 : vector<1x128xf32> to vector<8x128xf32>
    %174 = arith.addf %172, %173 : vector<8x128xf32>
    %175 = arith.mulf %162, %174 : vector<8x128xf32>
    %176 = arith.addf %171, %175 : vector<8x128xf32>
    %177 = math.tanh %176 : vector<8x128xf32>
    %cst_55 = arith.constant 1.000000e+00 : f32
    %178 = vector.broadcast %cst_55 : f32 to vector<8x128xf32>
    %179 = arith.subf %178, %170 : vector<8x128xf32>
    %180 = arith.mulf %179, %177 : vector<8x128xf32>
    %181 = arith.mulf %170, %138 : vector<8x128xf32>
    %182 = arith.addf %180, %181 : vector<8x128xf32>
    %183 = arith.index_cast %150 : i32 to index
    %c0_56 = arith.constant 0 : index
    %184 = vector.load %arg11[%183, %c0_56] : memref<128x128xf32, #tpu.memory_space<vmem>>, vector<8x128xf32>
    tpu.vector_store %arg11[%183, %c0_56], %182 {strides = array<i32>} : memref<128x128xf32, #tpu.memory_space<vmem>>, vector<8x128xf32>,
    %185 = arith.addi %15, %c3_i32 : i32
    %186 = vector.broadcast %185 : i32 to vector<8x1xi32>
    %187 = arith.cmpi eq, %14, %186 : vector<8x1xi32>
    %c0_57 = arith.constant 0 : index
    %c0_58 = arith.constant 0 : index
    %188 = vector.load %arg8[%c0_57, %c0_58] : memref<8x128xf32, #tpu.memory_space<vmem>>, vector<8x128xf32>
    %189 = vector.shape_cast %187 : vector<8x1xi1> to vector<8x1xi1>
    %190 = vector.broadcast %189 : vector<8x1xi1> to vector<8x128xi1>
    %191 = arith.select %190, %182, %188 : vector<8x128xi1>, vector<8x128xf32>
    %c0_59 = arith.constant 0 : index
    %c0_60 = arith.constant 0 : index
    %192 = vector.load %arg8[%c0_59, %c0_60] : memref<8x128xf32, #tpu.memory_space<vmem>>, vector<8x128xf32>
    tpu.vector_store %arg8[%c0_59, %c0_60], %191 {strides = array<i32>} : memref<8x128xf32, #tpu.memory_space<vmem>>, vector<8x128xf32>,
    %c4_i32 = arith.constant 4 : i32
    %c8_i32_61 = arith.constant 8 : i32
    %193 = arith.muli %c4_i32, %c8_i32_61 : i32
    %194 = tpu.assume_multiple %193, 8 : i32
    %195 = arith.index_cast %194 : i32 to index
    %c0_62 = arith.constant 0 : index
    %196 = vector.load %arg10[%195, %c0_62] : memref<128x384xf32, #tpu.memory_space<vmem>>, vector<8x384xf32>
    %197 = arith.truncf %182 : vector<8x128xf32> to vector<8x128xbf16>
    %cst_63 = arith.constant dense<0.000000e+00> : vector<8x384xf32>
    %198 = tpu.matmul %197, %10, %cst_63 {dimension_numbers = #tpu.dot_dimension_numbers<[1], [0], [0], [1], [0, 0, 1, 1], [], []>} : vector<8x128xbf16>, vector<128x384xbf16>, vector<8x384xf32> -> vector<8x384xf32>
    %199 = vector.extract_strided_slice %196 {offsets = [0, 0], sizes = [8, 128], strides = [1, 1]} : vector<8x384xf32> to vector<8x128xf32>
    %200 = vector.extract_strided_slice %198 {offsets = [0, 0], sizes = [8, 128], strides = [1, 1]} : vector<8x384xf32> to vector<8x128xf32>
    %201 = arith.addf %199, %200 : vector<8x128xf32>
    %202 = arith.negf %201 : vector<8x128xf32>
    %203 = math.exp %202 : vector<8x128xf32>
    %cst_64 = arith.constant 1.000000e+00 : f32
    %204 = vector.broadcast %cst_64 : f32 to vector<8x128xf32>
    %205 = arith.addf %204, %203 : vector<8x128xf32>
    %206 = arith.divf %204, %205 : vector<8x128xf32>
    %207 = vector.extract_strided_slice %196 {offsets = [0, 128], sizes = [8, 128], strides = [1, 1]} : vector<8x384xf32> to vector<8x128xf32>
    %208 = vector.extract_strided_slice %198 {offsets = [0, 128], sizes = [8, 128], strides = [1, 1]} : vector<8x384xf32> to vector<8x128xf32>
    %209 = arith.addf %207, %208 : vector<8x128xf32>
    %210 = arith.negf %209 : vector<8x128xf32>
    %211 = math.exp %210 : vector<8x128xf32>
    %cst_65 = arith.constant 1.000000e+00 : f32
    %212 = vector.broadcast %cst_65 : f32 to vector<8x128xf32>
    %213 = arith.addf %212, %211 : vector<8x128xf32>
    %214 = arith.divf %212, %213 : vector<8x128xf32>
    %215 = vector.extract_strided_slice %196 {offsets = [0, 256], sizes = [8, 128], strides = [1, 1]} : vector<8x384xf32> to vector<8x128xf32>
    %216 = vector.extract_strided_slice %198 {offsets = [0, 256], sizes = [8, 128], strides = [1, 1]} : vector<8x384xf32> to vector<8x128xf32>
    %217 = vector.broadcast %11 : vector<1x128xf32> to vector<8x128xf32>
    %218 = arith.addf %216, %217 : vector<8x128xf32>
    %219 = arith.mulf %206, %218 : vector<8x128xf32>
    %220 = arith.addf %215, %219 : vector<8x128xf32>
    %221 = math.tanh %220 : vector<8x128xf32>
    %cst_66 = arith.constant 1.000000e+00 : f32
    %222 = vector.broadcast %cst_66 : f32 to vector<8x128xf32>
    %223 = arith.subf %222, %214 : vector<8x128xf32>
    %224 = arith.mulf %223, %221 : vector<8x128xf32>
    %225 = arith.mulf %214, %182 : vector<8x128xf32>
    %226 = arith.addf %224, %225 : vector<8x128xf32>
    %227 = arith.index_cast %194 : i32 to index
    %c0_67 = arith.constant 0 : index
    %228 = vector.load %arg11[%227, %c0_67] : memref<128x128xf32, #tpu.memory_space<vmem>>, vector<8x128xf32>
    tpu.vector_store %arg11[%227, %c0_67], %226 {strides = array<i32>} : memref<128x128xf32, #tpu.memory_space<vmem>>, vector<8x128xf32>,
    %229 = arith.addi %15, %c4_i32 : i32
    %230 = vector.broadcast %229 : i32 to vector<8x1xi32>
    %231 = arith.cmpi eq, %14, %230 : vector<8x1xi32>
    %c0_68 = arith.constant 0 : index
    %c0_69 = arith.constant 0 : index
    %232 = vector.load %arg8[%c0_68, %c0_69] : memref<8x128xf32, #tpu.memory_space<vmem>>, vector<8x128xf32>
    %233 = vector.shape_cast %231 : vector<8x1xi1> to vector<8x1xi1>
    %234 = vector.broadcast %233 : vector<8x1xi1> to vector<8x128xi1>
    %235 = arith.select %234, %226, %232 : vector<8x128xi1>, vector<8x128xf32>
    %c0_70 = arith.constant 0 : index
    %c0_71 = arith.constant 0 : index
    %236 = vector.load %arg8[%c0_70, %c0_71] : memref<8x128xf32, #tpu.memory_space<vmem>>, vector<8x128xf32>
    tpu.vector_store %arg8[%c0_70, %c0_71], %235 {strides = array<i32>} : memref<8x128xf32, #tpu.memory_space<vmem>>, vector<8x128xf32>,
    %c5_i32 = arith.constant 5 : i32
    %c8_i32_72 = arith.constant 8 : i32
    %237 = arith.muli %c5_i32, %c8_i32_72 : i32
    %238 = tpu.assume_multiple %237, 8 : i32
    %239 = arith.index_cast %238 : i32 to index
    %c0_73 = arith.constant 0 : index
    %240 = vector.load %arg10[%239, %c0_73] : memref<128x384xf32, #tpu.memory_space<vmem>>, vector<8x384xf32>
    %241 = arith.truncf %226 : vector<8x128xf32> to vector<8x128xbf16>
    %cst_74 = arith.constant dense<0.000000e+00> : vector<8x384xf32>
    %242 = tpu.matmul %241, %10, %cst_74 {dimension_numbers = #tpu.dot_dimension_numbers<[1], [0], [0], [1], [0, 0, 1, 1], [], []>} : vector<8x128xbf16>, vector<128x384xbf16>, vector<8x384xf32> -> vector<8x384xf32>
    %243 = vector.extract_strided_slice %240 {offsets = [0, 0], sizes = [8, 128], strides = [1, 1]} : vector<8x384xf32> to vector<8x128xf32>
    %244 = vector.extract_strided_slice %242 {offsets = [0, 0], sizes = [8, 128], strides = [1, 1]} : vector<8x384xf32> to vector<8x128xf32>
    %245 = arith.addf %243, %244 : vector<8x128xf32>
    %246 = arith.negf %245 : vector<8x128xf32>
    %247 = math.exp %246 : vector<8x128xf32>
    %cst_75 = arith.constant 1.000000e+00 : f32
    %248 = vector.broadcast %cst_75 : f32 to vector<8x128xf32>
    %249 = arith.addf %248, %247 : vector<8x128xf32>
    %250 = arith.divf %248, %249 : vector<8x128xf32>
    %251 = vector.extract_strided_slice %240 {offsets = [0, 128], sizes = [8, 128], strides = [1, 1]} : vector<8x384xf32> to vector<8x128xf32>
    %252 = vector.extract_strided_slice %242 {offsets = [0, 128], sizes = [8, 128], strides = [1, 1]} : vector<8x384xf32> to vector<8x128xf32>
    %253 = arith.addf %251, %252 : vector<8x128xf32>
    %254 = arith.negf %253 : vector<8x128xf32>
    %255 = math.exp %254 : vector<8x128xf32>
    %cst_76 = arith.constant 1.000000e+00 : f32
    %256 = vector.broadcast %cst_76 : f32 to vector<8x128xf32>
    %257 = arith.addf %256, %255 : vector<8x128xf32>
    %258 = arith.divf %256, %257 : vector<8x128xf32>
    %259 = vector.extract_strided_slice %240 {offsets = [0, 256], sizes = [8, 128], strides = [1, 1]} : vector<8x384xf32> to vector<8x128xf32>
    %260 = vector.extract_strided_slice %242 {offsets = [0, 256], sizes = [8, 128], strides = [1, 1]} : vector<8x384xf32> to vector<8x128xf32>
    %261 = vector.broadcast %11 : vector<1x128xf32> to vector<8x128xf32>
    %262 = arith.addf %260, %261 : vector<8x128xf32>
    %263 = arith.mulf %250, %262 : vector<8x128xf32>
    %264 = arith.addf %259, %263 : vector<8x128xf32>
    %265 = math.tanh %264 : vector<8x128xf32>
    %cst_77 = arith.constant 1.000000e+00 : f32
    %266 = vector.broadcast %cst_77 : f32 to vector<8x128xf32>
    %267 = arith.subf %266, %258 : vector<8x128xf32>
    %268 = arith.mulf %267, %265 : vector<8x128xf32>
    %269 = arith.mulf %258, %226 : vector<8x128xf32>
    %270 = arith.addf %268, %269 : vector<8x128xf32>
    %271 = arith.index_cast %238 : i32 to index
    %c0_78 = arith.constant 0 : index
    %272 = vector.load %arg11[%271, %c0_78] : memref<128x128xf32, #tpu.memory_space<vmem>>, vector<8x128xf32>
    tpu.vector_store %arg11[%271, %c0_78], %270 {strides = array<i32>} : memref<128x128xf32, #tpu.memory_space<vmem>>, vector<8x128xf32>,
    %273 = arith.addi %15, %c5_i32 : i32
    %274 = vector.broadcast %273 : i32 to vector<8x1xi32>
    %275 = arith.cmpi eq, %14, %274 : vector<8x1xi32>
    %c0_79 = arith.constant 0 : index
    %c0_80 = arith.constant 0 : index
    %276 = vector.load %arg8[%c0_79, %c0_80] : memref<8x128xf32, #tpu.memory_space<vmem>>, vector<8x128xf32>
    %277 = vector.shape_cast %275 : vector<8x1xi1> to vector<8x1xi1>
    %278 = vector.broadcast %277 : vector<8x1xi1> to vector<8x128xi1>
    %279 = arith.select %278, %270, %276 : vector<8x128xi1>, vector<8x128xf32>
    %c0_81 = arith.constant 0 : index
    %c0_82 = arith.constant 0 : index
    %280 = vector.load %arg8[%c0_81, %c0_82] : memref<8x128xf32, #tpu.memory_space<vmem>>, vector<8x128xf32>
    tpu.vector_store %arg8[%c0_81, %c0_82], %279 {strides = array<i32>} : memref<8x128xf32, #tpu.memory_space<vmem>>, vector<8x128xf32>,
    %c6_i32 = arith.constant 6 : i32
    %c8_i32_83 = arith.constant 8 : i32
    %281 = arith.muli %c6_i32, %c8_i32_83 : i32
    %282 = tpu.assume_multiple %281, 8 : i32
    %283 = arith.index_cast %282 : i32 to index
    %c0_84 = arith.constant 0 : index
    %284 = vector.load %arg10[%283, %c0_84] : memref<128x384xf32, #tpu.memory_space<vmem>>, vector<8x384xf32>
    %285 = arith.truncf %270 : vector<8x128xf32> to vector<8x128xbf16>
    %cst_85 = arith.constant dense<0.000000e+00> : vector<8x384xf32>
    %286 = tpu.matmul %285, %10, %cst_85 {dimension_numbers = #tpu.dot_dimension_numbers<[1], [0], [0], [1], [0, 0, 1, 1], [], []>} : vector<8x128xbf16>, vector<128x384xbf16>, vector<8x384xf32> -> vector<8x384xf32>
    %287 = vector.extract_strided_slice %284 {offsets = [0, 0], sizes = [8, 128], strides = [1, 1]} : vector<8x384xf32> to vector<8x128xf32>
    %288 = vector.extract_strided_slice %286 {offsets = [0, 0], sizes = [8, 128], strides = [1, 1]} : vector<8x384xf32> to vector<8x128xf32>
    %289 = arith.addf %287, %288 : vector<8x128xf32>
    %290 = arith.negf %289 : vector<8x128xf32>
    %291 = math.exp %290 : vector<8x128xf32>
    %cst_86 = arith.constant 1.000000e+00 : f32
    %292 = vector.broadcast %cst_86 : f32 to vector<8x128xf32>
    %293 = arith.addf %292, %291 : vector<8x128xf32>
    %294 = arith.divf %292, %293 : vector<8x128xf32>
    %295 = vector.extract_strided_slice %284 {offsets = [0, 128], sizes = [8, 128], strides = [1, 1]} : vector<8x384xf32> to vector<8x128xf32>
    %296 = vector.extract_strided_slice %286 {offsets = [0, 128], sizes = [8, 128], strides = [1, 1]} : vector<8x384xf32> to vector<8x128xf32>
    %297 = arith.addf %295, %296 : vector<8x128xf32>
    %298 = arith.negf %297 : vector<8x128xf32>
    %299 = math.exp %298 : vector<8x128xf32>
    %cst_87 = arith.constant 1.000000e+00 : f32
    %300 = vector.broadcast %cst_87 : f32 to vector<8x128xf32>
    %301 = arith.addf %300, %299 : vector<8x128xf32>
    %302 = arith.divf %300, %301 : vector<8x128xf32>
    %303 = vector.extract_strided_slice %284 {offsets = [0, 256], sizes = [8, 128], strides = [1, 1]} : vector<8x384xf32> to vector<8x128xf32>
    %304 = vector.extract_strided_slice %286 {offsets = [0, 256], sizes = [8, 128], strides = [1, 1]} : vector<8x384xf32> to vector<8x128xf32>
    %305 = vector.broadcast %11 : vector<1x128xf32> to vector<8x128xf32>
    %306 = arith.addf %304, %305 : vector<8x128xf32>
    %307 = arith.mulf %294, %306 : vector<8x128xf32>
    %308 = arith.addf %303, %307 : vector<8x128xf32>
    %309 = math.tanh %308 : vector<8x128xf32>
    %cst_88 = arith.constant 1.000000e+00 : f32
    %310 = vector.broadcast %cst_88 : f32 to vector<8x128xf32>
    %311 = arith.subf %310, %302 : vector<8x128xf32>
    %312 = arith.mulf %311, %309 : vector<8x128xf32>
    %313 = arith.mulf %302, %270 : vector<8x128xf32>
    %314 = arith.addf %312, %313 : vector<8x128xf32>
    %315 = arith.index_cast %282 : i32 to index
    %c0_89 = arith.constant 0 : index
    %316 = vector.load %arg11[%315, %c0_89] : memref<128x128xf32, #tpu.memory_space<vmem>>, vector<8x128xf32>
    tpu.vector_store %arg11[%315, %c0_89], %314 {strides = array<i32>} : memref<128x128xf32, #tpu.memory_space<vmem>>, vector<8x128xf32>,
    %317 = arith.addi %15, %c6_i32 : i32
    %318 = vector.broadcast %317 : i32 to vector<8x1xi32>
    %319 = arith.cmpi eq, %14, %318 : vector<8x1xi32>
    %c0_90 = arith.constant 0 : index
    %c0_91 = arith.constant 0 : index
    %320 = vector.load %arg8[%c0_90, %c0_91] : memref<8x128xf32, #tpu.memory_space<vmem>>, vector<8x128xf32>
    %321 = vector.shape_cast %319 : vector<8x1xi1> to vector<8x1xi1>
    %322 = vector.broadcast %321 : vector<8x1xi1> to vector<8x128xi1>
    %323 = arith.select %322, %314, %320 : vector<8x128xi1>, vector<8x128xf32>
    %c0_92 = arith.constant 0 : index
    %c0_93 = arith.constant 0 : index
    %324 = vector.load %arg8[%c0_92, %c0_93] : memref<8x128xf32, #tpu.memory_space<vmem>>, vector<8x128xf32>
    tpu.vector_store %arg8[%c0_92, %c0_93], %323 {strides = array<i32>} : memref<8x128xf32, #tpu.memory_space<vmem>>, vector<8x128xf32>,
    %c7_i32 = arith.constant 7 : i32
    %c8_i32_94 = arith.constant 8 : i32
    %325 = arith.muli %c7_i32, %c8_i32_94 : i32
    %326 = tpu.assume_multiple %325, 8 : i32
    %327 = arith.index_cast %326 : i32 to index
    %c0_95 = arith.constant 0 : index
    %328 = vector.load %arg10[%327, %c0_95] : memref<128x384xf32, #tpu.memory_space<vmem>>, vector<8x384xf32>
    %329 = arith.truncf %314 : vector<8x128xf32> to vector<8x128xbf16>
    %cst_96 = arith.constant dense<0.000000e+00> : vector<8x384xf32>
    %330 = tpu.matmul %329, %10, %cst_96 {dimension_numbers = #tpu.dot_dimension_numbers<[1], [0], [0], [1], [0, 0, 1, 1], [], []>} : vector<8x128xbf16>, vector<128x384xbf16>, vector<8x384xf32> -> vector<8x384xf32>
    %331 = vector.extract_strided_slice %328 {offsets = [0, 0], sizes = [8, 128], strides = [1, 1]} : vector<8x384xf32> to vector<8x128xf32>
    %332 = vector.extract_strided_slice %330 {offsets = [0, 0], sizes = [8, 128], strides = [1, 1]} : vector<8x384xf32> to vector<8x128xf32>
    %333 = arith.addf %331, %332 : vector<8x128xf32>
    %334 = arith.negf %333 : vector<8x128xf32>
    %335 = math.exp %334 : vector<8x128xf32>
    %cst_97 = arith.constant 1.000000e+00 : f32
    %336 = vector.broadcast %cst_97 : f32 to vector<8x128xf32>
    %337 = arith.addf %336, %335 : vector<8x128xf32>
    %338 = arith.divf %336, %337 : vector<8x128xf32>
    %339 = vector.extract_strided_slice %328 {offsets = [0, 128], sizes = [8, 128], strides = [1, 1]} : vector<8x384xf32> to vector<8x128xf32>
    %340 = vector.extract_strided_slice %330 {offsets = [0, 128], sizes = [8, 128], strides = [1, 1]} : vector<8x384xf32> to vector<8x128xf32>
    %341 = arith.addf %339, %340 : vector<8x128xf32>
    %342 = arith.negf %341 : vector<8x128xf32>
    %343 = math.exp %342 : vector<8x128xf32>
    %cst_98 = arith.constant 1.000000e+00 : f32
    %344 = vector.broadcast %cst_98 : f32 to vector<8x128xf32>
    %345 = arith.addf %344, %343 : vector<8x128xf32>
    %346 = arith.divf %344, %345 : vector<8x128xf32>
    %347 = vector.extract_strided_slice %328 {offsets = [0, 256], sizes = [8, 128], strides = [1, 1]} : vector<8x384xf32> to vector<8x128xf32>
    %348 = vector.extract_strided_slice %330 {offsets = [0, 256], sizes = [8, 128], strides = [1, 1]} : vector<8x384xf32> to vector<8x128xf32>
    %349 = vector.broadcast %11 : vector<1x128xf32> to vector<8x128xf32>
    %350 = arith.addf %348, %349 : vector<8x128xf32>
    %351 = arith.mulf %338, %350 : vector<8x128xf32>
    %352 = arith.addf %347, %351 : vector<8x128xf32>
    %353 = math.tanh %352 : vector<8x128xf32>
    %cst_99 = arith.constant 1.000000e+00 : f32
    %354 = vector.broadcast %cst_99 : f32 to vector<8x128xf32>
    %355 = arith.subf %354, %346 : vector<8x128xf32>
    %356 = arith.mulf %355, %353 : vector<8x128xf32>
    %357 = arith.mulf %346, %314 : vector<8x128xf32>
    %358 = arith.addf %356, %357 : vector<8x128xf32>
    %359 = arith.index_cast %326 : i32 to index
    %c0_100 = arith.constant 0 : index
    %360 = vector.load %arg11[%359, %c0_100] : memref<128x128xf32, #tpu.memory_space<vmem>>, vector<8x128xf32>
    tpu.vector_store %arg11[%359, %c0_100], %358 {strides = array<i32>} : memref<128x128xf32, #tpu.memory_space<vmem>>, vector<8x128xf32>,
    %361 = arith.addi %15, %c7_i32 : i32
    %362 = vector.broadcast %361 : i32 to vector<8x1xi32>
    %363 = arith.cmpi eq, %14, %362 : vector<8x1xi32>
    %c0_101 = arith.constant 0 : index
    %c0_102 = arith.constant 0 : index
    %364 = vector.load %arg8[%c0_101, %c0_102] : memref<8x128xf32, #tpu.memory_space<vmem>>, vector<8x128xf32>
    %365 = vector.shape_cast %363 : vector<8x1xi1> to vector<8x1xi1>
    %366 = vector.broadcast %365 : vector<8x1xi1> to vector<8x128xi1>
    %367 = arith.select %366, %358, %364 : vector<8x128xi1>, vector<8x128xf32>
    %c0_103 = arith.constant 0 : index
    %c0_104 = arith.constant 0 : index
    %368 = vector.load %arg8[%c0_103, %c0_104] : memref<8x128xf32, #tpu.memory_space<vmem>>, vector<8x128xf32>
    tpu.vector_store %arg8[%c0_103, %c0_104], %367 {strides = array<i32>} : memref<8x128xf32, #tpu.memory_space<vmem>>, vector<8x128xf32>,
    %c8_i32_105 = arith.constant 8 : i32
    %c8_i32_106 = arith.constant 8 : i32
    %369 = arith.muli %c8_i32_105, %c8_i32_106 : i32
    %370 = tpu.assume_multiple %369, 8 : i32
    %371 = arith.index_cast %370 : i32 to index
    %c0_107 = arith.constant 0 : index
    %372 = vector.load %arg10[%371, %c0_107] : memref<128x384xf32, #tpu.memory_space<vmem>>, vector<8x384xf32>
    %373 = arith.truncf %358 : vector<8x128xf32> to vector<8x128xbf16>
    %cst_108 = arith.constant dense<0.000000e+00> : vector<8x384xf32>
    %374 = tpu.matmul %373, %10, %cst_108 {dimension_numbers = #tpu.dot_dimension_numbers<[1], [0], [0], [1], [0, 0, 1, 1], [], []>} : vector<8x128xbf16>, vector<128x384xbf16>, vector<8x384xf32> -> vector<8x384xf32>
    %375 = vector.extract_strided_slice %372 {offsets = [0, 0], sizes = [8, 128], strides = [1, 1]} : vector<8x384xf32> to vector<8x128xf32>
    %376 = vector.extract_strided_slice %374 {offsets = [0, 0], sizes = [8, 128], strides = [1, 1]} : vector<8x384xf32> to vector<8x128xf32>
    %377 = arith.addf %375, %376 : vector<8x128xf32>
    %378 = arith.negf %377 : vector<8x128xf32>
    %379 = math.exp %378 : vector<8x128xf32>
    %cst_109 = arith.constant 1.000000e+00 : f32
    %380 = vector.broadcast %cst_109 : f32 to vector<8x128xf32>
    %381 = arith.addf %380, %379 : vector<8x128xf32>
    %382 = arith.divf %380, %381 : vector<8x128xf32>
    %383 = vector.extract_strided_slice %372 {offsets = [0, 128], sizes = [8, 128], strides = [1, 1]} : vector<8x384xf32> to vector<8x128xf32>
    %384 = vector.extract_strided_slice %374 {offsets = [0, 128], sizes = [8, 128], strides = [1, 1]} : vector<8x384xf32> to vector<8x128xf32>
    %385 = arith.addf %383, %384 : vector<8x128xf32>
    %386 = arith.negf %385 : vector<8x128xf32>
    %387 = math.exp %386 : vector<8x128xf32>
    %cst_110 = arith.constant 1.000000e+00 : f32
    %388 = vector.broadcast %cst_110 : f32 to vector<8x128xf32>
    %389 = arith.addf %388, %387 : vector<8x128xf32>
    %390 = arith.divf %388, %389 : vector<8x128xf32>
    %391 = vector.extract_strided_slice %372 {offsets = [0, 256], sizes = [8, 128], strides = [1, 1]} : vector<8x384xf32> to vector<8x128xf32>
    %392 = vector.extract_strided_slice %374 {offsets = [0, 256], sizes = [8, 128], strides = [1, 1]} : vector<8x384xf32> to vector<8x128xf32>
    %393 = vector.broadcast %11 : vector<1x128xf32> to vector<8x128xf32>
    %394 = arith.addf %392, %393 : vector<8x128xf32>
    %395 = arith.mulf %382, %394 : vector<8x128xf32>
    %396 = arith.addf %391, %395 : vector<8x128xf32>
    %397 = math.tanh %396 : vector<8x128xf32>
    %cst_111 = arith.constant 1.000000e+00 : f32
    %398 = vector.broadcast %cst_111 : f32 to vector<8x128xf32>
    %399 = arith.subf %398, %390 : vector<8x128xf32>
    %400 = arith.mulf %399, %397 : vector<8x128xf32>
    %401 = arith.mulf %390, %358 : vector<8x128xf32>
    %402 = arith.addf %400, %401 : vector<8x128xf32>
    %403 = arith.index_cast %370 : i32 to index
    %c0_112 = arith.constant 0 : index
    %404 = vector.load %arg11[%403, %c0_112] : memref<128x128xf32, #tpu.memory_space<vmem>>, vector<8x128xf32>
    tpu.vector_store %arg11[%403, %c0_112], %402 {strides = array<i32>} : memref<128x128xf32, #tpu.memory_space<vmem>>, vector<8x128xf32>,
    %405 = arith.addi %15, %c8_i32_105 : i32
    %406 = vector.broadcast %405 : i32 to vector<8x1xi32>
    %407 = arith.cmpi eq, %14, %406 : vector<8x1xi32>
    %c0_113 = arith.constant 0 : index
    %c0_114 = arith.constant 0 : index
    %408 = vector.load %arg8[%c0_113, %c0_114] : memref<8x128xf32, #tpu.memory_space<vmem>>, vector<8x128xf32>
    %409 = vector.shape_cast %407 : vector<8x1xi1> to vector<8x1xi1>
    %410 = vector.broadcast %409 : vector<8x1xi1> to vector<8x128xi1>
    %411 = arith.select %410, %402, %408 : vector<8x128xi1>, vector<8x128xf32>
    %c0_115 = arith.constant 0 : index
    %c0_116 = arith.constant 0 : index
    %412 = vector.load %arg8[%c0_115, %c0_116] : memref<8x128xf32, #tpu.memory_space<vmem>>, vector<8x128xf32>
    tpu.vector_store %arg8[%c0_115, %c0_116], %411 {strides = array<i32>} : memref<8x128xf32, #tpu.memory_space<vmem>>, vector<8x128xf32>,
    %c9_i32 = arith.constant 9 : i32
    %c8_i32_117 = arith.constant 8 : i32
    %413 = arith.muli %c9_i32, %c8_i32_117 : i32
    %414 = tpu.assume_multiple %413, 8 : i32
    %415 = arith.index_cast %414 : i32 to index
    %c0_118 = arith.constant 0 : index
    %416 = vector.load %arg10[%415, %c0_118] : memref<128x384xf32, #tpu.memory_space<vmem>>, vector<8x384xf32>
    %417 = arith.truncf %402 : vector<8x128xf32> to vector<8x128xbf16>
    %cst_119 = arith.constant dense<0.000000e+00> : vector<8x384xf32>
    %418 = tpu.matmul %417, %10, %cst_119 {dimension_numbers = #tpu.dot_dimension_numbers<[1], [0], [0], [1], [0, 0, 1, 1], [], []>} : vector<8x128xbf16>, vector<128x384xbf16>, vector<8x384xf32> -> vector<8x384xf32>
    %419 = vector.extract_strided_slice %416 {offsets = [0, 0], sizes = [8, 128], strides = [1, 1]} : vector<8x384xf32> to vector<8x128xf32>
    %420 = vector.extract_strided_slice %418 {offsets = [0, 0], sizes = [8, 128], strides = [1, 1]} : vector<8x384xf32> to vector<8x128xf32>
    %421 = arith.addf %419, %420 : vector<8x128xf32>
    %422 = arith.negf %421 : vector<8x128xf32>
    %423 = math.exp %422 : vector<8x128xf32>
    %cst_120 = arith.constant 1.000000e+00 : f32
    %424 = vector.broadcast %cst_120 : f32 to vector<8x128xf32>
    %425 = arith.addf %424, %423 : vector<8x128xf32>
    %426 = arith.divf %424, %425 : vector<8x128xf32>
    %427 = vector.extract_strided_slice %416 {offsets = [0, 128], sizes = [8, 128], strides = [1, 1]} : vector<8x384xf32> to vector<8x128xf32>
    %428 = vector.extract_strided_slice %418 {offsets = [0, 128], sizes = [8, 128], strides = [1, 1]} : vector<8x384xf32> to vector<8x128xf32>
    %429 = arith.addf %427, %428 : vector<8x128xf32>
    %430 = arith.negf %429 : vector<8x128xf32>
    %431 = math.exp %430 : vector<8x128xf32>
    %cst_121 = arith.constant 1.000000e+00 : f32
    %432 = vector.broadcast %cst_121 : f32 to vector<8x128xf32>
    %433 = arith.addf %432, %431 : vector<8x128xf32>
    %434 = arith.divf %432, %433 : vector<8x128xf32>
    %435 = vector.extract_strided_slice %416 {offsets = [0, 256], sizes = [8, 128], strides = [1, 1]} : vector<8x384xf32> to vector<8x128xf32>
    %436 = vector.extract_strided_slice %418 {offsets = [0, 256], sizes = [8, 128], strides = [1, 1]} : vector<8x384xf32> to vector<8x128xf32>
    %437 = vector.broadcast %11 : vector<1x128xf32> to vector<8x128xf32>
    %438 = arith.addf %436, %437 : vector<8x128xf32>
    %439 = arith.mulf %426, %438 : vector<8x128xf32>
    %440 = arith.addf %435, %439 : vector<8x128xf32>
    %441 = math.tanh %440 : vector<8x128xf32>
    %cst_122 = arith.constant 1.000000e+00 : f32
    %442 = vector.broadcast %cst_122 : f32 to vector<8x128xf32>
    %443 = arith.subf %442, %434 : vector<8x128xf32>
    %444 = arith.mulf %443, %441 : vector<8x128xf32>
    %445 = arith.mulf %434, %402 : vector<8x128xf32>
    %446 = arith.addf %444, %445 : vector<8x128xf32>
    %447 = arith.index_cast %414 : i32 to index
    %c0_123 = arith.constant 0 : index
    %448 = vector.load %arg11[%447, %c0_123] : memref<128x128xf32, #tpu.memory_space<vmem>>, vector<8x128xf32>
    tpu.vector_store %arg11[%447, %c0_123], %446 {strides = array<i32>} : memref<128x128xf32, #tpu.memory_space<vmem>>, vector<8x128xf32>,
    %449 = arith.addi %15, %c9_i32 : i32
    %450 = vector.broadcast %449 : i32 to vector<8x1xi32>
    %451 = arith.cmpi eq, %14, %450 : vector<8x1xi32>
    %c0_124 = arith.constant 0 : index
    %c0_125 = arith.constant 0 : index
    %452 = vector.load %arg8[%c0_124, %c0_125] : memref<8x128xf32, #tpu.memory_space<vmem>>, vector<8x128xf32>
    %453 = vector.shape_cast %451 : vector<8x1xi1> to vector<8x1xi1>
    %454 = vector.broadcast %453 : vector<8x1xi1> to vector<8x128xi1>
    %455 = arith.select %454, %446, %452 : vector<8x128xi1>, vector<8x128xf32>
    %c0_126 = arith.constant 0 : index
    %c0_127 = arith.constant 0 : index
    %456 = vector.load %arg8[%c0_126, %c0_127] : memref<8x128xf32, #tpu.memory_space<vmem>>, vector<8x128xf32>
    tpu.vector_store %arg8[%c0_126, %c0_127], %455 {strides = array<i32>} : memref<8x128xf32, #tpu.memory_space<vmem>>, vector<8x128xf32>,
    %c10_i32 = arith.constant 10 : i32
    %c8_i32_128 = arith.constant 8 : i32
    %457 = arith.muli %c10_i32, %c8_i32_128 : i32
    %458 = tpu.assume_multiple %457, 8 : i32
    %459 = arith.index_cast %458 : i32 to index
    %c0_129 = arith.constant 0 : index
    %460 = vector.load %arg10[%459, %c0_129] : memref<128x384xf32, #tpu.memory_space<vmem>>, vector<8x384xf32>
    %461 = arith.truncf %446 : vector<8x128xf32> to vector<8x128xbf16>
    %cst_130 = arith.constant dense<0.000000e+00> : vector<8x384xf32>
    %462 = tpu.matmul %461, %10, %cst_130 {dimension_numbers = #tpu.dot_dimension_numbers<[1], [0], [0], [1], [0, 0, 1, 1], [], []>} : vector<8x128xbf16>, vector<128x384xbf16>, vector<8x384xf32> -> vector<8x384xf32>
    %463 = vector.extract_strided_slice %460 {offsets = [0, 0], sizes = [8, 128], strides = [1, 1]} : vector<8x384xf32> to vector<8x128xf32>
    %464 = vector.extract_strided_slice %462 {offsets = [0, 0], sizes = [8, 128], strides = [1, 1]} : vector<8x384xf32> to vector<8x128xf32>
    %465 = arith.addf %463, %464 : vector<8x128xf32>
    %466 = arith.negf %465 : vector<8x128xf32>
    %467 = math.exp %466 : vector<8x128xf32>
    %cst_131 = arith.constant 1.000000e+00 : f32
    %468 = vector.broadcast %cst_131 : f32 to vector<8x128xf32>
    %469 = arith.addf %468, %467 : vector<8x128xf32>
    %470 = arith.divf %468, %469 : vector<8x128xf32>
    %471 = vector.extract_strided_slice %460 {offsets = [0, 128], sizes = [8, 128], strides = [1, 1]} : vector<8x384xf32> to vector<8x128xf32>
    %472 = vector.extract_strided_slice %462 {offsets = [0, 128], sizes = [8, 128], strides = [1, 1]} : vector<8x384xf32> to vector<8x128xf32>
    %473 = arith.addf %471, %472 : vector<8x128xf32>
    %474 = arith.negf %473 : vector<8x128xf32>
    %475 = math.exp %474 : vector<8x128xf32>
    %cst_132 = arith.constant 1.000000e+00 : f32
    %476 = vector.broadcast %cst_132 : f32 to vector<8x128xf32>
    %477 = arith.addf %476, %475 : vector<8x128xf32>
    %478 = arith.divf %476, %477 : vector<8x128xf32>
    %479 = vector.extract_strided_slice %460 {offsets = [0, 256], sizes = [8, 128], strides = [1, 1]} : vector<8x384xf32> to vector<8x128xf32>
    %480 = vector.extract_strided_slice %462 {offsets = [0, 256], sizes = [8, 128], strides = [1, 1]} : vector<8x384xf32> to vector<8x128xf32>
    %481 = vector.broadcast %11 : vector<1x128xf32> to vector<8x128xf32>
    %482 = arith.addf %480, %481 : vector<8x128xf32>
    %483 = arith.mulf %470, %482 : vector<8x128xf32>
    %484 = arith.addf %479, %483 : vector<8x128xf32>
    %485 = math.tanh %484 : vector<8x128xf32>
    %cst_133 = arith.constant 1.000000e+00 : f32
    %486 = vector.broadcast %cst_133 : f32 to vector<8x128xf32>
    %487 = arith.subf %486, %478 : vector<8x128xf32>
    %488 = arith.mulf %487, %485 : vector<8x128xf32>
    %489 = arith.mulf %478, %446 : vector<8x128xf32>
    %490 = arith.addf %488, %489 : vector<8x128xf32>
    %491 = arith.index_cast %458 : i32 to index
    %c0_134 = arith.constant 0 : index
    %492 = vector.load %arg11[%491, %c0_134] : memref<128x128xf32, #tpu.memory_space<vmem>>, vector<8x128xf32>
    tpu.vector_store %arg11[%491, %c0_134], %490 {strides = array<i32>} : memref<128x128xf32, #tpu.memory_space<vmem>>, vector<8x128xf32>,
    %493 = arith.addi %15, %c10_i32 : i32
    %494 = vector.broadcast %493 : i32 to vector<8x1xi32>
    %495 = arith.cmpi eq, %14, %494 : vector<8x1xi32>
    %c0_135 = arith.constant 0 : index
    %c0_136 = arith.constant 0 : index
    %496 = vector.load %arg8[%c0_135, %c0_136] : memref<8x128xf32, #tpu.memory_space<vmem>>, vector<8x128xf32>
    %497 = vector.shape_cast %495 : vector<8x1xi1> to vector<8x1xi1>
    %498 = vector.broadcast %497 : vector<8x1xi1> to vector<8x128xi1>
    %499 = arith.select %498, %490, %496 : vector<8x128xi1>, vector<8x128xf32>
    %c0_137 = arith.constant 0 : index
    %c0_138 = arith.constant 0 : index
    %500 = vector.load %arg8[%c0_137, %c0_138] : memref<8x128xf32, #tpu.memory_space<vmem>>, vector<8x128xf32>
    tpu.vector_store %arg8[%c0_137, %c0_138], %499 {strides = array<i32>} : memref<8x128xf32, #tpu.memory_space<vmem>>, vector<8x128xf32>,
    %c11_i32 = arith.constant 11 : i32
    %c8_i32_139 = arith.constant 8 : i32
    %501 = arith.muli %c11_i32, %c8_i32_139 : i32
    %502 = tpu.assume_multiple %501, 8 : i32
    %503 = arith.index_cast %502 : i32 to index
    %c0_140 = arith.constant 0 : index
    %504 = vector.load %arg10[%503, %c0_140] : memref<128x384xf32, #tpu.memory_space<vmem>>, vector<8x384xf32>
    %505 = arith.truncf %490 : vector<8x128xf32> to vector<8x128xbf16>
    %cst_141 = arith.constant dense<0.000000e+00> : vector<8x384xf32>
    %506 = tpu.matmul %505, %10, %cst_141 {dimension_numbers = #tpu.dot_dimension_numbers<[1], [0], [0], [1], [0, 0, 1, 1], [], []>} : vector<8x128xbf16>, vector<128x384xbf16>, vector<8x384xf32> -> vector<8x384xf32>
    %507 = vector.extract_strided_slice %504 {offsets = [0, 0], sizes = [8, 128], strides = [1, 1]} : vector<8x384xf32> to vector<8x128xf32>
    %508 = vector.extract_strided_slice %506 {offsets = [0, 0], sizes = [8, 128], strides = [1, 1]} : vector<8x384xf32> to vector<8x128xf32>
    %509 = arith.addf %507, %508 : vector<8x128xf32>
    %510 = arith.negf %509 : vector<8x128xf32>
    %511 = math.exp %510 : vector<8x128xf32>
    %cst_142 = arith.constant 1.000000e+00 : f32
    %512 = vector.broadcast %cst_142 : f32 to vector<8x128xf32>
    %513 = arith.addf %512, %511 : vector<8x128xf32>
    %514 = arith.divf %512, %513 : vector<8x128xf32>
    %515 = vector.extract_strided_slice %504 {offsets = [0, 128], sizes = [8, 128], strides = [1, 1]} : vector<8x384xf32> to vector<8x128xf32>
    %516 = vector.extract_strided_slice %506 {offsets = [0, 128], sizes = [8, 128], strides = [1, 1]} : vector<8x384xf32> to vector<8x128xf32>
    %517 = arith.addf %515, %516 : vector<8x128xf32>
    %518 = arith.negf %517 : vector<8x128xf32>
    %519 = math.exp %518 : vector<8x128xf32>
    %cst_143 = arith.constant 1.000000e+00 : f32
    %520 = vector.broadcast %cst_143 : f32 to vector<8x128xf32>
    %521 = arith.addf %520, %519 : vector<8x128xf32>
    %522 = arith.divf %520, %521 : vector<8x128xf32>
    %523 = vector.extract_strided_slice %504 {offsets = [0, 256], sizes = [8, 128], strides = [1, 1]} : vector<8x384xf32> to vector<8x128xf32>
    %524 = vector.extract_strided_slice %506 {offsets = [0, 256], sizes = [8, 128], strides = [1, 1]} : vector<8x384xf32> to vector<8x128xf32>
    %525 = vector.broadcast %11 : vector<1x128xf32> to vector<8x128xf32>
    %526 = arith.addf %524, %525 : vector<8x128xf32>
    %527 = arith.mulf %514, %526 : vector<8x128xf32>
    %528 = arith.addf %523, %527 : vector<8x128xf32>
    %529 = math.tanh %528 : vector<8x128xf32>
    %cst_144 = arith.constant 1.000000e+00 : f32
    %530 = vector.broadcast %cst_144 : f32 to vector<8x128xf32>
    %531 = arith.subf %530, %522 : vector<8x128xf32>
    %532 = arith.mulf %531, %529 : vector<8x128xf32>
    %533 = arith.mulf %522, %490 : vector<8x128xf32>
    %534 = arith.addf %532, %533 : vector<8x128xf32>
    %535 = arith.index_cast %502 : i32 to index
    %c0_145 = arith.constant 0 : index
    %536 = vector.load %arg11[%535, %c0_145] : memref<128x128xf32, #tpu.memory_space<vmem>>, vector<8x128xf32>
    tpu.vector_store %arg11[%535, %c0_145], %534 {strides = array<i32>} : memref<128x128xf32, #tpu.memory_space<vmem>>, vector<8x128xf32>,
    %537 = arith.addi %15, %c11_i32 : i32
    %538 = vector.broadcast %537 : i32 to vector<8x1xi32>
    %539 = arith.cmpi eq, %14, %538 : vector<8x1xi32>
    %c0_146 = arith.constant 0 : index
    %c0_147 = arith.constant 0 : index
    %540 = vector.load %arg8[%c0_146, %c0_147] : memref<8x128xf32, #tpu.memory_space<vmem>>, vector<8x128xf32>
    %541 = vector.shape_cast %539 : vector<8x1xi1> to vector<8x1xi1>
    %542 = vector.broadcast %541 : vector<8x1xi1> to vector<8x128xi1>
    %543 = arith.select %542, %534, %540 : vector<8x128xi1>, vector<8x128xf32>
    %c0_148 = arith.constant 0 : index
    %c0_149 = arith.constant 0 : index
    %544 = vector.load %arg8[%c0_148, %c0_149] : memref<8x128xf32, #tpu.memory_space<vmem>>, vector<8x128xf32>
    tpu.vector_store %arg8[%c0_148, %c0_149], %543 {strides = array<i32>} : memref<8x128xf32, #tpu.memory_space<vmem>>, vector<8x128xf32>,
    %c12_i32 = arith.constant 12 : i32
    %c8_i32_150 = arith.constant 8 : i32
    %545 = arith.muli %c12_i32, %c8_i32_150 : i32
    %546 = tpu.assume_multiple %545, 8 : i32
    %547 = arith.index_cast %546 : i32 to index
    %c0_151 = arith.constant 0 : index
    %548 = vector.load %arg10[%547, %c0_151] : memref<128x384xf32, #tpu.memory_space<vmem>>, vector<8x384xf32>
    %549 = arith.truncf %534 : vector<8x128xf32> to vector<8x128xbf16>
    %cst_152 = arith.constant dense<0.000000e+00> : vector<8x384xf32>
    %550 = tpu.matmul %549, %10, %cst_152 {dimension_numbers = #tpu.dot_dimension_numbers<[1], [0], [0], [1], [0, 0, 1, 1], [], []>} : vector<8x128xbf16>, vector<128x384xbf16>, vector<8x384xf32> -> vector<8x384xf32>
    %551 = vector.extract_strided_slice %548 {offsets = [0, 0], sizes = [8, 128], strides = [1, 1]} : vector<8x384xf32> to vector<8x128xf32>
    %552 = vector.extract_strided_slice %550 {offsets = [0, 0], sizes = [8, 128], strides = [1, 1]} : vector<8x384xf32> to vector<8x128xf32>
    %553 = arith.addf %551, %552 : vector<8x128xf32>
    %554 = arith.negf %553 : vector<8x128xf32>
    %555 = math.exp %554 : vector<8x128xf32>
    %cst_153 = arith.constant 1.000000e+00 : f32
    %556 = vector.broadcast %cst_153 : f32 to vector<8x128xf32>
    %557 = arith.addf %556, %555 : vector<8x128xf32>
    %558 = arith.divf %556, %557 : vector<8x128xf32>
    %559 = vector.extract_strided_slice %548 {offsets = [0, 128], sizes = [8, 128], strides = [1, 1]} : vector<8x384xf32> to vector<8x128xf32>
    %560 = vector.extract_strided_slice %550 {offsets = [0, 128], sizes = [8, 128], strides = [1, 1]} : vector<8x384xf32> to vector<8x128xf32>
    %561 = arith.addf %559, %560 : vector<8x128xf32>
    %562 = arith.negf %561 : vector<8x128xf32>
    %563 = math.exp %562 : vector<8x128xf32>
    %cst_154 = arith.constant 1.000000e+00 : f32
    %564 = vector.broadcast %cst_154 : f32 to vector<8x128xf32>
    %565 = arith.addf %564, %563 : vector<8x128xf32>
    %566 = arith.divf %564, %565 : vector<8x128xf32>
    %567 = vector.extract_strided_slice %548 {offsets = [0, 256], sizes = [8, 128], strides = [1, 1]} : vector<8x384xf32> to vector<8x128xf32>
    %568 = vector.extract_strided_slice %550 {offsets = [0, 256], sizes = [8, 128], strides = [1, 1]} : vector<8x384xf32> to vector<8x128xf32>
    %569 = vector.broadcast %11 : vector<1x128xf32> to vector<8x128xf32>
    %570 = arith.addf %568, %569 : vector<8x128xf32>
    %571 = arith.mulf %558, %570 : vector<8x128xf32>
    %572 = arith.addf %567, %571 : vector<8x128xf32>
    %573 = math.tanh %572 : vector<8x128xf32>
    %cst_155 = arith.constant 1.000000e+00 : f32
    %574 = vector.broadcast %cst_155 : f32 to vector<8x128xf32>
    %575 = arith.subf %574, %566 : vector<8x128xf32>
    %576 = arith.mulf %575, %573 : vector<8x128xf32>
    %577 = arith.mulf %566, %534 : vector<8x128xf32>
    %578 = arith.addf %576, %577 : vector<8x128xf32>
    %579 = arith.index_cast %546 : i32 to index
    %c0_156 = arith.constant 0 : index
    %580 = vector.load %arg11[%579, %c0_156] : memref<128x128xf32, #tpu.memory_space<vmem>>, vector<8x128xf32>
    tpu.vector_store %arg11[%579, %c0_156], %578 {strides = array<i32>} : memref<128x128xf32, #tpu.memory_space<vmem>>, vector<8x128xf32>,
    %581 = arith.addi %15, %c12_i32 : i32
    %582 = vector.broadcast %581 : i32 to vector<8x1xi32>
    %583 = arith.cmpi eq, %14, %582 : vector<8x1xi32>
    %c0_157 = arith.constant 0 : index
    %c0_158 = arith.constant 0 : index
    %584 = vector.load %arg8[%c0_157, %c0_158] : memref<8x128xf32, #tpu.memory_space<vmem>>, vector<8x128xf32>
    %585 = vector.shape_cast %583 : vector<8x1xi1> to vector<8x1xi1>
    %586 = vector.broadcast %585 : vector<8x1xi1> to vector<8x128xi1>
    %587 = arith.select %586, %578, %584 : vector<8x128xi1>, vector<8x128xf32>
    %c0_159 = arith.constant 0 : index
    %c0_160 = arith.constant 0 : index
    %588 = vector.load %arg8[%c0_159, %c0_160] : memref<8x128xf32, #tpu.memory_space<vmem>>, vector<8x128xf32>
    tpu.vector_store %arg8[%c0_159, %c0_160], %587 {strides = array<i32>} : memref<8x128xf32, #tpu.memory_space<vmem>>, vector<8x128xf32>,
    %c13_i32 = arith.constant 13 : i32
    %c8_i32_161 = arith.constant 8 : i32
    %589 = arith.muli %c13_i32, %c8_i32_161 : i32
    %590 = tpu.assume_multiple %589, 8 : i32
    %591 = arith.index_cast %590 : i32 to index
    %c0_162 = arith.constant 0 : index
    %592 = vector.load %arg10[%591, %c0_162] : memref<128x384xf32, #tpu.memory_space<vmem>>, vector<8x384xf32>
    %593 = arith.truncf %578 : vector<8x128xf32> to vector<8x128xbf16>
    %cst_163 = arith.constant dense<0.000000e+00> : vector<8x384xf32>
    %594 = tpu.matmul %593, %10, %cst_163 {dimension_numbers = #tpu.dot_dimension_numbers<[1], [0], [0], [1], [0, 0, 1, 1], [], []>} : vector<8x128xbf16>, vector<128x384xbf16>, vector<8x384xf32> -> vector<8x384xf32>
    %595 = vector.extract_strided_slice %592 {offsets = [0, 0], sizes = [8, 128], strides = [1, 1]} : vector<8x384xf32> to vector<8x128xf32>
    %596 = vector.extract_strided_slice %594 {offsets = [0, 0], sizes = [8, 128], strides = [1, 1]} : vector<8x384xf32> to vector<8x128xf32>
    %597 = arith.addf %595, %596 : vector<8x128xf32>
    %598 = arith.negf %597 : vector<8x128xf32>
    %599 = math.exp %598 : vector<8x128xf32>
    %cst_164 = arith.constant 1.000000e+00 : f32
    %600 = vector.broadcast %cst_164 : f32 to vector<8x128xf32>
    %601 = arith.addf %600, %599 : vector<8x128xf32>
    %602 = arith.divf %600, %601 : vector<8x128xf32>
    %603 = vector.extract_strided_slice %592 {offsets = [0, 128], sizes = [8, 128], strides = [1, 1]} : vector<8x384xf32> to vector<8x128xf32>
    %604 = vector.extract_strided_slice %594 {offsets = [0, 128], sizes = [8, 128], strides = [1, 1]} : vector<8x384xf32> to vector<8x128xf32>
    %605 = arith.addf %603, %604 : vector<8x128xf32>
    %606 = arith.negf %605 : vector<8x128xf32>
    %607 = math.exp %606 : vector<8x128xf32>
    %cst_165 = arith.constant 1.000000e+00 : f32
    %608 = vector.broadcast %cst_165 : f32 to vector<8x128xf32>
    %609 = arith.addf %608, %607 : vector<8x128xf32>
    %610 = arith.divf %608, %609 : vector<8x128xf32>
    %611 = vector.extract_strided_slice %592 {offsets = [0, 256], sizes = [8, 128], strides = [1, 1]} : vector<8x384xf32> to vector<8x128xf32>
    %612 = vector.extract_strided_slice %594 {offsets = [0, 256], sizes = [8, 128], strides = [1, 1]} : vector<8x384xf32> to vector<8x128xf32>
    %613 = vector.broadcast %11 : vector<1x128xf32> to vector<8x128xf32>
    %614 = arith.addf %612, %613 : vector<8x128xf32>
    %615 = arith.mulf %602, %614 : vector<8x128xf32>
    %616 = arith.addf %611, %615 : vector<8x128xf32>
    %617 = math.tanh %616 : vector<8x128xf32>
    %cst_166 = arith.constant 1.000000e+00 : f32
    %618 = vector.broadcast %cst_166 : f32 to vector<8x128xf32>
    %619 = arith.subf %618, %610 : vector<8x128xf32>
    %620 = arith.mulf %619, %617 : vector<8x128xf32>
    %621 = arith.mulf %610, %578 : vector<8x128xf32>
    %622 = arith.addf %620, %621 : vector<8x128xf32>
    %623 = arith.index_cast %590 : i32 to index
    %c0_167 = arith.constant 0 : index
    %624 = vector.load %arg11[%623, %c0_167] : memref<128x128xf32, #tpu.memory_space<vmem>>, vector<8x128xf32>
    tpu.vector_store %arg11[%623, %c0_167], %622 {strides = array<i32>} : memref<128x128xf32, #tpu.memory_space<vmem>>, vector<8x128xf32>,
    %625 = arith.addi %15, %c13_i32 : i32
    %626 = vector.broadcast %625 : i32 to vector<8x1xi32>
    %627 = arith.cmpi eq, %14, %626 : vector<8x1xi32>
    %c0_168 = arith.constant 0 : index
    %c0_169 = arith.constant 0 : index
    %628 = vector.load %arg8[%c0_168, %c0_169] : memref<8x128xf32, #tpu.memory_space<vmem>>, vector<8x128xf32>
    %629 = vector.shape_cast %627 : vector<8x1xi1> to vector<8x1xi1>
    %630 = vector.broadcast %629 : vector<8x1xi1> to vector<8x128xi1>
    %631 = arith.select %630, %622, %628 : vector<8x128xi1>, vector<8x128xf32>
    %c0_170 = arith.constant 0 : index
    %c0_171 = arith.constant 0 : index
    %632 = vector.load %arg8[%c0_170, %c0_171] : memref<8x128xf32, #tpu.memory_space<vmem>>, vector<8x128xf32>
    tpu.vector_store %arg8[%c0_170, %c0_171], %631 {strides = array<i32>} : memref<8x128xf32, #tpu.memory_space<vmem>>, vector<8x128xf32>,
    %c14_i32 = arith.constant 14 : i32
    %c8_i32_172 = arith.constant 8 : i32
    %633 = arith.muli %c14_i32, %c8_i32_172 : i32
    %634 = tpu.assume_multiple %633, 8 : i32
    %635 = arith.index_cast %634 : i32 to index
    %c0_173 = arith.constant 0 : index
    %636 = vector.load %arg10[%635, %c0_173] : memref<128x384xf32, #tpu.memory_space<vmem>>, vector<8x384xf32>
    %637 = arith.truncf %622 : vector<8x128xf32> to vector<8x128xbf16>
    %cst_174 = arith.constant dense<0.000000e+00> : vector<8x384xf32>
    %638 = tpu.matmul %637, %10, %cst_174 {dimension_numbers = #tpu.dot_dimension_numbers<[1], [0], [0], [1], [0, 0, 1, 1], [], []>} : vector<8x128xbf16>, vector<128x384xbf16>, vector<8x384xf32> -> vector<8x384xf32>
    %639 = vector.extract_strided_slice %636 {offsets = [0, 0], sizes = [8, 128], strides = [1, 1]} : vector<8x384xf32> to vector<8x128xf32>
    %640 = vector.extract_strided_slice %638 {offsets = [0, 0], sizes = [8, 128], strides = [1, 1]} : vector<8x384xf32> to vector<8x128xf32>
    %641 = arith.addf %639, %640 : vector<8x128xf32>
    %642 = arith.negf %641 : vector<8x128xf32>
    %643 = math.exp %642 : vector<8x128xf32>
    %cst_175 = arith.constant 1.000000e+00 : f32
    %644 = vector.broadcast %cst_175 : f32 to vector<8x128xf32>
    %645 = arith.addf %644, %643 : vector<8x128xf32>
    %646 = arith.divf %644, %645 : vector<8x128xf32>
    %647 = vector.extract_strided_slice %636 {offsets = [0, 128], sizes = [8, 128], strides = [1, 1]} : vector<8x384xf32> to vector<8x128xf32>
    %648 = vector.extract_strided_slice %638 {offsets = [0, 128], sizes = [8, 128], strides = [1, 1]} : vector<8x384xf32> to vector<8x128xf32>
    %649 = arith.addf %647, %648 : vector<8x128xf32>
    %650 = arith.negf %649 : vector<8x128xf32>
    %651 = math.exp %650 : vector<8x128xf32>
    %cst_176 = arith.constant 1.000000e+00 : f32
    %652 = vector.broadcast %cst_176 : f32 to vector<8x128xf32>
    %653 = arith.addf %652, %651 : vector<8x128xf32>
    %654 = arith.divf %652, %653 : vector<8x128xf32>
    %655 = vector.extract_strided_slice %636 {offsets = [0, 256], sizes = [8, 128], strides = [1, 1]} : vector<8x384xf32> to vector<8x128xf32>
    %656 = vector.extract_strided_slice %638 {offsets = [0, 256], sizes = [8, 128], strides = [1, 1]} : vector<8x384xf32> to vector<8x128xf32>
    %657 = vector.broadcast %11 : vector<1x128xf32> to vector<8x128xf32>
    %658 = arith.addf %656, %657 : vector<8x128xf32>
    %659 = arith.mulf %646, %658 : vector<8x128xf32>
    %660 = arith.addf %655, %659 : vector<8x128xf32>
    %661 = math.tanh %660 : vector<8x128xf32>
    %cst_177 = arith.constant 1.000000e+00 : f32
    %662 = vector.broadcast %cst_177 : f32 to vector<8x128xf32>
    %663 = arith.subf %662, %654 : vector<8x128xf32>
    %664 = arith.mulf %663, %661 : vector<8x128xf32>
    %665 = arith.mulf %654, %622 : vector<8x128xf32>
    %666 = arith.addf %664, %665 : vector<8x128xf32>
    %667 = arith.index_cast %634 : i32 to index
    %c0_178 = arith.constant 0 : index
    %668 = vector.load %arg11[%667, %c0_178] : memref<128x128xf32, #tpu.memory_space<vmem>>, vector<8x128xf32>
    tpu.vector_store %arg11[%667, %c0_178], %666 {strides = array<i32>} : memref<128x128xf32, #tpu.memory_space<vmem>>, vector<8x128xf32>,
    %669 = arith.addi %15, %c14_i32 : i32
    %670 = vector.broadcast %669 : i32 to vector<8x1xi32>
    %671 = arith.cmpi eq, %14, %670 : vector<8x1xi32>
    %c0_179 = arith.constant 0 : index
    %c0_180 = arith.constant 0 : index
    %672 = vector.load %arg8[%c0_179, %c0_180] : memref<8x128xf32, #tpu.memory_space<vmem>>, vector<8x128xf32>
    %673 = vector.shape_cast %671 : vector<8x1xi1> to vector<8x1xi1>
    %674 = vector.broadcast %673 : vector<8x1xi1> to vector<8x128xi1>
    %675 = arith.select %674, %666, %672 : vector<8x128xi1>, vector<8x128xf32>
    %c0_181 = arith.constant 0 : index
    %c0_182 = arith.constant 0 : index
    %676 = vector.load %arg8[%c0_181, %c0_182] : memref<8x128xf32, #tpu.memory_space<vmem>>, vector<8x128xf32>
    tpu.vector_store %arg8[%c0_181, %c0_182], %675 {strides = array<i32>} : memref<8x128xf32, #tpu.memory_space<vmem>>, vector<8x128xf32>,
    %c15_i32 = arith.constant 15 : i32
    %c8_i32_183 = arith.constant 8 : i32
    %677 = arith.muli %c15_i32, %c8_i32_183 : i32
    %678 = tpu.assume_multiple %677, 8 : i32
    %679 = arith.index_cast %678 : i32 to index
    %c0_184 = arith.constant 0 : index
    %680 = vector.load %arg10[%679, %c0_184] : memref<128x384xf32, #tpu.memory_space<vmem>>, vector<8x384xf32>
    %681 = arith.truncf %666 : vector<8x128xf32> to vector<8x128xbf16>
    %cst_185 = arith.constant dense<0.000000e+00> : vector<8x384xf32>
    %682 = tpu.matmul %681, %10, %cst_185 {dimension_numbers = #tpu.dot_dimension_numbers<[1], [0], [0], [1], [0, 0, 1, 1], [], []>} : vector<8x128xbf16>, vector<128x384xbf16>, vector<8x384xf32> -> vector<8x384xf32>
    %683 = vector.extract_strided_slice %680 {offsets = [0, 0], sizes = [8, 128], strides = [1, 1]} : vector<8x384xf32> to vector<8x128xf32>
    %684 = vector.extract_strided_slice %682 {offsets = [0, 0], sizes = [8, 128], strides = [1, 1]} : vector<8x384xf32> to vector<8x128xf32>
    %685 = arith.addf %683, %684 : vector<8x128xf32>
    %686 = arith.negf %685 : vector<8x128xf32>
    %687 = math.exp %686 : vector<8x128xf32>
    %cst_186 = arith.constant 1.000000e+00 : f32
    %688 = vector.broadcast %cst_186 : f32 to vector<8x128xf32>
    %689 = arith.addf %688, %687 : vector<8x128xf32>
    %690 = arith.divf %688, %689 : vector<8x128xf32>
    %691 = vector.extract_strided_slice %680 {offsets = [0, 128], sizes = [8, 128], strides = [1, 1]} : vector<8x384xf32> to vector<8x128xf32>
    %692 = vector.extract_strided_slice %682 {offsets = [0, 128], sizes = [8, 128], strides = [1, 1]} : vector<8x384xf32> to vector<8x128xf32>
    %693 = arith.addf %691, %692 : vector<8x128xf32>
    %694 = arith.negf %693 : vector<8x128xf32>
    %695 = math.exp %694 : vector<8x128xf32>
    %cst_187 = arith.constant 1.000000e+00 : f32
    %696 = vector.broadcast %cst_187 : f32 to vector<8x128xf32>
    %697 = arith.addf %696, %695 : vector<8x128xf32>
    %698 = arith.divf %696, %697 : vector<8x128xf32>
    %699 = vector.extract_strided_slice %680 {offsets = [0, 256], sizes = [8, 128], strides = [1, 1]} : vector<8x384xf32> to vector<8x128xf32>
    %700 = vector.extract_strided_slice %682 {offsets = [0, 256], sizes = [8, 128], strides = [1, 1]} : vector<8x384xf32> to vector<8x128xf32>
    %701 = vector.broadcast %11 : vector<1x128xf32> to vector<8x128xf32>
    %702 = arith.addf %700, %701 : vector<8x128xf32>
    %703 = arith.mulf %690, %702 : vector<8x128xf32>
    %704 = arith.addf %699, %703 : vector<8x128xf32>
    %705 = math.tanh %704 : vector<8x128xf32>
    %cst_188 = arith.constant 1.000000e+00 : f32
    %706 = vector.broadcast %cst_188 : f32 to vector<8x128xf32>
    %707 = arith.subf %706, %698 : vector<8x128xf32>
    %708 = arith.mulf %707, %705 : vector<8x128xf32>
    %709 = arith.mulf %698, %666 : vector<8x128xf32>
    %710 = arith.addf %708, %709 : vector<8x128xf32>
    %711 = arith.index_cast %678 : i32 to index
    %c0_189 = arith.constant 0 : index
    %712 = vector.load %arg11[%711, %c0_189] : memref<128x128xf32, #tpu.memory_space<vmem>>, vector<8x128xf32>
    tpu.vector_store %arg11[%711, %c0_189], %710 {strides = array<i32>} : memref<128x128xf32, #tpu.memory_space<vmem>>, vector<8x128xf32>,
    %713 = arith.addi %15, %c15_i32 : i32
    %714 = vector.broadcast %713 : i32 to vector<8x1xi32>
    %715 = arith.cmpi eq, %14, %714 : vector<8x1xi32>
    %c0_190 = arith.constant 0 : index
    %c0_191 = arith.constant 0 : index
    %716 = vector.load %arg8[%c0_190, %c0_191] : memref<8x128xf32, #tpu.memory_space<vmem>>, vector<8x128xf32>
    %717 = vector.shape_cast %715 : vector<8x1xi1> to vector<8x1xi1>
    %718 = vector.broadcast %717 : vector<8x1xi1> to vector<8x128xi1>
    %719 = arith.select %718, %710, %716 : vector<8x128xi1>, vector<8x128xf32>
    %c0_192 = arith.constant 0 : index
    %c0_193 = arith.constant 0 : index
    %720 = vector.load %arg8[%c0_192, %c0_193] : memref<8x128xf32, #tpu.memory_space<vmem>>, vector<8x128xf32>
    tpu.vector_store %arg8[%c0_192, %c0_193], %719 {strides = array<i32>} : memref<8x128xf32, #tpu.memory_space<vmem>>, vector<8x128xf32>,
    %c16_i32_194 = arith.constant 16 : i32
    %c0_195 = arith.constant 0 : index
    %c0_196 = arith.constant 0 : index
    %721 = vector.load %arg9[%c0_195, %c0_196] : memref<8x128xf32, #tpu.memory_space<vmem>>, vector<8x128xf32>
    tpu.vector_store %arg9[%c0_195, %c0_196], %710 {strides = array<i32>} : memref<8x128xf32, #tpu.memory_space<vmem>>, vector<8x128xf32>,
    %c0_197 = arith.constant 0 : index
    %c0_198 = arith.constant 0 : index
    %722 = vector.load %arg11[%c0_197, %c0_198] : memref<128x128xf32, #tpu.memory_space<vmem>>, vector<128x128xf32>
    %723 = arith.truncf %722 : vector<128x128xf32> to vector<128x128xbf16>
    %c0_199 = arith.constant 0 : index
    %c0_200 = arith.constant 0 : index
    %724 = vector.load %arg7[%c0_199, %c0_200] : memref<128x128xbf16, #tpu.memory_space<vmem>>, vector<128x128xbf16>
    tpu.vector_store %arg7[%c0_199, %c0_200], %723 {strides = array<i32>} : memref<128x128xbf16, #tpu.memory_space<vmem>>, vector<128x128xbf16>,
    return
  }
  func.func @transform_0(%arg0: i32) -> (i32, i32) {
    %c0_i32 = arith.constant 0 : i32
    %c0_i32_0 = arith.constant 0 : i32
    %c0_i32_1 = arith.constant 0 : i32
    return %c0_i32, %c0_i32_0 : i32, i32
  }
  func.func @transform_1(%arg0: i32) -> (i32, i32) {
    %c0_i32 = arith.constant 0 : i32
    %c0_i32_0 = arith.constant 0 : i32
    return %arg0, %c0_i32 : i32, i32
  }
  func.func @transform_2(%arg0: i32) -> (i32, i32) {
    %c0_i32 = arith.constant 0 : i32
    %c0_i32_0 = arith.constant 0 : i32
    %c0_i32_1 = arith.constant 0 : i32
    return %c0_i32, %c0_i32_0 : i32, i32
  }
  func.func @transform_3(%arg0: i32) -> (i32, i32) {
    %c0_i32 = arith.constant 0 : i32
    %c0_i32_0 = arith.constant 0 : i32
    %c0_i32_1 = arith.constant 0 : i32
    return %c0_i32, %c0_i32_0 : i32, i32
  }
  func.func @transform_4(%arg0: i32) -> (i32, i32) {
    %c0_i32 = arith.constant 0 : i32
    %c0_i32_0 = arith.constant 0 : i32
    %c0_i32_1 = arith.constant 0 : i32
    return %c0_i32, %c0_i32_0 : i32, i32
  }
  func.func @transform_5(%arg0: i32) -> (i32, i32) {
    %c0_i32 = arith.constant 0 : i32
    %c0_i32_0 = arith.constant 0 : i32
    %c0_i32_1 = arith.constant 0 : i32
    return %c0_i32, %c0_i32_0 : i32, i32
  }
  func.func @transform_6(%arg0: i32) -> (i32, i32) {
    %c0_i32 = arith.constant 0 : i32
    %c0_i32_0 = arith.constant 0 : i32
    return %arg0, %c0_i32 : i32, i32
  }
  func.func @transform_7(%arg0: i32) -> (i32, i32) {
    %c0_i32 = arith.constant 0 : i32
    %c0_i32_0 = arith.constant 0 : i32
    %c0_i32_1 = arith.constant 0 : i32
    return %c0_i32, %c0_i32_0 : i32, i32
  }
}

</mosaic_0001>

<bundles_post_ra>
// kernel: encoder_forward.6
= control target key start
LH: loop header
LB: loop body
LE: loop exit
PB: predicated region body
PF: predicated region fallthrough
CT: control target
= control target key end

     0   :  { %v316_v0 = vmov 0.0   ;;  %vm317_vm0 = vmmov 0   ;;  %s386_s1 = inlined_call_operand.vmem [shape: bf16[128,128], index: 1, kind: input, shape index: {}]   ;;  %s387_s0 = inlined_call_operand.vmem [shape: bf16[48,128], index: 0, kind: input, shape index: {}]   ;;  %s388_s2 = inlined_call_operand.vmem [shape: f32[1,128], index: 2, kind: input, shape index: {}]   ;;  %s389_s3 = inlined_call_operand.vmem [shape: bf16[48,128], index: 3, kind: output, shape index: {}]  }
   0x1   :  { %287 = vmatprep.subr.bf16.mxu1 %v316_v0  ;;  %v305_v1 = vld [vmem:[%s386_s1 + $0x38] sm:$0xff]   ;;  %259 = vmatprep.subr.bf16.mxu0 %v316_v0  ;;  %v306_v2 = vld [vmem:[%s386_s1 + $0x30] sm:$0xff]   ;;  %v307_v3 = vld [vmem:[%s386_s1 + $0x28] sm:$0xff]  }
   0x2   :  { %279 = vmatprep.mubr.msk.bf16.mxu1 %vm317_vm0, %v316_v0  ;;  %275 = vmatprep.mubr.msk.bf16.mxu0 %vm317_vm0, %v316_v0  ;;  %v308_v4 = vld [vmem:[%s386_s1 + $0x20] sm:$0xff]   ;;  %v309_v5 = vld [vmem:[%s386_s1 + $0x18] sm:$0xff]   ;;  %v310_v6 = vld [vmem:[%s386_s1 + $0x10] sm:$0xff]  }
   0x3   :  { %295 = vmatpush3.bf16.msra.mxu1 %v305_v1  ;;  %260 = vmatpush3.bf16.msra.mxu0 %v305_v1  ;;  %v311_v7 = vld [vmem:[%s386_s1 + $0x8] sm:$0xff]   ;;  %v312_v8 = vld [vmem:[%s386_s1] sm:$0xff]   ;;  %v315_v11 = vld [vmem:[%s387_s0 + $0x10] sm:$0xff]  }
   0x4   :  { %288 = vmatprep.subr.bf16.mxu1 %v316_v0  ;;  %261 = vmatprep.subr.bf16.mxu0 %v316_v0  ;;  %v313_v9 = vld [vmem:[%s387_s0 + $0x8] sm:$0xff]   ;;  %v314_v10 = vld [vmem:[%s387_s0] sm:$0xff]  }
   0x5   :  { %v207_v12 = vld [vmem:[%s388_s2] ss:$0 sm:$0xff] }
   0x7   :  { %296 = vmatpush3.bf16.msra.mxu1 %v306_v2  ;;  %262 = vmatpush3.bf16.msra.mxu0 %v306_v2 }
   0x8   :  { %289 = vmatprep.subr.bf16.mxu1 %v316_v0  ;;  %263 = vmatprep.subr.bf16.mxu0 %v316_v0 }
   0xb   :  { %297 = vmatpush3.bf16.msra.mxu1 %v307_v3  ;;  %264 = vmatpush3.bf16.msra.mxu0 %v307_v3 }
   0xc   :  { %290 = vmatprep.subr.bf16.mxu1 %v316_v0  ;;  %265 = vmatprep.subr.bf16.mxu0 %v316_v0 }
   0xf   :  { %298 = vmatpush3.bf16.msra.mxu1 %v308_v4  ;;  %266 = vmatpush3.bf16.msra.mxu0 %v308_v4 }
  0x10   :  { %291 = vmatprep.subr.bf16.mxu1 %v316_v0  ;;  %267 = vmatprep.subr.bf16.mxu0 %v316_v0 }
  0x13   :  { %299 = vmatpush3.bf16.msra.mxu1 %v309_v5  ;;  %268 = vmatpush3.bf16.msra.mxu0 %v309_v5 }
  0x14   :  { %292 = vmatprep.subr.bf16.mxu1 %v316_v0  ;;  %269 = vmatprep.subr.bf16.mxu0 %v316_v0 }
  0x17   :  { %300 = vmatpush3.bf16.msra.mxu1 %v310_v6  ;;  %270 = vmatpush3.bf16.msra.mxu0 %v310_v6 }
  0x18   :  { %293 = vmatprep.subr.bf16.mxu1 %v316_v0  ;;  %271 = vmatprep.subr.bf16.mxu0 %v316_v0 }
  0x1b   :  { %301 = vmatpush3.bf16.msra.mxu1 %v311_v7  ;;  %272 = vmatpush3.bf16.msra.mxu0 %v311_v7 }
  0x1c   :  { %294 = vmatprep.subr.bf16.mxu1 %v316_v0  ;;  %273 = vmatprep.subr.bf16.mxu0 %v316_v0 }
  0x1f   :  { %302 = vmatpush3.bf16.msra.mxu1 %v312_v8  ;;  %274 = vmatpush3.bf16.msra.mxu0 %v312_v8 }
  0x22   :  { %280 = vmatmul.mubr.bf16.vlgmr.msra.gmra.mxu1 %v313_v9  ;;  %276 = vmatmul.mubr.bf16.vlgmr.msra.gmra.mxu0 %v314_v10 }
  0x23   :  { %283 = vmatprep.mubr.msk.bf16.mxu1 %vm317_vm0, %v316_v0 }
  0x2a   :  { %284 = vmatmul.mubr.bf16.gmra.mxu1 %v315_v11 }
  0xe2   :  { %v152_v13 = vpop.f32.mrf.mxu1  ;;  %v144_v14 = vpop.f32.mrf.mxu0 }
  0xe3   :  { %v145_v15 = vadd.f32 %v207_v12, %v144_v14  ;;  %v153_v18 = vadd.f32 %v207_v12, %v152_v13 }
  0xe4   :  { %v281_v16 = vpop.f32.mrf.mxu1  ;;  %v277_v17 = vpop.f32.mrf.mxu0 }
  0xe5   :  { %v167_v21 = vmax.f32 %v145_v15, 0.0  ;;  %v169_v26 = vmax.f32 %v153_v18, 0.0 }
  0xe6   :  { %v155_v19 = vpop.f32.mrf.mxu1  ;;  %v147_v20 = vpop.f32.mrf.mxu0 }
  0xe7   :  { %v156_v22 = vadd.f32 %v207_v12, %v155_v19  ;;  %v148_v23 = vadd.f32 %v207_v12, %v147_v20 }
  0xe8   :  { %v282_v24 = vpop.f32.mrf.mxu1  ;;  %v278_v25 = vpop.f32.mrf.mxu0 }
  0xe9   :  { %v170_v27 = vmax.f32 %v156_v22, 0.0  ;;  %v168_v28 = vmax.f32 %v148_v23, 0.0 }
  0xea   :  { %v160_v29 = vpop.f32.mrf.mxu1 }
  0xeb   :  { %v239_v30 = vpack.c.bf16 %v170_v27, %v169_v26  ;;  %v234_v31 = vpack.c.bf16 %v168_v28, %v167_v21  ;;  %v161_v33 = vadd.f32 %v207_v12, %v160_v29 }
  0xec   :  { %v285_v32 = vpop.f32.mrf.mxu1 }
  0xed   :  { %246 = vst [vmem:[%s389_s3 + $0x8] sm:$0xff] %v239_v30   ;;  %235 = vst [vmem:[%s389_s3] sm:$0xff] %v234_v31   ;;  %v171_v37 = vmax.f32 %v161_v33, 0.0 }
  0xee   :  { %v163_v34 = vpop.f32.mrf.mxu1 }
  0xef   :  { %v164_v35 = vadd.f32 %v207_v12, %v163_v34 }
  0xf0   :  { %v286_v36 = vpop.f32.mrf.mxu1 }
  0xf1   :  { %v172_v38 = vmax.f32 %v164_v35, 0.0 }
  0xf3   :  { %v244_v39 = vpack.c.bf16 %v172_v38, %v171_v37 }
  0xf5   :  { %247 = vst [vmem:[%s389_s3 + $0x10] sm:$0xff] %v244_v39  }

// kernel: encoder_forward.11
= control target key start
LH: loop header
LB: loop body
LE: loop exit
PB: predicated region body
PF: predicated region fallthrough
CT: control target
= control target key end

     0   :  { %s3850_s21 = smov 0   ;;  %s5263_s0 = inlined_call_operand.vmem [shape: s32[8,1], index: 0, kind: input, shape index: {}]   ;;  %s5264_s1 = inlined_call_operand.vmem [shape: bf16[256,128], index: 1, kind: input, shape index: {}]   ;;  %s5265_s2 = inlined_call_operand.vmem [shape: bf16[128,384], index: 2, kind: input, shape index: {}]   ;;  %s5266_s3 = inlined_call_operand.vmem [shape: f32[1,384], index: 3, kind: input, shape index: {}]   ;;  %s5267_s4 = inlined_call_operand.vmem [shape: bf16[128,384], index: 4, kind: input, shape index: {}]   ;;  %s5268_s5 = inlined_call_operand.vmem [shape: f32[1,128], index: 5, kind: input, shape index: {}]   ;;  %s5269_s6 = inlined_call_operand.vmem [shape: f32[8,128], index: 6, kind: output, shape index: {}]  }
   0x1 LB: > { %s2895_s22 = sadd.s32 4294967295, %s3809_s21   ;;  %p2898_p0 = scmp.ge.s32.totalorder %s3809_s21, 1  ;;  %s3809_s21 = sphi %s3850_s21, %s16_s21  }
   0x2   : > { %p208_p1 = scmp.lt.s32.totalorder %s3809_s21, 3 }
   0x4   : > { %p209_p2 = pnand %p2898_p0, %p208_p1 }
   0x6   : > { %212 = sbr.rel (%p209_p2) target bundleno = 4103 (0x1007), region = 44 }
   0xb   : > { %s3858_s23 = sshll.u32 %s2895_s22, 4  ;;  %p2901_p4 = scmp.ne.s32.totalorder %s2895_s22, 0 }
   0xc   : > { %p234_p3 = scmp.lt.s32.totalorder %s3858_s23, 31 }
   0xd   : > { %243 = sbr.rel (%p2901_p4) target bundleno = 20 (0x14), region = 48 }
   0xe   : > { %s235_s24 = scalar_select %p234_p3, %s3858_s23, 31 }
  0x10   : > { %s2900_s25 = sshll.u32 %s235_s24, 2 }
  0x11   : > { %s3865_s28 = scalar_lea.vmem %s5264_s1, %s2900_s25 }
  0x12   : > { %v3811_v0 = vmov 0.0  }
  0x13   : > { %244 = vst [vmem:[#allocation2] sm:$0xff] %v3811_v0  ;;  %245 = vst [vmem:[%s5269_s6] sm:$0xff] %v3811_v0 }
  0x14 PF: > { %v3521_v1 = vld [vmem:[%s5265_s2 + $0xac] ss:$12 sps:$4 sm:$0xff]   ;;  %v3523_v2 = vld [vmem:[%s5265_s2 + $0xb0] ss:$12 sps:$4 sm:$0xff]   ;;  %v5270_v3 = vmov 0   ;;  %v3553_v19 = vld [vmem:[%s3865_s28] sm:$0xff]   ;;  %v1026_v45 = vstv %s3858_s23 }
  0x15   : > { %519 = vmatprep.mubr.bf16.mxu0 %v5270_v3  ;;  %3519 = vset.pattern.permute.xlu0 %v5270_v3  ;;  %v3524_v4 = vld [vmem:[%s5265_s2 + $0xa8] ss:$12 sps:$4 sm:$0xff]   ;;  %v3527_v6 = vld [vmem:[%s5265_s2 + $0x98] ss:$12 sps:$4 sm:$0xff]   ;;  %v3528_v7 = vld [vmem:[%s5265_s2 + $0x90] ss:$12 sps:$4 sm:$0xff]  }
  0x16   : > { %487 = vmatprep.subr.bf16.mxu0 %v3521_v1  ;;  %3520 = vset.pattern.permute.xlu1 %v5270_v3  ;;  %v3525_v5 = vld [vmem:[%s5265_s2 + $0x94] ss:$12 sps:$4 sm:$0xff]   ;;  %v3529_v8 = vld [vmem:[%s5265_s2 + $0x7c] ss:$12 sps:$4 sm:$0xff]   ;;  %v3532_v10 = vld [vmem:[%s5265_s2 + $0x78] ss:$12 sps:$4 sm:$0xff]  }
  0x17   : > { %3155 = vmatprep.subr.bf16.mxu1 %v3523_v2  ;;  %488 = vmatpush1.bf16.msra.mxu0 %v3524_v4  ;;  %v3531_v9 = vld [vmem:[%s5265_s2 + $0x80] ss:$12 sps:$4 sm:$0xff]   ;;  %v3533_v11 = vld [vmem:[%s5265_s2 + $0x64] ss:$12 sps:$4 sm:$0xff]   ;;  %v3535_v12 = vld [vmem:[%s5265_s2 + $0x68] ss:$12 sps:$4 sm:$0xff]   ;;  %v296_v4 = vlaneseq }
  0x18   : > { %3156 = vmatpush3.bf16.msra.mxu1 %v3523_v2  ;;  %489 = vmatprep.subr.bf16.mxu0 %v3525_v5  ;;  %v3536_v13 = vld [vmem:[%s5265_s2 + $0x60] ss:$12 sps:$4 sm:$0xff]   ;;  %v3539_v15 = vld [vmem:[%s5265_s2 + $0x50] ss:$12 sps:$4 sm:$0xff]   ;;  %v3540_v16 = vld [vmem:[%s5265_s2 + $0x48] ss:$12 sps:$4 sm:$0xff]  }
  0x19   : > { %3157 = vmatprep.subr.bf16.mxu1 %v3527_v6  ;;  %v3537_v14 = vld [vmem:[%s5265_s2 + $0x4c] ss:$12 sps:$4 sm:$0xff]   ;;  %v3541_v17 = vld [vmem:[%s5265_s2 + $0x34] ss:$12 sps:$4 sm:$0xff]   ;;  %v3544_v20 = vld [vmem:[%s5265_s2 + $0x30] ss:$12 sps:$4 sm:$0xff]   ;;  %3171 = vmatprep.mubr.bf16.mxu1 %v3553_v19 }
  0x1a   : > { %v3543_v18 = vld [vmem:[%s5265_s2 + $0x38] ss:$12 sps:$4 sm:$0xff]   ;;  %v3545_v21 = vld [vmem:[%s5265_s2 + $0x1c] ss:$12 sps:$4 sm:$0xff]   ;;  %v3547_v22 = vld [vmem:[%s5265_s2 + $0x20] ss:$12 sps:$4 sm:$0xff]  }
  0x1b   : > { %490 = vmatpush1.bf16.msra.mxu0 %v3528_v7  ;;  %v3548_v23 = vld [vmem:[%s5265_s2 + $0x18] ss:$12 sps:$4 sm:$0xff]   ;;  %v3551_v25 = vld [vmem:[%s5265_s2 + $0x8] ss:$12 sps:$4 sm:$0xff]   ;;  %v3552_v26 = vld [vmem:[%s5265_s2] ss:$12 sps:$4 sm:$0xff]  }
  0x1c   : > { %3158 = vmatpush3.bf16.msra.mxu1 %v3527_v6  ;;  %491 = vmatprep.subr.bf16.mxu0 %v3529_v8  ;;  %v3549_v24 = vld [vmem:[%s5265_s2 + $0x4] ss:$12 sps:$4 sm:$0xff]   ;;  %v3949_v27 = vld [vmem:[%s5267_s4 + $0xac] ss:$12 sps:$4 sm:$0xff]   ;;  %v3955_v29 = vld [vmem:[%s5267_s4 + $0xa8] ss:$12 sps:$4 sm:$0xff]  }
  0x1d   : > { %3159 = vmatprep.subr.bf16.mxu1 %v3531_v9  ;;  %v3554_v28 = vld [vmem:[%s3865_s28 + $0x8] sm:$0xff]   ;;  %v3960_v30 = vld [vmem:[%s5267_s4 + $0xb0] ss:$12 sps:$4 sm:$0xff]   ;;  %v5272_v31 = vmov 0.0   ;;  %v3967_v32 = vld [vmem:[%s5267_s4 + $0x94] ss:$12 sps:$4 sm:$0xff]  }
  0x1e   : > { %v3562_v33 = vld [vmem:[%s3865_s28 + $0x10] sm:$0xff]   ;;  %v3980_v35 = vld [vmem:[%s5267_s4 + $0x98] ss:$12 sps:$4 sm:$0xff]   ;;  %v3987_v36 = vld [vmem:[%s5267_s4 + $0x7c] ss:$12 sps:$4 sm:$0xff]   ;;  %vm3814_vm1 = vmmov 0  }
  0x1f   : > { %492 = vmatpush1.bf16.msra.mxu0 %v3532_v10  ;;  %v3973_v34 = vld [vmem:[%s5267_s4 + $0x90] ss:$12 sps:$4 sm:$0xff]   ;;  %v3995_v38 = vld [vmem:[%s5267_s4 + $0x78] ss:$12 sps:$4 sm:$0xff]   ;;  %v4009_v41 = vld [vmem:[%s5267_s4 + $0x80] ss:$12 sps:$4 sm:$0xff]  }
  0x20   : > { %3160 = vmatpush3.bf16.msra.mxu1 %v3531_v9  ;;  %493 = vmatprep.subr.bf16.mxu0 %v3533_v11  ;;  %v3563_v37 = vld [vmem:[%s3865_s28 + $0x18] sm:$0xff]   ;;  %v4002_v39 = vld [vmem:[%s5267_s4 + $0x64] ss:$12 sps:$4 sm:$0xff]   ;;  %v4015_v42 = vld [vmem:[%s5267_s4 + $0x60] ss:$12 sps:$4 sm:$0xff]   ;;  %s1146_s20 = sadd.s32 1, %s3858_s23 }
  0x21   : > { %3161 = vmatprep.subr.bf16.mxu1 %v3535_v12  ;;  %v3571_v40 = vld [vmem:[%s3865_s28 + $0x20] sm:$0xff]   ;;  %v4022_v43 = vld [vmem:[%s5267_s4 + $0x4c] ss:$12 sps:$4 sm:$0xff]   ;;  %v4032_v46 = vld [vmem:[%s5267_s4 + $0x68] ss:$12 sps:$4 sm:$0xff]   ;;  %v1147_v1 = vstv %s1146_s20  ;;  %v297_v5 = vshrl.u32 %v296_v4, 7 }
  0x22   : > { %v778_v44 = vld [vmem:[%s5263_s0] sm:$0xff]  ;;  %v3572_v48 = vld [vmem:[%s3865_s28 + $0x28] sm:$0xff]   ;;  %v3580_v51 = vld [vmem:[%s3865_s28 + $0x30] sm:$0xff]   ;;  %s1267_s27 = sadd.s32 2, %s3858_s23  ;;  %s1388_s29 = sadd.s32 3, %s3858_s23 }
  0x23   : > { %494 = vmatpush1.bf16.msra.mxu0 %v3536_v13  ;;  %v4034_v47 = vadd.s32 4294967295, %v778_v44  ;;  %v4042_v49 = vld [vmem:[%s5267_s4 + $0x48] ss:$12 sps:$4 sm:$0xff]   ;;  %v4057_v53 = vld [vmem:[%s5267_s4 + $0x50] ss:$12 sps:$4 sm:$0xff]   ;;  %v4100_v61 = vld [vmem:[#allocation2] sm:$0xff] }
  0x24   : > { %3162 = vmatpush3.bf16.msra.mxu1 %v3535_v12  ;;  %495 = vmatprep.subr.bf16.mxu0 %v3537_v14  ;;  %v4049_v50 = vld [vmem:[%s5267_s4 + $0x34] ss:$12 sps:$4 sm:$0xff]   ;;  %v4063_v54 = vld [vmem:[%s5267_s4 + $0x30] ss:$12 sps:$4 sm:$0xff]   ;;  %v4079_v57 = vld [vmem:[%s5267_s4 + $0x18] ss:$12 sps:$4 sm:$0xff]   ;;  %v788_v63 = vpack.c.bf16 %v4100_v61, %v4100_v61 }
  0x25   : > { %3163 = vmatprep.subr.bf16.mxu1 %v3539_v15  ;;  %vm1027_vm0 = vcmp.eq.s32.totalorder %v4034_v47, %v1026_v45  ;;  %v4070_v55 = vld [vmem:[%s5267_s4 + $0x1c] ss:$12 sps:$4 sm:$0xff]   ;;  %v4086_v58 = vld [vmem:[%s5267_s4 + $0x4] ss:$12 sps:$4 sm:$0xff]   ;;  %v4097_v60 = vld [vmem:[%s5267_s4] ss:$12 sps:$4 sm:$0xff]   ;;  %vm1148_vm2 = vcmp.eq.s32.totalorder %v4034_v47, %v1147_v1 }
  0x26   : > { %v1029_v52 = vsel %vm1027_vm0, 1, %v5270_v3  ;;  %v3581_v56 = vld [vmem:[%s3865_s28 + $0x38] sm:$0xff]   ;;  %v4108_v62 = vld [vmem:[%s5267_s4 + $0x20] ss:$12 sps:$4 sm:$0xff]   ;;  %v4119_v0 = vld [vmem:[%s5267_s4 + $0x8] ss:$12 sps:$4 sm:$0xff]  }
  0x27   : > { %496 = vmatpush1.bf16.msra.mxu0 %v3540_v16  ;;  %1031 = vperm.xlu0 %3519, %v1029_v52   ;;  %v4091_v59 = vld [vmem:[%s5267_s4 + $0x38] ss:$12 sps:$4 sm:$0xff]   ;;  %v1150_v2 = vsel %vm1148_vm2, 1, %v5270_v3  ;;  %v306_v6 = vsub.s32 2, %v297_v5  ;;  %v294_v7 = vld [vmem:[%s5266_s3] sm:$0x7] }
  0x28   : > { %3164 = vmatpush3.bf16.msra.mxu1 %v3539_v15  ;;  %497 = vmatprep.subr.bf16.mxu0 %v3541_v17  ;;  %v298_v9 = vsub.s32 0, %v297_v5  ;;  %v302_v13 = vsub.s32 1, %v297_v5  ;;  %s1509_s30 = sadd.s32 4, %s3858_s23  ;;  %s1630_s16 = sadd.s32 5, %s3858_s23 }
  0x29   : > { %3165 = vmatprep.subr.bf16.mxu1 %v3543_v18  ;;  %v4170_v8 = vrot.slane %v294_v7, %v306_v6  ;;  %s1751_s12 = sadd.s32 6, %s3858_s23  ;;  %s1872_s13 = sadd.s32 7, %s3858_s23 }
  0x2a   : > { %v4179_v16 = vrot.slane %v294_v7, %v298_v9  ;;  %s1993_s28 = sadd.s32 8, %s3858_s23  ;;  %s2235_s17 = sadd.s32 10, %s3858_s23 }
  0x2b   : > { %498 = vmatpush1.bf16.msra.mxu0 %v3544_v20  ;;  %1152 = vperm.xlu0 %3519, %v1150_v2   ;;  %s2356_s18 = sadd.s32 11, %s3858_s23  ;;  %s2477_s19 = sadd.s32 12, %s3858_s23 }
  0x2c   : > { %3166 = vmatpush3.bf16.msra.mxu1 %v3543_v18  ;;  %499 = vmatprep.subr.bf16.mxu0 %v3545_v21  ;;  %s2598_s9 = sadd.s32 13, %s3858_s23 }
  0x2d   : > { %3167 = vmatprep.subr.bf16.mxu1 %v3547_v22 }
  0x2f   : > { %500 = vmatpush1.bf16.msra.mxu0 %v3548_v23 }
  0x30   : > { %3168 = vmatpush3.bf16.msra.mxu1 %v3547_v22  ;;  %501 = vmatprep.subr.bf16.mxu0 %v3549_v24 }
  0x31   : > { %3169 = vmatprep.subr.bf16.mxu1 %v3551_v25 }
  0x33   : > { %502 = vmatpush1.bf16.msra.mxu0 %v3552_v26 }
  0x34   : > { %3170 = vmatpush3.bf16.msra.mxu1 %v3551_v25  ;;  %3187 = vmatprep.subr.bf16.mxu0 %v5272_v31 }
  0x35   : > { %917 = vmatprep.subr.bf16.mxu1 %v3949_v27 }
  0x36   : > { %520 = vmatmul.mubr.bf16.vlgmr.msra.gmra.mxu0 %v3553_v19  ;;  %v4181_v19 = vrot.slane %v294_v7, %v302_v13 }
  0x37   : > { %3172 = vmatmul.mubr.bf16.vlgmr.msra.gmra.mxu1 %v3554_v28  ;;  %3188 = vmatpush3.bf16.msra.mxu0 %v3960_v30 }
  0x38   : > { %918 = vmatpush1.bf16.msra.mxu1 %v3955_v29  ;;  %529 = vmatprep.mubr.bf16.mxu0 %v5270_v3 }
  0x39   : > { %919 = vmatprep.subr.bf16.mxu1 %v3967_v32  ;;  %3175 = vmatprep.mubr.bf16.mxu1 %v3562_v33 }
  0x3a   : > { %3189 = vmatprep.subr.bf16.mxu0 %v5272_v31 }
  0x3b   : > { %3190 = vmatpush3.bf16.msra.mxu0 %v3980_v35 }
  0x3c   : > { %920 = vmatpush1.bf16.msra.mxu1 %v3973_v34  ;;  %3191 = vmatprep.subr.bf16.mxu0 %v5272_v31 }
  0x3d   : > { %921 = vmatprep.subr.bf16.mxu1 %v3987_v36 }
  0x3e   : > { %530 = vmatmul.mubr.bf16.gmra.mxu0 %v3554_v28 }
  0x3f   : > { %3176 = vmatmul.mubr.bf16.gmra.mxu1 %v3563_v37  ;;  %539 = vmatprep.mubr.bf16.mxu0 %v5270_v3 }
  0x40   : > { %922 = vmatpush1.bf16.msra.mxu1 %v3995_v38  ;;  %3179 = vmatprep.mubr.bf16.mxu1 %v3571_v40 }
  0x41   : > { %923 = vmatprep.subr.bf16.mxu1 %v4002_v39  ;;  %3192 = vmatpush3.bf16.msra.mxu0 %v4009_v41 }
  0x42   : > { %3193 = vmatprep.subr.bf16.mxu0 %v5272_v31 }
  0x44   : > { %924 = vmatpush1.bf16.msra.mxu1 %v4015_v42 }
  0x45   : > { %925 = vmatprep.subr.bf16.mxu1 %v4022_v43  ;;  %3194 = vmatpush3.bf16.msra.mxu0 %v4032_v46 }
  0x46   : > { %540 = vmatmul.mubr.bf16.gmra.mxu0 %v3562_v33  ;;  %3195 = vmatprep.subr.bf16.mxu0 %v5272_v31 }
  0x47   : > { %3180 = vmatmul.mubr.bf16.gmra.mxu1 %v3572_v48  ;;  %549 = vmatprep.mubr.bf16.mxu0 %v5270_v3 }
  0x48   : > { %926 = vmatpush1.bf16.msra.mxu1 %v4042_v49  ;;  %3183 = vmatprep.mubr.bf16.mxu1 %v3580_v51 }
  0x49   : > { %927 = vmatprep.subr.bf16.mxu1 %v4049_v50  ;;  %3196 = vmatpush3.bf16.msra.mxu0 %v4057_v53 }
  0x4a   : > { %3197 = vmatprep.subr.bf16.mxu0 %v5272_v31 }
  0x4c   : > { %928 = vmatpush1.bf16.msra.mxu1 %v4063_v54 }
  0x4d   : > { %929 = vmatprep.subr.bf16.mxu1 %v4070_v55  ;;  %3198 = vmatpush3.bf16.msra.mxu0 %v4091_v59 }
  0x4e   : > { %550 = vmatmul.mubr.bf16.gmra.mxu0 %v3563_v37  ;;  %3199 = vmatprep.subr.bf16.mxu0 %v5272_v31 }
  0x4f   : > { %3184 = vmatmul.mubr.bf16.gmra.mxu1 %v3581_v56  ;;  %559 = vmatprep.mubr.bf16.mxu0 %v5270_v3 }
  0x50   : > { %930 = vmatpush1.bf16.msra.mxu1 %v4079_v57  ;;  %949 = vmatprep.mubr.bf16.mxu1 %v5270_v3 }
  0x51   : > { %931 = vmatprep.subr.bf16.mxu1 %v4086_v58  ;;  %3200 = vmatpush3.bf16.msra.mxu0 %v4108_v62 }
  0x52   : > { %3201 = vmatprep.subr.bf16.mxu0 %v5272_v31 }
  0x54   : > { %932 = vmatpush1.bf16.msra.mxu1 %v4097_v60 }
  0x55   : > { %1043 = vmatprep.subr.bf16.mxu1 %v3949_v27  ;;  %3202 = vmatpush3.bf16.msra.mxu0 %v4119_v0 }
  0x56   : > { %560 = vmatmul.mubr.bf16.gmra.mxu0 %v3571_v40  ;;  %3207 = vmatprep.subr.bf16.mxu0 %v5272_v31 }
  0x57   : > { %950 = vmatmul.mubr.bf16.vlgmr.msra.gmra.mxu1 %v788_v63  ;;  %569 = vmatprep.mubr.bf16.mxu0 %v5270_v3 }
  0x58   : > { %1044 = vmatpush1.bf16.msra.mxu1 %v3955_v29  ;;  %1075 = vmatprep.mubr.bf16.mxu1 %v5270_v3 }
  0x59   : > { %1045 = vmatprep.subr.bf16.mxu1 %v3967_v32 }
  0x5c   : > { %1046 = vmatpush1.bf16.msra.mxu1 %v3973_v34 }
  0x5d   : > { %1047 = vmatprep.subr.bf16.mxu1 %v3987_v36 }
  0x5e   : > { %570 = vmatmul.mubr.bf16.gmra.mxu0 %v3572_v48 }
  0x5f   : > { %579 = vmatprep.mubr.bf16.mxu0 %v5270_v3 }
  0x60   : > { %1048 = vmatpush1.bf16.msra.mxu1 %v3995_v38 }
  0x61   : > { %1049 = vmatprep.subr.bf16.mxu1 %v4002_v39 }
  0x64   : > { %1050 = vmatpush1.bf16.msra.mxu1 %v4015_v42 }
  0x65   : > { %1051 = vmatprep.subr.bf16.mxu1 %v4022_v43 }
  0x66   : > { %580 = vmatmul.mubr.bf16.gmra.mxu0 %v3580_v51 }
  0x67   : > { %589 = vmatprep.mubr.bf16.mxu0 %v5270_v3 }
  0x68   : > { %1052 = vmatpush1.bf16.msra.mxu1 %v4042_v49 }
  0x69   : > { %1053 = vmatprep.subr.bf16.mxu1 %v4049_v50 }
  0x6c   : > { %1054 = vmatpush1.bf16.msra.mxu1 %v4063_v54 }
  0x6d   : > { %1055 = vmatprep.subr.bf16.mxu1 %v4070_v55 }
  0x6e   : > { %590 = vmatmul.mubr.bf16.gmra.mxu0 %v3581_v56 }
  0x6f   : > { %3203 = vmatprep.mubr.msk.bf16.mxu0 %vm3814_vm1, %v5272_v31 }
  0x70   : > { %1056 = vmatpush1.bf16.msra.mxu1 %v4079_v57 }
  0x71   : > { %1057 = vmatprep.subr.bf16.mxu1 %v4086_v58 }
  0x74   : > { %1058 = vmatpush1.bf16.msra.mxu1 %v4097_v60 }
  0x75   : > { %1164 = vmatprep.subr.bf16.mxu1 %v3949_v27 }
  0x76   : > { %3204 = vmatmul.mubr.bf16.vlgmr.msra.gmra.mxu0 %v788_v63 }
  0x77   : > { %3208 = vmatpush3.bf16.msra.mxu0 %v3960_v30  ;;  %3223 = vmatprep.mubr.msk.bf16.mxu0 %vm3814_vm1, %v5272_v31 }
  0x78   : > { %3209 = vmatprep.subr.bf16.mxu0 %v5272_v31 }
  0x7b   : > { %3210 = vmatpush3.bf16.msra.mxu0 %v3980_v35 }
  0x7c   : > { %3211 = vmatprep.subr.bf16.mxu0 %v5272_v31 }
  0x7f   : > { %3212 = vmatpush3.bf16.msra.mxu0 %v4009_v41 }
  0x80   : > { %3213 = vmatprep.subr.bf16.mxu0 %v5272_v31 }
  0x83   : > { %3214 = vmatpush3.bf16.msra.mxu0 %v4032_v46 }
  0x84   : > { %3215 = vmatprep.subr.bf16.mxu0 %v5272_v31 }
  0x87   : > { %3216 = vmatpush3.bf16.msra.mxu0 %v4057_v53 }
  0x88   : > { %3217 = vmatprep.subr.bf16.mxu0 %v5272_v31 }
  0x8b   : > { %3218 = vmatpush3.bf16.msra.mxu0 %v4091_v59 }
  0x8c   : > { %3219 = vmatprep.subr.bf16.mxu0 %v5272_v31 }
  0x8f   : > { %3220 = vmatpush3.bf16.msra.mxu0 %v4108_v62 }
  0x90   : > { %3221 = vmatprep.subr.bf16.mxu0 %v5272_v31 }
  0x93   : > { %3222 = vmatpush3.bf16.msra.mxu0 %v4119_v0 }
  0x94   : > { %3227 = vmatprep.subr.bf16.mxu0 %v5272_v31 }
  0xf6   : > { %v521_v10 = vpop.f32.mrf.mxu0 }
  0xf7   : > { %v3173_v11 = vpop.f32.mrf.mxu1 }
  0xf8   : > { %v4173_v12 = vadd.f32 %v3173_v11, %v4170_v8  ;;  %v4175_v14 = vpop.f32.mrf.mxu0 }
  0xf9   : > { %v4177_v15 = vpop.f32.mrf.mxu1 }
  0xfa   : > { %v525_v17 = vpop.f32.mrf.mxu0 }
  0xfb   : > { %v3174_v18 = vpop.f32.mrf.mxu1  ;;  %v4184_v20 = vadd.f32 %v525_v17, %v4179_v16 }
  0xfc   : > { %v4187_v21 = vadd.f32 %v3174_v18, %v4170_v8  ;;  %v527_v22 = vpop.f32.mrf.mxu0 }
  0xfd   : > { %v637_v23 = vpop.f32.mrf.mxu1  ;;  %v4190_v24 = vadd.f32 %v527_v22, %v4181_v19 }
  0xfe   : > { %v4193_v25 = vadd.f32 %v637_v23, %v4170_v8  ;;  %v531_v26 = vpop.f32.mrf.mxu0 }
  0xff   : > { %v3177_v28 = vpop.f32.mrf.mxu1  ;;  %v4196_v33 = vadd.f32 %v531_v26, %v4179_v16 }
 0x100   : > { %v4199_v37 = vadd.f32 %v3177_v28, %v4170_v8  ;;  %v533_v40 = vpop.f32.mrf.mxu0 }
 0x101   : > { %v650_v44 = vpop.f32.mrf.mxu1  ;;  %v4202_v45 = vadd.f32 %v533_v40, %v4181_v19 }
 0x102   : > { %v4205_v48 = vadd.f32 %v650_v44, %v4170_v8  ;;  %v535_v51 = vpop.f32.mrf.mxu0 }
 0x103   : > { %v3178_v52 = vpop.f32.mrf.mxu1  ;;  %v4208_v56 = vadd.f32 %v535_v51, %v4179_v16 }
 0x104   : > { %v4211_v63 = vadd.f32 %v3178_v52, %v4170_v8  ;;  %v537_v1 = vpop.f32.mrf.mxu0 }
 0x105   : > { %v653_v2 = vpop.f32.mrf.mxu1  ;;  %v4214_v4 = vadd.f32 %v537_v1, %v4181_v19 }
 0x106   : > { %5274 = vst [vmem:[#allocation4_spill] sm:$0xff] %v4211_v63  ;;  %v4217_v5 = vadd.f32 %v653_v2, %v4170_v8  ;;  %v541_v6 = vpop.f32.mrf.mxu0 }
 0x107   : > { %v3181_v7 = vpop.f32.mrf.mxu1  ;;  %v4220_v9 = vadd.f32 %v541_v6, %v4179_v16 }
 0x108   : > { %v4223_v11 = vadd.f32 %v3181_v7, %v4170_v8  ;;  %v543_v13 = vpop.f32.mrf.mxu0 }
 0x109   : > { %v666_v17 = vpop.f32.mrf.mxu1  ;;  %v4226_v18 = vadd.f32 %v543_v13, %v4181_v19 }
 0x10a   : > { %5275 = vst [vmem:[#allocation5_spill] sm:$0xff] %v4223_v11  ;;  %v4229_v22 = vadd.f32 %v666_v17, %v4170_v8  ;;  %v545_v23 = vpop.f32.mrf.mxu0 }
 0x10b   : > { %v3182_v26 = vpop.f32.mrf.mxu1  ;;  %v4232_v28 = vadd.f32 %v545_v23, %v4179_v16 }
 0x10c   : > { %5276 = vst [vmem:[#allocation6_spill] sm:$0xff] %v4229_v22  ;;  %v4235_v40 = vadd.f32 %v3182_v26, %v4170_v8  ;;  %v547_v44 = vpop.f32.mrf.mxu0 }
 0x10d   : > { %v669_v51 = vpop.f32.mrf.mxu1  ;;  %v4238_v52 = vadd.f32 %v547_v44, %v4181_v19 }
 0x10e   : > { %5277 = vst [vmem:[#allocation7_spill] sm:$0xff] %v4235_v40  ;;  %v4241_v1 = vadd.f32 %v669_v51, %v4170_v8  ;;  %v551_v2 = vpop.f32.mrf.mxu0 }
 0x10f   : > { %v3185_v6 = vpop.f32.mrf.mxu1  ;;  %v4244_v7 = vadd.f32 %v551_v2, %v4179_v16 }
 0x110   : > { %5278 = vst [vmem:[#allocation8_spill] sm:$0xff] %v4241_v1  ;;  %v4247_v13 = vadd.f32 %v3185_v6, %v4170_v8  ;;  %v553_v17 = vpop.f32.mrf.mxu0  ;;  %v522_v6 = vadd.f32 %v521_v10, %v4179_v16 }
 0x111   : > { %v682_v23 = vpop.f32.mrf.mxu1  ;;  %v4250_v26 = vadd.f32 %v553_v17, %v4181_v19 }
 0x112   : > { %5279 = vst [vmem:[#allocation9_spill] sm:$0xff] %v4247_v13  ;;  %v4253_v3 = vadd.f32 %v682_v23, %v4170_v8  ;;  %v555_v44 = vpop.f32.mrf.mxu0 }
 0x113   : > { %v3186_v31 = vpop.f32.mrf.mxu1  ;;  %v4256_v51 = vadd.f32 %v555_v44, %v4179_v16 }
 0x114   : > { %5280 = vst [vmem:[#allocation10_spill] sm:$0xff] %v4253_v3  ;;  %v4259_v40 = vadd.f32 %v3186_v31, %v4170_v8  ;;  %v557_v2 = vpop.f32.mrf.mxu0 }
 0x115   : > { %5281 = vst [vmem:[#allocation11_spill] sm:$0xff] %v4256_v51  ;;  %v685_v11 = vpop.f32.mrf.mxu1  ;;  %v4263_v13 = vadd.f32 %v557_v2, %v4181_v19  ;;  %v524_v2 = vadd.f32 %v4175_v14, %v4181_v19 }
 0x116   : > { %5282 = vst [vmem:[#allocation12_spill] sm:$0xff] %v4259_v40  ;;  %v4266_v17 = vadd.f32 %v685_v11, %v4170_v8  ;;  %v561_v23 = vpop.f32.mrf.mxu0 }
 0x117   : > { %5283 = vst [vmem:[#allocation13_spill] sm:$0xff] %v4263_v13  ;;  %v951_v3 = vpop.f32.mrf.mxu1  ;;  %v4269_v1 = vadd.f32 %v561_v23, %v4179_v16 }
 0x118   : > { %5284 = vst [vmem:[#allocation14_spill] sm:$0xff] %v4266_v17  ;;  %v998_v44 = vadd.f32 %v951_v3, %v522_v6  ;;  %v563_v22 = vpop.f32.mrf.mxu0 }
 0x119   : > { %5285 = vst [vmem:[#allocation15_spill] sm:$0xff] %v4269_v1  ;;  %v953_v63 = vpop.f32.mrf.mxu1  ;;  %v4272_v40 = vadd.f32 %v563_v22, %v4181_v19 }
 0x11a   : > { %v2960_v31 = vmul.f32 -1.442695, %v998_v44  ;;  %v565_v51 = vpop.f32.mrf.mxu0  ;;  %v1005_v23 = vadd.f32 %v953_v63, %v524_v2 }
 0x11b   : > { %5286 = vst [vmem:[#allocation16_spill] sm:$0xff] %v4272_v40  ;;  %v955_v10 = vpop.f32.mrf.mxu1  ;;  %v4277_v11 = vadd.f32 %v565_v51, %v4179_v16 }
 0x11c   : > { %3593 = vpow2.f32 %v2960_v31  ;;  %v567_v17 = vpop.f32.mrf.mxu0  ;;  %v2961_v40 = vmul.f32 -1.442695, %v1005_v23 }
 0x11d   : > { %5287 = vst [vmem:[#allocation17_spill] sm:$0xff] %v4277_v11  ;;  %v956_v13 = vpop.f32.mrf.mxu1  ;;  %v4280_v3 = vadd.f32 %v567_v17, %v4181_v19 }
 0x11e   : > { %v571_v6 = vpop.f32.mrf.mxu0  ;;  %3595 = vpow2.f32 %v2961_v40 }
 0x11f   : > { %5288 = vst [vmem:[#allocation18_spill] sm:$0xff] %v4280_v3  ;;  %v4283_v44 = vadd.f32 %v571_v6, %v4179_v16 }
 0x120   : > { %v573_v22 = vpop.f32.mrf.mxu0 }
 0x121   : > { %5289 = vst [vmem:[#allocation19_spill] sm:$0xff] %v4283_v44  ;;  %v4286_v10 = vadd.f32 %v573_v22, %v4181_v19 }
 0x122   : > { %v575_v14 = vpop.f32.mrf.mxu0 }
 0x123   : > { %5290 = vst [vmem:[#allocation20_spill] sm:$0xff] %v4286_v10  ;;  %v4289_v31 = vadd.f32 %v575_v14, %v4179_v16 }
 0x124   : > { %v577_v51 = vpop.f32.mrf.mxu0 }
 0x125   : > { %5291 = vst [vmem:[#allocation21_spill] sm:$0xff] %v4289_v31  ;;  %v4292_v63 = vadd.f32 %v577_v51, %v4181_v19 }
 0x126   : > { %v581_v13 = vpop.f32.mrf.mxu0 }
 0x127   : > { %5292 = vst [vmem:[#allocation22_spill] sm:$0xff] %v4292_v63  ;;  %v4295_v17 = vadd.f32 %v581_v13, %v4179_v16 }
 0x128   : > { %v583_v6 = vpop.f32.mrf.mxu0 }
 0x129   : > { %5293 = vst [vmem:[#allocation23_spill] sm:$0xff] %v4295_v17  ;;  %v3594_v2 = vpop.eup %3593  ;;  %v4298_v23 = vadd.f32 %v583_v6, %v4181_v19 }
 0x12a   : > { %v1002_v44 = vadd.f32 1.0, %v3594_v2  ;;  %v585_v22 = vpop.f32.mrf.mxu0 }
 0x12b   : > { %5294 = vst [vmem:[#allocation24_spill] sm:$0xff] %v4298_v23  ;;  %v4301_v14 = vadd.f32 %v585_v22, %v4179_v16  ;;  %v3596_v2 = vpop.eup %3595  ;;  %v4318_v22 = vld [vmem:[%s5268_s5] ss:$0 sm:$0xff] }
 0x12c   : > { %3597 = vrcp.f32 %v1002_v44  ;;  %v587_v31 = vpop.f32.mrf.mxu0 }
 0x12d   : > { %5295 = vst [vmem:[#allocation25_spill] sm:$0xff] %v4301_v14  ;;  %v4304_v40 = vadd.f32 %v587_v31, %v4181_v19  ;;  %v1009_v31 = vadd.f32 1.0, %v3596_v2  ;;  %v635_v14 = vadd.f32 %v4177_v15, %v4170_v8  ;;  %v5301_v8 = vmov 0.0  }
 0x12e   : > { %v591_v51 = vpop.f32.mrf.mxu0  ;;  %v5302_v15 = vmov 0  }
 0x12f   : > { %5296 = vst [vmem:[#allocation26_spill] sm:$0xff] %v4304_v40  ;;  %v4307_v63 = vadd.f32 %v591_v51, %v4179_v16  ;;  %3599 = vrcp.f32 %v1009_v31 }
 0x130   : > { %v593_v13 = vpop.f32.mrf.mxu0 }
 0x131   : > { %5297 = vst [vmem:[#allocation27_spill] sm:$0xff] %v4307_v63  ;;  %v4310_v17 = vadd.f32 %v593_v13, %v4181_v19 }
 0x132   : > { %v595_v6 = vpop.f32.mrf.mxu0 }
 0x133   : > { %5298 = vst [vmem:[#allocation28_spill] sm:$0xff] %v4310_v17  ;;  %v4313_v23 = vadd.f32 %v595_v6, %v4179_v16 }
 0x134   : > { %v597_v44 = vpop.f32.mrf.mxu0 }
 0x135   : > { %5299 = vst [vmem:[#allocation29_spill] sm:$0xff] %v4313_v23  ;;  %v4321_v40 = vadd.f32 %v597_v44, %v4181_v19 }
 0x136   : > { %v992_v51 = vpop.f32.mrf.mxu0 }
 0x137   : > { %5300 = vst [vmem:[#allocation30_spill] sm:$0xff] %v4321_v40  ;;  %v1018_v63 = vadd.f32 %v4318_v22, %v992_v51 }
 0x138   : > { %v3205_v17 = vpop.f32.mrf.mxu0 }
 0x139   : > { %v3598_v13 = vpop.eup %3597 }
 0x13a   : > { %v1019_v16 = vmul.f32 %v3598_v13, %v1018_v63  ;;  %v995_v6 = vpop.f32.mrf.mxu0 }
 0x13c   : > { %v1020_v23 = vadd.f32 %v1019_v16, %v635_v14  ;;  %v3206_v10 = vpop.f32.mrf.mxu0  ;;  %v3600_v3 = vpop.eup %3599 }
 0x13d   : > { %v1022_v11 = vsub.f32 1.0, %v3600_v3  ;;  %v1024_v19 = vmul.f32 %v3600_v3, %v4100_v61  ;;  %v1268_v61 = vstv %s1267_s27  ;;  %s2719_s27 = sadd.s32 14, %s3858_s23 }
 0x13e   : > { %3601 = vtanh.f32 %v1020_v23  ;;  %vm1269_vm3 = vcmp.eq.s32.totalorder %v4034_v47, %v1268_v61 }
 0x14b   : > { %v3602_v2 = vpop.eup %3601 }
 0x14c   : > { %v1023_v1 = vmul.f32 %v3602_v2, %v1022_v11 }
 0x14e   : > { %v4327_v44 = vadd.f32 %v1024_v19, %v1023_v1  ;;  %v1271_v1 = vsel %vm1269_vm3, 1, %v5302_v15 }
 0x14f   : > { %1273 = vperm.xlu1 %3520, %v1271_v1  }
 0x150   : > { %v1042_v17 = vpack.c.bf16 %v4327_v44, %v4327_v44 }
 0x152   : > { %1076 = vmatmul.mubr.bf16.vlgmr.msra.gmra.mxu1 %v1042_v17  ;;  %3224 = vmatmul.mubr.bf16.vlgmr.msra.gmra.mxu0 %v1042_v17 }
 0x153   : > { %1165 = vmatpush1.bf16.msra.mxu1 %v3955_v29  ;;  %3228 = vmatpush3.bf16.msra.mxu0 %v3960_v30 }
 0x154   : > { %1166 = vmatprep.subr.bf16.mxu1 %v3967_v32  ;;  %3229 = vmatprep.subr.bf16.mxu0 %v5301_v8 }
 0x155   : > { %1196 = vmatprep.mubr.bf16.mxu1 %v5302_v15  ;;  %3243 = vmatprep.mubr.msk.bf16.mxu0 %vm3814_vm1, %v5301_v8 }
 0x157   : > { %1167 = vmatpush1.bf16.msra.mxu1 %v3973_v34  ;;  %3230 = vmatpush3.bf16.msra.mxu0 %v3980_v35 }
 0x158   : > { %1168 = vmatprep.subr.bf16.mxu1 %v3987_v36  ;;  %3231 = vmatprep.subr.bf16.mxu0 %v5301_v8 }
 0x15b   : > { %1169 = vmatpush1.bf16.msra.mxu1 %v3995_v38  ;;  %3232 = vmatpush3.bf16.msra.mxu0 %v4009_v41 }
 0x15c   : > { %1170 = vmatprep.subr.bf16.mxu1 %v4002_v39  ;;  %3233 = vmatprep.subr.bf16.mxu0 %v5301_v8 }
 0x15f   : > { %1171 = vmatpush1.bf16.msra.mxu1 %v4015_v42  ;;  %3234 = vmatpush3.bf16.msra.mxu0 %v4032_v46 }
 0x160   : > { %1172 = vmatprep.subr.bf16.mxu1 %v4022_v43  ;;  %3235 = vmatprep.subr.bf16.mxu0 %v5301_v8 }
 0x163   : > { %1173 = vmatpush1.bf16.msra.mxu1 %v4042_v49  ;;  %3236 = vmatpush3.bf16.msra.mxu0 %v4057_v53 }
 0x164   : > { %1174 = vmatprep.subr.bf16.mxu1 %v4049_v50  ;;  %3237 = vmatprep.subr.bf16.mxu0 %v5301_v8 }
 0x167   : > { %1175 = vmatpush1.bf16.msra.mxu1 %v4063_v54  ;;  %3238 = vmatpush3.bf16.msra.mxu0 %v4091_v59 }
 0x168   : > { %1176 = vmatprep.subr.bf16.mxu1 %v4070_v55  ;;  %3239 = vmatprep.subr.bf16.mxu0 %v5301_v8 }
 0x16b   : > { %1177 = vmatpush1.bf16.msra.mxu1 %v4079_v57  ;;  %3240 = vmatpush3.bf16.msra.mxu0 %v4108_v62 }
 0x16c   : > { %1178 = vmatprep.subr.bf16.mxu1 %v4086_v58  ;;  %3241 = vmatprep.subr.bf16.mxu0 %v5301_v8 }
 0x16f   : > { %1179 = vmatpush1.bf16.msra.mxu1 %v4097_v60  ;;  %3242 = vmatpush3.bf16.msra.mxu0 %v4119_v0 }
 0x170   : > { %1285 = vmatprep.subr.bf16.mxu1 %v3949_v27  ;;  %3247 = vmatprep.subr.bf16.mxu0 %v5301_v8 }
 0x212   : > { %v1077_v11 = vpop.f32.mrf.mxu1  ;;  %v1118_v3 = vpop.f32.mrf.mxu0 }
 0x213   : > { %v1124_v10 = vadd.f32 %v1077_v11, %v4184_v20  ;;  %v1138_v40 = vadd.f32 %v4318_v22, %v1118_v3 }
 0x214   : > { %v1079_v63 = vpop.f32.mrf.mxu1  ;;  %v3225_v23 = vpop.f32.mrf.mxu0 }
 0x215   : > { %v2963_v14 = vmul.f32 -1.442695, %v1124_v10  ;;  %v1131_v6 = vadd.f32 %v1079_v63, %v4190_v24 }
 0x216   : > { %v1081_v31 = vpop.f32.mrf.mxu1  ;;  %v1121_v51 = vpop.f32.mrf.mxu0 }
 0x217   : > { %3603 = vpow2.f32 %v2963_v14  ;;  %v2964_v2 = vmul.f32 -1.442695, %v1131_v6 }
 0x218   : > { %v1082_v13 = vpop.f32.mrf.mxu1  ;;  %v3226_v16 = vpop.f32.mrf.mxu0 }
 0x219   : > { %3605 = vpow2.f32 %v2964_v2 }
 0x224   : > { %v3604_v19 = vpop.eup %3603 }
 0x225   : > { %v1128_v17 = vadd.f32 1.0, %v3604_v19 }
 0x226   : > { %v3606_v61 = vpop.eup %3605 }
 0x227   : > { %3607 = vrcp.f32 %v1128_v17  ;;  %v1135_v1 = vadd.f32 1.0, %v3606_v61 }
 0x229   : > { %3609 = vrcp.f32 %v1135_v1 }
 0x234   : > { %v3608_v20 = vpop.eup %3607 }
 0x235   : > { %v1139_v11 = vmul.f32 %v3608_v20, %v1138_v40 }
 0x236   : > { %v3610_v23 = vpop.eup %3609 }
 0x237   : > { %v1140_v10 = vadd.f32 %v1139_v11, %v4193_v25  ;;  %v1142_v14 = vsub.f32 1.0, %v3610_v23  ;;  %v1144_v24 = vmul.f32 %v3610_v23, %v4327_v44  ;;  %v1389_v25 = vstv %s1388_s29  ;;  %s2840_s29 = sadd.s32 15, %s3858_s23 }
 0x238   : > { %vm1390_vm4 = vcmp.eq.s32.totalorder %v4034_v47, %v1389_v25 }
 0x239   : > { %3611 = vtanh.f32 %v1140_v10  ;;  %v1392_v40 = vsel %vm1390_vm4, 1, %v5302_v15 }
 0x23a   : > { %1394 = vperm.xlu1 %3520, %v1392_v40  }
 0x246   : > { %v3612_v31 = vpop.eup %3611 }
 0x247   : > { %v1143_v51 = vmul.f32 %v3612_v31, %v1142_v14 }
 0x249   : > { %v4374_v63 = vadd.f32 %v1144_v24, %v1143_v51 }
 0x24b   : > { %v1163_v13 = vpack.c.bf16 %v4374_v63, %v4374_v63 }
 0x24d   : > { %1197 = vmatmul.mubr.bf16.vlgmr.msra.gmra.mxu1 %v1163_v13  ;;  %3244 = vmatmul.mubr.bf16.vlgmr.msra.gmra.mxu0 %v1163_v13 }
 0x24e   : > { %1286 = vmatpush1.bf16.msra.mxu1 %v3955_v29  ;;  %3248 = vmatpush3.bf16.msra.mxu0 %v3960_v30 }
 0x24f   : > { %1287 = vmatprep.subr.bf16.mxu1 %v3967_v32  ;;  %3249 = vmatprep.subr.bf16.mxu0 %v5301_v8 }
 0x250   : > { %1317 = vmatprep.mubr.bf16.mxu1 %v5302_v15  ;;  %3263 = vmatprep.mubr.msk.bf16.mxu0 %vm3814_vm1, %v5301_v8 }
 0x252   : > { %1288 = vmatpush1.bf16.msra.mxu1 %v3973_v34  ;;  %3250 = vmatpush3.bf16.msra.mxu0 %v3980_v35 }
 0x253   : > { %1289 = vmatprep.subr.bf16.mxu1 %v3987_v36  ;;  %3251 = vmatprep.subr.bf16.mxu0 %v5301_v8 }
 0x256   : > { %1290 = vmatpush1.bf16.msra.mxu1 %v3995_v38  ;;  %3252 = vmatpush3.bf16.msra.mxu0 %v4009_v41 }
 0x257   : > { %1291 = vmatprep.subr.bf16.mxu1 %v4002_v39  ;;  %3253 = vmatprep.subr.bf16.mxu0 %v5301_v8 }
 0x25a   : > { %1292 = vmatpush1.bf16.msra.mxu1 %v4015_v42  ;;  %3254 = vmatpush3.bf16.msra.mxu0 %v4032_v46 }
 0x25b   : > { %1293 = vmatprep.subr.bf16.mxu1 %v4022_v43  ;;  %3255 = vmatprep.subr.bf16.mxu0 %v5301_v8 }
 0x25e   : > { %1294 = vmatpush1.bf16.msra.mxu1 %v4042_v49  ;;  %3256 = vmatpush3.bf16.msra.mxu0 %v4057_v53 }
 0x25f   : > { %1295 = vmatprep.subr.bf16.mxu1 %v4049_v50  ;;  %3257 = vmatprep.subr.bf16.mxu0 %v5301_v8 }
 0x262   : > { %1296 = vmatpush1.bf16.msra.mxu1 %v4063_v54  ;;  %3258 = vmatpush3.bf16.msra.mxu0 %v4091_v59 }
 0x263   : > { %1297 = vmatprep.subr.bf16.mxu1 %v4070_v55  ;;  %3259 = vmatprep.subr.bf16.mxu0 %v5301_v8 }
 0x266   : > { %1298 = vmatpush1.bf16.msra.mxu1 %v4079_v57  ;;  %3260 = vmatpush3.bf16.msra.mxu0 %v4108_v62 }
 0x267   : > { %1299 = vmatprep.subr.bf16.mxu1 %v4086_v58  ;;  %3261 = vmatprep.subr.bf16.mxu0 %v5301_v8 }
 0x26a   : > { %1300 = vmatpush1.bf16.msra.mxu1 %v4097_v60  ;;  %3262 = vmatpush3.bf16.msra.mxu0 %v4119_v0 }
 0x26b   : > { %1406 = vmatprep.subr.bf16.mxu1 %v3949_v27  ;;  %3267 = vmatprep.subr.bf16.mxu0 %v5301_v8 }
 0x30d   : > { %v1198_v3 = vpop.f32.mrf.mxu1  ;;  %v1239_v16 = vpop.f32.mrf.mxu0 }
 0x30e   : > { %v1245_v6 = vadd.f32 %v1198_v3, %v4196_v33  ;;  %v1259_v13 = vadd.f32 %v4318_v22, %v1239_v16 }
 0x30f   : > { %v1200_v2 = vpop.f32.mrf.mxu1  ;;  %v3245_v19 = vpop.f32.mrf.mxu0 }
 0x310   : > { %v2965_v17 = vmul.f32 -1.442695, %v1245_v6  ;;  %v1252_v10 = vadd.f32 %v1200_v2, %v4202_v45 }
 0x311   : > { %v1202_v61 = vpop.f32.mrf.mxu1  ;;  %v1242_v1 = vpop.f32.mrf.mxu0 }
 0x312   : > { %3613 = vpow2.f32 %v2965_v17  ;;  %v2966_v23 = vmul.f32 -1.442695, %v1252_v10 }
 0x313   : > { %v1203_v20 = vpop.f32.mrf.mxu1  ;;  %v3246_v11 = vpop.f32.mrf.mxu0 }
 0x314   : > { %3615 = vpow2.f32 %v2966_v23 }
 0x31f   : > { %v3614_v14 = vpop.eup %3613 }
 0x320   : > { %v1249_v31 = vadd.f32 1.0, %v3614_v14 }
 0x321   : > { %v3616_v51 = vpop.eup %3615 }
 0x322   : > { %3617 = vrcp.f32 %v1249_v31  ;;  %v1256_v24 = vadd.f32 1.0, %v3616_v51 }
 0x324   : > { %3619 = vrcp.f32 %v1256_v24 }
 0x32f   : > { %v3618_v33 = vpop.eup %3617 }
 0x330   : > { %v1260_v25 = vmul.f32 %v3618_v33, %v1259_v13 }
 0x331   : > { %v3620_v3 = vpop.eup %3619 }
 0x332   : > { %v1261_v40 = vadd.f32 %v1260_v25, %v4173_v12  ;;  %v1263_v6 = vsub.f32 1.0, %v3620_v3  ;;  %v1265_v45 = vmul.f32 %v3620_v3, %v4374_v63 }
 0x334   : > { %3621 = vtanh.f32 %v1261_v40 }
 0x341   : > { %v3622_v19 = vpop.eup %3621 }
 0x342   : > { %v1264_v17 = vmul.f32 %v3622_v19, %v1263_v6 }
 0x344   : > { %v4421_v2 = vadd.f32 %v1265_v45, %v1264_v17 }
 0x346   : > { %v1284_v61 = vpack.c.bf16 %v4421_v2, %v4421_v2 }
 0x348   : > { %1318 = vmatmul.mubr.bf16.vlgmr.msra.gmra.mxu1 %v1284_v61  ;;  %3264 = vmatmul.mubr.bf16.vlgmr.msra.gmra.mxu0 %v1284_v61 }
 0x349   : > { %1407 = vmatpush1.bf16.msra.mxu1 %v3955_v29  ;;  %3268 = vmatpush3.bf16.msra.mxu0 %v3960_v30  ;;  %v1510_v29 = vstv %s1509_s30 }
 0x34a   : > { %1408 = vmatprep.subr.bf16.mxu1 %v3967_v32  ;;  %3269 = vmatprep.subr.bf16.mxu0 %v5301_v8  ;;  %vm1511_vm5 = vcmp.eq.s32.totalorder %v4034_v47, %v1510_v29 }
 0x34b   : > { %1438 = vmatprep.mubr.bf16.mxu1 %v5302_v15  ;;  %3283 = vmatprep.mubr.msk.bf16.mxu0 %vm3814_vm1, %v5301_v8  ;;  %v1513_v30 = vsel %vm1511_vm5, 1, %v5302_v15 }
 0x34c   : > { %1515 = vperm.xlu0 %3519, %v1513_v30   ;;  %v4475_v30 = vld [vmem:[%s5267_s4 + $0xa8] ss:$12 sps:$4 sm:$0xff]  }
 0x34d   : > { %1409 = vmatpush1.bf16.msra.mxu1 %v3973_v34  ;;  %3270 = vmatpush3.bf16.msra.mxu0 %v3980_v35 }
 0x34e   : > { %1410 = vmatprep.subr.bf16.mxu1 %v3987_v36  ;;  %3271 = vmatprep.subr.bf16.mxu0 %v5301_v8 }
 0x351   : > { %1411 = vmatpush1.bf16.msra.mxu1 %v3995_v38  ;;  %3272 = vmatpush3.bf16.msra.mxu0 %v4009_v41 }
 0x352   : > { %1412 = vmatprep.subr.bf16.mxu1 %v4002_v39  ;;  %3273 = vmatprep.subr.bf16.mxu0 %v5301_v8 }
 0x355   : > { %1413 = vmatpush1.bf16.msra.mxu1 %v4015_v42  ;;  %3274 = vmatpush3.bf16.msra.mxu0 %v4032_v46 }
 0x356   : > { %1414 = vmatprep.subr.bf16.mxu1 %v4022_v43  ;;  %3275 = vmatprep.subr.bf16.mxu0 %v5301_v8 }
 0x359   : > { %1415 = vmatpush1.bf16.msra.mxu1 %v4042_v49  ;;  %3276 = vmatpush3.bf16.msra.mxu0 %v4057_v53 }
 0x35a   : > { %1416 = vmatprep.subr.bf16.mxu1 %v4049_v50  ;;  %3277 = vmatprep.subr.bf16.mxu0 %v5301_v8 }
 0x35d   : > { %1417 = vmatpush1.bf16.msra.mxu1 %v4063_v54  ;;  %3278 = vmatpush3.bf16.msra.mxu0 %v4091_v59 }
 0x35e   : > { %1418 = vmatprep.subr.bf16.mxu1 %v4070_v55  ;;  %3279 = vmatprep.subr.bf16.mxu0 %v5301_v8 }
 0x361   : > { %1419 = vmatpush1.bf16.msra.mxu1 %v4079_v57  ;;  %3280 = vmatpush3.bf16.msra.mxu0 %v4108_v62 }
 0x362   : > { %1420 = vmatprep.subr.bf16.mxu1 %v4086_v58  ;;  %3281 = vmatprep.subr.bf16.mxu0 %v5301_v8 }
 0x365   : > { %1421 = vmatpush1.bf16.msra.mxu1 %v4097_v60  ;;  %3282 = vmatpush3.bf16.msra.mxu0 %v4119_v0 }
 0x366   : > { %1527 = vmatprep.subr.bf16.mxu1 %v3949_v27  ;;  %3287 = vmatprep.subr.bf16.mxu0 %v5301_v8 }
 0x408   : > { %v1319_v32 = vpop.f32.mrf.mxu1  ;;  %v1360_v34 = vpop.f32.mrf.mxu0 }
 0x409   : > { %v1366_v12 = vadd.f32 %v1319_v32, %v4208_v56  ;;  %v1380_v25 = vadd.f32 %v4318_v22, %v1360_v34  ;;  %v4487_v32 = vld [vmem:[%s5267_s4 + $0x94] ss:$12 sps:$4 sm:$0xff]   ;;  %v4497_v34 = vld [vmem:[%s5267_s4 + $0x90] ss:$12 sps:$4 sm:$0xff]  }
 0x40a   : > { %v1321_v16 = vpop.f32.mrf.mxu1  ;;  %v3265_v1 = vpop.f32.mrf.mxu0 }
 0x40b   : > { %v2967_v20 = vmul.f32 -1.442695, %v1366_v12  ;;  %v1373_v14 = vadd.f32 %v1321_v16, %v4214_v4 }
 0x40c   : > { %v1323_v11 = vpop.f32.mrf.mxu1  ;;  %v1363_v10 = vpop.f32.mrf.mxu0 }
 0x40d   : > { %3623 = vpow2.f32 %v2967_v20  ;;  %v2968_v31 = vmul.f32 -1.442695, %v1373_v14 }
 0x40e   : > { %v1324_v27 = vpop.f32.mrf.mxu1  ;;  %v3266_v23 = vpop.f32.mrf.mxu0 }
 0x40f   : > { %3625 = vpow2.f32 %v2968_v31  ;;  %v4561_v31 = vld [vmem:[%s5267_s4 + $0x7c] ss:$12 sps:$4 sm:$0xff]  }
 0x41a   : > { %v3624_v51 = vpop.eup %3623 }
 0x41b   : > { %v1370_v24 = vadd.f32 1.0, %v3624_v51  ;;  %v4568_v51 = vld [vmem:[%s5267_s4 + $0x78] ss:$12 sps:$4 sm:$0xff]  }
 0x41c   : > { %v3626_v13 = vpop.eup %3625 }
 0x41d   : > { %3627 = vrcp.f32 %v1370_v24  ;;  %v1377_v33 = vadd.f32 1.0, %v3626_v13  ;;  %v4574_v24 = vld [vmem:[%s5267_s4 + $0x80] ss:$12 sps:$4 sm:$0xff]   ;;  %v4580_v13 = vld [vmem:[%s5267_s4 + $0x64] ss:$12 sps:$4 sm:$0xff]  }
 0x41f   : > { %3629 = vrcp.f32 %v1377_v33  ;;  %v4587_v33 = vld [vmem:[%s5267_s4 + $0x60] ss:$12 sps:$4 sm:$0xff]  }
 0x42a   : > { %v3628_v56 = vpop.eup %3627 }
 0x42b   : > { %v1381_v40 = vmul.f32 %v3628_v56, %v1380_v25  ;;  %v4593_v25 = vld [vmem:[%s5267_s4 + $0x68] ss:$12 sps:$4 sm:$0xff]   ;;  %v4599_v56 = vld [vmem:[%s5267_s4 + $0x4c] ss:$12 sps:$4 sm:$0xff]  }
 0x42c   : > { %v3630_v6 = vpop.eup %3629 }
 0x42d   : > { %v1382_v3 = vadd.f32 %v1381_v40, %v4187_v21  ;;  %v1384_v19 = vsub.f32 1.0, %v3630_v6  ;;  %v1386_v4 = vmul.f32 %v3630_v6, %v4421_v2  ;;  %v4481_v21 = vld [vmem:[%s5267_s4 + $0xb0] ss:$12 sps:$4 sm:$0xff]   ;;  %v4606_v40 = vld [vmem:[%s5267_s4 + $0x48] ss:$12 sps:$4 sm:$0xff]  }
 0x42e   : > { %v4618_v6 = vld [vmem:[%s5267_s4 + $0x34] ss:$12 sps:$4 sm:$0xff]  }
 0x42f   : > { %3631 = vtanh.f32 %v1382_v3  ;;  %v4612_v3 = vld [vmem:[%s5267_s4 + $0x50] ss:$12 sps:$4 sm:$0xff]  }
 0x43c   : > { %v3632_v17 = vpop.eup %3631 }
 0x43d   : > { %v1385_v45 = vmul.f32 %v3632_v17, %v1384_v19  ;;  %v4625_v19 = vld [vmem:[%s5267_s4 + $0x30] ss:$12 sps:$4 sm:$0xff]   ;;  %v4631_v17 = vld [vmem:[%s5267_s4 + $0x38] ss:$12 sps:$4 sm:$0xff]  }
 0x43f   : > { %v4468_v61 = vadd.f32 %v1386_v4, %v1385_v45  ;;  %v4637_v45 = vld [vmem:[%s5267_s4 + $0x1c] ss:$12 sps:$4 sm:$0xff]   ;;  %v4644_v4 = vld [vmem:[%s5267_s4 + $0x18] ss:$12 sps:$4 sm:$0xff]  }
 0x441   : > { %v1405_v29 = vpack.c.bf16 %v4468_v61, %v4468_v61 }
 0x443   : > { %1439 = vmatmul.mubr.bf16.vlgmr.msra.gmra.mxu1 %v1405_v29  ;;  %3284 = vmatmul.mubr.bf16.vlgmr.msra.gmra.mxu0 %v1405_v29  ;;  %v4650_v29 = vld [vmem:[%s5267_s4 + $0x20] ss:$12 sps:$4 sm:$0xff]  }
 0x444   : > { %1528 = vmatpush1.bf16.msra.mxu1 %v4475_v30  ;;  %3288 = vmatpush3.bf16.msra.mxu0 %v4481_v21 }
 0x445   : > { %1529 = vmatprep.subr.bf16.mxu1 %v4487_v32  ;;  %3289 = vmatprep.subr.bf16.mxu0 %v5301_v8 }
 0x446   : > { %1559 = vmatprep.mubr.bf16.mxu1 %v5302_v15  ;;  %3303 = vmatprep.mubr.msk.bf16.mxu0 %vm3814_vm1, %v5301_v8 }
 0x448   : > { %1530 = vmatpush1.bf16.msra.mxu1 %v4497_v34  ;;  %3290 = vmatpush3.bf16.msra.mxu0 %v3980_v35  ;;  %v4528_v35 = vld [vmem:[%s5267_s4 + $0xac] ss:$12 sps:$4 sm:$0xff]  }
 0x449   : > { %1531 = vmatprep.subr.bf16.mxu1 %v3987_v36  ;;  %3291 = vmatprep.subr.bf16.mxu0 %v5301_v8  ;;  %v1631_v36 = vstv %s1630_s16  ;;  %s2114_s16 = sadd.s32 9, %s3858_s23 }
 0x44a   : > { %vm1632_vm6 = vcmp.eq.s32.totalorder %v4034_v47, %v1631_v36  ;;  %v4656_v36 = vld [vmem:[%s5267_s4 + $0x4] ss:$12 sps:$4 sm:$0xff]  }
 0x44c   : > { %1532 = vmatpush1.bf16.msra.mxu1 %v3995_v38  ;;  %3292 = vmatpush3.bf16.msra.mxu0 %v4009_v41  ;;  %v1634_v38 = vsel %vm1632_vm6, 1, %v5302_v15 }
 0x44d   : > { %1533 = vmatprep.subr.bf16.mxu1 %v4002_v39  ;;  %3293 = vmatprep.subr.bf16.mxu0 %v5301_v8 }
 0x44e   : > { %1636 = vperm.xlu1 %3520, %v1634_v38   ;;  %v4663_v38 = vld [vmem:[%s5267_s4] ss:$12 sps:$4 sm:$0xff]  }
 0x450   : > { %1534 = vmatpush1.bf16.msra.mxu1 %v4015_v42  ;;  %3294 = vmatpush3.bf16.msra.mxu0 %v4032_v46 }
 0x451   : > { %1535 = vmatprep.subr.bf16.mxu1 %v4022_v43  ;;  %3295 = vmatprep.subr.bf16.mxu0 %v5301_v8 }
 0x454   : > { %1536 = vmatpush1.bf16.msra.mxu1 %v4042_v49  ;;  %3296 = vmatpush3.bf16.msra.mxu0 %v4057_v53 }
 0x455   : > { %1537 = vmatprep.subr.bf16.mxu1 %v4049_v50  ;;  %3297 = vmatprep.subr.bf16.mxu0 %v5301_v8 }
 0x458   : > { %1538 = vmatpush1.bf16.msra.mxu1 %v4063_v54  ;;  %3298 = vmatpush3.bf16.msra.mxu0 %v4091_v59 }
 0x459   : > { %1539 = vmatprep.subr.bf16.mxu1 %v4070_v55  ;;  %3299 = vmatprep.subr.bf16.mxu0 %v5301_v8 }
 0x45c   : > { %1540 = vmatpush1.bf16.msra.mxu1 %v4079_v57  ;;  %3300 = vmatpush3.bf16.msra.mxu0 %v4108_v62 }
 0x45d   : > { %1541 = vmatprep.subr.bf16.mxu1 %v4086_v58  ;;  %3301 = vmatprep.subr.bf16.mxu0 %v5301_v8 }
 0x460   : > { %1542 = vmatpush1.bf16.msra.mxu1 %v4097_v60  ;;  %3302 = vmatpush3.bf16.msra.mxu0 %v4119_v0 }
 0x461   : > { %1648 = vmatprep.subr.bf16.mxu1 %v4528_v35  ;;  %3307 = vmatprep.subr.bf16.mxu0 %v5301_v8 }
 0x503   : > { %v1440_v39 = vpop.f32.mrf.mxu1  ;;  %v1481_v41 = vpop.f32.mrf.mxu0 }
 0x504   : > { %v1487_v42 = vadd.f32 %v1440_v39, %v4220_v9  ;;  %v1501_v12 = vadd.f32 %v4318_v22, %v1481_v41  ;;  %v4669_v39 = vld [vmem:[%s5267_s4 + $0x8] ss:$12 sps:$4 sm:$0xff]   ;;  %v1752_v41 = vstv %s1751_s12 }
 0x505   : > { %v1442_v43 = vpop.f32.mrf.mxu1  ;;  %v3285_v46 = vpop.f32.mrf.mxu0  ;;  %vm1753_vm7 = vcmp.eq.s32.totalorder %v4034_v47, %v1752_v41 }
 0x506   : > { %v2969_v49 = vmul.f32 -1.442695, %v1487_v42  ;;  %v1494_v57 = vadd.f32 %v1442_v43, %v4226_v18  ;;  %v1755_v42 = vsel %vm1753_vm7, 1, %v5302_v15 }
 0x507   : > { %v1444_v50 = vpop.f32.mrf.mxu1  ;;  %v1484_v53 = vpop.f32.mrf.mxu0  ;;  %1757 = vperm.xlu0 %3519, %v1755_v42  }
 0x508   : > { %3633 = vpow2.f32 %v2969_v49  ;;  %v2970_v58 = vmul.f32 -1.442695, %v1494_v57 }
 0x509   : > { %v1445_v54 = vpop.f32.mrf.mxu1  ;;  %v3286_v55 = vpop.f32.mrf.mxu0 }
 0x50a   : > { %3635 = vpow2.f32 %v2970_v58 }
 0x515   : > { %v3634_v59 = vpop.eup %3633 }
 0x516   : > { %v1491_v60 = vadd.f32 1.0, %v3634_v59 }
 0x517   : > { %v3636_v62 = vpop.eup %3635 }
 0x518   : > { %3637 = vrcp.f32 %v1491_v60  ;;  %v1498_v0 = vadd.f32 1.0, %v3636_v62 }
 0x51a   : > { %3639 = vrcp.f32 %v1498_v0 }
 0x525   : > { %v3638_v9 = vpop.eup %3637 }
 0x526   : > { %v1502_v16 = vmul.f32 %v3638_v9, %v1501_v12 }
 0x527   : > { %v3640_v20 = vpop.eup %3639 }
 0x528   : > { %v1503_v1 = vadd.f32 %v1502_v16, %v4205_v48  ;;  %v1505_v11 = vsub.f32 1.0, %v3640_v20  ;;  %v1507_v18 = vmul.f32 %v3640_v20, %v4468_v61  ;;  %v4555_v48 = vld [vmem:[%s5267_s4 + $0x98] ss:$12 sps:$4 sm:$0xff]  }
 0x52a   : > { %3641 = vtanh.f32 %v1503_v1 }
 0x537   : > { %v3642_v10 = vpop.eup %3641 }
 0x538   : > { %v1506_v27 = vmul.f32 %v3642_v10, %v1505_v11 }
 0x53a   : > { %v4540_v23 = vadd.f32 %v1507_v18, %v1506_v27 }
 0x53c   : > { %v1526_v14 = vpack.c.bf16 %v4540_v23, %v4540_v23 }
 0x53e   : > { %1560 = vmatmul.mubr.bf16.vlgmr.msra.gmra.mxu1 %v1526_v14  ;;  %3304 = vmatmul.mubr.bf16.vlgmr.msra.gmra.mxu0 %v1526_v14 }
 0x53f   : > { %1649 = vmatpush1.bf16.msra.mxu1 %v4475_v30  ;;  %3308 = vmatpush3.bf16.msra.mxu0 %v4481_v21 }
 0x540   : > { %1650 = vmatprep.subr.bf16.mxu1 %v4487_v32  ;;  %3309 = vmatprep.subr.bf16.mxu0 %v5301_v8 }
 0x541   : > { %1680 = vmatprep.mubr.bf16.mxu1 %v5302_v15  ;;  %3323 = vmatprep.mubr.msk.bf16.mxu0 %vm3814_vm1, %v5301_v8 }
 0x543   : > { %1651 = vmatpush1.bf16.msra.mxu1 %v4497_v34  ;;  %3310 = vmatpush3.bf16.msra.mxu0 %v4555_v48 }
 0x544   : > { %1652 = vmatprep.subr.bf16.mxu1 %v4561_v31  ;;  %3311 = vmatprep.subr.bf16.mxu0 %v5301_v8 }
 0x547   : > { %1653 = vmatpush1.bf16.msra.mxu1 %v4568_v51  ;;  %3312 = vmatpush3.bf16.msra.mxu0 %v4574_v24 }
 0x548   : > { %1654 = vmatprep.subr.bf16.mxu1 %v4580_v13  ;;  %3313 = vmatprep.subr.bf16.mxu0 %v5301_v8 }
 0x54b   : > { %1655 = vmatpush1.bf16.msra.mxu1 %v4587_v33  ;;  %3314 = vmatpush3.bf16.msra.mxu0 %v4593_v25 }
 0x54c   : > { %1656 = vmatprep.subr.bf16.mxu1 %v4599_v56  ;;  %3315 = vmatprep.subr.bf16.mxu0 %v5301_v8 }
 0x54f   : > { %1657 = vmatpush1.bf16.msra.mxu1 %v4606_v40  ;;  %3316 = vmatpush3.bf16.msra.mxu0 %v4612_v3 }
 0x550   : > { %1658 = vmatprep.subr.bf16.mxu1 %v4618_v6  ;;  %3317 = vmatprep.subr.bf16.mxu0 %v5301_v8 }
 0x553   : > { %1659 = vmatpush1.bf16.msra.mxu1 %v4625_v19  ;;  %3318 = vmatpush3.bf16.msra.mxu0 %v4631_v17 }
 0x554   : > { %1660 = vmatprep.subr.bf16.mxu1 %v4637_v45  ;;  %3319 = vmatprep.subr.bf16.mxu0 %v5301_v8 }
 0x557   : > { %1661 = vmatpush1.bf16.msra.mxu1 %v4644_v4  ;;  %3320 = vmatpush3.bf16.msra.mxu0 %v4650_v29 }
 0x558   : > { %1662 = vmatprep.subr.bf16.mxu1 %v4656_v36  ;;  %3321 = vmatprep.subr.bf16.mxu0 %v5301_v8 }
 0x55b   : > { %1663 = vmatpush1.bf16.msra.mxu1 %v4663_v38  ;;  %3322 = vmatpush3.bf16.msra.mxu0 %v4669_v39 }
 0x55c   : > { %1769 = vmatprep.subr.bf16.mxu1 %v4528_v35  ;;  %3327 = vmatprep.subr.bf16.mxu0 %v5301_v8 }
 0x5fe   : > { %v1561_v43 = vpop.f32.mrf.mxu1  ;;  %v1602_v46 = vpop.f32.mrf.mxu0 }
 0x5ff   : > { %v1608_v49 = vadd.f32 %v1561_v43, %v4232_v28  ;;  %v1622_v1 = vadd.f32 %v4318_v22, %v1602_v46 }
 0x600   : > { %v1563_v50 = vpop.f32.mrf.mxu1  ;;  %v3305_v53 = vpop.f32.mrf.mxu0 }
 0x601   : > { %v2971_v54 = vmul.f32 -1.442695, %v1608_v49  ;;  %v1615_v60 = vadd.f32 %v1563_v50, %v4238_v52 }
 0x602   : > { %v1565_v55 = vpop.f32.mrf.mxu1  ;;  %v1605_v57 = vpop.f32.mrf.mxu0 }
 0x603   : > { %3643 = vpow2.f32 %v2971_v54  ;;  %v2972_v62 = vmul.f32 -1.442695, %v1615_v60 }
 0x604   : > { %v1566_v58 = vpop.f32.mrf.mxu1  ;;  %v3306_v59 = vpop.f32.mrf.mxu0 }
 0x605   : > { %3645 = vpow2.f32 %v2972_v62 }
 0x610   : > { %v3644_v0 = vpop.eup %3643 }
 0x611   : > { %v1612_v12 = vadd.f32 1.0, %v3644_v0 }
 0x612   : > { %v3646_v9 = vpop.eup %3645 }
 0x613   : > { %3647 = vrcp.f32 %v1612_v12  ;;  %v1619_v16 = vadd.f32 1.0, %v3646_v9 }
 0x615   : > { %3649 = vrcp.f32 %v1619_v16 }
 0x620   : > { %v3648_v28 = vpop.eup %3647 }
 0x621   : > { %v1623_v20 = vmul.f32 %v3648_v28, %v1622_v1 }
 0x622   : > { %v3650_v10 = vpop.eup %3649 }
 0x623   : > { %v1624_v11 = vadd.f32 %v1623_v20, %v4217_v5  ;;  %v1626_v27 = vsub.f32 1.0, %v3650_v10  ;;  %v1628_v52 = vmul.f32 %v3650_v10, %v4540_v23  ;;  %v1873_v5 = vstv %s1872_s13 }
 0x624   : > { %vm1874_vm8 = vcmp.eq.s32.totalorder %v4034_v47, %v1873_v5 }
 0x625   : > { %3651 = vtanh.f32 %v1624_v11  ;;  %v1876_v43 = vsel %vm1874_vm8, 1, %v5302_v15 }
 0x626   : > { %1878 = vperm.xlu1 %3520, %v1876_v43  }
 0x632   : > { %v3652_v18 = vpop.eup %3651 }
 0x633   : > { %v1627_v14 = vmul.f32 %v3652_v18, %v1626_v27 }
 0x635   : > { %v4682_v41 = vadd.f32 %v1628_v52, %v1627_v14 }
 0x637   : > { %v1647_v42 = vpack.c.bf16 %v4682_v41, %v4682_v41 }
 0x639   : > { %1681 = vmatmul.mubr.bf16.vlgmr.msra.gmra.mxu1 %v1647_v42  ;;  %3324 = vmatmul.mubr.bf16.vlgmr.msra.gmra.mxu0 %v1647_v42 }
 0x63a   : > { %1770 = vmatpush1.bf16.msra.mxu1 %v4475_v30  ;;  %3328 = vmatpush3.bf16.msra.mxu0 %v4481_v21 }
 0x63b   : > { %1771 = vmatprep.subr.bf16.mxu1 %v4487_v32  ;;  %3329 = vmatprep.subr.bf16.mxu0 %v5301_v8 }
 0x63c   : > { %1801 = vmatprep.mubr.bf16.mxu1 %v5302_v15  ;;  %3343 = vmatprep.mubr.msk.bf16.mxu0 %vm3814_vm1, %v5301_v8 }
 0x63e   : > { %1772 = vmatpush1.bf16.msra.mxu1 %v4497_v34  ;;  %3330 = vmatpush3.bf16.msra.mxu0 %v4555_v48 }
 0x63f   : > { %1773 = vmatprep.subr.bf16.mxu1 %v4561_v31  ;;  %3331 = vmatprep.subr.bf16.mxu0 %v5301_v8 }
 0x642   : > { %1774 = vmatpush1.bf16.msra.mxu1 %v4568_v51  ;;  %3332 = vmatpush3.bf16.msra.mxu0 %v4574_v24 }
 0x643   : > { %1775 = vmatprep.subr.bf16.mxu1 %v4580_v13  ;;  %3333 = vmatprep.subr.bf16.mxu0 %v5301_v8 }
 0x646   : > { %1776 = vmatpush1.bf16.msra.mxu1 %v4587_v33  ;;  %3334 = vmatpush3.bf16.msra.mxu0 %v4593_v25 }
 0x647   : > { %1777 = vmatprep.subr.bf16.mxu1 %v4599_v56  ;;  %3335 = vmatprep.subr.bf16.mxu0 %v5301_v8 }
 0x64a   : > { %1778 = vmatpush1.bf16.msra.mxu1 %v4606_v40  ;;  %3336 = vmatpush3.bf16.msra.mxu0 %v4612_v3 }
 0x64b   : > { %1779 = vmatprep.subr.bf16.mxu1 %v4618_v6  ;;  %3337 = vmatprep.subr.bf16.mxu0 %v5301_v8 }
 0x64e   : > { %1780 = vmatpush1.bf16.msra.mxu1 %v4625_v19  ;;  %3338 = vmatpush3.bf16.msra.mxu0 %v4631_v17 }
 0x64f   : > { %1781 = vmatprep.subr.bf16.mxu1 %v4637_v45  ;;  %3339 = vmatprep.subr.bf16.mxu0 %v5301_v8 }
 0x652   : > { %1782 = vmatpush1.bf16.msra.mxu1 %v4644_v4  ;;  %3340 = vmatpush3.bf16.msra.mxu0 %v4650_v29 }
 0x653   : > { %1783 = vmatprep.subr.bf16.mxu1 %v4656_v36  ;;  %3341 = vmatprep.subr.bf16.mxu0 %v5301_v8 }
 0x656   : > { %1784 = vmatpush1.bf16.msra.mxu1 %v4663_v38  ;;  %3342 = vmatpush3.bf16.msra.mxu0 %v4669_v39 }
 0x657   : > { %1890 = vmatprep.subr.bf16.mxu1 %v4528_v35  ;;  %3347 = vmatprep.subr.bf16.mxu0 %v5301_v8 }
 0x6f9   : > { %v1682_v46 = vpop.f32.mrf.mxu1  ;;  %v1723_v49 = vpop.f32.mrf.mxu0 }
 0x6fa   : > { %v1729_v50 = vadd.f32 %v1682_v46, %v4244_v7  ;;  %v1743_v28 = vadd.f32 %v4318_v22, %v1723_v49  ;;  %v5303_v46 = vld [vmem:[#allocation11_spill] sm:$0xff] }
 0x6fb   : > { %v1684_v53 = vpop.f32.mrf.mxu1  ;;  %v3325_v54 = vpop.f32.mrf.mxu0 }
 0x6fc   : > { %v2973_v55 = vmul.f32 -1.442695, %v1729_v50  ;;  %v1736_v62 = vadd.f32 %v1684_v53, %v4250_v26 }
 0x6fd   : > { %v1686_v57 = vpop.f32.mrf.mxu1  ;;  %v1726_v58 = vpop.f32.mrf.mxu0 }
 0x6fe   : > { %3653 = vpow2.f32 %v2973_v55  ;;  %v2974_v0 = vmul.f32 -1.442695, %v1736_v62 }
 0x6ff   : > { %v1687_v59 = vpop.f32.mrf.mxu1  ;;  %v3326_v60 = vpop.f32.mrf.mxu0 }
 0x700   : > { %3655 = vpow2.f32 %v2974_v0  ;;  %v5304_v60 = vld [vmem:[#allocation13_spill] sm:$0xff] }
 0x70b   : > { %v3654_v12 = vpop.eup %3653 }
 0x70c   : > { %v1733_v9 = vadd.f32 1.0, %v3654_v12 }
 0x70d   : > { %v3656_v16 = vpop.eup %3655 }
 0x70e   : > { %3657 = vrcp.f32 %v1733_v9  ;;  %v1740_v1 = vadd.f32 1.0, %v3656_v16 }
 0x710   : > { %3659 = vrcp.f32 %v1740_v1 }
 0x71b   : > { %v3658_v7 = vpop.eup %3657 }
 0x71c   : > { %v1744_v20 = vmul.f32 %v3658_v7, %v1743_v28  ;;  %v4776_v28 = vld [vmem:[%s5268_s5] ss:$0 sm:$0xff] }
 0x71d   : > { %v3660_v10 = vpop.eup %3659 }
 0x71e   : > { %v1745_v11 = vadd.f32 %v1744_v20, %v4199_v37  ;;  %v1747_v27 = vsub.f32 1.0, %v3660_v10  ;;  %v1749_v26 = vmul.f32 %v3660_v10, %v4682_v41  ;;  %v1994_v37 = vstv %s1993_s28  ;;  %v5305_v10 = vld [vmem:[#allocation4_spill] sm:$0xff] }
 0x71f   : > { %vm1995_vm9 = vcmp.eq.s32.totalorder %v4034_v47, %v1994_v37 }
 0x720   : > { %3661 = vtanh.f32 %v1745_v11  ;;  %v1997_v22 = vsel %vm1995_vm9, 1, %v5302_v15 }
 0x721   : > { %1999 = vperm.xlu0 %3519, %v1997_v22  }
 0x72d   : > { %v3662_v18 = vpop.eup %3661 }
 0x72e   : > { %v1748_v14 = vmul.f32 %v3662_v18, %v1747_v27 }
 0x730   : > { %v4729_v52 = vadd.f32 %v1749_v26, %v1748_v14 }
 0x732   : > { %v1768_v42 = vpack.c.bf16 %v4729_v52, %v4729_v52 }
 0x734   : > { %1802 = vmatmul.mubr.bf16.vlgmr.msra.gmra.mxu1 %v1768_v42  ;;  %3344 = vmatmul.mubr.bf16.vlgmr.msra.gmra.mxu0 %v1768_v42 }
 0x735   : > { %1891 = vmatpush1.bf16.msra.mxu1 %v4475_v30  ;;  %3348 = vmatpush3.bf16.msra.mxu0 %v4481_v21 }
 0x736   : > { %1892 = vmatprep.subr.bf16.mxu1 %v4487_v32  ;;  %3349 = vmatprep.subr.bf16.mxu0 %v5301_v8 }
 0x737   : > { %1922 = vmatprep.mubr.bf16.mxu1 %v5302_v15  ;;  %3363 = vmatprep.mubr.msk.bf16.mxu0 %vm3814_vm1, %v5301_v8 }
 0x739   : > { %1893 = vmatpush1.bf16.msra.mxu1 %v4497_v34  ;;  %3350 = vmatpush3.bf16.msra.mxu0 %v4555_v48 }
 0x73a   : > { %1894 = vmatprep.subr.bf16.mxu1 %v4561_v31  ;;  %3351 = vmatprep.subr.bf16.mxu0 %v5301_v8 }
 0x73d   : > { %1895 = vmatpush1.bf16.msra.mxu1 %v4568_v51  ;;  %3352 = vmatpush3.bf16.msra.mxu0 %v4574_v24 }
 0x73e   : > { %1896 = vmatprep.subr.bf16.mxu1 %v4580_v13  ;;  %3353 = vmatprep.subr.bf16.mxu0 %v5301_v8 }
 0x741   : > { %1897 = vmatpush1.bf16.msra.mxu1 %v4587_v33  ;;  %3354 = vmatpush3.bf16.msra.mxu0 %v4593_v25 }
 0x742   : > { %1898 = vmatprep.subr.bf16.mxu1 %v4599_v56  ;;  %3355 = vmatprep.subr.bf16.mxu0 %v5301_v8 }
 0x745   : > { %1899 = vmatpush1.bf16.msra.mxu1 %v4606_v40  ;;  %3356 = vmatpush3.bf16.msra.mxu0 %v4612_v3 }
 0x746   : > { %1900 = vmatprep.subr.bf16.mxu1 %v4618_v6  ;;  %3357 = vmatprep.subr.bf16.mxu0 %v5301_v8 }
 0x749   : > { %1901 = vmatpush1.bf16.msra.mxu1 %v4625_v19  ;;  %3358 = vmatpush3.bf16.msra.mxu0 %v4631_v17 }
 0x74a   : > { %1902 = vmatprep.subr.bf16.mxu1 %v4637_v45  ;;  %3359 = vmatprep.subr.bf16.mxu0 %v5301_v8 }
 0x74d   : > { %1903 = vmatpush1.bf16.msra.mxu1 %v4644_v4  ;;  %3360 = vmatpush3.bf16.msra.mxu0 %v4650_v29 }
 0x74e   : > { %1904 = vmatprep.subr.bf16.mxu1 %v4656_v36  ;;  %3361 = vmatprep.subr.bf16.mxu0 %v5301_v8 }
 0x751   : > { %1905 = vmatpush1.bf16.msra.mxu1 %v4663_v38  ;;  %3362 = vmatpush3.bf16.msra.mxu0 %v4669_v39 }
 0x752   : > { %2011 = vmatprep.subr.bf16.mxu1 %v4528_v35  ;;  %3367 = vmatprep.subr.bf16.mxu0 %v5301_v8 }
 0x7f4   : > { %v1803_v5 = vpop.f32.mrf.mxu1  ;;  %v1844_v43 = vpop.f32.mrf.mxu0 }
 0x7f5   : > { %v1850_v49 = vadd.f32 %v1803_v5, %v5303_v46  ;;  %v1864_v7 = vadd.f32 %v4776_v28, %v1844_v43  ;;  %v2115_v43 = vstv %s2114_s16 }
 0x7f6   : > { %v1805_v50 = vpop.f32.mrf.mxu1  ;;  %v3345_v53 = vpop.f32.mrf.mxu0  ;;  %vm2116_vm10 = vcmp.eq.s32.totalorder %v4034_v47, %v2115_v43 }
 0x7f7   : > { %v2975_v54 = vmul.f32 -1.442695, %v1850_v49  ;;  %v1857_v62 = vadd.f32 %v1805_v50, %v5304_v60  ;;  %v2118_v46 = vsel %vm2116_vm10, 1, %v5302_v15  ;;  %v5306_v53 = vld [vmem:[#allocation15_spill] sm:$0xff] }
 0x7f8   : > { %v1807_v55 = vpop.f32.mrf.mxu1  ;;  %v1847_v57 = vpop.f32.mrf.mxu0  ;;  %2120 = vperm.xlu1 %3520, %v2118_v46  }
 0x7f9   : > { %3663 = vpow2.f32 %v2975_v54  ;;  %v2976_v0 = vmul.f32 -1.442695, %v1857_v62 }
 0x7fa   : > { %v1808_v58 = vpop.f32.mrf.mxu1  ;;  %v3346_v59 = vpop.f32.mrf.mxu0 }
 0x7fb   : > { %3665 = vpow2.f32 %v2976_v0 }
 0x806   : > { %v3664_v12 = vpop.eup %3663 }
 0x807   : > { %v1854_v9 = vadd.f32 1.0, %v3664_v12  ;;  %v5307_v12 = vld [vmem:[#allocation16_spill] sm:$0xff] }
 0x808   : > { %v3666_v16 = vpop.eup %3665 }
 0x809   : > { %3667 = vrcp.f32 %v1854_v9  ;;  %v1861_v1 = vadd.f32 1.0, %v3666_v16 }
 0x80b   : > { %3669 = vrcp.f32 %v1861_v1 }
 0x816   : > { %v3668_v20 = vpop.eup %3667 }
 0x817   : > { %v1865_v11 = vmul.f32 %v3668_v20, %v1864_v7 }
 0x818   : > { %v3670_v18 = vpop.eup %3669 }
 0x819   : > { %v1866_v27 = vadd.f32 %v1865_v11, %v5305_v10  ;;  %v1868_v14 = vsub.f32 1.0, %v3670_v18  ;;  %v1870_v37 = vmul.f32 %v3670_v18, %v4729_v52 }
 0x81b   : > { %3671 = vtanh.f32 %v1866_v27 }
 0x828   : > { %v3672_v26 = vpop.eup %3671 }
 0x829   : > { %v1869_v42 = vmul.f32 %v3672_v26, %v1868_v14  ;;  %v5308_v14 = vld [vmem:[#allocation6_spill] sm:$0xff] }
 0x82b   : > { %v4781_v22 = vadd.f32 %v1870_v37, %v1869_v42 }
 0x82d   : > { %v1889_v5 = vpack.c.bf16 %v4781_v22, %v4781_v22 }
 0x82f   : > { %1923 = vmatmul.mubr.bf16.vlgmr.msra.gmra.mxu1 %v1889_v5  ;;  %3364 = vmatmul.mubr.bf16.vlgmr.msra.gmra.mxu0 %v1889_v5 }
 0x830   : > { %2012 = vmatpush1.bf16.msra.mxu1 %v4475_v30  ;;  %3368 = vmatpush3.bf16.msra.mxu0 %v4481_v21 }
 0x831   : > { %2013 = vmatprep.subr.bf16.mxu1 %v4487_v32  ;;  %3369 = vmatprep.subr.bf16.mxu0 %v5301_v8 }
 0x832   : > { %2043 = vmatprep.mubr.bf16.mxu1 %v5302_v15  ;;  %3383 = vmatprep.mubr.msk.bf16.mxu0 %vm3814_vm1, %v5301_v8 }
 0x834   : > { %2014 = vmatpush1.bf16.msra.mxu1 %v4497_v34  ;;  %3370 = vmatpush3.bf16.msra.mxu0 %v4555_v48 }
 0x835   : > { %2015 = vmatprep.subr.bf16.mxu1 %v4561_v31  ;;  %3371 = vmatprep.subr.bf16.mxu0 %v5301_v8 }
 0x838   : > { %2016 = vmatpush1.bf16.msra.mxu1 %v4568_v51  ;;  %3372 = vmatpush3.bf16.msra.mxu0 %v4574_v24 }
 0x839   : > { %2017 = vmatprep.subr.bf16.mxu1 %v4580_v13  ;;  %3373 = vmatprep.subr.bf16.mxu0 %v5301_v8 }
 0x83c   : > { %2018 = vmatpush1.bf16.msra.mxu1 %v4587_v33  ;;  %3374 = vmatpush3.bf16.msra.mxu0 %v4593_v25 }
 0x83d   : > { %2019 = vmatprep.subr.bf16.mxu1 %v4599_v56  ;;  %3375 = vmatprep.subr.bf16.mxu0 %v5301_v8 }
 0x840   : > { %2020 = vmatpush1.bf16.msra.mxu1 %v4606_v40  ;;  %3376 = vmatpush3.bf16.msra.mxu0 %v4612_v3 }
 0x841   : > { %2021 = vmatprep.subr.bf16.mxu1 %v4618_v6  ;;  %3377 = vmatprep.subr.bf16.mxu0 %v5301_v8 }
 0x844   : > { %2022 = vmatpush1.bf16.msra.mxu1 %v4625_v19  ;;  %3378 = vmatpush3.bf16.msra.mxu0 %v4631_v17 }
 0x845   : > { %2023 = vmatprep.subr.bf16.mxu1 %v4637_v45  ;;  %3379 = vmatprep.subr.bf16.mxu0 %v5301_v8 }
 0x848   : > { %2024 = vmatpush1.bf16.msra.mxu1 %v4644_v4  ;;  %3380 = vmatpush3.bf16.msra.mxu0 %v4650_v29 }
 0x849   : > { %2025 = vmatprep.subr.bf16.mxu1 %v4656_v36  ;;  %3381 = vmatprep.subr.bf16.mxu0 %v5301_v8 }
 0x84c   : > { %2026 = vmatpush1.bf16.msra.mxu1 %v4663_v38  ;;  %3382 = vmatpush3.bf16.msra.mxu0 %v4669_v39 }
 0x84d   : > { %2132 = vmatprep.subr.bf16.mxu1 %v4528_v35  ;;  %3387 = vmatprep.subr.bf16.mxu0 %v5301_v8 }
 0x8ef   : > { %v1924_v49 = vpop.f32.mrf.mxu1  ;;  %v1965_v50 = vpop.f32.mrf.mxu0 }
 0x8f0   : > { %v1971_v54 = vadd.f32 %v1924_v49, %v5306_v53  ;;  %v1985_v10 = vadd.f32 %v4776_v28, %v1965_v50  ;;  %v2236_v50 = vstv %s2235_s17 }
 0x8f1   : > { %v1926_v55 = vpop.f32.mrf.mxu1  ;;  %v3365_v57 = vpop.f32.mrf.mxu0  ;;  %vm2237_vm11 = vcmp.eq.s32.totalorder %v4034_v47, %v2236_v50 }
 0x8f2   : > { %v2977_v58 = vmul.f32 -1.442695, %v1971_v54  ;;  %v1978_v9 = vadd.f32 %v1926_v55, %v5307_v12  ;;  %v2239_v54 = vsel %vm2237_vm11, 1, %v5302_v15 }
 0x8f3   : > { %v1928_v59 = vpop.f32.mrf.mxu1  ;;  %v1968_v60 = vpop.f32.mrf.mxu0  ;;  %2241 = vperm.xlu0 %3519, %v2239_v54  }
 0x8f4   : > { %3673 = vpow2.f32 %v2977_v58  ;;  %v2978_v16 = vmul.f32 -1.442695, %v1978_v9  ;;  %v5309_v58 = vld [vmem:[#allocation17_spill] sm:$0xff] }
 0x8f5   : > { %v1929_v62 = vpop.f32.mrf.mxu1  ;;  %v3366_v0 = vpop.f32.mrf.mxu0 }
 0x8f6   : > { %3675 = vpow2.f32 %v2978_v16 }
 0x901   : > { %v3674_v1 = vpop.eup %3673 }
 0x902   : > { %v1975_v7 = vadd.f32 1.0, %v3674_v1 }
 0x903   : > { %v3676_v20 = vpop.eup %3675 }
 0x904   : > { %3677 = vrcp.f32 %v1975_v7  ;;  %v1982_v11 = vadd.f32 1.0, %v3676_v20  ;;  %v5310_v7 = vld [vmem:[#allocation18_spill] sm:$0xff] }
 0x906   : > { %3679 = vrcp.f32 %v1982_v11 }
 0x911   : > { %v3678_v27 = vpop.eup %3677 }
 0x912   : > { %v1986_v18 = vmul.f32 %v3678_v27, %v1985_v10 }
 0x913   : > { %v3680_v42 = vpop.eup %3679 }
 0x914   : > { %v1987_v26 = vadd.f32 %v1986_v18, %v5308_v14  ;;  %v1989_v37 = vsub.f32 1.0, %v3680_v42  ;;  %v1991_v46 = vmul.f32 %v3680_v42, %v4781_v22 }
 0x916   : > { %3681 = vtanh.f32 %v1987_v26 }
 0x923   : > { %v3682_v5 = vpop.eup %3681 }
 0x924   : > { %v1990_v43 = vmul.f32 %v3682_v5, %v1989_v37  ;;  %v5311_v5 = vld [vmem:[#allocation8_spill] sm:$0xff] }
 0x926   : > { %v4828_v49 = vadd.f32 %v1991_v46, %v1990_v43 }
 0x928   : > { %v2010_v53 = vpack.c.bf16 %v4828_v49, %v4828_v49 }
 0x92a   : > { %2044 = vmatmul.mubr.bf16.vlgmr.msra.gmra.mxu1 %v2010_v53  ;;  %3384 = vmatmul.mubr.bf16.vlgmr.msra.gmra.mxu0 %v2010_v53 }
 0x92b   : > { %2133 = vmatpush1.bf16.msra.mxu1 %v4475_v30  ;;  %3388 = vmatpush3.bf16.msra.mxu0 %v4481_v21 }
 0x92c   : > { %2134 = vmatprep.subr.bf16.mxu1 %v4487_v32  ;;  %3389 = vmatprep.subr.bf16.mxu0 %v5301_v8 }
 0x92d   : > { %2164 = vmatprep.mubr.bf16.mxu1 %v5302_v15  ;;  %3403 = vmatprep.mubr.msk.bf16.mxu0 %vm3814_vm1, %v5301_v8 }
 0x92f   : > { %2135 = vmatpush1.bf16.msra.mxu1 %v4497_v34  ;;  %3390 = vmatpush3.bf16.msra.mxu0 %v4555_v48 }
 0x930   : > { %2136 = vmatprep.subr.bf16.mxu1 %v4561_v31  ;;  %3391 = vmatprep.subr.bf16.mxu0 %v5301_v8 }
 0x933   : > { %2137 = vmatpush1.bf16.msra.mxu1 %v4568_v51  ;;  %3392 = vmatpush3.bf16.msra.mxu0 %v4574_v24 }
 0x934   : > { %2138 = vmatprep.subr.bf16.mxu1 %v4580_v13  ;;  %3393 = vmatprep.subr.bf16.mxu0 %v5301_v8 }
 0x937   : > { %2139 = vmatpush1.bf16.msra.mxu1 %v4587_v33  ;;  %3394 = vmatpush3.bf16.msra.mxu0 %v4593_v25 }
 0x938   : > { %2140 = vmatprep.subr.bf16.mxu1 %v4599_v56  ;;  %3395 = vmatprep.subr.bf16.mxu0 %v5301_v8 }
 0x93b   : > { %2141 = vmatpush1.bf16.msra.mxu1 %v4606_v40  ;;  %3396 = vmatpush3.bf16.msra.mxu0 %v4612_v3 }
 0x93c   : > { %2142 = vmatprep.subr.bf16.mxu1 %v4618_v6  ;;  %3397 = vmatprep.subr.bf16.mxu0 %v5301_v8 }
 0x93f   : > { %2143 = vmatpush1.bf16.msra.mxu1 %v4625_v19  ;;  %3398 = vmatpush3.bf16.msra.mxu0 %v4631_v17 }
 0x940   : > { %2144 = vmatprep.subr.bf16.mxu1 %v4637_v45  ;;  %3399 = vmatprep.subr.bf16.mxu0 %v5301_v8 }
 0x943   : > { %2145 = vmatpush1.bf16.msra.mxu1 %v4644_v4  ;;  %3400 = vmatpush3.bf16.msra.mxu0 %v4650_v29 }
 0x944   : > { %2146 = vmatprep.subr.bf16.mxu1 %v4656_v36  ;;  %3401 = vmatprep.subr.bf16.mxu0 %v5301_v8 }
 0x947   : > { %2147 = vmatpush1.bf16.msra.mxu1 %v4663_v38  ;;  %3402 = vmatpush3.bf16.msra.mxu0 %v4669_v39 }
 0x948   : > { %2253 = vmatprep.subr.bf16.mxu1 %v4528_v35  ;;  %3407 = vmatprep.subr.bf16.mxu0 %v5301_v8 }
 0x9ea   : > { %v2045_v55 = vpop.f32.mrf.mxu1  ;;  %v2086_v57 = vpop.f32.mrf.mxu0 }
 0x9eb   : > { %v2092_v59 = vadd.f32 %v2045_v55, %v5309_v58  ;;  %v2106_v26 = vadd.f32 %v4776_v28, %v2086_v57  ;;  %v2357_v57 = vstv %s2356_s18 }
 0x9ec   : > { %v2047_v60 = vpop.f32.mrf.mxu1  ;;  %v3385_v62 = vpop.f32.mrf.mxu0  ;;  %vm2358_vm12 = vcmp.eq.s32.totalorder %v4034_v47, %v2357_v57 }
 0x9ed   : > { %v2979_v0 = vmul.f32 -1.442695, %v2092_v59  ;;  %v2099_v20 = vadd.f32 %v2047_v60, %v5310_v7  ;;  %v2360_v60 = vsel %vm2358_vm12, 1, %v5302_v15 }
 0x9ee   : > { %v2049_v12 = vpop.f32.mrf.mxu1  ;;  %v2089_v9 = vpop.f32.mrf.mxu0  ;;  %2362 = vperm.xlu1 %3520, %v2360_v60  }
 0x9ef   : > { %3683 = vpow2.f32 %v2979_v0  ;;  %v2980_v11 = vmul.f32 -1.442695, %v2099_v20  ;;  %v5312_v12 = vld [vmem:[#allocation19_spill] sm:$0xff] }
 0x9f0   : > { %v2050_v16 = vpop.f32.mrf.mxu1  ;;  %v3386_v1 = vpop.f32.mrf.mxu0 }
 0x9f1   : > { %3685 = vpow2.f32 %v2980_v11 }
 0x9fc   : > { %v3684_v10 = vpop.eup %3683 }
 0x9fd   : > { %v2096_v27 = vadd.f32 1.0, %v3684_v10 }
 0x9fe   : > { %v3686_v18 = vpop.eup %3685 }
 0x9ff   : > { %3687 = vrcp.f32 %v2096_v27  ;;  %v2103_v14 = vadd.f32 1.0, %v3686_v18  ;;  %v5313_v18 = vld [vmem:[#allocation20_spill] sm:$0xff] }
 0xa01   : > { %3689 = vrcp.f32 %v2103_v14 }
 0xa0c   : > { %v3688_v42 = vpop.eup %3687 }
 0xa0d   : > { %v2107_v37 = vmul.f32 %v3688_v42, %v2106_v26 }
 0xa0e   : > { %v3690_v46 = vpop.eup %3689 }
 0xa0f   : > { %v2108_v43 = vadd.f32 %v2107_v37, %v5311_v5  ;;  %v2110_v53 = vsub.f32 1.0, %v3690_v46  ;;  %v2112_v55 = vmul.f32 %v3690_v46, %v4828_v49 }
 0xa11   : > { %3691 = vtanh.f32 %v2108_v43 }
 0xa1e   : > { %v3692_v50 = vpop.eup %3691 }
 0xa1f   : > { %v2111_v54 = vmul.f32 %v3692_v50, %v2110_v53 }
 0xa21   : > { %v4875_v58 = vadd.f32 %v2112_v55, %v2111_v54  ;;  %v5314_v54 = vld [vmem:[#allocation5_spill] sm:$0xff] }
 0xa23   : > { %v2131_v59 = vpack.c.bf16 %v4875_v58, %v4875_v58 }
 0xa25   : > { %2165 = vmatmul.mubr.bf16.vlgmr.msra.gmra.mxu1 %v2131_v59  ;;  %3404 = vmatmul.mubr.bf16.vlgmr.msra.gmra.mxu0 %v2131_v59 }
 0xa26   : > { %2254 = vmatpush1.bf16.msra.mxu1 %v4475_v30  ;;  %3408 = vmatpush3.bf16.msra.mxu0 %v4481_v21 }
 0xa27   : > { %2255 = vmatprep.subr.bf16.mxu1 %v4487_v32  ;;  %3409 = vmatprep.subr.bf16.mxu0 %v5301_v8 }
 0xa28   : > { %2285 = vmatprep.mubr.bf16.mxu1 %v5302_v15  ;;  %3423 = vmatprep.mubr.msk.bf16.mxu0 %vm3814_vm1, %v5301_v8 }
 0xa2a   : > { %2256 = vmatpush1.bf16.msra.mxu1 %v4497_v34  ;;  %3410 = vmatpush3.bf16.msra.mxu0 %v4555_v48 }
 0xa2b   : > { %2257 = vmatprep.subr.bf16.mxu1 %v4561_v31  ;;  %3411 = vmatprep.subr.bf16.mxu0 %v5301_v8 }
 0xa2e   : > { %2258 = vmatpush1.bf16.msra.mxu1 %v4568_v51  ;;  %3412 = vmatpush3.bf16.msra.mxu0 %v4574_v24 }
 0xa2f   : > { %2259 = vmatprep.subr.bf16.mxu1 %v4580_v13  ;;  %3413 = vmatprep.subr.bf16.mxu0 %v5301_v8 }
 0xa32   : > { %2260 = vmatpush1.bf16.msra.mxu1 %v4587_v33  ;;  %3414 = vmatpush3.bf16.msra.mxu0 %v4593_v25 }
 0xa33   : > { %2261 = vmatprep.subr.bf16.mxu1 %v4599_v56  ;;  %3415 = vmatprep.subr.bf16.mxu0 %v5301_v8 }
 0xa36   : > { %2262 = vmatpush1.bf16.msra.mxu1 %v4606_v40  ;;  %3416 = vmatpush3.bf16.msra.mxu0 %v4612_v3 }
 0xa37   : > { %2263 = vmatprep.subr.bf16.mxu1 %v4618_v6  ;;  %3417 = vmatprep.subr.bf16.mxu0 %v5301_v8 }
 0xa3a   : > { %2264 = vmatpush1.bf16.msra.mxu1 %v4625_v19  ;;  %3418 = vmatpush3.bf16.msra.mxu0 %v4631_v17 }
 0xa3b   : > { %2265 = vmatprep.subr.bf16.mxu1 %v4637_v45  ;;  %3419 = vmatprep.subr.bf16.mxu0 %v5301_v8 }
 0xa3e   : > { %2266 = vmatpush1.bf16.msra.mxu1 %v4644_v4  ;;  %3420 = vmatpush3.bf16.msra.mxu0 %v4650_v29 }
 0xa3f   : > { %2267 = vmatprep.subr.bf16.mxu1 %v4656_v36  ;;  %3421 = vmatprep.subr.bf16.mxu0 %v5301_v8 }
 0xa42   : > { %2268 = vmatpush1.bf16.msra.mxu1 %v4663_v38  ;;  %3422 = vmatpush3.bf16.msra.mxu0 %v4669_v39 }
 0xa43   : > { %2374 = vmatprep.subr.bf16.mxu1 %v4528_v35  ;;  %3427 = vmatprep.subr.bf16.mxu0 %v5301_v8 }
 0xae5   : > { %v2166_v62 = vpop.f32.mrf.mxu1  ;;  %v2207_v0 = vpop.f32.mrf.mxu0 }
 0xae6   : > { %v2213_v9 = vadd.f32 %v2166_v62, %v5312_v12  ;;  %v2227_v46 = vadd.f32 %v4776_v28, %v2207_v0  ;;  %v5315_v0 = vld [vmem:[#allocation21_spill] sm:$0xff] }
 0xae7   : > { %v2168_v16 = vpop.f32.mrf.mxu1  ;;  %v3405_v1 = vpop.f32.mrf.mxu0 }
 0xae8   : > { %v2981_v7 = vmul.f32 -1.442695, %v2213_v9  ;;  %v2220_v14 = vadd.f32 %v2168_v16, %v5313_v18 }
 0xae9   : > { %v2170_v20 = vpop.f32.mrf.mxu1  ;;  %v2210_v11 = vpop.f32.mrf.mxu0 }
 0xaea   : > { %3693 = vpow2.f32 %v2981_v7  ;;  %v2982_v26 = vmul.f32 -1.442695, %v2220_v14  ;;  %v5316_v14 = vld [vmem:[#allocation22_spill] sm:$0xff] }
 0xaeb   : > { %v2171_v10 = vpop.f32.mrf.mxu1  ;;  %v3406_v27 = vpop.f32.mrf.mxu0 }
 0xaec   : > { %3695 = vpow2.f32 %v2982_v26 }
 0xaf7   : > { %v3694_v42 = vpop.eup %3693 }
 0xaf8   : > { %v2217_v37 = vadd.f32 1.0, %v3694_v42 }
 0xaf9   : > { %v3696_v5 = vpop.eup %3695 }
 0xafa   : > { %3697 = vrcp.f32 %v2217_v37  ;;  %v2224_v43 = vadd.f32 1.0, %v3696_v5 }
 0xafc   : > { %3699 = vrcp.f32 %v2224_v43 }
 0xb07   : > { %v3698_v53 = vpop.eup %3697 }
 0xb08   : > { %v2228_v50 = vmul.f32 %v3698_v53, %v2227_v46 }
 0xb09   : > { %v3700_v59 = vpop.eup %3699 }
 0xb0a   : > { %v2229_v55 = vadd.f32 %v2228_v50, %v5314_v54  ;;  %v2231_v57 = vsub.f32 1.0, %v3700_v59  ;;  %v2233_v12 = vmul.f32 %v3700_v59, %v4875_v58 }
 0xb0c   : > { %3701 = vtanh.f32 %v2229_v55  ;;  %v5317_v55 = vld [vmem:[#allocation7_spill] sm:$0xff] }
 0xb19   : > { %v3702_v60 = vpop.eup %3701 }
 0xb1a   : > { %v2232_v62 = vmul.f32 %v3702_v60, %v2231_v57 }
 0xb1c   : > { %v4922_v9 = vadd.f32 %v2233_v12, %v2232_v62 }
 0xb1e   : > { %v2252_v16 = vpack.c.bf16 %v4922_v9, %v4922_v9 }
 0xb20   : > { %2286 = vmatmul.mubr.bf16.vlgmr.msra.gmra.mxu1 %v2252_v16  ;;  %3424 = vmatmul.mubr.bf16.vlgmr.msra.gmra.mxu0 %v2252_v16 }
 0xb21   : > { %2375 = vmatpush1.bf16.msra.mxu1 %v4475_v30  ;;  %3428 = vmatpush3.bf16.msra.mxu0 %v4481_v21  ;;  %v2478_v30 = vstv %s2477_s19 }
 0xb22   : > { %2376 = vmatprep.subr.bf16.mxu1 %v4487_v32  ;;  %3429 = vmatprep.subr.bf16.mxu0 %v5301_v8  ;;  %vm2479_vm13 = vcmp.eq.s32.totalorder %v4034_v47, %v2478_v30 }
 0xb23   : > { %2406 = vmatprep.mubr.bf16.mxu1 %v5302_v15  ;;  %3443 = vmatprep.mubr.msk.bf16.mxu0 %vm3814_vm1, %v5301_v8  ;;  %v2481_v21 = vsel %vm2479_vm13, 1, %v5302_v15 }
 0xb24   : > { %2483 = vperm.xlu0 %3519, %v2481_v21  }
 0xb25   : > { %2377 = vmatpush1.bf16.msra.mxu1 %v4497_v34  ;;  %3430 = vmatpush3.bf16.msra.mxu0 %v4555_v48 }
 0xb26   : > { %2378 = vmatprep.subr.bf16.mxu1 %v4561_v31  ;;  %3431 = vmatprep.subr.bf16.mxu0 %v5301_v8 }
 0xb29   : > { %2379 = vmatpush1.bf16.msra.mxu1 %v4568_v51  ;;  %3432 = vmatpush3.bf16.msra.mxu0 %v4574_v24 }
 0xb2a   : > { %2380 = vmatprep.subr.bf16.mxu1 %v4580_v13  ;;  %3433 = vmatprep.subr.bf16.mxu0 %v5301_v8 }
 0xb2d   : > { %2381 = vmatpush1.bf16.msra.mxu1 %v4587_v33  ;;  %3434 = vmatpush3.bf16.msra.mxu0 %v4593_v25 }
 0xb2e   : > { %2382 = vmatprep.subr.bf16.mxu1 %v4599_v56  ;;  %3435 = vmatprep.subr.bf16.mxu0 %v5301_v8 }
 0xb31   : > { %2383 = vmatpush1.bf16.msra.mxu1 %v4606_v40  ;;  %3436 = vmatpush3.bf16.msra.mxu0 %v4612_v3 }
 0xb32   : > { %2384 = vmatprep.subr.bf16.mxu1 %v4618_v6  ;;  %3437 = vmatprep.subr.bf16.mxu0 %v5301_v8 }
 0xb35   : > { %2385 = vmatpush1.bf16.msra.mxu1 %v4625_v19  ;;  %3438 = vmatpush3.bf16.msra.mxu0 %v4631_v17 }
 0xb36   : > { %2386 = vmatprep.subr.bf16.mxu1 %v4637_v45  ;;  %3439 = vmatprep.subr.bf16.mxu0 %v5301_v8 }
 0xb39   : > { %2387 = vmatpush1.bf16.msra.mxu1 %v4644_v4  ;;  %3440 = vmatpush3.bf16.msra.mxu0 %v4650_v29 }
 0xb3a   : > { %2388 = vmatprep.subr.bf16.mxu1 %v4656_v36  ;;  %3441 = vmatprep.subr.bf16.mxu0 %v5301_v8 }
 0xb3d   : > { %2389 = vmatpush1.bf16.msra.mxu1 %v4663_v38  ;;  %3442 = vmatpush3.bf16.msra.mxu0 %v4669_v39 }
 0xb3e   : > { %2495 = vmatprep.subr.bf16.mxu1 %v4528_v35  ;;  %3447 = vmatprep.subr.bf16.mxu0 %v5301_v8 }
 0xbe0   : > { %v2287_v32 = vpop.f32.mrf.mxu1  ;;  %v2328_v34 = vpop.f32.mrf.mxu0 }
 0xbe1   : > { %v2334_v1 = vadd.f32 %v2287_v32, %v5315_v0  ;;  %v2348_v53 = vadd.f32 %v4776_v28, %v2328_v34  ;;  %v4976_v32 = vld [vmem:[%s5267_s4 + $0xa8] ss:$12 sps:$4 sm:$0xff]   ;;  %v4982_v34 = vld [vmem:[%s5267_s4 + $0xb0] ss:$12 sps:$4 sm:$0xff]  }
 0xbe2   : > { %v2289_v7 = vpop.f32.mrf.mxu1  ;;  %v3425_v20 = vpop.f32.mrf.mxu0  ;;  %v4988_v0 = vld [vmem:[%s5267_s4 + $0x94] ss:$12 sps:$4 sm:$0xff]  }
 0xbe3   : > { %v2983_v11 = vmul.f32 -1.442695, %v2334_v1  ;;  %v2341_v26 = vadd.f32 %v2289_v7, %v5316_v14  ;;  %v4998_v1 = vld [vmem:[%s5267_s4 + $0x90] ss:$12 sps:$4 sm:$0xff]  }
 0xbe4   : > { %v2291_v10 = vpop.f32.mrf.mxu1  ;;  %v2331_v27 = vpop.f32.mrf.mxu0 }
 0xbe5   : > { %3703 = vpow2.f32 %v2983_v11  ;;  %v2984_v42 = vmul.f32 -1.442695, %v2341_v26 }
 0xbe6   : > { %v2292_v35 = vpop.f32.mrf.mxu1  ;;  %v3426_v18 = vpop.f32.mrf.mxu0 }
 0xbe7   : > { %3705 = vpow2.f32 %v2984_v42  ;;  %v5320_v35 = vld [vmem:[#allocation10_spill] sm:$0xff] }
 0xbf2   : > { %v3704_v37 = vpop.eup %3703 }
 0xbf3   : > { %v2338_v5 = vadd.f32 1.0, %v3704_v37 }
 0xbf4   : > { %v3706_v43 = vpop.eup %3705 }
 0xbf5   : > { %3707 = vrcp.f32 %v2338_v5  ;;  %v2345_v46 = vadd.f32 1.0, %v3706_v43 }
 0xbf7   : > { %3709 = vrcp.f32 %v2345_v46 }
 0xc02   : > { %v3708_v50 = vpop.eup %3707 }
 0xc03   : > { %v2349_v54 = vmul.f32 %v3708_v50, %v2348_v53  ;;  %v5056_v53 = vld [vmem:[%s5267_s4 + $0x98] ss:$12 sps:$4 sm:$0xff]   ;;  %v5062_v50 = vld [vmem:[%s5267_s4 + $0x7c] ss:$12 sps:$4 sm:$0xff]  }
 0xc04   : > { %v3710_v57 = vpop.eup %3709 }
 0xc05   : > { %v2350_v59 = vadd.f32 %v2349_v54, %v5317_v55  ;;  %v2352_v60 = vsub.f32 1.0, %v3710_v57  ;;  %v2354_v16 = vmul.f32 %v3710_v57, %v4922_v9  ;;  %v5069_v54 = vld [vmem:[%s5267_s4 + $0x78] ss:$12 sps:$4 sm:$0xff]   ;;  %v5075_v55 = vld [vmem:[%s5267_s4 + $0x80] ss:$12 sps:$4 sm:$0xff]  }
 0xc06   : > { %v5088_v57 = vld [vmem:[%s5267_s4 + $0x60] ss:$12 sps:$4 sm:$0xff]  }
 0xc07   : > { %3711 = vtanh.f32 %v2350_v59  ;;  %v5081_v59 = vld [vmem:[%s5267_s4 + $0x64] ss:$12 sps:$4 sm:$0xff]  }
 0xc14   : > { %v3712_v62 = vpop.eup %3711 }
 0xc15   : > { %v2353_v12 = vmul.f32 %v3712_v62, %v2352_v60  ;;  %v5094_v60 = vld [vmem:[%s5267_s4 + $0x68] ss:$12 sps:$4 sm:$0xff]   ;;  %v5100_v62 = vld [vmem:[%s5267_s4 + $0x4c] ss:$12 sps:$4 sm:$0xff]  }
 0xc17   : > { %v4969_v30 = vadd.f32 %v2354_v16, %v2353_v12  ;;  %v5107_v12 = vld [vmem:[%s5267_s4 + $0x48] ss:$12 sps:$4 sm:$0xff]   ;;  %v5113_v16 = vld [vmem:[%s5267_s4 + $0x50] ss:$12 sps:$4 sm:$0xff]  }
 0xc19   : > { %v2373_v21 = vpack.c.bf16 %v4969_v30, %v4969_v30 }
 0xc1b   : > { %2407 = vmatmul.mubr.bf16.vlgmr.msra.gmra.mxu1 %v2373_v21  ;;  %3444 = vmatmul.mubr.bf16.vlgmr.msra.gmra.mxu0 %v2373_v21  ;;  %v5119_v21 = vld [vmem:[%s5267_s4 + $0x34] ss:$12 sps:$4 sm:$0xff]  }
 0xc1c   : > { %2496 = vmatpush1.bf16.msra.mxu1 %v4976_v32  ;;  %3448 = vmatpush3.bf16.msra.mxu0 %v4982_v34 }
 0xc1d   : > { %2497 = vmatprep.subr.bf16.mxu1 %v4988_v0  ;;  %3449 = vmatprep.subr.bf16.mxu0 %v5301_v8 }
 0xc1e   : > { %2527 = vmatprep.mubr.bf16.mxu1 %v5302_v15  ;;  %3463 = vmatprep.mubr.msk.bf16.mxu0 %vm3814_vm1, %v5301_v8 }
 0xc20   : > { %2498 = vmatpush1.bf16.msra.mxu1 %v4998_v1  ;;  %3450 = vmatpush3.bf16.msra.mxu0 %v4555_v48  ;;  %v5029_v48 = vld [vmem:[%s5267_s4 + $0xac] ss:$12 sps:$4 sm:$0xff]  }
 0xc21   : > { %2499 = vmatprep.subr.bf16.mxu1 %v4561_v31  ;;  %3451 = vmatprep.subr.bf16.mxu0 %v5301_v8  ;;  %v2599_v31 = vstv %s2598_s9 }
 0xc22   : > { %vm2600_vm14 = vcmp.eq.s32.totalorder %v4034_v47, %v2599_v31  ;;  %v5126_v31 = vld [vmem:[%s5267_s4 + $0x30] ss:$12 sps:$4 sm:$0xff]  }
 0xc24   : > { %2500 = vmatpush1.bf16.msra.mxu1 %v4568_v51  ;;  %3452 = vmatpush3.bf16.msra.mxu0 %v4574_v24  ;;  %v2602_v51 = vsel %vm2600_vm14, 1, %v5302_v15 }
 0xc25   : > { %2501 = vmatprep.subr.bf16.mxu1 %v4580_v13  ;;  %3453 = vmatprep.subr.bf16.mxu0 %v5301_v8 }
 0xc26   : > { %2604 = vperm.xlu1 %3520, %v2602_v51   ;;  %v5132_v51 = vld [vmem:[%s5267_s4 + $0x38] ss:$12 sps:$4 sm:$0xff]  }
 0xc28   : > { %2502 = vmatpush1.bf16.msra.mxu1 %v4587_v33  ;;  %3454 = vmatpush3.bf16.msra.mxu0 %v4593_v25  ;;  %v5318_v33 = vld [vmem:[#allocation23_spill] sm:$0xff] }
 0xc29   : > { %2503 = vmatprep.subr.bf16.mxu1 %v4599_v56  ;;  %3455 = vmatprep.subr.bf16.mxu0 %v5301_v8 }
 0xc2c   : > { %2504 = vmatpush1.bf16.msra.mxu1 %v4606_v40  ;;  %3456 = vmatpush3.bf16.msra.mxu0 %v4612_v3 }
 0xc2d   : > { %2505 = vmatprep.subr.bf16.mxu1 %v4618_v6  ;;  %3457 = vmatprep.subr.bf16.mxu0 %v5301_v8 }
 0xc30   : > { %2506 = vmatpush1.bf16.msra.mxu1 %v4625_v19  ;;  %3458 = vmatpush3.bf16.msra.mxu0 %v4631_v17 }
 0xc31   : > { %2507 = vmatprep.subr.bf16.mxu1 %v4637_v45  ;;  %3459 = vmatprep.subr.bf16.mxu0 %v5301_v8 }
 0xc34   : > { %2508 = vmatpush1.bf16.msra.mxu1 %v4644_v4  ;;  %3460 = vmatpush3.bf16.msra.mxu0 %v4650_v29  ;;  %v5319_v4 = vld [vmem:[#allocation24_spill] sm:$0xff] }
 0xc35   : > { %2509 = vmatprep.subr.bf16.mxu1 %v4656_v36  ;;  %3461 = vmatprep.subr.bf16.mxu0 %v5301_v8 }
 0xc38   : > { %2510 = vmatpush1.bf16.msra.mxu1 %v4663_v38  ;;  %3462 = vmatpush3.bf16.msra.mxu0 %v4669_v39 }
 0xc39   : > { %2616 = vmatprep.subr.bf16.mxu1 %v5029_v48  ;;  %3467 = vmatprep.subr.bf16.mxu0 %v5301_v8 }
 0xcdb   : > { %v2408_v24 = vpop.f32.mrf.mxu1  ;;  %v2449_v13 = vpop.f32.mrf.mxu0 }
 0xcdc   : > { %v2455_v25 = vadd.f32 %v2408_v24, %v5318_v33  ;;  %v2469_v11 = vadd.f32 %v4776_v28, %v2449_v13  ;;  %v5138_v24 = vld [vmem:[%s5267_s4 + $0x1c] ss:$12 sps:$4 sm:$0xff]   ;;  %v5145_v13 = vld [vmem:[%s5267_s4 + $0x18] ss:$12 sps:$4 sm:$0xff]   ;;  %v5151_v33 = vld [vmem:[%s5267_s4 + $0x20] ss:$12 sps:$4 sm:$0xff]  }
 0xcdd   : > { %v2410_v56 = vpop.f32.mrf.mxu1  ;;  %v3445_v40 = vpop.f32.mrf.mxu0 }
 0xcde   : > { %v2985_v3 = vmul.f32 -1.442695, %v2455_v25  ;;  %v2462_v29 = vadd.f32 %v2410_v56, %v5319_v4  ;;  %v5157_v25 = vld [vmem:[%s5267_s4 + $0x4] ss:$12 sps:$4 sm:$0xff]   ;;  %v5164_v56 = vld [vmem:[%s5267_s4] ss:$12 sps:$4 sm:$0xff]  }
 0xcdf   : > { %v2412_v6 = vpop.f32.mrf.mxu1  ;;  %v2452_v19 = vpop.f32.mrf.mxu0  ;;  %v5170_v40 = vld [vmem:[%s5267_s4 + $0x8] ss:$12 sps:$4 sm:$0xff]  }
 0xce0   : > { %3713 = vpow2.f32 %v2985_v3  ;;  %v2986_v36 = vmul.f32 -1.442695, %v2462_v29  ;;  %v2720_v3 = vstv %s2719_s27 }
 0xce1   : > { %v2413_v17 = vpop.f32.mrf.mxu1  ;;  %v3446_v45 = vpop.f32.mrf.mxu0  ;;  %vm2721_vm15 = vcmp.eq.s32.totalorder %v4034_v47, %v2720_v3 }
 0xce2   : > { %3715 = vpow2.f32 %v2986_v36  ;;  %v2723_v6 = vsel %vm2721_vm15, 1, %v5302_v15  ;;  %v5321_v45 = vld [vmem:[#allocation25_spill] sm:$0xff] }
 0xce3   : > { %2725 = vperm.xlu0 %3519, %v2723_v6  }
 0xced   : > { %v3714_v38 = vpop.eup %3713 }
 0xcee   : > { %v2459_v39 = vadd.f32 1.0, %v3714_v38 }
 0xcef   : > { %v3716_v7 = vpop.eup %3715 }
 0xcf0   : > { %3717 = vrcp.f32 %v2459_v39  ;;  %v2466_v20 = vadd.f32 1.0, %v3716_v7 }
 0xcf2   : > { %3719 = vrcp.f32 %v2466_v20 }
 0xcfd   : > { %v3718_v10 = vpop.eup %3717 }
 0xcfe   : > { %v2470_v27 = vmul.f32 %v3718_v10, %v2469_v11  ;;  %v5322_v11 = vld [vmem:[#allocation26_spill] sm:$0xff] }
 0xcff   : > { %v3720_v14 = vpop.eup %3719 }
 0xd00   : > { %v2471_v18 = vadd.f32 %v2470_v27, %v5320_v35  ;;  %v2473_v26 = vsub.f32 1.0, %v3720_v14  ;;  %v2475_v5 = vmul.f32 %v3720_v14, %v4969_v30 }
 0xd02   : > { %3721 = vtanh.f32 %v2471_v18 }
 0xd0f   : > { %v3722_v42 = vpop.eup %3721 }
 0xd10   : > { %v2474_v37 = vmul.f32 %v3722_v42, %v2473_v26 }
 0xd12   : > { %v5041_v43 = vadd.f32 %v2475_v5, %v2474_v37 }
 0xd14   : > { %v2494_v46 = vpack.c.bf16 %v5041_v43, %v5041_v43 }
 0xd16   : > { %2528 = vmatmul.mubr.bf16.vlgmr.msra.gmra.mxu1 %v2494_v46  ;;  %3464 = vmatmul.mubr.bf16.vlgmr.msra.gmra.mxu0 %v2494_v46  ;;  %v5323_v46 = vld [vmem:[#allocation14_spill] sm:$0xff] }
 0xd17   : > { %2617 = vmatpush1.bf16.msra.mxu1 %v4976_v32  ;;  %3468 = vmatpush3.bf16.msra.mxu0 %v4982_v34 }
 0xd18   : > { %2618 = vmatprep.subr.bf16.mxu1 %v4988_v0  ;;  %3469 = vmatprep.subr.bf16.mxu0 %v5301_v8 }
 0xd19   : > { %2648 = vmatprep.mubr.bf16.mxu1 %v5302_v15  ;;  %3483 = vmatprep.mubr.msk.bf16.mxu0 %vm3814_vm1, %v5301_v8 }
 0xd1b   : > { %2619 = vmatpush1.bf16.msra.mxu1 %v4998_v1  ;;  %3470 = vmatpush3.bf16.msra.mxu0 %v5056_v53 }
 0xd1c   : > { %2620 = vmatprep.subr.bf16.mxu1 %v5062_v50  ;;  %3471 = vmatprep.subr.bf16.mxu0 %v5301_v8 }
 0xd1f   : > { %2621 = vmatpush1.bf16.msra.mxu1 %v5069_v54  ;;  %3472 = vmatpush3.bf16.msra.mxu0 %v5075_v55 }
 0xd20   : > { %2622 = vmatprep.subr.bf16.mxu1 %v5081_v59  ;;  %3473 = vmatprep.subr.bf16.mxu0 %v5301_v8 }
 0xd23   : > { %2623 = vmatpush1.bf16.msra.mxu1 %v5088_v57  ;;  %3474 = vmatpush3.bf16.msra.mxu0 %v5094_v60 }
 0xd24   : > { %2624 = vmatprep.subr.bf16.mxu1 %v5100_v62  ;;  %3475 = vmatprep.subr.bf16.mxu0 %v5301_v8 }
 0xd27   : > { %2625 = vmatpush1.bf16.msra.mxu1 %v5107_v12  ;;  %3476 = vmatpush3.bf16.msra.mxu0 %v5113_v16 }
 0xd28   : > { %2626 = vmatprep.subr.bf16.mxu1 %v5119_v21  ;;  %3477 = vmatprep.subr.bf16.mxu0 %v5301_v8 }
 0xd2b   : > { %2627 = vmatpush1.bf16.msra.mxu1 %v5126_v31  ;;  %3478 = vmatpush3.bf16.msra.mxu0 %v5132_v51 }
 0xd2c   : > { %2628 = vmatprep.subr.bf16.mxu1 %v5138_v24  ;;  %3479 = vmatprep.subr.bf16.mxu0 %v5301_v8 }
 0xd2f   : > { %2629 = vmatpush1.bf16.msra.mxu1 %v5145_v13  ;;  %3480 = vmatpush3.bf16.msra.mxu0 %v5151_v33 }
 0xd30   : > { %2630 = vmatprep.subr.bf16.mxu1 %v5157_v25  ;;  %3481 = vmatprep.subr.bf16.mxu0 %v5301_v8 }
 0xd33   : > { %2631 = vmatpush1.bf16.msra.mxu1 %v5164_v56  ;;  %3482 = vmatpush3.bf16.msra.mxu0 %v5170_v40 }
 0xd34   : > { %2737 = vmatprep.subr.bf16.mxu1 %v5029_v48  ;;  %3487 = vmatprep.subr.bf16.mxu0 %v5301_v8 }
 0xdd6   : > { %v2529_v19 = vpop.f32.mrf.mxu1  ;;  %v2570_v17 = vpop.f32.mrf.mxu0 }
 0xdd7   : > { %v2576_v4 = vadd.f32 %v2529_v19, %v5321_v45  ;;  %v2590_v42 = vadd.f32 %v4776_v28, %v2570_v17 }
 0xdd8   : > { %v2531_v29 = vpop.f32.mrf.mxu1  ;;  %v3465_v36 = vpop.f32.mrf.mxu0 }
 0xdd9   : > { %v2987_v38 = vmul.f32 -1.442695, %v2576_v4  ;;  %v2583_v10 = vadd.f32 %v2531_v29, %v5322_v11 }
 0xdda   : > { %v2533_v39 = vpop.f32.mrf.mxu1  ;;  %v2573_v7 = vpop.f32.mrf.mxu0 }
 0xddb   : > { %3723 = vpow2.f32 %v2987_v38  ;;  %v2988_v27 = vmul.f32 -1.442695, %v2583_v10 }
 0xddc   : > { %v2534_v48 = vpop.f32.mrf.mxu1  ;;  %v3466_v20 = vpop.f32.mrf.mxu0 }
 0xddd   : > { %3725 = vpow2.f32 %v2988_v27  ;;  %v5327_v27 = vld [vmem:[#allocation29_spill] sm:$0xff] }
 0xde8   : > { %v3724_v35 = vpop.eup %3723 }
 0xde9   : > { %v2580_v18 = vadd.f32 1.0, %v3724_v35 }
 0xdea   : > { %v3726_v14 = vpop.eup %3725 }
 0xdeb   : > { %3727 = vrcp.f32 %v2580_v18  ;;  %v2587_v26 = vadd.f32 1.0, %v3726_v14 }
 0xded   : > { %3729 = vrcp.f32 %v2587_v26 }
 0xdf8   : > { %v3728_v37 = vpop.eup %3727 }
 0xdf9   : > { %v2591_v5 = vmul.f32 %v3728_v37, %v2590_v42 }
 0xdfa   : > { %v3730_v6 = vpop.eup %3729 }
 0xdfb   : > { %v2592_v3 = vadd.f32 %v2591_v5, %v5323_v46  ;;  %v2594_v19 = vsub.f32 1.0, %v3730_v6  ;;  %v2596_v29 = vmul.f32 %v3730_v6, %v5041_v43 }
 0xdfd   : > { %3731 = vtanh.f32 %v2592_v3  ;;  %v5328_v3 = vld [vmem:[#allocation30_spill] sm:$0xff] }
 0xe0a   : > { %v3732_v45 = vpop.eup %3731 }
 0xe0b   : > { %v2595_v4 = vmul.f32 %v3732_v45, %v2594_v19 }
 0xe0d   : > { %v5183_v36 = vadd.f32 %v2596_v29, %v2595_v4  ;;  %v1032_v29 = vpop.permute.xlu0 %1031 }
 0xe0f   : > { %v2615_v38 = vpack.c.bf16 %v5183_v36, %v5183_v36 }
 0xe11   : > { %2649 = vmatmul.mubr.bf16.vlgmr.msra.gmra.mxu1 %v2615_v38  ;;  %3484 = vmatmul.mubr.bf16.vlgmr.msra.gmra.mxu0 %v2615_v38  ;;  %v1274_v38 = vpop.permute.xlu1 %1273 }
 0xe12   : > { %2738 = vmatpush1.bf16.msra.mxu1 %v4976_v32  ;;  %3488 = vmatpush3.bf16.msra.mxu0 %v4982_v34  ;;  %v2841_v32 = vstv %s2840_s29  ;;  %vm1275_vm3 = vcmp.eq.s32.totalorder %v1274_v38, 1 }
 0xe13   : > { %2739 = vmatprep.subr.bf16.mxu1 %v4988_v0  ;;  %3489 = vmatprep.subr.bf16.mxu0 %v5301_v8  ;;  %vm2842_vm0 = vcmp.eq.s32.totalorder %v4034_v47, %v2841_v32  ;;  %v1153_v32 = vpop.permute.xlu0 %1152 }
 0xe14   : > { %2769 = vmatprep.mubr.bf16.mxu1 %v5302_v15  ;;  %3503 = vmatprep.mubr.msk.bf16.mxu0 %vm3814_vm1, %v5301_v8  ;;  %v2844_v34 = vsel %vm2842_vm0, 1, %v5302_v15  ;;  %vm1033_vm1 = vcmp.eq.s32.totalorder %v1032_v29, 1  ;;  %vm1154_vm2 = vcmp.eq.s32.totalorder %v1153_v32, 1 }
 0xe15   : > { %2846 = vperm.xlu1 %3520, %v2844_v34  }
 0xe16   : > { %2740 = vmatpush1.bf16.msra.mxu1 %v4998_v1  ;;  %3490 = vmatpush3.bf16.msra.mxu0 %v5056_v53  ;;  %v5324_v53 = vld [vmem:[#allocation27_spill] sm:$0xff] }
 0xe17   : > { %2741 = vmatprep.subr.bf16.mxu1 %v5062_v50  ;;  %3491 = vmatprep.subr.bf16.mxu0 %v5301_v8 }
 0xe1a   : > { %2742 = vmatpush1.bf16.msra.mxu1 %v5069_v54  ;;  %3492 = vmatpush3.bf16.msra.mxu0 %v5075_v55 }
 0xe1b   : > { %2743 = vmatprep.subr.bf16.mxu1 %v5081_v59  ;;  %3493 = vmatprep.subr.bf16.mxu0 %v5301_v8 }
 0xe1e   : > { %2744 = vmatpush1.bf16.msra.mxu1 %v5088_v57  ;;  %3494 = vmatpush3.bf16.msra.mxu0 %v5094_v60 }
 0xe1f   : > { %2745 = vmatprep.subr.bf16.mxu1 %v5100_v62  ;;  %3495 = vmatprep.subr.bf16.mxu0 %v5301_v8 }
 0xe22   : > { %2746 = vmatpush1.bf16.msra.mxu1 %v5107_v12  ;;  %3496 = vmatpush3.bf16.msra.mxu0 %v5113_v16  ;;  %v5325_v12 = vld [vmem:[#allocation28_spill] sm:$0xff] }
 0xe23   : > { %2747 = vmatprep.subr.bf16.mxu1 %v5119_v21  ;;  %3497 = vmatprep.subr.bf16.mxu0 %v5301_v8 }
 0xe26   : > { %2748 = vmatpush1.bf16.msra.mxu1 %v5126_v31  ;;  %3498 = vmatpush3.bf16.msra.mxu0 %v5132_v51 }
 0xe27   : > { %2749 = vmatprep.subr.bf16.mxu1 %v5138_v24  ;;  %3499 = vmatprep.subr.bf16.mxu0 %v5301_v8 }
 0xe2a   : > { %2750 = vmatpush1.bf16.msra.mxu1 %v5145_v13  ;;  %3500 = vmatpush3.bf16.msra.mxu0 %v5151_v33 }
 0xe2b   : > { %2751 = vmatprep.subr.bf16.mxu1 %v5157_v25  ;;  %3501 = vmatprep.subr.bf16.mxu0 %v5301_v8  ;;  %v5326_v25 = vld [vmem:[#allocation9_spill] sm:$0xff] }
 0xe2e   : > { %2752 = vmatpush1.bf16.msra.mxu1 %v5164_v56  ;;  %3502 = vmatpush3.bf16.msra.mxu0 %v5170_v40 }
 0xed1   : > { %v2650_v0 = vpop.f32.mrf.mxu1  ;;  %v2691_v1 = vpop.f32.mrf.mxu0 }
 0xed2   : > { %v2697_v50 = vadd.f32 %v2650_v0, %v5324_v53  ;;  %v2711_v24 = vadd.f32 %v4776_v28, %v2691_v1  ;;  %v1395_v0 = vpop.permute.xlu1 %1394  ;;  %v1516_v1 = vpop.permute.xlu0 %1515 }
 0xed3   : > { %v2652_v54 = vpop.f32.mrf.mxu1  ;;  %v3485_v55 = vpop.f32.mrf.mxu0  ;;  %vm1396_vm4 = vcmp.eq.s32.totalorder %v1395_v0, 1  ;;  %vm1517_vm5 = vcmp.eq.s32.totalorder %v1516_v1, 1 }
 0xed4   : > { %v2989_v59 = vmul.f32 -1.442695, %v2697_v50  ;;  %v2704_v16 = vadd.f32 %v2652_v54, %v5325_v12  ;;  %v3802_v54 = vld [vmem:[%s5268_s5] ss:$0 sm:$0xff] }
 0xed5   : > { %v2654_v57 = vpop.f32.mrf.mxu1  ;;  %v2694_v8 = vpop.f32.mrf.mxu0 }
 0xed6   : > { %3733 = vpow2.f32 %v2989_v59  ;;  %v2990_v21 = vmul.f32 -1.442695, %v2704_v16  ;;  %v1637_v50 = vpop.permute.xlu1 %1636  ;;  %v1758_v57 = vpop.permute.xlu0 %1757 }
 0xed7   : > { %v2655_v60 = vpop.f32.mrf.mxu1  ;;  %v3486_v62 = vpop.f32.mrf.mxu0  ;;  %vm1638_vm6 = vcmp.eq.s32.totalorder %v1637_v50, 1  ;;  %vm1759_vm7 = vcmp.eq.s32.totalorder %v1758_v57, 1 }
 0xed8   : > { %3735 = vpow2.f32 %v2990_v21  ;;  %v5329_v62 = vld [vmem:[#allocation12_spill] sm:$0xff]  ;;  %v1028_v21 = vld [vmem:[%s5269_s6] sm:$0xff] }
 0xeda   : > { %v1879_v60 = vpop.permute.xlu1 %1878  ;;  %v2000_v16 = vpop.permute.xlu0 %1999 }
 0xedb   : > { %vm1880_vm8 = vcmp.eq.s32.totalorder %v1879_v60, 1  ;;  %vm2001_vm9 = vcmp.eq.s32.totalorder %v2000_v16, 1 }
 0xee3   : > { %v3734_v47 = vpop.eup %3733 }
 0xee4   : > { %v2701_v31 = vadd.f32 1.0, %v3734_v47  ;;  %v2121_v47 = vpop.permute.xlu1 %2120 }
 0xee5   : > { %v3736_v15 = vpop.eup %3735  ;;  %vm2122_vm10 = vcmp.eq.s32.totalorder %v2121_v47, 1 }
 0xee6   : > { %3737 = vrcp.f32 %v2701_v31  ;;  %v2708_v51 = vadd.f32 1.0, %v3736_v15  ;;  %v1034_v31 = vsel %vm1033_vm1, %v4327_v44, %v1028_v21  ;;  %v2242_v15 = vpop.permute.xlu0 %2241 }
 0xee7   : > { %vm2243_vm11 = vcmp.eq.s32.totalorder %v2242_v15, 1 }
 0xee8   : > { %3739 = vrcp.f32 %v2708_v51  ;;  %v1155_v51 = vsel %vm1154_vm2, %v4374_v63, %v1034_v31 }
 0xef3   : > { %v3738_v13 = vpop.eup %3737 }
 0xef4   : > { %v2712_v33 = vmul.f32 %v3738_v13, %v2711_v24  ;;  %v1276_v24 = vsel %vm1275_vm3, %v4421_v2, %v1155_v51 }
 0xef5   : > { %v3740_v40 = vpop.eup %3739  ;;  %v1397_v13 = vsel %vm1396_vm4, %v4468_v61, %v1276_v24 }
 0xef6   : > { %v2713_v56 = vadd.f32 %v2712_v33, %v5326_v25  ;;  %v2715_v17 = vsub.f32 1.0, %v3740_v40  ;;  %v2717_v48 = vmul.f32 %v3740_v40, %v5183_v36  ;;  %v2363_v33 = vpop.permute.xlu1 %2362  ;;  %v1518_v25 = vsel %vm1517_vm5, %v4540_v23, %v1397_v13 }
 0xef7   : > { %v1639_v40 = vsel %vm1638_vm6, %v4682_v41, %v1518_v25  ;;  %vm2364_vm12 = vcmp.eq.s32.totalorder %v2363_v33, 1 }
 0xef8   : > { %3741 = vtanh.f32 %v2713_v56  ;;  %v2484_v56 = vpop.permute.xlu0 %2483 }
 0xef9   : > { %vm2485_vm13 = vcmp.eq.s32.totalorder %v2484_v56, 1 }
 0xefa   : > { %v2605_v2 = vpop.permute.xlu1 %2604 }
 0xefb   : > { %vm2606_vm14 = vcmp.eq.s32.totalorder %v2605_v2, 1 }
 0xefc   : > { %v2726_v61 = vpop.permute.xlu0 %2725 }
 0xefd   : > { %vm2727_vm15 = vcmp.eq.s32.totalorder %v2726_v61, 1 }
 0xf05   : > { %v3742_v39 = vpop.eup %3741 }
 0xf06   : > { %v2716_v7 = vmul.f32 %v3742_v39, %v2715_v17  ;;  %v1760_v17 = vsel %vm1759_vm7, %v4729_v52, %v1639_v40  ;;  %v2847_v52 = vpop.permute.xlu1 %2846 }
 0xf07   : > { %v1881_v63 = vsel %vm1880_vm8, %v4781_v22, %v1760_v17  ;;  %vm2848_vm0 = vcmp.eq.s32.totalorder %v2847_v52, 1 }
 0xf08   : > { %v5228_v20 = vadd.f32 %v2717_v48, %v2716_v7  ;;  %v2002_v39 = vsel %vm2001_vm9, %v4828_v49, %v1881_v63 }
 0xf09   : > { %v2123_v7 = vsel %vm2122_vm10, %v4875_v58, %v2002_v39 }
 0xf0a   : > { %v2736_v11 = vpack.c.bf16 %v5228_v20, %v5228_v20  ;;  %v2244_v41 = vsel %vm2243_vm11, %v4922_v9, %v2123_v7 }
 0xf0c   : > { %2770 = vmatmul.mubr.bf16.vlgmr.msra.gmra.mxu1 %v2736_v11  ;;  %3504 = vmatmul.mubr.bf16.vlgmr.msra.gmra.mxu0 %v2736_v11  ;;  %v2365_v11 = vsel %vm2364_vm12, %v4969_v30, %v2244_v41 }
 0xfcc   : > { %v2771_v28 = vpop.f32.mrf.mxu1  ;;  %v2812_v10 = vpop.f32.mrf.mxu0 }
 0xfcd   : > { %v2818_v35 = vadd.f32 %v2771_v28, %v5327_v27  ;;  %v2832_v55 = vadd.f32 %v3802_v54, %v2812_v10  ;;  %v2486_v10 = vsel %vm2485_vm13, %v5041_v43, %v2365_v11 }
 0xfce   : > { %v2773_v18 = vpop.f32.mrf.mxu1  ;;  %v3505_v14 = vpop.f32.mrf.mxu0  ;;  %v2607_v49 = vsel %vm2606_vm14, %v5183_v36, %v2486_v10 }
 0xfcf   : > { %v2991_v26 = vmul.f32 -1.442695, %v2818_v35  ;;  %v2825_v6 = vadd.f32 %v2773_v18, %v5328_v3  ;;  %v2728_v58 = vsel %vm2727_vm15, %v5228_v20, %v2607_v49 }
 0xfd0   : > { %v2775_v42 = vpop.f32.mrf.mxu1  ;;  %v2815_v37 = vpop.f32.mrf.mxu0 }
 0xfd1   : > { %3743 = vpow2.f32 %v2991_v26  ;;  %v2992_v19 = vmul.f32 -1.442695, %v2825_v6 }
 0xfd2   : > { %v2776_v5 = vpop.f32.mrf.mxu1  ;;  %v3506_v46 = vpop.f32.mrf.mxu0 }
 0xfd3   : > { %3745 = vpow2.f32 %v2992_v19 }
 0xfde   : > { %v3744_v45 = vpop.eup %3743 }
 0xfdf   : > { %v2822_v4 = vadd.f32 1.0, %v3744_v45 }
 0xfe0   : > { %v3746_v34 = vpop.eup %3745 }
 0xfe1   : > { %3747 = vrcp.f32 %v2822_v4  ;;  %v2829_v53 = vadd.f32 1.0, %v3746_v34 }
 0xfe3   : > { %3749 = vrcp.f32 %v2829_v53 }
 0xfee   : > { %v3748_v59 = vpop.eup %3747 }
 0xfef   : > { %v2833_v8 = vmul.f32 %v3748_v59, %v2832_v55 }
 0xff0   : > { %v3750_v44 = vpop.eup %3749 }
 0xff1   : > { %v2834_v12 = vadd.f32 %v2833_v8, %v5329_v62  ;;  %v2836_v23 = vsub.f32 1.0, %v3750_v44  ;;  %v2838_v22 = vmul.f32 %v3750_v44, %v5228_v20 }
 0xff3   : > { %3751 = vtanh.f32 %v2834_v12 }
0x1000   : > { %v3752_v48 = vpop.eup %3751 }
0x1001   : > { %v2837_v28 = vmul.f32 %v3752_v48, %v2836_v23 }
0x1003   : > { %v2839_v27 = vadd.f32 %v2838_v22, %v2837_v28 }
0x1005   : > { %v2849_v35 = vsel %vm2848_vm0, %v2839_v27, %v2728_v58  ;;  %2851 = vst [vmem:[#allocation2] sm:$0xff] %v2839_v27 }
0x1006   : > { %2850 = vst [vmem:[%s5269_s6] sm:$0xff] %v2849_v35 }
0x1007 PF: > { %s16_s21 = sadd.s32 1, %s3809_s21  }
0x1008   : > { %p13_p5 = scmp.ge.s32.totalorder %s16_s21, 4  }
0x100a   :  { %15 = sbr.rel (!%p13_p5) target bundleno = 1 (0x1), region = 90 }

// kernel: encoder_forward.10
= control target key start
LH: loop header
LB: loop body
LE: loop exit
PB: predicated region body
PF: predicated region fallthrough
CT: control target
= control target key end

     0   :  { %s4139_s24 = smov 0   ;;  %s5579_s0 = inlined_call_operand.vmem [shape: s32[8,1], index: 0, kind: input, shape index: {}]   ;;  %s5580_s1 = inlined_call_operand.vmem [shape: bf16[256,128], index: 1, kind: input, shape index: {}]   ;;  %s5581_s2 = inlined_call_operand.vmem [shape: bf16[128,384], index: 2, kind: input, shape index: {}]   ;;  %s5582_s3 = inlined_call_operand.vmem [shape: f32[1,384], index: 3, kind: input, shape index: {}]   ;;  %s5583_s4 = inlined_call_operand.vmem [shape: bf16[128,384], index: 4, kind: input, shape index: {}]   ;;  %s5584_s5 = inlined_call_operand.vmem [shape: f32[1,128], index: 5, kind: input, shape index: {}]   ;;  %s5585_s6 = inlined_call_operand.vmem [shape: bf16[256,128], index: 6, kind: output, shape index: {0}]   ;;  %s5586_s7 = inlined_call_operand.vmem [shape: f32[8,128], index: 7, kind: output, shape index: {1}]  }
   0x1 LB: > { %s3097_s25 = sadd.s32 4294967295, %s4093_s24   ;;  %p3101_p0 = scmp.ge.s32.totalorder %s4093_s24, 1  ;;  %s4093_s24 = sphi %s4139_s24, %s18_s24  }
   0x2   : > { %p236_p1 = scmp.lt.s32.totalorder %s4093_s24, 3 }
   0x4   : > { %p237_p2 = pnand %p3101_p0, %p236_p1 }
   0x6   : > { %240 = sbr.rel (%p237_p2) target bundleno = 4104 (0x1008), region = 44 }
   0xb   : > { %s4147_s26 = sshll.u32 %s3097_s25, 4  ;;  %p3106_p4 = scmp.ne.s32.totalorder %s3097_s25, 0 }
   0xc   : > { %p269_p3 = scmp.lt.s32.totalorder %s4147_s26, 31 }
   0xd   : > { %284 = sbr.rel (%p3106_p4) target bundleno = 20 (0x14), region = 48 }
   0xe   : > { %s270_s27 = scalar_select %p269_p3, %s4147_s26, 31 }
  0x10   : > { %s3103_s28 = sshll.u32 %s270_s27, 2 }
  0x11   : > { %s4154_s8 = scalar_lea.vmem %s5580_s1, %s3103_s28  ;;  %s4159_s11 = scalar_lea.vmem %s5585_s6, %s3103_s28 }
  0x12   : > { %v4095_v0 = vmov 0.0  }
  0x13   : > { %285 = vst [vmem:[#allocation2] sm:$0xff] %v4095_v0  ;;  %286 = vst [vmem:[%s5586_s7] sm:$0xff] %v4095_v0 }
  0x14 PF: > { %v3805_v1 = vld [vmem:[%s5581_s2 + $0xac] ss:$12 sps:$4 sm:$0xff]   ;;  %v3807_v2 = vld [vmem:[%s5581_s2 + $0xb0] ss:$12 sps:$4 sm:$0xff]   ;;  %v5587_v3 = vmov 0   ;;  %v3837_v19 = vld [vmem:[%s4154_s8] sm:$0xff]   ;;  %v1068_v45 = vstv %s4147_s26 }
  0x15   : > { %560 = vmatprep.mubr.bf16.mxu0 %v5587_v3  ;;  %3803 = vset.pattern.permute.xlu0 %v5587_v3  ;;  %v3808_v4 = vld [vmem:[%s5581_s2 + $0xa8] ss:$12 sps:$4 sm:$0xff]   ;;  %v3811_v6 = vld [vmem:[%s5581_s2 + $0x98] ss:$12 sps:$4 sm:$0xff]   ;;  %v3812_v7 = vld [vmem:[%s5581_s2 + $0x90] ss:$12 sps:$4 sm:$0xff]  }
  0x16   : > { %528 = vmatprep.subr.bf16.mxu0 %v3805_v1  ;;  %3804 = vset.pattern.permute.xlu1 %v5587_v3  ;;  %v3809_v5 = vld [vmem:[%s5581_s2 + $0x94] ss:$12 sps:$4 sm:$0xff]   ;;  %v3813_v8 = vld [vmem:[%s5581_s2 + $0x7c] ss:$12 sps:$4 sm:$0xff]   ;;  %v3816_v10 = vld [vmem:[%s5581_s2 + $0x78] ss:$12 sps:$4 sm:$0xff]  }
  0x17   : > { %3439 = vmatprep.subr.bf16.mxu1 %v3807_v2  ;;  %529 = vmatpush1.bf16.msra.mxu0 %v3808_v4  ;;  %v3815_v9 = vld [vmem:[%s5581_s2 + $0x80] ss:$12 sps:$4 sm:$0xff]   ;;  %v3817_v11 = vld [vmem:[%s5581_s2 + $0x64] ss:$12 sps:$4 sm:$0xff]   ;;  %v3819_v12 = vld [vmem:[%s5581_s2 + $0x68] ss:$12 sps:$4 sm:$0xff]   ;;  %v337_v4 = vlaneseq }
  0x18   : > { %3440 = vmatpush3.bf16.msra.mxu1 %v3807_v2  ;;  %530 = vmatprep.subr.bf16.mxu0 %v3809_v5  ;;  %v3820_v13 = vld [vmem:[%s5581_s2 + $0x60] ss:$12 sps:$4 sm:$0xff]   ;;  %v3823_v15 = vld [vmem:[%s5581_s2 + $0x50] ss:$12 sps:$4 sm:$0xff]   ;;  %v3824_v16 = vld [vmem:[%s5581_s2 + $0x48] ss:$12 sps:$4 sm:$0xff]  }
  0x19   : > { %3441 = vmatprep.subr.bf16.mxu1 %v3811_v6  ;;  %v3821_v14 = vld [vmem:[%s5581_s2 + $0x4c] ss:$12 sps:$4 sm:$0xff]   ;;  %v3825_v17 = vld [vmem:[%s5581_s2 + $0x34] ss:$12 sps:$4 sm:$0xff]   ;;  %v3828_v20 = vld [vmem:[%s5581_s2 + $0x30] ss:$12 sps:$4 sm:$0xff]   ;;  %3455 = vmatprep.mubr.bf16.mxu1 %v3837_v19 }
  0x1a   : > { %v3827_v18 = vld [vmem:[%s5581_s2 + $0x38] ss:$12 sps:$4 sm:$0xff]   ;;  %v3829_v21 = vld [vmem:[%s5581_s2 + $0x1c] ss:$12 sps:$4 sm:$0xff]   ;;  %v3831_v22 = vld [vmem:[%s5581_s2 + $0x20] ss:$12 sps:$4 sm:$0xff]  }
  0x1b   : > { %531 = vmatpush1.bf16.msra.mxu0 %v3812_v7  ;;  %v3832_v23 = vld [vmem:[%s5581_s2 + $0x18] ss:$12 sps:$4 sm:$0xff]   ;;  %v3835_v25 = vld [vmem:[%s5581_s2 + $0x8] ss:$12 sps:$4 sm:$0xff]   ;;  %v3836_v26 = vld [vmem:[%s5581_s2] ss:$12 sps:$4 sm:$0xff]  }
  0x1c   : > { %3442 = vmatpush3.bf16.msra.mxu1 %v3811_v6  ;;  %532 = vmatprep.subr.bf16.mxu0 %v3813_v8  ;;  %v3833_v24 = vld [vmem:[%s5581_s2 + $0x4] ss:$12 sps:$4 sm:$0xff]   ;;  %v4243_v27 = vld [vmem:[%s5583_s4 + $0xac] ss:$12 sps:$4 sm:$0xff]   ;;  %v4249_v29 = vld [vmem:[%s5583_s4 + $0xa8] ss:$12 sps:$4 sm:$0xff]  }
  0x1d   : > { %3443 = vmatprep.subr.bf16.mxu1 %v3815_v9  ;;  %v3838_v28 = vld [vmem:[%s4154_s8 + $0x8] sm:$0xff]   ;;  %v4254_v30 = vld [vmem:[%s5583_s4 + $0xb0] ss:$12 sps:$4 sm:$0xff]   ;;  %v5589_v31 = vmov 0.0   ;;  %v4261_v32 = vld [vmem:[%s5583_s4 + $0x94] ss:$12 sps:$4 sm:$0xff]  }
  0x1e   : > { %v3846_v33 = vld [vmem:[%s4154_s8 + $0x10] sm:$0xff]   ;;  %v4274_v35 = vld [vmem:[%s5583_s4 + $0x98] ss:$12 sps:$4 sm:$0xff]   ;;  %v4281_v36 = vld [vmem:[%s5583_s4 + $0x7c] ss:$12 sps:$4 sm:$0xff]   ;;  %vm4098_vm1 = vmmov 0  }
  0x1f   : > { %533 = vmatpush1.bf16.msra.mxu0 %v3816_v10  ;;  %v4267_v34 = vld [vmem:[%s5583_s4 + $0x90] ss:$12 sps:$4 sm:$0xff]   ;;  %v4289_v38 = vld [vmem:[%s5583_s4 + $0x78] ss:$12 sps:$4 sm:$0xff]   ;;  %v4303_v41 = vld [vmem:[%s5583_s4 + $0x80] ss:$12 sps:$4 sm:$0xff]  }
  0x20   : > { %3444 = vmatpush3.bf16.msra.mxu1 %v3815_v9  ;;  %534 = vmatprep.subr.bf16.mxu0 %v3817_v11  ;;  %v3847_v37 = vld [vmem:[%s4154_s8 + $0x18] sm:$0xff]   ;;  %v4296_v39 = vld [vmem:[%s5583_s4 + $0x64] ss:$12 sps:$4 sm:$0xff]   ;;  %v4309_v42 = vld [vmem:[%s5583_s4 + $0x60] ss:$12 sps:$4 sm:$0xff]   ;;  %s1190_s16 = sadd.s32 1, %s4147_s26 }
  0x21   : > { %3445 = vmatprep.subr.bf16.mxu1 %v3819_v12  ;;  %v3855_v40 = vld [vmem:[%s4154_s8 + $0x20] sm:$0xff]   ;;  %v4316_v43 = vld [vmem:[%s5583_s4 + $0x4c] ss:$12 sps:$4 sm:$0xff]   ;;  %v4326_v46 = vld [vmem:[%s5583_s4 + $0x68] ss:$12 sps:$4 sm:$0xff]   ;;  %v1191_v1 = vstv %s1190_s16  ;;  %v338_v5 = vshrl.u32 %v337_v4, 7 }
  0x22   : > { %v819_v44 = vld [vmem:[%s5579_s0] sm:$0xff]  ;;  %v3856_v48 = vld [vmem:[%s4154_s8 + $0x28] sm:$0xff]   ;;  %v3864_v51 = vld [vmem:[%s4154_s8 + $0x30] sm:$0xff]   ;;  %s1313_s21 = sadd.s32 2, %s4147_s26  ;;  %s1436_s22 = sadd.s32 3, %s4147_s26 }
  0x23   : > { %535 = vmatpush1.bf16.msra.mxu0 %v3820_v13  ;;  %v4328_v47 = vadd.s32 4294967295, %v819_v44  ;;  %v4336_v49 = vld [vmem:[%s5583_s4 + $0x48] ss:$12 sps:$4 sm:$0xff]   ;;  %v4351_v53 = vld [vmem:[%s5583_s4 + $0x50] ss:$12 sps:$4 sm:$0xff]   ;;  %v4394_v61 = vld [vmem:[#allocation2] sm:$0xff] }
  0x24   : > { %3446 = vmatpush3.bf16.msra.mxu1 %v3819_v12  ;;  %536 = vmatprep.subr.bf16.mxu0 %v3821_v14  ;;  %v4343_v50 = vld [vmem:[%s5583_s4 + $0x34] ss:$12 sps:$4 sm:$0xff]   ;;  %v4357_v54 = vld [vmem:[%s5583_s4 + $0x30] ss:$12 sps:$4 sm:$0xff]   ;;  %v4373_v57 = vld [vmem:[%s5583_s4 + $0x18] ss:$12 sps:$4 sm:$0xff]   ;;  %v829_v63 = vpack.c.bf16 %v4394_v61, %v4394_v61 }
  0x25   : > { %3447 = vmatprep.subr.bf16.mxu1 %v3823_v15  ;;  %vm1069_vm0 = vcmp.eq.s32.totalorder %v4328_v47, %v1068_v45  ;;  %v4364_v55 = vld [vmem:[%s5583_s4 + $0x1c] ss:$12 sps:$4 sm:$0xff]   ;;  %v4380_v58 = vld [vmem:[%s5583_s4 + $0x4] ss:$12 sps:$4 sm:$0xff]   ;;  %v4391_v60 = vld [vmem:[%s5583_s4] ss:$12 sps:$4 sm:$0xff]   ;;  %vm1192_vm2 = vcmp.eq.s32.totalorder %v4328_v47, %v1191_v1 }
  0x26   : > { %v1071_v52 = vsel %vm1069_vm0, 1, %v5587_v3  ;;  %v3865_v56 = vld [vmem:[%s4154_s8 + $0x38] sm:$0xff]   ;;  %v4402_v62 = vld [vmem:[%s5583_s4 + $0x20] ss:$12 sps:$4 sm:$0xff]   ;;  %v4413_v0 = vld [vmem:[%s5583_s4 + $0x8] ss:$12 sps:$4 sm:$0xff]  }
  0x27   : > { %537 = vmatpush1.bf16.msra.mxu0 %v3824_v16  ;;  %1073 = vperm.xlu0 %3803, %v1071_v52   ;;  %v4385_v59 = vld [vmem:[%s5583_s4 + $0x38] ss:$12 sps:$4 sm:$0xff]   ;;  %v1194_v2 = vsel %vm1192_vm2, 1, %v5587_v3  ;;  %v347_v6 = vsub.s32 2, %v338_v5  ;;  %v335_v7 = vld [vmem:[%s5582_s3] sm:$0x7] }
  0x28   : > { %3448 = vmatpush3.bf16.msra.mxu1 %v3823_v15  ;;  %538 = vmatprep.subr.bf16.mxu0 %v3825_v17  ;;  %v339_v9 = vsub.s32 0, %v338_v5  ;;  %v343_v13 = vsub.s32 1, %v338_v5  ;;  %s1559_s23 = sadd.s32 4, %s4147_s26  ;;  %s1682_s16 = sadd.s32 5, %s4147_s26 }
  0x29   : > { %3449 = vmatprep.subr.bf16.mxu1 %v3827_v18  ;;  %v4464_v8 = vrot.slane %v335_v7, %v347_v6  ;;  %s1805_s13 = sadd.s32 6, %s4147_s26  ;;  %s1928_s14 = sadd.s32 7, %s4147_s26 }
  0x2a   : > { %v4473_v16 = vrot.slane %v335_v7, %v339_v9  ;;  %s2051_s15 = sadd.s32 8, %s4147_s26  ;;  %s2174_s18 = sadd.s32 9, %s4147_s26 }
  0x2b   : > { %539 = vmatpush1.bf16.msra.mxu0 %v3828_v20  ;;  %1196 = vperm.xlu0 %3803, %v1194_v2   ;;  %s2297_s19 = sadd.s32 10, %s4147_s26  ;;  %s2420_s20 = sadd.s32 11, %s4147_s26 }
  0x2c   : > { %3450 = vmatpush3.bf16.msra.mxu1 %v3827_v18  ;;  %540 = vmatprep.subr.bf16.mxu0 %v3829_v21  ;;  %s2666_s9 = sadd.s32 13, %s4147_s26  ;;  %s2789_s10 = sadd.s32 14, %s4147_s26 }
  0x2d   : > { %3451 = vmatprep.subr.bf16.mxu1 %v3831_v22  ;;  %s2912_s12 = sadd.s32 15, %s4147_s26 }
  0x2f   : > { %541 = vmatpush1.bf16.msra.mxu0 %v3832_v23 }
  0x30   : > { %3452 = vmatpush3.bf16.msra.mxu1 %v3831_v22  ;;  %542 = vmatprep.subr.bf16.mxu0 %v3833_v24 }
  0x31   : > { %3453 = vmatprep.subr.bf16.mxu1 %v3835_v25 }
  0x33   : > { %543 = vmatpush1.bf16.msra.mxu0 %v3836_v26 }
  0x34   : > { %3454 = vmatpush3.bf16.msra.mxu1 %v3835_v25  ;;  %3471 = vmatprep.subr.bf16.mxu0 %v5589_v31 }
  0x35   : > { %958 = vmatprep.subr.bf16.mxu1 %v4243_v27 }
  0x36   : > { %561 = vmatmul.mubr.bf16.vlgmr.msra.gmra.mxu0 %v3837_v19  ;;  %v4475_v19 = vrot.slane %v335_v7, %v343_v13 }
  0x37   : > { %3456 = vmatmul.mubr.bf16.vlgmr.msra.gmra.mxu1 %v3838_v28  ;;  %3472 = vmatpush3.bf16.msra.mxu0 %v4254_v30 }
  0x38   : > { %959 = vmatpush1.bf16.msra.mxu1 %v4249_v29  ;;  %570 = vmatprep.mubr.bf16.mxu0 %v5587_v3 }
  0x39   : > { %960 = vmatprep.subr.bf16.mxu1 %v4261_v32  ;;  %3459 = vmatprep.mubr.bf16.mxu1 %v3846_v33 }
  0x3a   : > { %3473 = vmatprep.subr.bf16.mxu0 %v5589_v31 }
  0x3b   : > { %3474 = vmatpush3.bf16.msra.mxu0 %v4274_v35 }
  0x3c   : > { %961 = vmatpush1.bf16.msra.mxu1 %v4267_v34  ;;  %3475 = vmatprep.subr.bf16.mxu0 %v5589_v31 }
  0x3d   : > { %962 = vmatprep.subr.bf16.mxu1 %v4281_v36 }
  0x3e   : > { %571 = vmatmul.mubr.bf16.gmra.mxu0 %v3838_v28 }
  0x3f   : > { %3460 = vmatmul.mubr.bf16.gmra.mxu1 %v3847_v37  ;;  %580 = vmatprep.mubr.bf16.mxu0 %v5587_v3 }
  0x40   : > { %963 = vmatpush1.bf16.msra.mxu1 %v4289_v38  ;;  %3463 = vmatprep.mubr.bf16.mxu1 %v3855_v40 }
  0x41   : > { %964 = vmatprep.subr.bf16.mxu1 %v4296_v39  ;;  %3476 = vmatpush3.bf16.msra.mxu0 %v4303_v41 }
  0x42   : > { %3477 = vmatprep.subr.bf16.mxu0 %v5589_v31 }
  0x44   : > { %965 = vmatpush1.bf16.msra.mxu1 %v4309_v42 }
  0x45   : > { %966 = vmatprep.subr.bf16.mxu1 %v4316_v43  ;;  %3478 = vmatpush3.bf16.msra.mxu0 %v4326_v46 }
  0x46   : > { %581 = vmatmul.mubr.bf16.gmra.mxu0 %v3846_v33  ;;  %3479 = vmatprep.subr.bf16.mxu0 %v5589_v31 }
  0x47   : > { %3464 = vmatmul.mubr.bf16.gmra.mxu1 %v3856_v48  ;;  %590 = vmatprep.mubr.bf16.mxu0 %v5587_v3 }
  0x48   : > { %967 = vmatpush1.bf16.msra.mxu1 %v4336_v49  ;;  %3467 = vmatprep.mubr.bf16.mxu1 %v3864_v51 }
  0x49   : > { %968 = vmatprep.subr.bf16.mxu1 %v4343_v50  ;;  %3480 = vmatpush3.bf16.msra.mxu0 %v4351_v53 }
  0x4a   : > { %3481 = vmatprep.subr.bf16.mxu0 %v5589_v31 }
  0x4c   : > { %969 = vmatpush1.bf16.msra.mxu1 %v4357_v54 }
  0x4d   : > { %970 = vmatprep.subr.bf16.mxu1 %v4364_v55  ;;  %3482 = vmatpush3.bf16.msra.mxu0 %v4385_v59 }
  0x4e   : > { %591 = vmatmul.mubr.bf16.gmra.mxu0 %v3847_v37  ;;  %3483 = vmatprep.subr.bf16.mxu0 %v5589_v31 }
  0x4f   : > { %3468 = vmatmul.mubr.bf16.gmra.mxu1 %v3865_v56  ;;  %600 = vmatprep.mubr.bf16.mxu0 %v5587_v3 }
  0x50   : > { %971 = vmatpush1.bf16.msra.mxu1 %v4373_v57  ;;  %990 = vmatprep.mubr.bf16.mxu1 %v5587_v3 }
  0x51   : > { %972 = vmatprep.subr.bf16.mxu1 %v4380_v58  ;;  %3484 = vmatpush3.bf16.msra.mxu0 %v4402_v62 }
  0x52   : > { %3485 = vmatprep.subr.bf16.mxu0 %v5589_v31 }
  0x54   : > { %973 = vmatpush1.bf16.msra.mxu1 %v4391_v60 }
  0x55   : > { %1085 = vmatprep.subr.bf16.mxu1 %v4243_v27  ;;  %3486 = vmatpush3.bf16.msra.mxu0 %v4413_v0 }
  0x56   : > { %601 = vmatmul.mubr.bf16.gmra.mxu0 %v3855_v40  ;;  %3491 = vmatprep.subr.bf16.mxu0 %v5589_v31 }
  0x57   : > { %991 = vmatmul.mubr.bf16.vlgmr.msra.gmra.mxu1 %v829_v63  ;;  %610 = vmatprep.mubr.bf16.mxu0 %v5587_v3 }
  0x58   : > { %1086 = vmatpush1.bf16.msra.mxu1 %v4249_v29  ;;  %1117 = vmatprep.mubr.bf16.mxu1 %v5587_v3 }
  0x59   : > { %1087 = vmatprep.subr.bf16.mxu1 %v4261_v32 }
  0x5c   : > { %1088 = vmatpush1.bf16.msra.mxu1 %v4267_v34 }
  0x5d   : > { %1089 = vmatprep.subr.bf16.mxu1 %v4281_v36 }
  0x5e   : > { %611 = vmatmul.mubr.bf16.gmra.mxu0 %v3856_v48 }
  0x5f   : > { %620 = vmatprep.mubr.bf16.mxu0 %v5587_v3 }
  0x60   : > { %1090 = vmatpush1.bf16.msra.mxu1 %v4289_v38 }
  0x61   : > { %1091 = vmatprep.subr.bf16.mxu1 %v4296_v39 }
  0x64   : > { %1092 = vmatpush1.bf16.msra.mxu1 %v4309_v42 }
  0x65   : > { %1093 = vmatprep.subr.bf16.mxu1 %v4316_v43 }
  0x66   : > { %621 = vmatmul.mubr.bf16.gmra.mxu0 %v3864_v51 }
  0x67   : > { %630 = vmatprep.mubr.bf16.mxu0 %v5587_v3 }
  0x68   : > { %1094 = vmatpush1.bf16.msra.mxu1 %v4336_v49 }
  0x69   : > { %1095 = vmatprep.subr.bf16.mxu1 %v4343_v50 }
  0x6c   : > { %1096 = vmatpush1.bf16.msra.mxu1 %v4357_v54 }
  0x6d   : > { %1097 = vmatprep.subr.bf16.mxu1 %v4364_v55 }
  0x6e   : > { %631 = vmatmul.mubr.bf16.gmra.mxu0 %v3865_v56 }
  0x6f   : > { %3487 = vmatprep.mubr.msk.bf16.mxu0 %vm4098_vm1, %v5589_v31 }
  0x70   : > { %1098 = vmatpush1.bf16.msra.mxu1 %v4373_v57 }
  0x71   : > { %1099 = vmatprep.subr.bf16.mxu1 %v4380_v58 }
  0x74   : > { %1100 = vmatpush1.bf16.msra.mxu1 %v4391_v60 }
  0x75   : > { %1208 = vmatprep.subr.bf16.mxu1 %v4243_v27 }
  0x76   : > { %3488 = vmatmul.mubr.bf16.vlgmr.msra.gmra.mxu0 %v829_v63 }
  0x77   : > { %3492 = vmatpush3.bf16.msra.mxu0 %v4254_v30  ;;  %3507 = vmatprep.mubr.msk.bf16.mxu0 %vm4098_vm1, %v5589_v31 }
  0x78   : > { %3493 = vmatprep.subr.bf16.mxu0 %v5589_v31 }
  0x7b   : > { %3494 = vmatpush3.bf16.msra.mxu0 %v4274_v35 }
  0x7c   : > { %3495 = vmatprep.subr.bf16.mxu0 %v5589_v31 }
  0x7f   : > { %3496 = vmatpush3.bf16.msra.mxu0 %v4303_v41 }
  0x80   : > { %3497 = vmatprep.subr.bf16.mxu0 %v5589_v31 }
  0x83   : > { %3498 = vmatpush3.bf16.msra.mxu0 %v4326_v46 }
  0x84   : > { %3499 = vmatprep.subr.bf16.mxu0 %v5589_v31 }
  0x87   : > { %3500 = vmatpush3.bf16.msra.mxu0 %v4351_v53 }
  0x88   : > { %3501 = vmatprep.subr.bf16.mxu0 %v5589_v31 }
  0x8b   : > { %3502 = vmatpush3.bf16.msra.mxu0 %v4385_v59 }
  0x8c   : > { %3503 = vmatprep.subr.bf16.mxu0 %v5589_v31 }
  0x8f   : > { %3504 = vmatpush3.bf16.msra.mxu0 %v4402_v62 }
  0x90   : > { %3505 = vmatprep.subr.bf16.mxu0 %v5589_v31 }
  0x93   : > { %3506 = vmatpush3.bf16.msra.mxu0 %v4413_v0 }
  0x94   : > { %3511 = vmatprep.subr.bf16.mxu0 %v5589_v31 }
  0xf6   : > { %v562_v10 = vpop.f32.mrf.mxu0 }
  0xf7   : > { %v3457_v11 = vpop.f32.mrf.mxu1 }
  0xf8   : > { %v4467_v12 = vadd.f32 %v3457_v11, %v4464_v8  ;;  %v4469_v14 = vpop.f32.mrf.mxu0 }
  0xf9   : > { %v4471_v15 = vpop.f32.mrf.mxu1 }
  0xfa   : > { %v566_v17 = vpop.f32.mrf.mxu0 }
  0xfb   : > { %v3458_v18 = vpop.f32.mrf.mxu1  ;;  %v4478_v20 = vadd.f32 %v566_v17, %v4473_v16 }
  0xfc   : > { %v4481_v21 = vadd.f32 %v3458_v18, %v4464_v8  ;;  %v568_v22 = vpop.f32.mrf.mxu0 }
  0xfd   : > { %v678_v23 = vpop.f32.mrf.mxu1  ;;  %v4484_v24 = vadd.f32 %v568_v22, %v4475_v19 }
  0xfe   : > { %v4487_v25 = vadd.f32 %v678_v23, %v4464_v8  ;;  %v572_v26 = vpop.f32.mrf.mxu0 }
  0xff   : > { %v3461_v28 = vpop.f32.mrf.mxu1  ;;  %v4490_v33 = vadd.f32 %v572_v26, %v4473_v16 }
 0x100   : > { %v4493_v37 = vadd.f32 %v3461_v28, %v4464_v8  ;;  %v574_v40 = vpop.f32.mrf.mxu0 }
 0x101   : > { %v691_v44 = vpop.f32.mrf.mxu1  ;;  %v4496_v45 = vadd.f32 %v574_v40, %v4475_v19 }
 0x102   : > { %v4499_v48 = vadd.f32 %v691_v44, %v4464_v8  ;;  %v576_v51 = vpop.f32.mrf.mxu0 }
 0x103   : > { %v3462_v52 = vpop.f32.mrf.mxu1  ;;  %v4502_v56 = vadd.f32 %v576_v51, %v4473_v16 }
 0x104   : > { %v4505_v63 = vadd.f32 %v3462_v52, %v4464_v8  ;;  %v578_v1 = vpop.f32.mrf.mxu0 }
 0x105   : > { %v694_v2 = vpop.f32.mrf.mxu1  ;;  %v4508_v4 = vadd.f32 %v578_v1, %v4475_v19 }
 0x106   : > { %5591 = vst [vmem:[#allocation5_spill] sm:$0xff] %v4505_v63  ;;  %v4511_v5 = vadd.f32 %v694_v2, %v4464_v8  ;;  %v582_v6 = vpop.f32.mrf.mxu0 }
 0x107   : > { %v3465_v7 = vpop.f32.mrf.mxu1  ;;  %v4514_v9 = vadd.f32 %v582_v6, %v4473_v16 }
 0x108   : > { %v4517_v11 = vadd.f32 %v3465_v7, %v4464_v8  ;;  %v584_v13 = vpop.f32.mrf.mxu0 }
 0x109   : > { %v707_v17 = vpop.f32.mrf.mxu1  ;;  %v4520_v18 = vadd.f32 %v584_v13, %v4475_v19 }
 0x10a   : > { %5592 = vst [vmem:[#allocation6_spill] sm:$0xff] %v4517_v11  ;;  %v4523_v22 = vadd.f32 %v707_v17, %v4464_v8  ;;  %v586_v23 = vpop.f32.mrf.mxu0 }
 0x10b   : > { %v3466_v26 = vpop.f32.mrf.mxu1  ;;  %v4526_v28 = vadd.f32 %v586_v23, %v4473_v16 }
 0x10c   : > { %5593 = vst [vmem:[#allocation7_spill] sm:$0xff] %v4523_v22  ;;  %v4529_v40 = vadd.f32 %v3466_v26, %v4464_v8  ;;  %v588_v44 = vpop.f32.mrf.mxu0 }
 0x10d   : > { %v710_v51 = vpop.f32.mrf.mxu1  ;;  %v4532_v52 = vadd.f32 %v588_v44, %v4475_v19 }
 0x10e   : > { %5594 = vst [vmem:[#allocation8_spill] sm:$0xff] %v4529_v40  ;;  %v4535_v1 = vadd.f32 %v710_v51, %v4464_v8  ;;  %v592_v2 = vpop.f32.mrf.mxu0 }
 0x10f   : > { %v3469_v6 = vpop.f32.mrf.mxu1  ;;  %v4538_v7 = vadd.f32 %v592_v2, %v4473_v16 }
 0x110   : > { %5595 = vst [vmem:[#allocation9_spill] sm:$0xff] %v4535_v1  ;;  %v4541_v13 = vadd.f32 %v3469_v6, %v4464_v8  ;;  %v594_v17 = vpop.f32.mrf.mxu0  ;;  %v563_v6 = vadd.f32 %v562_v10, %v4473_v16 }
 0x111   : > { %v723_v23 = vpop.f32.mrf.mxu1  ;;  %v4544_v26 = vadd.f32 %v594_v17, %v4475_v19 }
 0x112   : > { %5596 = vst [vmem:[#allocation10_spill] sm:$0xff] %v4541_v13  ;;  %v4547_v3 = vadd.f32 %v723_v23, %v4464_v8  ;;  %v596_v44 = vpop.f32.mrf.mxu0 }
 0x113   : > { %v3470_v31 = vpop.f32.mrf.mxu1  ;;  %v4550_v51 = vadd.f32 %v596_v44, %v4473_v16 }
 0x114   : > { %5597 = vst [vmem:[#allocation11_spill] sm:$0xff] %v4547_v3  ;;  %v4553_v40 = vadd.f32 %v3470_v31, %v4464_v8  ;;  %v598_v2 = vpop.f32.mrf.mxu0 }
 0x115   : > { %5598 = vst [vmem:[#allocation12_spill] sm:$0xff] %v4550_v51  ;;  %v726_v11 = vpop.f32.mrf.mxu1  ;;  %v4557_v13 = vadd.f32 %v598_v2, %v4475_v19  ;;  %v565_v2 = vadd.f32 %v4469_v14, %v4475_v19 }
 0x116   : > { %5599 = vst [vmem:[#allocation13_spill] sm:$0xff] %v4553_v40  ;;  %v4560_v17 = vadd.f32 %v726_v11, %v4464_v8  ;;  %v602_v23 = vpop.f32.mrf.mxu0 }
 0x117   : > { %5600 = vst [vmem:[#allocation14_spill] sm:$0xff] %v4557_v13  ;;  %v992_v3 = vpop.f32.mrf.mxu1  ;;  %v4563_v1 = vadd.f32 %v602_v23, %v4473_v16 }
 0x118   : > { %5601 = vst [vmem:[#allocation15_spill] sm:$0xff] %v4560_v17  ;;  %v1039_v44 = vadd.f32 %v992_v3, %v563_v6  ;;  %v604_v22 = vpop.f32.mrf.mxu0 }
 0x119   : > { %5602 = vst [vmem:[#allocation16_spill] sm:$0xff] %v4563_v1  ;;  %v994_v63 = vpop.f32.mrf.mxu1  ;;  %v4566_v40 = vadd.f32 %v604_v22, %v4475_v19 }
 0x11a   : > { %v3165_v31 = vmul.f32 -1.442695, %v1039_v44  ;;  %v606_v51 = vpop.f32.mrf.mxu0  ;;  %v1046_v23 = vadd.f32 %v994_v63, %v565_v2 }
 0x11b   : > { %5603 = vst [vmem:[#allocation17_spill] sm:$0xff] %v4566_v40  ;;  %v996_v10 = vpop.f32.mrf.mxu1  ;;  %v4571_v11 = vadd.f32 %v606_v51, %v4473_v16 }
 0x11c   : > { %3877 = vpow2.f32 %v3165_v31  ;;  %v608_v17 = vpop.f32.mrf.mxu0  ;;  %v3166_v40 = vmul.f32 -1.442695, %v1046_v23 }
 0x11d   : > { %5604 = vst [vmem:[#allocation18_spill] sm:$0xff] %v4571_v11  ;;  %v997_v13 = vpop.f32.mrf.mxu1  ;;  %v4574_v3 = vadd.f32 %v608_v17, %v4475_v19 }
 0x11e   : > { %v612_v6 = vpop.f32.mrf.mxu0  ;;  %3879 = vpow2.f32 %v3166_v40 }
 0x11f   : > { %5605 = vst [vmem:[#allocation19_spill] sm:$0xff] %v4574_v3  ;;  %v4577_v44 = vadd.f32 %v612_v6, %v4473_v16 }
 0x120   : > { %v614_v22 = vpop.f32.mrf.mxu0 }
 0x121   : > { %5606 = vst [vmem:[#allocation20_spill] sm:$0xff] %v4577_v44  ;;  %v4580_v10 = vadd.f32 %v614_v22, %v4475_v19 }
 0x122   : > { %v616_v14 = vpop.f32.mrf.mxu0 }
 0x123   : > { %5607 = vst [vmem:[#allocation21_spill] sm:$0xff] %v4580_v10  ;;  %v4583_v31 = vadd.f32 %v616_v14, %v4473_v16 }
 0x124   : > { %v618_v51 = vpop.f32.mrf.mxu0 }
 0x125   : > { %5608 = vst [vmem:[#allocation22_spill] sm:$0xff] %v4583_v31  ;;  %v4586_v63 = vadd.f32 %v618_v51, %v4475_v19 }
 0x126   : > { %v622_v13 = vpop.f32.mrf.mxu0 }
 0x127   : > { %5609 = vst [vmem:[#allocation23_spill] sm:$0xff] %v4586_v63  ;;  %v4589_v17 = vadd.f32 %v622_v13, %v4473_v16 }
 0x128   : > { %v624_v6 = vpop.f32.mrf.mxu0 }
 0x129   : > { %5610 = vst [vmem:[#allocation24_spill] sm:$0xff] %v4589_v17  ;;  %v3878_v2 = vpop.eup %3877  ;;  %v4592_v23 = vadd.f32 %v624_v6, %v4475_v19 }
 0x12a   : > { %v1043_v44 = vadd.f32 1.0, %v3878_v2  ;;  %v626_v22 = vpop.f32.mrf.mxu0 }
 0x12b   : > { %5611 = vst [vmem:[#allocation25_spill] sm:$0xff] %v4592_v23  ;;  %v4595_v14 = vadd.f32 %v626_v22, %v4473_v16  ;;  %v3880_v2 = vpop.eup %3879  ;;  %v4612_v22 = vld [vmem:[%s5584_s5] ss:$0 sm:$0xff] }
 0x12c   : > { %3881 = vrcp.f32 %v1043_v44  ;;  %v628_v31 = vpop.f32.mrf.mxu0 }
 0x12d   : > { %5612 = vst [vmem:[#allocation26_spill] sm:$0xff] %v4595_v14  ;;  %v4598_v40 = vadd.f32 %v628_v31, %v4475_v19  ;;  %v1050_v31 = vadd.f32 1.0, %v3880_v2  ;;  %v676_v14 = vadd.f32 %v4471_v15, %v4464_v8  ;;  %v5617_v8 = vmov 0.0  }
 0x12e   : > { %v632_v51 = vpop.f32.mrf.mxu0  ;;  %v5618_v15 = vmov 0  }
 0x12f   : > { %5613 = vst [vmem:[#allocation27_spill] sm:$0xff] %v4598_v40  ;;  %v4601_v63 = vadd.f32 %v632_v51, %v4473_v16  ;;  %3883 = vrcp.f32 %v1050_v31 }
 0x130   : > { %v634_v13 = vpop.f32.mrf.mxu0 }
 0x131   : > { %5614 = vst [vmem:[#allocation28_spill] sm:$0xff] %v4601_v63  ;;  %v4604_v17 = vadd.f32 %v634_v13, %v4475_v19 }
 0x132   : > { %v636_v6 = vpop.f32.mrf.mxu0 }
 0x133   : > { %5615 = vst [vmem:[#allocation29_spill] sm:$0xff] %v4604_v17  ;;  %v4607_v23 = vadd.f32 %v636_v6, %v4473_v16 }
 0x134   : > { %v638_v44 = vpop.f32.mrf.mxu0 }
 0x135   : > { %5616 = vst [vmem:[#allocation30_spill] sm:$0xff] %v4607_v23  ;;  %v4615_v40 = vadd.f32 %v638_v44, %v4475_v19 }
 0x136   : > { %v1033_v51 = vpop.f32.mrf.mxu0 }
 0x137   : > { %v1059_v63 = vadd.f32 %v4612_v22, %v1033_v51 }
 0x138   : > { %v3489_v17 = vpop.f32.mrf.mxu0 }
 0x139   : > { %v3882_v13 = vpop.eup %3881 }
 0x13a   : > { %v1060_v16 = vmul.f32 %v3882_v13, %v1059_v63  ;;  %v1036_v6 = vpop.f32.mrf.mxu0 }
 0x13c   : > { %v1061_v23 = vadd.f32 %v1060_v16, %v676_v14  ;;  %v3490_v10 = vpop.f32.mrf.mxu0  ;;  %v3884_v3 = vpop.eup %3883 }
 0x13d   : > { %v1063_v11 = vsub.f32 1.0, %v3884_v3  ;;  %v1065_v19 = vmul.f32 %v3884_v3, %v4394_v61  ;;  %v1314_v61 = vstv %s1313_s21 }
 0x13e   : > { %3885 = vtanh.f32 %v1061_v23  ;;  %vm1315_vm3 = vcmp.eq.s32.totalorder %v4328_v47, %v1314_v61 }
 0x14b   : > { %v3886_v2 = vpop.eup %3885 }
 0x14c   : > { %v1064_v1 = vmul.f32 %v3886_v2, %v1063_v11 }
 0x14e   : > { %v4621_v44 = vadd.f32 %v1065_v19, %v1064_v1  ;;  %v1317_v1 = vsel %vm1315_vm3, 1, %v5618_v15 }
 0x14f   : > { %1319 = vperm.xlu1 %3804, %v1317_v1  }
 0x150   : > { %v1084_v17 = vpack.c.bf16 %v4621_v44, %v4621_v44 }
 0x152   : > { %1118 = vmatmul.mubr.bf16.vlgmr.msra.gmra.mxu1 %v1084_v17  ;;  %3508 = vmatmul.mubr.bf16.vlgmr.msra.gmra.mxu0 %v1084_v17 }
 0x153   : > { %1209 = vmatpush1.bf16.msra.mxu1 %v4249_v29  ;;  %3512 = vmatpush3.bf16.msra.mxu0 %v4254_v30 }
 0x154   : > { %1210 = vmatprep.subr.bf16.mxu1 %v4261_v32  ;;  %3513 = vmatprep.subr.bf16.mxu0 %v5617_v8 }
 0x155   : > { %1240 = vmatprep.mubr.bf16.mxu1 %v5618_v15  ;;  %3527 = vmatprep.mubr.msk.bf16.mxu0 %vm4098_vm1, %v5617_v8 }
 0x157   : > { %1211 = vmatpush1.bf16.msra.mxu1 %v4267_v34  ;;  %3514 = vmatpush3.bf16.msra.mxu0 %v4274_v35 }
 0x158   : > { %1212 = vmatprep.subr.bf16.mxu1 %v4281_v36  ;;  %3515 = vmatprep.subr.bf16.mxu0 %v5617_v8 }
 0x15b   : > { %1213 = vmatpush1.bf16.msra.mxu1 %v4289_v38  ;;  %3516 = vmatpush3.bf16.msra.mxu0 %v4303_v41 }
 0x15c   : > { %1214 = vmatprep.subr.bf16.mxu1 %v4296_v39  ;;  %3517 = vmatprep.subr.bf16.mxu0 %v5617_v8 }
 0x15f   : > { %1215 = vmatpush1.bf16.msra.mxu1 %v4309_v42  ;;  %3518 = vmatpush3.bf16.msra.mxu0 %v4326_v46 }
 0x160   : > { %1216 = vmatprep.subr.bf16.mxu1 %v4316_v43  ;;  %3519 = vmatprep.subr.bf16.mxu0 %v5617_v8 }
 0x163   : > { %1217 = vmatpush1.bf16.msra.mxu1 %v4336_v49  ;;  %3520 = vmatpush3.bf16.msra.mxu0 %v4351_v53 }
 0x164   : > { %1218 = vmatprep.subr.bf16.mxu1 %v4343_v50  ;;  %3521 = vmatprep.subr.bf16.mxu0 %v5617_v8 }
 0x167   : > { %1219 = vmatpush1.bf16.msra.mxu1 %v4357_v54  ;;  %3522 = vmatpush3.bf16.msra.mxu0 %v4385_v59 }
 0x168   : > { %1220 = vmatprep.subr.bf16.mxu1 %v4364_v55  ;;  %3523 = vmatprep.subr.bf16.mxu0 %v5617_v8 }
 0x16b   : > { %1221 = vmatpush1.bf16.msra.mxu1 %v4373_v57  ;;  %3524 = vmatpush3.bf16.msra.mxu0 %v4402_v62 }
 0x16c   : > { %1222 = vmatprep.subr.bf16.mxu1 %v4380_v58  ;;  %3525 = vmatprep.subr.bf16.mxu0 %v5617_v8 }
 0x16f   : > { %1223 = vmatpush1.bf16.msra.mxu1 %v4391_v60  ;;  %3526 = vmatpush3.bf16.msra.mxu0 %v4413_v0 }
 0x170   : > { %1331 = vmatprep.subr.bf16.mxu1 %v4243_v27  ;;  %3531 = vmatprep.subr.bf16.mxu0 %v5617_v8 }
 0x212   : > { %v1119_v11 = vpop.f32.mrf.mxu1  ;;  %v1160_v3 = vpop.f32.mrf.mxu0 }
 0x213   : > { %v1166_v10 = vadd.f32 %v1119_v11, %v4478_v20  ;;  %v1180_v20 = vadd.f32 %v4612_v22, %v1160_v3 }
 0x214   : > { %v1121_v63 = vpop.f32.mrf.mxu1  ;;  %v3509_v23 = vpop.f32.mrf.mxu0 }
 0x215   : > { %v3168_v14 = vmul.f32 -1.442695, %v1166_v10  ;;  %v1173_v6 = vadd.f32 %v1121_v63, %v4484_v24 }
 0x216   : > { %v1123_v31 = vpop.f32.mrf.mxu1  ;;  %v1163_v51 = vpop.f32.mrf.mxu0 }
 0x217   : > { %3887 = vpow2.f32 %v3168_v14  ;;  %v3169_v2 = vmul.f32 -1.442695, %v1173_v6 }
 0x218   : > { %v1124_v13 = vpop.f32.mrf.mxu1  ;;  %v3510_v16 = vpop.f32.mrf.mxu0 }
 0x219   : > { %3889 = vpow2.f32 %v3169_v2 }
 0x224   : > { %v3888_v19 = vpop.eup %3887 }
 0x225   : > { %v1170_v17 = vadd.f32 1.0, %v3888_v19 }
 0x226   : > { %v3890_v61 = vpop.eup %3889 }
 0x227   : > { %3891 = vrcp.f32 %v1170_v17  ;;  %v1177_v1 = vadd.f32 1.0, %v3890_v61 }
 0x229   : > { %3893 = vrcp.f32 %v1177_v1 }
 0x234   : > { %v3892_v11 = vpop.eup %3891 }
 0x235   : > { %v1181_v23 = vmul.f32 %v3892_v11, %v1180_v20 }
 0x236   : > { %v3894_v14 = vpop.eup %3893 }
 0x237   : > { %v1182_v10 = vadd.f32 %v1181_v23, %v4487_v25  ;;  %v1184_v31 = vsub.f32 1.0, %v3894_v14  ;;  %v1186_v63 = vmul.f32 %v3894_v14, %v4621_v44  ;;  %v1437_v25 = vstv %s1436_s22 }
 0x238   : > { %vm1438_vm4 = vcmp.eq.s32.totalorder %v4328_v47, %v1437_v25 }
 0x239   : > { %3895 = vtanh.f32 %v1182_v10  ;;  %v1440_v6 = vsel %vm1438_vm4, 1, %v5618_v15 }
 0x23a   : > { %1442 = vperm.xlu1 %3804, %v1440_v6  }
 0x246   : > { %v3896_v51 = vpop.eup %3895 }
 0x247   : > { %v1185_v24 = vmul.f32 %v3896_v51, %v1184_v31 }
 0x249   : > { %v4668_v13 = vadd.f32 %v1186_v63, %v1185_v24 }
 0x24b   : > { %v3235_v16 = vpack.c.bf16 %v4668_v13, %v4621_v44  ;;  %v1207_v3 = vpack.c.bf16 %v4668_v13, %v4668_v13 }
 0x24d   : > { %3236 = vst [vmem:[%s4159_s11] sm:$0xff] %v3235_v16   ;;  %1241 = vmatmul.mubr.bf16.vlgmr.msra.gmra.mxu1 %v1207_v3  ;;  %3528 = vmatmul.mubr.bf16.vlgmr.msra.gmra.mxu0 %v1207_v3 }
 0x24e   : > { %1332 = vmatpush1.bf16.msra.mxu1 %v4249_v29  ;;  %3532 = vmatpush3.bf16.msra.mxu0 %v4254_v30 }
 0x24f   : > { %1333 = vmatprep.subr.bf16.mxu1 %v4261_v32  ;;  %3533 = vmatprep.subr.bf16.mxu0 %v5617_v8 }
 0x250   : > { %1363 = vmatprep.mubr.bf16.mxu1 %v5618_v15  ;;  %3547 = vmatprep.mubr.msk.bf16.mxu0 %vm4098_vm1, %v5617_v8 }
 0x252   : > { %1334 = vmatpush1.bf16.msra.mxu1 %v4267_v34  ;;  %3534 = vmatpush3.bf16.msra.mxu0 %v4274_v35 }
 0x253   : > { %1335 = vmatprep.subr.bf16.mxu1 %v4281_v36  ;;  %3535 = vmatprep.subr.bf16.mxu0 %v5617_v8 }
 0x256   : > { %1336 = vmatpush1.bf16.msra.mxu1 %v4289_v38  ;;  %3536 = vmatpush3.bf16.msra.mxu0 %v4303_v41 }
 0x257   : > { %1337 = vmatprep.subr.bf16.mxu1 %v4296_v39  ;;  %3537 = vmatprep.subr.bf16.mxu0 %v5617_v8 }
 0x25a   : > { %1338 = vmatpush1.bf16.msra.mxu1 %v4309_v42  ;;  %3538 = vmatpush3.bf16.msra.mxu0 %v4326_v46 }
 0x25b   : > { %1339 = vmatprep.subr.bf16.mxu1 %v4316_v43  ;;  %3539 = vmatprep.subr.bf16.mxu0 %v5617_v8 }
 0x25e   : > { %1340 = vmatpush1.bf16.msra.mxu1 %v4336_v49  ;;  %3540 = vmatpush3.bf16.msra.mxu0 %v4351_v53 }
 0x25f   : > { %1341 = vmatprep.subr.bf16.mxu1 %v4343_v50  ;;  %3541 = vmatprep.subr.bf16.mxu0 %v5617_v8 }
 0x262   : > { %1342 = vmatpush1.bf16.msra.mxu1 %v4357_v54  ;;  %3542 = vmatpush3.bf16.msra.mxu0 %v4385_v59 }
 0x263   : > { %1343 = vmatprep.subr.bf16.mxu1 %v4364_v55  ;;  %3543 = vmatprep.subr.bf16.mxu0 %v5617_v8 }
 0x266   : > { %1344 = vmatpush1.bf16.msra.mxu1 %v4373_v57  ;;  %3544 = vmatpush3.bf16.msra.mxu0 %v4402_v62 }
 0x267   : > { %1345 = vmatprep.subr.bf16.mxu1 %v4380_v58  ;;  %3545 = vmatprep.subr.bf16.mxu0 %v5617_v8 }
 0x26a   : > { %1346 = vmatpush1.bf16.msra.mxu1 %v4391_v60  ;;  %3546 = vmatpush3.bf16.msra.mxu0 %v4413_v0 }
 0x26b   : > { %1454 = vmatprep.subr.bf16.mxu1 %v4243_v27  ;;  %3551 = vmatprep.subr.bf16.mxu0 %v5617_v8 }
 0x30d   : > { %v1242_v2 = vpop.f32.mrf.mxu1  ;;  %v1283_v19 = vpop.f32.mrf.mxu0 }
 0x30e   : > { %v1289_v17 = vadd.f32 %v1242_v2, %v4490_v33  ;;  %v1303_v25 = vadd.f32 %v4612_v22, %v1283_v19 }
 0x30f   : > { %v1244_v61 = vpop.f32.mrf.mxu1  ;;  %v3529_v1 = vpop.f32.mrf.mxu0 }
 0x310   : > { %v3170_v20 = vmul.f32 -1.442695, %v1289_v17  ;;  %v1296_v31 = vadd.f32 %v1244_v61, %v4496_v45 }
 0x311   : > { %v1246_v11 = vpop.f32.mrf.mxu1  ;;  %v1286_v23 = vpop.f32.mrf.mxu0 }
 0x312   : > { %3897 = vpow2.f32 %v3170_v20  ;;  %v3171_v51 = vmul.f32 -1.442695, %v1296_v31 }
 0x313   : > { %v1247_v10 = vpop.f32.mrf.mxu1  ;;  %v3530_v14 = vpop.f32.mrf.mxu0 }
 0x314   : > { %3899 = vpow2.f32 %v3171_v51 }
 0x31f   : > { %v3898_v24 = vpop.eup %3897 }
 0x320   : > { %v1293_v63 = vadd.f32 1.0, %v3898_v24 }
 0x321   : > { %v3900_v16 = vpop.eup %3899 }
 0x322   : > { %3901 = vrcp.f32 %v1293_v63  ;;  %v1300_v3 = vadd.f32 1.0, %v3900_v16 }
 0x324   : > { %3903 = vrcp.f32 %v1300_v3 }
 0x32f   : > { %v3902_v33 = vpop.eup %3901 }
 0x330   : > { %v1304_v6 = vmul.f32 %v3902_v33, %v1303_v25 }
 0x331   : > { %v3904_v17 = vpop.eup %3903 }
 0x332   : > { %v1305_v2 = vadd.f32 %v1304_v6, %v4467_v12  ;;  %v1307_v1 = vsub.f32 1.0, %v3904_v17  ;;  %v1309_v45 = vmul.f32 %v3904_v17, %v4668_v13 }
 0x334   : > { %3905 = vtanh.f32 %v1305_v2 }
 0x341   : > { %v3906_v20 = vpop.eup %3905 }
 0x342   : > { %v1308_v11 = vmul.f32 %v3906_v20, %v1307_v1 }
 0x344   : > { %v4718_v61 = vadd.f32 %v1309_v45, %v1308_v11 }
 0x346   : > { %v1330_v23 = vpack.c.bf16 %v4718_v61, %v4718_v61 }
 0x348   : > { %1364 = vmatmul.mubr.bf16.vlgmr.msra.gmra.mxu1 %v1330_v23  ;;  %3548 = vmatmul.mubr.bf16.vlgmr.msra.gmra.mxu0 %v1330_v23 }
 0x349   : > { %1455 = vmatpush1.bf16.msra.mxu1 %v4249_v29  ;;  %3552 = vmatpush3.bf16.msra.mxu0 %v4254_v30  ;;  %v1560_v29 = vstv %s1559_s23 }
 0x34a   : > { %1456 = vmatprep.subr.bf16.mxu1 %v4261_v32  ;;  %3553 = vmatprep.subr.bf16.mxu0 %v5617_v8  ;;  %vm1561_vm5 = vcmp.eq.s32.totalorder %v4328_v47, %v1560_v29 }
 0x34b   : > { %1486 = vmatprep.mubr.bf16.mxu1 %v5618_v15  ;;  %3567 = vmatprep.mubr.msk.bf16.mxu0 %vm4098_vm1, %v5617_v8  ;;  %v1563_v30 = vsel %vm1561_vm5, 1, %v5618_v15 }
 0x34c   : > { %1565 = vperm.xlu0 %3803, %v1563_v30  }
 0x34d   : > { %1457 = vmatpush1.bf16.msra.mxu1 %v4267_v34  ;;  %3554 = vmatpush3.bf16.msra.mxu0 %v4274_v35 }
 0x34e   : > { %1458 = vmatprep.subr.bf16.mxu1 %v4281_v36  ;;  %3555 = vmatprep.subr.bf16.mxu0 %v5617_v8 }
 0x351   : > { %1459 = vmatpush1.bf16.msra.mxu1 %v4289_v38  ;;  %3556 = vmatpush3.bf16.msra.mxu0 %v4303_v41 }
 0x352   : > { %1460 = vmatprep.subr.bf16.mxu1 %v4296_v39  ;;  %3557 = vmatprep.subr.bf16.mxu0 %v5617_v8 }
 0x355   : > { %1461 = vmatpush1.bf16.msra.mxu1 %v4309_v42  ;;  %3558 = vmatpush3.bf16.msra.mxu0 %v4326_v46 }
 0x356   : > { %1462 = vmatprep.subr.bf16.mxu1 %v4316_v43  ;;  %3559 = vmatprep.subr.bf16.mxu0 %v5617_v8 }
 0x359   : > { %1463 = vmatpush1.bf16.msra.mxu1 %v4336_v49  ;;  %3560 = vmatpush3.bf16.msra.mxu0 %v4351_v53 }
 0x35a   : > { %1464 = vmatprep.subr.bf16.mxu1 %v4343_v50  ;;  %3561 = vmatprep.subr.bf16.mxu0 %v5617_v8 }
 0x35d   : > { %1465 = vmatpush1.bf16.msra.mxu1 %v4357_v54  ;;  %3562 = vmatpush3.bf16.msra.mxu0 %v4385_v59 }
 0x35e   : > { %1466 = vmatprep.subr.bf16.mxu1 %v4364_v55  ;;  %3563 = vmatprep.subr.bf16.mxu0 %v5617_v8 }
 0x361   : > { %1467 = vmatpush1.bf16.msra.mxu1 %v4373_v57  ;;  %3564 = vmatpush3.bf16.msra.mxu0 %v4402_v62 }
 0x362   : > { %1468 = vmatprep.subr.bf16.mxu1 %v4380_v58  ;;  %3565 = vmatprep.subr.bf16.mxu0 %v5617_v8 }
 0x365   : > { %1469 = vmatpush1.bf16.msra.mxu1 %v4391_v60  ;;  %3566 = vmatpush3.bf16.msra.mxu0 %v4413_v0 }
 0x366   : > { %1577 = vmatprep.subr.bf16.mxu1 %v4243_v27  ;;  %3571 = vmatprep.subr.bf16.mxu0 %v5617_v8 }
 0x408   : > { %v1365_v32 = vpop.f32.mrf.mxu1  ;;  %v1406_v34 = vpop.f32.mrf.mxu0 }
 0x409   : > { %v1412_v35 = vadd.f32 %v1365_v32, %v4502_v56  ;;  %v1426_v56 = vadd.f32 %v4612_v22, %v1406_v34  ;;  %v4781_v32 = vld [vmem:[%s5583_s4 + $0xb0] ss:$12 sps:$4 sm:$0xff]   ;;  %v4787_v34 = vld [vmem:[%s5583_s4 + $0x94] ss:$12 sps:$4 sm:$0xff]  }
 0x40a   : > { %v1367_v12 = vpop.f32.mrf.mxu1  ;;  %v3549_v19 = vpop.f32.mrf.mxu0 }
 0x40b   : > { %v3172_v10 = vmul.f32 -1.442695, %v1412_v35  ;;  %v1419_v24 = vadd.f32 %v1367_v12, %v4508_v4  ;;  %v4797_v35 = vld [vmem:[%s5583_s4 + $0x90] ss:$12 sps:$4 sm:$0xff]   ;;  %v4803_v12 = vld [vmem:[%s5583_s4 + $0x98] ss:$12 sps:$4 sm:$0xff]  }
 0x40c   : > { %v1369_v14 = vpop.f32.mrf.mxu1  ;;  %v1409_v31 = vpop.f32.mrf.mxu0 }
 0x40d   : > { %3907 = vpow2.f32 %v3172_v10  ;;  %v3173_v63 = vmul.f32 -1.442695, %v1419_v24 }
 0x40e   : > { %v1370_v27 = vpop.f32.mrf.mxu1  ;;  %v3550_v51 = vpop.f32.mrf.mxu0 }
 0x40f   : > { %3909 = vpow2.f32 %v3173_v63 }
 0x41a   : > { %v3908_v16 = vpop.eup %3907 }
 0x41b   : > { %v1416_v3 = vadd.f32 1.0, %v3908_v16 }
 0x41c   : > { %v3910_v25 = vpop.eup %3909 }
 0x41d   : > { %3911 = vrcp.f32 %v1416_v3  ;;  %v1423_v33 = vadd.f32 1.0, %v3910_v25  ;;  %v4868_v25 = vld [vmem:[%s5583_s4 + $0x78] ss:$12 sps:$4 sm:$0xff]  }
 0x41f   : > { %3913 = vrcp.f32 %v1423_v33  ;;  %v4874_v33 = vld [vmem:[%s5583_s4 + $0x80] ss:$12 sps:$4 sm:$0xff]  }
 0x42a   : > { %v3912_v6 = vpop.eup %3911 }
 0x42b   : > { %v1427_v2 = vmul.f32 %v3912_v6, %v1426_v56  ;;  %v4880_v56 = vld [vmem:[%s5583_s4 + $0x64] ss:$12 sps:$4 sm:$0xff]   ;;  %v4887_v6 = vld [vmem:[%s5583_s4 + $0x60] ss:$12 sps:$4 sm:$0xff]  }
 0x42c   : > { %v3914_v1 = vpop.eup %3913 }
 0x42d   : > { %v1428_v17 = vadd.f32 %v1427_v2, %v4481_v21  ;;  %v1430_v20 = vsub.f32 1.0, %v3914_v1  ;;  %v1432_v45 = vmul.f32 %v3914_v1, %v4718_v61  ;;  %v4775_v21 = vld [vmem:[%s5583_s4 + $0xa8] ss:$12 sps:$4 sm:$0xff]  }
 0x42e   : > { %v4893_v2 = vld [vmem:[%s5583_s4 + $0x68] ss:$12 sps:$4 sm:$0xff]  }
 0x42f   : > { %3915 = vtanh.f32 %v1428_v17  ;;  %v4899_v17 = vld [vmem:[%s5583_s4 + $0x4c] ss:$12 sps:$4 sm:$0xff]   ;;  %v4906_v1 = vld [vmem:[%s5583_s4 + $0x48] ss:$12 sps:$4 sm:$0xff]  }
 0x43c   : > { %v3916_v11 = vpop.eup %3915 }
 0x43d   : > { %v1431_v4 = vmul.f32 %v3916_v11, %v1430_v20  ;;  %v4912_v20 = vld [vmem:[%s5583_s4 + $0x50] ss:$12 sps:$4 sm:$0xff]   ;;  %v4918_v11 = vld [vmem:[%s5583_s4 + $0x34] ss:$12 sps:$4 sm:$0xff]  }
 0x43f   : > { %v4765_v23 = vadd.f32 %v1432_v45, %v1431_v4  ;;  %v4925_v4 = vld [vmem:[%s5583_s4 + $0x30] ss:$12 sps:$4 sm:$0xff]   ;;  %v4931_v45 = vld [vmem:[%s5583_s4 + $0x38] ss:$12 sps:$4 sm:$0xff]  }
 0x441   : > { %v3240_v29 = vpack.c.bf16 %v4765_v23, %v4718_v61  ;;  %v1453_v30 = vpack.c.bf16 %v4765_v23, %v4765_v23 }
 0x443   : > { %3272 = vst [vmem:[%s4159_s11 + $0x8] sm:$0xff] %v3240_v29   ;;  %1487 = vmatmul.mubr.bf16.vlgmr.msra.gmra.mxu1 %v1453_v30  ;;  %3568 = vmatmul.mubr.bf16.vlgmr.msra.gmra.mxu0 %v1453_v30  ;;  %v4937_v29 = vld [vmem:[%s5583_s4 + $0x1c] ss:$12 sps:$4 sm:$0xff]   ;;  %v4944_v30 = vld [vmem:[%s5583_s4 + $0x18] ss:$12 sps:$4 sm:$0xff]  }
 0x444   : > { %1578 = vmatpush1.bf16.msra.mxu1 %v4775_v21  ;;  %3572 = vmatpush3.bf16.msra.mxu0 %v4781_v32 }
 0x445   : > { %1579 = vmatprep.subr.bf16.mxu1 %v4787_v34  ;;  %3573 = vmatprep.subr.bf16.mxu0 %v5617_v8 }
 0x446   : > { %1609 = vmatprep.mubr.bf16.mxu1 %v5618_v15  ;;  %3587 = vmatprep.mubr.msk.bf16.mxu0 %vm4098_vm1, %v5617_v8 }
 0x448   : > { %1580 = vmatpush1.bf16.msra.mxu1 %v4797_v35  ;;  %3574 = vmatpush3.bf16.msra.mxu0 %v4803_v12 }
 0x449   : > { %1581 = vmatprep.subr.bf16.mxu1 %v4281_v36  ;;  %3575 = vmatprep.subr.bf16.mxu0 %v5617_v8  ;;  %v4833_v36 = vld [vmem:[%s5583_s4 + $0xac] ss:$12 sps:$4 sm:$0xff]  }
 0x44c   : > { %1582 = vmatpush1.bf16.msra.mxu1 %v4289_v38  ;;  %3576 = vmatpush3.bf16.msra.mxu0 %v4303_v41  ;;  %v1683_v38 = vstv %s1682_s16 }
 0x44d   : > { %1583 = vmatprep.subr.bf16.mxu1 %v4296_v39  ;;  %3577 = vmatprep.subr.bf16.mxu0 %v5617_v8  ;;  %vm1684_vm6 = vcmp.eq.s32.totalorder %v4328_v47, %v1683_v38  ;;  %v4950_v38 = vld [vmem:[%s5583_s4 + $0x20] ss:$12 sps:$4 sm:$0xff]  }
 0x44e   : > { %v1686_v39 = vsel %vm1684_vm6, 1, %v5618_v15 }
 0x44f   : > { %1688 = vperm.xlu1 %3804, %v1686_v39   ;;  %v4956_v39 = vld [vmem:[%s5583_s4 + $0x4] ss:$12 sps:$4 sm:$0xff]  }
 0x450   : > { %1584 = vmatpush1.bf16.msra.mxu1 %v4309_v42  ;;  %3578 = vmatpush3.bf16.msra.mxu0 %v4326_v46 }
 0x451   : > { %1585 = vmatprep.subr.bf16.mxu1 %v4316_v43  ;;  %3579 = vmatprep.subr.bf16.mxu0 %v5617_v8 }
 0x454   : > { %1586 = vmatpush1.bf16.msra.mxu1 %v4336_v49  ;;  %3580 = vmatpush3.bf16.msra.mxu0 %v4351_v53 }
 0x455   : > { %1587 = vmatprep.subr.bf16.mxu1 %v4343_v50  ;;  %3581 = vmatprep.subr.bf16.mxu0 %v5617_v8 }
 0x458   : > { %1588 = vmatpush1.bf16.msra.mxu1 %v4357_v54  ;;  %3582 = vmatpush3.bf16.msra.mxu0 %v4385_v59 }
 0x459   : > { %1589 = vmatprep.subr.bf16.mxu1 %v4364_v55  ;;  %3583 = vmatprep.subr.bf16.mxu0 %v5617_v8 }
 0x45c   : > { %1590 = vmatpush1.bf16.msra.mxu1 %v4373_v57  ;;  %3584 = vmatpush3.bf16.msra.mxu0 %v4402_v62 }
 0x45d   : > { %1591 = vmatprep.subr.bf16.mxu1 %v4380_v58  ;;  %3585 = vmatprep.subr.bf16.mxu0 %v5617_v8 }
 0x460   : > { %1592 = vmatpush1.bf16.msra.mxu1 %v4391_v60  ;;  %3586 = vmatpush3.bf16.msra.mxu0 %v4413_v0 }
 0x461   : > { %1700 = vmatprep.subr.bf16.mxu1 %v4833_v36  ;;  %3591 = vmatprep.subr.bf16.mxu0 %v5617_v8 }
 0x503   : > { %v1488_v41 = vpop.f32.mrf.mxu1  ;;  %v1529_v42 = vpop.f32.mrf.mxu0 }
 0x504   : > { %v1535_v43 = vadd.f32 %v1488_v41, %v4514_v9  ;;  %v1549_v10 = vadd.f32 %v4612_v22, %v1529_v42  ;;  %v4963_v41 = vld [vmem:[%s5583_s4] ss:$12 sps:$4 sm:$0xff]   ;;  %v4969_v42 = vld [vmem:[%s5583_s4 + $0x8] ss:$12 sps:$4 sm:$0xff]  }
 0x505   : > { %v1490_v46 = vpop.f32.mrf.mxu1  ;;  %v3569_v49 = vpop.f32.mrf.mxu0 }
 0x506   : > { %v3174_v50 = vmul.f32 -1.442695, %v1535_v43  ;;  %v1542_v58 = vadd.f32 %v1490_v46, %v4520_v18  ;;  %v1806_v43 = vstv %s1805_s13  ;;  %s2543_s13 = sadd.s32 12, %s4147_s26 }
 0x507   : > { %v1492_v53 = vpop.f32.mrf.mxu1  ;;  %v1532_v54 = vpop.f32.mrf.mxu0  ;;  %vm1807_vm7 = vcmp.eq.s32.totalorder %v4328_v47, %v1806_v43 }
 0x508   : > { %3917 = vpow2.f32 %v3174_v50  ;;  %v3175_v59 = vmul.f32 -1.442695, %v1542_v58  ;;  %v1809_v46 = vsel %vm1807_vm7, 1, %v5618_v15 }
 0x509   : > { %v1493_v55 = vpop.f32.mrf.mxu1  ;;  %v3570_v57 = vpop.f32.mrf.mxu0  ;;  %1811 = vperm.xlu0 %3803, %v1809_v46  }
 0x50a   : > { %3919 = vpow2.f32 %v3175_v59 }
 0x515   : > { %v3918_v60 = vpop.eup %3917 }
 0x516   : > { %v1539_v62 = vadd.f32 1.0, %v3918_v60 }
 0x517   : > { %v3920_v0 = vpop.eup %3919 }
 0x518   : > { %3921 = vrcp.f32 %v1539_v62  ;;  %v1546_v19 = vadd.f32 1.0, %v3920_v0 }
 0x51a   : > { %3923 = vrcp.f32 %v1546_v19 }
 0x525   : > { %v3922_v9 = vpop.eup %3921 }
 0x526   : > { %v1550_v14 = vmul.f32 %v3922_v9, %v1549_v10 }
 0x527   : > { %v3924_v27 = vpop.eup %3923 }
 0x528   : > { %v1551_v31 = vadd.f32 %v1550_v14, %v4499_v48  ;;  %v1553_v51 = vsub.f32 1.0, %v3924_v27  ;;  %v1555_v18 = vmul.f32 %v3924_v27, %v4765_v23  ;;  %v4861_v48 = vld [vmem:[%s5583_s4 + $0x7c] ss:$12 sps:$4 sm:$0xff]  }
 0x52a   : > { %3925 = vtanh.f32 %v1551_v31 }
 0x537   : > { %v3926_v24 = vpop.eup %3925 }
 0x538   : > { %v1554_v63 = vmul.f32 %v3926_v24, %v1553_v51 }
 0x53a   : > { %v4845_v16 = vadd.f32 %v1555_v18, %v1554_v63 }
 0x53c   : > { %v1576_v3 = vpack.c.bf16 %v4845_v16, %v4845_v16 }
 0x53e   : > { %1610 = vmatmul.mubr.bf16.vlgmr.msra.gmra.mxu1 %v1576_v3  ;;  %3588 = vmatmul.mubr.bf16.vlgmr.msra.gmra.mxu0 %v1576_v3 }
 0x53f   : > { %1701 = vmatpush1.bf16.msra.mxu1 %v4775_v21  ;;  %3592 = vmatpush3.bf16.msra.mxu0 %v4781_v32 }
 0x540   : > { %1702 = vmatprep.subr.bf16.mxu1 %v4787_v34  ;;  %3593 = vmatprep.subr.bf16.mxu0 %v5617_v8 }
 0x541   : > { %1732 = vmatprep.mubr.bf16.mxu1 %v5618_v15  ;;  %3607 = vmatprep.mubr.msk.bf16.mxu0 %vm4098_vm1, %v5617_v8 }
 0x543   : > { %1703 = vmatpush1.bf16.msra.mxu1 %v4797_v35  ;;  %3594 = vmatpush3.bf16.msra.mxu0 %v4803_v12 }
 0x544   : > { %1704 = vmatprep.subr.bf16.mxu1 %v4861_v48  ;;  %3595 = vmatprep.subr.bf16.mxu0 %v5617_v8 }
 0x547   : > { %1705 = vmatpush1.bf16.msra.mxu1 %v4868_v25  ;;  %3596 = vmatpush3.bf16.msra.mxu0 %v4874_v33 }
 0x548   : > { %1706 = vmatprep.subr.bf16.mxu1 %v4880_v56  ;;  %3597 = vmatprep.subr.bf16.mxu0 %v5617_v8 }
 0x54b   : > { %1707 = vmatpush1.bf16.msra.mxu1 %v4887_v6  ;;  %3598 = vmatpush3.bf16.msra.mxu0 %v4893_v2 }
 0x54c   : > { %1708 = vmatprep.subr.bf16.mxu1 %v4899_v17  ;;  %3599 = vmatprep.subr.bf16.mxu0 %v5617_v8 }
 0x54f   : > { %1709 = vmatpush1.bf16.msra.mxu1 %v4906_v1  ;;  %3600 = vmatpush3.bf16.msra.mxu0 %v4912_v20 }
 0x550   : > { %1710 = vmatprep.subr.bf16.mxu1 %v4918_v11  ;;  %3601 = vmatprep.subr.bf16.mxu0 %v5617_v8 }
 0x553   : > { %1711 = vmatpush1.bf16.msra.mxu1 %v4925_v4  ;;  %3602 = vmatpush3.bf16.msra.mxu0 %v4931_v45 }
 0x554   : > { %1712 = vmatprep.subr.bf16.mxu1 %v4937_v29  ;;  %3603 = vmatprep.subr.bf16.mxu0 %v5617_v8 }
 0x557   : > { %1713 = vmatpush1.bf16.msra.mxu1 %v4944_v30  ;;  %3604 = vmatpush3.bf16.msra.mxu0 %v4950_v38 }
 0x558   : > { %1714 = vmatprep.subr.bf16.mxu1 %v4956_v39  ;;  %3605 = vmatprep.subr.bf16.mxu0 %v5617_v8 }
 0x55b   : > { %1715 = vmatpush1.bf16.msra.mxu1 %v4963_v41  ;;  %3606 = vmatpush3.bf16.msra.mxu0 %v4969_v42 }
 0x55c   : > { %1823 = vmatprep.subr.bf16.mxu1 %v4833_v36  ;;  %3611 = vmatprep.subr.bf16.mxu0 %v5617_v8 }
 0x5fe   : > { %v1611_v49 = vpop.f32.mrf.mxu1  ;;  %v1652_v50 = vpop.f32.mrf.mxu0 }
 0x5ff   : > { %v1658_v53 = vadd.f32 %v1611_v49, %v4526_v28  ;;  %v1672_v28 = vadd.f32 %v4612_v22, %v1652_v50 }
 0x600   : > { %v1613_v54 = vpop.f32.mrf.mxu1  ;;  %v3589_v55 = vpop.f32.mrf.mxu0 }
 0x601   : > { %v3176_v57 = vmul.f32 -1.442695, %v1658_v53  ;;  %v1665_v0 = vadd.f32 %v1613_v54, %v4532_v52 }
 0x602   : > { %v1615_v58 = vpop.f32.mrf.mxu1  ;;  %v1655_v59 = vpop.f32.mrf.mxu0 }
 0x603   : > { %3927 = vpow2.f32 %v3176_v57  ;;  %v3177_v19 = vmul.f32 -1.442695, %v1665_v0 }
 0x604   : > { %v1616_v60 = vpop.f32.mrf.mxu1  ;;  %v3590_v62 = vpop.f32.mrf.mxu0 }
 0x605   : > { %3929 = vpow2.f32 %v3177_v19 }
 0x610   : > { %v3928_v10 = vpop.eup %3927 }
 0x611   : > { %v1662_v9 = vadd.f32 1.0, %v3928_v10 }
 0x612   : > { %v3930_v14 = vpop.eup %3929 }
 0x613   : > { %3931 = vrcp.f32 %v1662_v9  ;;  %v1669_v31 = vadd.f32 1.0, %v3930_v14 }
 0x615   : > { %3933 = vrcp.f32 %v1669_v31 }
 0x620   : > { %v3932_v27 = vpop.eup %3931 }
 0x621   : > { %v1673_v51 = vmul.f32 %v3932_v27, %v1672_v28 }
 0x622   : > { %v3934_v63 = vpop.eup %3933 }
 0x623   : > { %v1674_v24 = vadd.f32 %v1673_v51, %v4511_v5  ;;  %v1676_v18 = vsub.f32 1.0, %v3934_v63  ;;  %v1678_v43 = vmul.f32 %v3934_v63, %v4845_v16  ;;  %v1929_v5 = vstv %s1928_s14 }
 0x624   : > { %vm1930_vm8 = vcmp.eq.s32.totalorder %v4328_v47, %v1929_v5 }
 0x625   : > { %3935 = vtanh.f32 %v1674_v24  ;;  %v1932_v53 = vsel %vm1930_vm8, 1, %v5618_v15 }
 0x626   : > { %1934 = vperm.xlu1 %3804, %v1932_v53  }
 0x632   : > { %v3936_v3 = vpop.eup %3935 }
 0x633   : > { %v1677_v52 = vmul.f32 %v3936_v3, %v1676_v18 }
 0x635   : > { %v4982_v46 = vadd.f32 %v1678_v43, %v1677_v52 }
 0x637   : > { %v3245_v49 = vpack.c.bf16 %v4982_v46, %v4845_v16  ;;  %v1699_v50 = vpack.c.bf16 %v4982_v46, %v4982_v46 }
 0x639   : > { %3273 = vst [vmem:[%s4159_s11 + $0x10] sm:$0xff] %v3245_v49   ;;  %1733 = vmatmul.mubr.bf16.vlgmr.msra.gmra.mxu1 %v1699_v50  ;;  %3608 = vmatmul.mubr.bf16.vlgmr.msra.gmra.mxu0 %v1699_v50 }
 0x63a   : > { %1824 = vmatpush1.bf16.msra.mxu1 %v4775_v21  ;;  %3612 = vmatpush3.bf16.msra.mxu0 %v4781_v32 }
 0x63b   : > { %1825 = vmatprep.subr.bf16.mxu1 %v4787_v34  ;;  %3613 = vmatprep.subr.bf16.mxu0 %v5617_v8 }
 0x63c   : > { %1855 = vmatprep.mubr.bf16.mxu1 %v5618_v15  ;;  %3627 = vmatprep.mubr.msk.bf16.mxu0 %vm4098_vm1, %v5617_v8 }
 0x63e   : > { %1826 = vmatpush1.bf16.msra.mxu1 %v4797_v35  ;;  %3614 = vmatpush3.bf16.msra.mxu0 %v4803_v12 }
 0x63f   : > { %1827 = vmatprep.subr.bf16.mxu1 %v4861_v48  ;;  %3615 = vmatprep.subr.bf16.mxu0 %v5617_v8 }
 0x642   : > { %1828 = vmatpush1.bf16.msra.mxu1 %v4868_v25  ;;  %3616 = vmatpush3.bf16.msra.mxu0 %v4874_v33 }
 0x643   : > { %1829 = vmatprep.subr.bf16.mxu1 %v4880_v56  ;;  %3617 = vmatprep.subr.bf16.mxu0 %v5617_v8 }
 0x646   : > { %1830 = vmatpush1.bf16.msra.mxu1 %v4887_v6  ;;  %3618 = vmatpush3.bf16.msra.mxu0 %v4893_v2 }
 0x647   : > { %1831 = vmatprep.subr.bf16.mxu1 %v4899_v17  ;;  %3619 = vmatprep.subr.bf16.mxu0 %v5617_v8 }
 0x64a   : > { %1832 = vmatpush1.bf16.msra.mxu1 %v4906_v1  ;;  %3620 = vmatpush3.bf16.msra.mxu0 %v4912_v20 }
 0x64b   : > { %1833 = vmatprep.subr.bf16.mxu1 %v4918_v11  ;;  %3621 = vmatprep.subr.bf16.mxu0 %v5617_v8 }
 0x64e   : > { %1834 = vmatpush1.bf16.msra.mxu1 %v4925_v4  ;;  %3622 = vmatpush3.bf16.msra.mxu0 %v4931_v45 }
 0x64f   : > { %1835 = vmatprep.subr.bf16.mxu1 %v4937_v29  ;;  %3623 = vmatprep.subr.bf16.mxu0 %v5617_v8 }
 0x652   : > { %1836 = vmatpush1.bf16.msra.mxu1 %v4944_v30  ;;  %3624 = vmatpush3.bf16.msra.mxu0 %v4950_v38 }
 0x653   : > { %1837 = vmatprep.subr.bf16.mxu1 %v4956_v39  ;;  %3625 = vmatprep.subr.bf16.mxu0 %v5617_v8 }
 0x656   : > { %1838 = vmatpush1.bf16.msra.mxu1 %v4963_v41  ;;  %3626 = vmatpush3.bf16.msra.mxu0 %v4969_v42 }
 0x657   : > { %1946 = vmatprep.subr.bf16.mxu1 %v4833_v36  ;;  %3631 = vmatprep.subr.bf16.mxu0 %v5617_v8 }
 0x6f9   : > { %v1734_v54 = vpop.f32.mrf.mxu1  ;;  %v1775_v55 = vpop.f32.mrf.mxu0 }
 0x6fa   : > { %v1781_v57 = vadd.f32 %v1734_v54, %v4538_v7  ;;  %v1795_v24 = vadd.f32 %v4612_v22, %v1775_v55  ;;  %v5619_v55 = vld [vmem:[#allocation12_spill] sm:$0xff] }
 0x6fb   : > { %v1736_v58 = vpop.f32.mrf.mxu1  ;;  %v3609_v59 = vpop.f32.mrf.mxu0 }
 0x6fc   : > { %v3178_v60 = vmul.f32 -1.442695, %v1781_v57  ;;  %v1788_v9 = vadd.f32 %v1736_v58, %v4544_v26 }
 0x6fd   : > { %v1738_v62 = vpop.f32.mrf.mxu1  ;;  %v1778_v0 = vpop.f32.mrf.mxu0 }
 0x6fe   : > { %3937 = vpow2.f32 %v3178_v60  ;;  %v3179_v14 = vmul.f32 -1.442695, %v1788_v9  ;;  %v5620_v9 = vld [vmem:[#allocation14_spill] sm:$0xff] }
 0x6ff   : > { %v1739_v19 = vpop.f32.mrf.mxu1  ;;  %v3610_v10 = vpop.f32.mrf.mxu0 }
 0x700   : > { %3939 = vpow2.f32 %v3179_v14 }
 0x70b   : > { %v3938_v31 = vpop.eup %3937 }
 0x70c   : > { %v1785_v28 = vadd.f32 1.0, %v3938_v31 }
 0x70d   : > { %v3940_v27 = vpop.eup %3939 }
 0x70e   : > { %3941 = vrcp.f32 %v1785_v28  ;;  %v1792_v51 = vadd.f32 1.0, %v3940_v27 }
 0x710   : > { %3943 = vrcp.f32 %v1792_v51 }
 0x71b   : > { %v3942_v7 = vpop.eup %3941 }
 0x71c   : > { %v1796_v63 = vmul.f32 %v3942_v7, %v1795_v24  ;;  %v5079_v7 = vld [vmem:[%s5584_s5] ss:$0 sm:$0xff] }
 0x71d   : > { %v3944_v3 = vpop.eup %3943 }
 0x71e   : > { %v1797_v18 = vadd.f32 %v1796_v63, %v4493_v37  ;;  %v1799_v52 = vsub.f32 1.0, %v3944_v3  ;;  %v1801_v26 = vmul.f32 %v3944_v3, %v4982_v46  ;;  %v2052_v37 = vstv %s2051_s15 }
 0x71f   : > { %vm2053_vm9 = vcmp.eq.s32.totalorder %v4328_v47, %v2052_v37 }
 0x720   : > { %3945 = vtanh.f32 %v1797_v18  ;;  %v2055_v22 = vsel %vm2053_vm9, 1, %v5618_v15 }
 0x721   : > { %2057 = vperm.xlu0 %3803, %v2055_v22  }
 0x72d   : > { %v3946_v43 = vpop.eup %3945 }
 0x72e   : > { %v1800_v49 = vmul.f32 %v3946_v43, %v1799_v52  ;;  %v5621_v52 = vld [vmem:[#allocation5_spill] sm:$0xff] }
 0x730   : > { %v5032_v50 = vadd.f32 %v1801_v26, %v1800_v49 }
 0x732   : > { %v1822_v5 = vpack.c.bf16 %v5032_v50, %v5032_v50 }
 0x734   : > { %1856 = vmatmul.mubr.bf16.vlgmr.msra.gmra.mxu1 %v1822_v5  ;;  %3628 = vmatmul.mubr.bf16.vlgmr.msra.gmra.mxu0 %v1822_v5 }
 0x735   : > { %1947 = vmatpush1.bf16.msra.mxu1 %v4775_v21  ;;  %3632 = vmatpush3.bf16.msra.mxu0 %v4781_v32 }
 0x736   : > { %1948 = vmatprep.subr.bf16.mxu1 %v4787_v34  ;;  %3633 = vmatprep.subr.bf16.mxu0 %v5617_v8 }
 0x737   : > { %1978 = vmatprep.mubr.bf16.mxu1 %v5618_v15  ;;  %3647 = vmatprep.mubr.msk.bf16.mxu0 %vm4098_vm1, %v5617_v8 }
 0x739   : > { %1949 = vmatpush1.bf16.msra.mxu1 %v4797_v35  ;;  %3634 = vmatpush3.bf16.msra.mxu0 %v4803_v12 }
 0x73a   : > { %1950 = vmatprep.subr.bf16.mxu1 %v4861_v48  ;;  %3635 = vmatprep.subr.bf16.mxu0 %v5617_v8 }
 0x73d   : > { %1951 = vmatpush1.bf16.msra.mxu1 %v4868_v25  ;;  %3636 = vmatpush3.bf16.msra.mxu0 %v4874_v33 }
 0x73e   : > { %1952 = vmatprep.subr.bf16.mxu1 %v4880_v56  ;;  %3637 = vmatprep.subr.bf16.mxu0 %v5617_v8 }
 0x741   : > { %1953 = vmatpush1.bf16.msra.mxu1 %v4887_v6  ;;  %3638 = vmatpush3.bf16.msra.mxu0 %v4893_v2 }
 0x742   : > { %1954 = vmatprep.subr.bf16.mxu1 %v4899_v17  ;;  %3639 = vmatprep.subr.bf16.mxu0 %v5617_v8 }
 0x745   : > { %1955 = vmatpush1.bf16.msra.mxu1 %v4906_v1  ;;  %3640 = vmatpush3.bf16.msra.mxu0 %v4912_v20 }
 0x746   : > { %1956 = vmatprep.subr.bf16.mxu1 %v4918_v11  ;;  %3641 = vmatprep.subr.bf16.mxu0 %v5617_v8 }
 0x749   : > { %1957 = vmatpush1.bf16.msra.mxu1 %v4925_v4  ;;  %3642 = vmatpush3.bf16.msra.mxu0 %v4931_v45 }
 0x74a   : > { %1958 = vmatprep.subr.bf16.mxu1 %v4937_v29  ;;  %3643 = vmatprep.subr.bf16.mxu0 %v5617_v8 }
 0x74d   : > { %1959 = vmatpush1.bf16.msra.mxu1 %v4944_v30  ;;  %3644 = vmatpush3.bf16.msra.mxu0 %v4950_v38 }
 0x74e   : > { %1960 = vmatprep.subr.bf16.mxu1 %v4956_v39  ;;  %3645 = vmatprep.subr.bf16.mxu0 %v5617_v8 }
 0x751   : > { %1961 = vmatpush1.bf16.msra.mxu1 %v4963_v41  ;;  %3646 = vmatpush3.bf16.msra.mxu0 %v4969_v42 }
 0x752   : > { %2069 = vmatprep.subr.bf16.mxu1 %v4833_v36  ;;  %3651 = vmatprep.subr.bf16.mxu0 %v5617_v8 }
 0x7f4   : > { %v1857_v53 = vpop.f32.mrf.mxu1  ;;  %v1898_v54 = vpop.f32.mrf.mxu0 }
 0x7f5   : > { %v1904_v57 = vadd.f32 %v1857_v53, %v5619_v55  ;;  %v1918_v63 = vadd.f32 %v5079_v7, %v1898_v54 }
 0x7f6   : > { %v1859_v58 = vpop.f32.mrf.mxu1  ;;  %v3629_v59 = vpop.f32.mrf.mxu0 }
 0x7f7   : > { %v3180_v60 = vmul.f32 -1.442695, %v1904_v57  ;;  %v1911_v14 = vadd.f32 %v1859_v58, %v5620_v9  ;;  %v2175_v57 = vstv %s2174_s18 }
 0x7f8   : > { %v1861_v62 = vpop.f32.mrf.mxu1  ;;  %v1901_v0 = vpop.f32.mrf.mxu0  ;;  %vm2176_vm10 = vcmp.eq.s32.totalorder %v4328_v47, %v2175_v57 }
 0x7f9   : > { %3947 = vpow2.f32 %v3180_v60  ;;  %v3181_v31 = vmul.f32 -1.442695, %v1911_v14  ;;  %v2178_v58 = vsel %vm2176_vm10, 1, %v5618_v15  ;;  %v5622_v62 = vld [vmem:[#allocation16_spill] sm:$0xff] }
 0x7fa   : > { %v1862_v19 = vpop.f32.mrf.mxu1  ;;  %v3630_v10 = vpop.f32.mrf.mxu0  ;;  %2180 = vperm.xlu1 %3804, %v2178_v58  }
 0x7fb   : > { %3949 = vpow2.f32 %v3181_v31 }
 0x806   : > { %v3948_v28 = vpop.eup %3947 }
 0x807   : > { %v1908_v27 = vadd.f32 1.0, %v3948_v28 }
 0x808   : > { %v3950_v51 = vpop.eup %3949 }
 0x809   : > { %3951 = vrcp.f32 %v1908_v27  ;;  %v1915_v24 = vadd.f32 1.0, %v3950_v51  ;;  %v5623_v51 = vld [vmem:[#allocation17_spill] sm:$0xff] }
 0x80b   : > { %3953 = vrcp.f32 %v1915_v24 }
 0x816   : > { %v3952_v18 = vpop.eup %3951 }
 0x817   : > { %v1919_v3 = vmul.f32 %v3952_v18, %v1918_v63 }
 0x818   : > { %v3954_v49 = vpop.eup %3953 }
 0x819   : > { %v1920_v43 = vadd.f32 %v1919_v3, %v5621_v52  ;;  %v1922_v26 = vsub.f32 1.0, %v3954_v49  ;;  %v1924_v22 = vmul.f32 %v3954_v49, %v5032_v50 }
 0x81b   : > { %3955 = vtanh.f32 %v1920_v43 }
 0x828   : > { %v3956_v5 = vpop.eup %3955 }
 0x829   : > { %v1923_v37 = vmul.f32 %v3956_v5, %v1922_v26 }
 0x82b   : > { %v5084_v53 = vadd.f32 %v1924_v22, %v1923_v37  ;;  %v5624_v37 = vld [vmem:[#allocation7_spill] sm:$0xff] }
 0x82d   : > { %v3250_v55 = vpack.c.bf16 %v5084_v53, %v5032_v50  ;;  %v1945_v54 = vpack.c.bf16 %v5084_v53, %v5084_v53 }
 0x82f   : > { %3274 = vst [vmem:[%s4159_s11 + $0x18] sm:$0xff] %v3250_v55   ;;  %1979 = vmatmul.mubr.bf16.vlgmr.msra.gmra.mxu1 %v1945_v54  ;;  %3648 = vmatmul.mubr.bf16.vlgmr.msra.gmra.mxu0 %v1945_v54 }
 0x830   : > { %2070 = vmatpush1.bf16.msra.mxu1 %v4775_v21  ;;  %3652 = vmatpush3.bf16.msra.mxu0 %v4781_v32 }
 0x831   : > { %2071 = vmatprep.subr.bf16.mxu1 %v4787_v34  ;;  %3653 = vmatprep.subr.bf16.mxu0 %v5617_v8 }
 0x832   : > { %2101 = vmatprep.mubr.bf16.mxu1 %v5618_v15  ;;  %3667 = vmatprep.mubr.msk.bf16.mxu0 %vm4098_vm1, %v5617_v8 }
 0x834   : > { %2072 = vmatpush1.bf16.msra.mxu1 %v4797_v35  ;;  %3654 = vmatpush3.bf16.msra.mxu0 %v4803_v12 }
 0x835   : > { %2073 = vmatprep.subr.bf16.mxu1 %v4861_v48  ;;  %3655 = vmatprep.subr.bf16.mxu0 %v5617_v8 }
 0x838   : > { %2074 = vmatpush1.bf16.msra.mxu1 %v4868_v25  ;;  %3656 = vmatpush3.bf16.msra.mxu0 %v4874_v33 }
 0x839   : > { %2075 = vmatprep.subr.bf16.mxu1 %v4880_v56  ;;  %3657 = vmatprep.subr.bf16.mxu0 %v5617_v8 }
 0x83c   : > { %2076 = vmatpush1.bf16.msra.mxu1 %v4887_v6  ;;  %3658 = vmatpush3.bf16.msra.mxu0 %v4893_v2 }
 0x83d   : > { %2077 = vmatprep.subr.bf16.mxu1 %v4899_v17  ;;  %3659 = vmatprep.subr.bf16.mxu0 %v5617_v8 }
 0x840   : > { %2078 = vmatpush1.bf16.msra.mxu1 %v4906_v1  ;;  %3660 = vmatpush3.bf16.msra.mxu0 %v4912_v20 }
 0x841   : > { %2079 = vmatprep.subr.bf16.mxu1 %v4918_v11  ;;  %3661 = vmatprep.subr.bf16.mxu0 %v5617_v8 }
 0x844   : > { %2080 = vmatpush1.bf16.msra.mxu1 %v4925_v4  ;;  %3662 = vmatpush3.bf16.msra.mxu0 %v4931_v45 }
 0x845   : > { %2081 = vmatprep.subr.bf16.mxu1 %v4937_v29  ;;  %3663 = vmatprep.subr.bf16.mxu0 %v5617_v8 }
 0x848   : > { %2082 = vmatpush1.bf16.msra.mxu1 %v4944_v30  ;;  %3664 = vmatpush3.bf16.msra.mxu0 %v4950_v38 }
 0x849   : > { %2083 = vmatprep.subr.bf16.mxu1 %v4956_v39  ;;  %3665 = vmatprep.subr.bf16.mxu0 %v5617_v8 }
 0x84c   : > { %2084 = vmatpush1.bf16.msra.mxu1 %v4963_v41  ;;  %3666 = vmatpush3.bf16.msra.mxu0 %v4969_v42 }
 0x84d   : > { %2192 = vmatprep.subr.bf16.mxu1 %v4833_v36  ;;  %3671 = vmatprep.subr.bf16.mxu0 %v5617_v8 }
 0x8ef   : > { %v1980_v59 = vpop.f32.mrf.mxu1  ;;  %v2021_v60 = vpop.f32.mrf.mxu0 }
 0x8f0   : > { %v2027_v0 = vadd.f32 %v1980_v59, %v5622_v62  ;;  %v2041_v49 = vadd.f32 %v5079_v7, %v2021_v60  ;;  %v2298_v60 = vstv %s2297_s19 }
 0x8f1   : > { %v1982_v19 = vpop.f32.mrf.mxu1  ;;  %v3649_v10 = vpop.f32.mrf.mxu0  ;;  %vm2299_vm11 = vcmp.eq.s32.totalorder %v4328_v47, %v2298_v60 }
 0x8f2   : > { %v3182_v9 = vmul.f32 -1.442695, %v2027_v0  ;;  %v2034_v24 = vadd.f32 %v1982_v19, %v5623_v51  ;;  %v2301_v19 = vsel %vm2299_vm11, 1, %v5618_v15 }
 0x8f3   : > { %v1984_v14 = vpop.f32.mrf.mxu1  ;;  %v2024_v31 = vpop.f32.mrf.mxu0  ;;  %2303 = vperm.xlu0 %3803, %v2301_v19  }
 0x8f4   : > { %3957 = vpow2.f32 %v3182_v9  ;;  %v3183_v63 = vmul.f32 -1.442695, %v2034_v24  ;;  %v5625_v14 = vld [vmem:[#allocation18_spill] sm:$0xff] }
 0x8f5   : > { %v1985_v28 = vpop.f32.mrf.mxu1  ;;  %v3650_v27 = vpop.f32.mrf.mxu0 }
 0x8f6   : > { %3959 = vpow2.f32 %v3183_v63 }
 0x901   : > { %v3958_v18 = vpop.eup %3957 }
 0x902   : > { %v2031_v3 = vadd.f32 1.0, %v3958_v18 }
 0x903   : > { %v3960_v52 = vpop.eup %3959 }
 0x904   : > { %3961 = vrcp.f32 %v2031_v3  ;;  %v2038_v43 = vadd.f32 1.0, %v3960_v52  ;;  %v5626_v52 = vld [vmem:[#allocation19_spill] sm:$0xff] }
 0x906   : > { %3963 = vrcp.f32 %v2038_v43 }
 0x911   : > { %v3962_v26 = vpop.eup %3961 }
 0x912   : > { %v2042_v5 = vmul.f32 %v3962_v26, %v2041_v49 }
 0x913   : > { %v3964_v55 = vpop.eup %3963 }
 0x914   : > { %v2043_v22 = vadd.f32 %v2042_v5, %v5624_v37  ;;  %v2045_v54 = vsub.f32 1.0, %v3964_v55  ;;  %v2047_v59 = vmul.f32 %v3964_v55, %v5084_v53 }
 0x916   : > { %3965 = vtanh.f32 %v2043_v22 }
 0x923   : > { %v3966_v57 = vpop.eup %3965 }
 0x924   : > { %v2046_v58 = vmul.f32 %v3966_v57, %v2045_v54 }
 0x926   : > { %v5134_v62 = vadd.f32 %v2047_v59, %v2046_v58  ;;  %v5627_v58 = vld [vmem:[#allocation9_spill] sm:$0xff] }
 0x928   : > { %v2068_v0 = vpack.c.bf16 %v5134_v62, %v5134_v62 }
 0x92a   : > { %2102 = vmatmul.mubr.bf16.vlgmr.msra.gmra.mxu1 %v2068_v0  ;;  %3668 = vmatmul.mubr.bf16.vlgmr.msra.gmra.mxu0 %v2068_v0 }
 0x92b   : > { %2193 = vmatpush1.bf16.msra.mxu1 %v4775_v21  ;;  %3672 = vmatpush3.bf16.msra.mxu0 %v4781_v32 }
 0x92c   : > { %2194 = vmatprep.subr.bf16.mxu1 %v4787_v34  ;;  %3673 = vmatprep.subr.bf16.mxu0 %v5617_v8 }
 0x92d   : > { %2224 = vmatprep.mubr.bf16.mxu1 %v5618_v15  ;;  %3687 = vmatprep.mubr.msk.bf16.mxu0 %vm4098_vm1, %v5617_v8 }
 0x92f   : > { %2195 = vmatpush1.bf16.msra.mxu1 %v4797_v35  ;;  %3674 = vmatpush3.bf16.msra.mxu0 %v4803_v12 }
 0x930   : > { %2196 = vmatprep.subr.bf16.mxu1 %v4861_v48  ;;  %3675 = vmatprep.subr.bf16.mxu0 %v5617_v8 }
 0x933   : > { %2197 = vmatpush1.bf16.msra.mxu1 %v4868_v25  ;;  %3676 = vmatpush3.bf16.msra.mxu0 %v4874_v33 }
 0x934   : > { %2198 = vmatprep.subr.bf16.mxu1 %v4880_v56  ;;  %3677 = vmatprep.subr.bf16.mxu0 %v5617_v8 }
 0x937   : > { %2199 = vmatpush1.bf16.msra.mxu1 %v4887_v6  ;;  %3678 = vmatpush3.bf16.msra.mxu0 %v4893_v2 }
 0x938   : > { %2200 = vmatprep.subr.bf16.mxu1 %v4899_v17  ;;  %3679 = vmatprep.subr.bf16.mxu0 %v5617_v8 }
 0x93b   : > { %2201 = vmatpush1.bf16.msra.mxu1 %v4906_v1  ;;  %3680 = vmatpush3.bf16.msra.mxu0 %v4912_v20 }
 0x93c   : > { %2202 = vmatprep.subr.bf16.mxu1 %v4918_v11  ;;  %3681 = vmatprep.subr.bf16.mxu0 %v5617_v8 }
 0x93f   : > { %2203 = vmatpush1.bf16.msra.mxu1 %v4925_v4  ;;  %3682 = vmatpush3.bf16.msra.mxu0 %v4931_v45 }
 0x940   : > { %2204 = vmatprep.subr.bf16.mxu1 %v4937_v29  ;;  %3683 = vmatprep.subr.bf16.mxu0 %v5617_v8 }
 0x943   : > { %2205 = vmatpush1.bf16.msra.mxu1 %v4944_v30  ;;  %3684 = vmatpush3.bf16.msra.mxu0 %v4950_v38 }
 0x944   : > { %2206 = vmatprep.subr.bf16.mxu1 %v4956_v39  ;;  %3685 = vmatprep.subr.bf16.mxu0 %v5617_v8 }
 0x947   : > { %2207 = vmatpush1.bf16.msra.mxu1 %v4963_v41  ;;  %3686 = vmatpush3.bf16.msra.mxu0 %v4969_v42 }
 0x948   : > { %2315 = vmatprep.subr.bf16.mxu1 %v4833_v36  ;;  %3691 = vmatprep.subr.bf16.mxu0 %v5617_v8 }
 0x9ea   : > { %v2103_v10 = vpop.f32.mrf.mxu1  ;;  %v2144_v9 = vpop.f32.mrf.mxu0 }
 0x9eb   : > { %v2150_v31 = vadd.f32 %v2103_v10, %v5625_v14  ;;  %v2164_v55 = vadd.f32 %v5079_v7, %v2144_v9 }
 0x9ec   : > { %v2105_v28 = vpop.f32.mrf.mxu1  ;;  %v3669_v27 = vpop.f32.mrf.mxu0 }
 0x9ed   : > { %v3184_v51 = vmul.f32 -1.442695, %v2150_v31  ;;  %v2157_v43 = vadd.f32 %v2105_v28, %v5626_v52 }
 0x9ee   : > { %v2107_v24 = vpop.f32.mrf.mxu1  ;;  %v2147_v63 = vpop.f32.mrf.mxu0 }
 0x9ef   : > { %3967 = vpow2.f32 %v3184_v51  ;;  %v3185_v49 = vmul.f32 -1.442695, %v2157_v43  ;;  %v5629_v43 = vld [vmem:[#allocation21_spill] sm:$0xff] }
 0x9f0   : > { %v2108_v18 = vpop.f32.mrf.mxu1  ;;  %v3670_v3 = vpop.f32.mrf.mxu0 }
 0x9f1   : > { %3969 = vpow2.f32 %v3185_v49 }
 0x9fc   : > { %v3968_v26 = vpop.eup %3967 }
 0x9fd   : > { %v2154_v5 = vadd.f32 1.0, %v3968_v26 }
 0x9fe   : > { %v3970_v37 = vpop.eup %3969 }
 0x9ff   : > { %3971 = vrcp.f32 %v2154_v5  ;;  %v2161_v22 = vadd.f32 1.0, %v3970_v37 }
 0xa01   : > { %3973 = vrcp.f32 %v2161_v22 }
 0xa0c   : > { %v3972_v54 = vpop.eup %3971 }
 0xa0d   : > { %v2165_v57 = vmul.f32 %v3972_v54, %v2164_v55 }
 0xa0e   : > { %v3974_v0 = vpop.eup %3973 }
 0xa0f   : > { %v2166_v59 = vadd.f32 %v2165_v57, %v5627_v58  ;;  %v2168_v60 = vsub.f32 1.0, %v3974_v0  ;;  %v2170_v14 = vmul.f32 %v3974_v0, %v5134_v62 }
 0xa11   : > { %3975 = vtanh.f32 %v2166_v59  ;;  %v5630_v59 = vld [vmem:[#allocation6_spill] sm:$0xff] }
 0xa1e   : > { %v3976_v19 = vpop.eup %3975 }
 0xa1f   : > { %v2169_v10 = vmul.f32 %v3976_v19, %v2168_v60 }
 0xa21   : > { %v5181_v31 = vadd.f32 %v2170_v14, %v2169_v10 }
 0xa23   : > { %v3255_v28 = vpack.c.bf16 %v5181_v31, %v5134_v62  ;;  %v2191_v9 = vpack.c.bf16 %v5181_v31, %v5181_v31 }
 0xa25   : > { %3275 = vst [vmem:[%s4159_s11 + $0x20] sm:$0xff] %v3255_v28   ;;  %2225 = vmatmul.mubr.bf16.vlgmr.msra.gmra.mxu1 %v2191_v9  ;;  %3688 = vmatmul.mubr.bf16.vlgmr.msra.gmra.mxu0 %v2191_v9 }
 0xa26   : > { %2316 = vmatpush1.bf16.msra.mxu1 %v4775_v21  ;;  %3692 = vmatpush3.bf16.msra.mxu0 %v4781_v32  ;;  %v2421_v21 = vstv %s2420_s20 }
 0xa27   : > { %2317 = vmatprep.subr.bf16.mxu1 %v4787_v34  ;;  %3693 = vmatprep.subr.bf16.mxu0 %v5617_v8  ;;  %vm2422_vm12 = vcmp.eq.s32.totalorder %v4328_v47, %v2421_v21 }
 0xa28   : > { %2347 = vmatprep.mubr.bf16.mxu1 %v5618_v15  ;;  %3707 = vmatprep.mubr.msk.bf16.mxu0 %vm4098_vm1, %v5617_v8  ;;  %v2424_v32 = vsel %vm2422_vm12, 1, %v5618_v15 }
 0xa29   : > { %2426 = vperm.xlu1 %3804, %v2424_v32   ;;  %v5238_v32 = vld [vmem:[%s5583_s4 + $0xa8] ss:$12 sps:$4 sm:$0xff]  }
 0xa2a   : > { %2318 = vmatpush1.bf16.msra.mxu1 %v4797_v35  ;;  %3694 = vmatpush3.bf16.msra.mxu0 %v4803_v12  ;;  %v5628_v12 = vld [vmem:[#allocation20_spill] sm:$0xff] }
 0xa2b   : > { %2319 = vmatprep.subr.bf16.mxu1 %v4861_v48  ;;  %3695 = vmatprep.subr.bf16.mxu0 %v5617_v8 }
 0xa2e   : > { %2320 = vmatpush1.bf16.msra.mxu1 %v4868_v25  ;;  %3696 = vmatpush3.bf16.msra.mxu0 %v4874_v33 }
 0xa2f   : > { %2321 = vmatprep.subr.bf16.mxu1 %v4880_v56  ;;  %3697 = vmatprep.subr.bf16.mxu0 %v5617_v8 }
 0xa32   : > { %2322 = vmatpush1.bf16.msra.mxu1 %v4887_v6  ;;  %3698 = vmatpush3.bf16.msra.mxu0 %v4893_v2 }
 0xa33   : > { %2323 = vmatprep.subr.bf16.mxu1 %v4899_v17  ;;  %3699 = vmatprep.subr.bf16.mxu0 %v5617_v8 }
 0xa36   : > { %2324 = vmatpush1.bf16.msra.mxu1 %v4906_v1  ;;  %3700 = vmatpush3.bf16.msra.mxu0 %v4912_v20 }
 0xa37   : > { %2325 = vmatprep.subr.bf16.mxu1 %v4918_v11  ;;  %3701 = vmatprep.subr.bf16.mxu0 %v5617_v8 }
 0xa3a   : > { %2326 = vmatpush1.bf16.msra.mxu1 %v4925_v4  ;;  %3702 = vmatpush3.bf16.msra.mxu0 %v4931_v45 }
 0xa3b   : > { %2327 = vmatprep.subr.bf16.mxu1 %v4937_v29  ;;  %3703 = vmatprep.subr.bf16.mxu0 %v5617_v8 }
 0xa3e   : > { %2328 = vmatpush1.bf16.msra.mxu1 %v4944_v30  ;;  %3704 = vmatpush3.bf16.msra.mxu0 %v4950_v38 }
 0xa3f   : > { %2329 = vmatprep.subr.bf16.mxu1 %v4956_v39  ;;  %3705 = vmatprep.subr.bf16.mxu0 %v5617_v8 }
 0xa42   : > { %2330 = vmatpush1.bf16.msra.mxu1 %v4963_v41  ;;  %3706 = vmatpush3.bf16.msra.mxu0 %v4969_v42 }
 0xa43   : > { %2438 = vmatprep.subr.bf16.mxu1 %v4833_v36  ;;  %3711 = vmatprep.subr.bf16.mxu0 %v5617_v8 }
 0xae5   : > { %v2226_v34 = vpop.f32.mrf.mxu1  ;;  %v2267_v35 = vpop.f32.mrf.mxu0 }
 0xae6   : > { %v2273_v27 = vadd.f32 %v2226_v34, %v5628_v12  ;;  %v2287_v54 = vadd.f32 %v5079_v7, %v2267_v35  ;;  %v5244_v34 = vld [vmem:[%s5583_s4 + $0xb0] ss:$12 sps:$4 sm:$0xff]   ;;  %v5250_v35 = vld [vmem:[%s5583_s4 + $0x94] ss:$12 sps:$4 sm:$0xff]  }
 0xae7   : > { %v2228_v51 = vpop.f32.mrf.mxu1  ;;  %v3689_v24 = vpop.f32.mrf.mxu0  ;;  %v5260_v12 = vld [vmem:[%s5583_s4 + $0x90] ss:$12 sps:$4 sm:$0xff]  }
 0xae8   : > { %v3186_v63 = vmul.f32 -1.442695, %v2273_v27  ;;  %v2280_v49 = vadd.f32 %v2228_v51, %v5629_v43  ;;  %v5266_v27 = vld [vmem:[%s5583_s4 + $0x98] ss:$12 sps:$4 sm:$0xff]  }
 0xae9   : > { %v2230_v18 = vpop.f32.mrf.mxu1  ;;  %v2270_v3 = vpop.f32.mrf.mxu0 }
 0xaea   : > { %3977 = vpow2.f32 %v3186_v63  ;;  %v3187_v26 = vmul.f32 -1.442695, %v2280_v49 }
 0xaeb   : > { %v2231_v36 = vpop.f32.mrf.mxu1  ;;  %v3690_v52 = vpop.f32.mrf.mxu0 }
 0xaec   : > { %3979 = vpow2.f32 %v3187_v26  ;;  %v5633_v52 = vld [vmem:[#allocation8_spill] sm:$0xff] }
 0xaf7   : > { %v3978_v5 = vpop.eup %3977 }
 0xaf8   : > { %v2277_v37 = vadd.f32 1.0, %v3978_v5 }
 0xaf9   : > { %v3980_v22 = vpop.eup %3979 }
 0xafa   : > { %3981 = vrcp.f32 %v2277_v37  ;;  %v2284_v55 = vadd.f32 1.0, %v3980_v22 }
 0xafc   : > { %3983 = vrcp.f32 %v2284_v55 }
 0xb07   : > { %v3982_v57 = vpop.eup %3981 }
 0xb08   : > { %v2288_v58 = vmul.f32 %v3982_v57, %v2287_v54 }
 0xb09   : > { %v3984_v60 = vpop.eup %3983 }
 0xb0a   : > { %v2289_v0 = vadd.f32 %v2288_v58, %v5630_v59  ;;  %v2291_v19 = vsub.f32 1.0, %v3984_v60  ;;  %v2293_v28 = vmul.f32 %v3984_v60, %v5181_v31  ;;  %v5327_v58 = vld [vmem:[%s5583_s4 + $0x7c] ss:$12 sps:$4 sm:$0xff]   ;;  %v5334_v59 = vld [vmem:[%s5583_s4 + $0x78] ss:$12 sps:$4 sm:$0xff]  }
 0xb0b   : > { %v5346_v60 = vld [vmem:[%s5583_s4 + $0x64] ss:$12 sps:$4 sm:$0xff]  }
 0xb0c   : > { %3985 = vtanh.f32 %v2289_v0  ;;  %v5340_v0 = vld [vmem:[%s5583_s4 + $0x80] ss:$12 sps:$4 sm:$0xff]  }
 0xb19   : > { %v3986_v10 = vpop.eup %3985 }
 0xb1a   : > { %v2292_v14 = vmul.f32 %v3986_v10, %v2291_v19  ;;  %v5353_v19 = vld [vmem:[%s5583_s4 + $0x60] ss:$12 sps:$4 sm:$0xff]   ;;  %v5359_v10 = vld [vmem:[%s5583_s4 + $0x68] ss:$12 sps:$4 sm:$0xff]  }
 0xb1c   : > { %v5231_v9 = vadd.f32 %v2293_v28, %v2292_v14  ;;  %v5365_v14 = vld [vmem:[%s5583_s4 + $0x4c] ss:$12 sps:$4 sm:$0xff]   ;;  %v5372_v28 = vld [vmem:[%s5583_s4 + $0x48] ss:$12 sps:$4 sm:$0xff]  }
 0xb1e   : > { %v2314_v21 = vpack.c.bf16 %v5231_v9, %v5231_v9 }
 0xb20   : > { %2348 = vmatmul.mubr.bf16.vlgmr.msra.gmra.mxu1 %v2314_v21  ;;  %3708 = vmatmul.mubr.bf16.vlgmr.msra.gmra.mxu0 %v2314_v21  ;;  %v5378_v21 = vld [vmem:[%s5583_s4 + $0x50] ss:$12 sps:$4 sm:$0xff]  }
 0xb21   : > { %2439 = vmatpush1.bf16.msra.mxu1 %v5238_v32  ;;  %3712 = vmatpush3.bf16.msra.mxu0 %v5244_v34 }
 0xb22   : > { %2440 = vmatprep.subr.bf16.mxu1 %v5250_v35  ;;  %3713 = vmatprep.subr.bf16.mxu0 %v5617_v8 }
 0xb23   : > { %2470 = vmatprep.mubr.bf16.mxu1 %v5618_v15  ;;  %3727 = vmatprep.mubr.msk.bf16.mxu0 %vm4098_vm1, %v5617_v8 }
 0xb25   : > { %2441 = vmatpush1.bf16.msra.mxu1 %v5260_v12  ;;  %3714 = vmatpush3.bf16.msra.mxu0 %v5266_v27 }
 0xb26   : > { %2442 = vmatprep.subr.bf16.mxu1 %v4861_v48  ;;  %3715 = vmatprep.subr.bf16.mxu0 %v5617_v8  ;;  %v5296_v48 = vld [vmem:[%s5583_s4 + $0xac] ss:$12 sps:$4 sm:$0xff]  }
 0xb29   : > { %2443 = vmatpush1.bf16.msra.mxu1 %v4868_v25  ;;  %3716 = vmatpush3.bf16.msra.mxu0 %v4874_v33  ;;  %v2544_v25 = vstv %s2543_s13 }
 0xb2a   : > { %2444 = vmatprep.subr.bf16.mxu1 %v4880_v56  ;;  %3717 = vmatprep.subr.bf16.mxu0 %v5617_v8  ;;  %vm2545_vm13 = vcmp.eq.s32.totalorder %v4328_v47, %v2544_v25  ;;  %v5384_v25 = vld [vmem:[%s5583_s4 + $0x34] ss:$12 sps:$4 sm:$0xff]  }
 0xb2b   : > { %v2547_v33 = vsel %vm2545_vm13, 1, %v5618_v15 }
 0xb2c   : > { %2549 = vperm.xlu0 %3803, %v2547_v33   ;;  %v5391_v33 = vld [vmem:[%s5583_s4 + $0x30] ss:$12 sps:$4 sm:$0xff]  }
 0xb2d   : > { %2445 = vmatpush1.bf16.msra.mxu1 %v4887_v6  ;;  %3718 = vmatpush3.bf16.msra.mxu0 %v4893_v2  ;;  %v5631_v2 = vld [vmem:[#allocation22_spill] sm:$0xff] }
 0xb2e   : > { %2446 = vmatprep.subr.bf16.mxu1 %v4899_v17  ;;  %3719 = vmatprep.subr.bf16.mxu0 %v5617_v8 }
 0xb31   : > { %2447 = vmatpush1.bf16.msra.mxu1 %v4906_v1  ;;  %3720 = vmatpush3.bf16.msra.mxu0 %v4912_v20 }
 0xb32   : > { %2448 = vmatprep.subr.bf16.mxu1 %v4918_v11  ;;  %3721 = vmatprep.subr.bf16.mxu0 %v5617_v8 }
 0xb35   : > { %2449 = vmatpush1.bf16.msra.mxu1 %v4925_v4  ;;  %3722 = vmatpush3.bf16.msra.mxu0 %v4931_v45 }
 0xb36   : > { %2450 = vmatprep.subr.bf16.mxu1 %v4937_v29  ;;  %3723 = vmatprep.subr.bf16.mxu0 %v5617_v8 }
 0xb39   : > { %2451 = vmatpush1.bf16.msra.mxu1 %v4944_v30  ;;  %3724 = vmatpush3.bf16.msra.mxu0 %v4950_v38  ;;  %v5632_v38 = vld [vmem:[#allocation23_spill] sm:$0xff] }
 0xb3a   : > { %2452 = vmatprep.subr.bf16.mxu1 %v4956_v39  ;;  %3725 = vmatprep.subr.bf16.mxu0 %v5617_v8 }
 0xb3d   : > { %2453 = vmatpush1.bf16.msra.mxu1 %v4963_v41  ;;  %3726 = vmatpush3.bf16.msra.mxu0 %v4969_v42 }
 0xb3e   : > { %2561 = vmatprep.subr.bf16.mxu1 %v5296_v48  ;;  %3731 = vmatprep.subr.bf16.mxu0 %v5617_v8 }
 0xbe0   : > { %v2349_v56 = vpop.f32.mrf.mxu1  ;;  %v2390_v6 = vpop.f32.mrf.mxu0 }
 0xbe1   : > { %v2396_v17 = vadd.f32 %v2349_v56, %v5631_v2  ;;  %v2410_v18 = vadd.f32 %v5079_v7, %v2390_v6  ;;  %v5397_v56 = vld [vmem:[%s5583_s4 + $0x38] ss:$12 sps:$4 sm:$0xff]   ;;  %v5403_v6 = vld [vmem:[%s5583_s4 + $0x1c] ss:$12 sps:$4 sm:$0xff]  }
 0xbe2   : > { %v2351_v1 = vpop.f32.mrf.mxu1  ;;  %v3709_v20 = vpop.f32.mrf.mxu0  ;;  %v5410_v2 = vld [vmem:[%s5583_s4 + $0x18] ss:$12 sps:$4 sm:$0xff]  }
 0xbe3   : > { %v3188_v11 = vmul.f32 -1.442695, %v2396_v17  ;;  %v2403_v39 = vadd.f32 %v2351_v1, %v5632_v38  ;;  %v5416_v17 = vld [vmem:[%s5583_s4 + $0x20] ss:$12 sps:$4 sm:$0xff]   ;;  %v5422_v1 = vld [vmem:[%s5583_s4 + $0x4] ss:$12 sps:$4 sm:$0xff]  }
 0xbe4   : > { %v2353_v4 = vpop.f32.mrf.mxu1  ;;  %v2393_v45 = vpop.f32.mrf.mxu0  ;;  %v5429_v20 = vld [vmem:[%s5583_s4] ss:$12 sps:$4 sm:$0xff]  }
 0xbe5   : > { %3987 = vpow2.f32 %v3188_v11  ;;  %v3189_v41 = vmul.f32 -1.442695, %v2403_v39  ;;  %v5435_v11 = vld [vmem:[%s5583_s4 + $0x8] ss:$12 sps:$4 sm:$0xff]   ;;  %v2667_v4 = vstv %s2666_s9  ;;  %v5634_v38 = vld [vmem:[#allocation24_spill] sm:$0xff] }
 0xbe6   : > { %v2354_v29 = vpop.f32.mrf.mxu1  ;;  %v3710_v30 = vpop.f32.mrf.mxu0  ;;  %vm2668_vm14 = vcmp.eq.s32.totalorder %v4328_v47, %v2667_v4  ;;  %v5636_v4 = vld [vmem:[#allocation11_spill] sm:$0xff] }
 0xbe7   : > { %3989 = vpow2.f32 %v3189_v41  ;;  %v2670_v45 = vsel %vm2668_vm14, 1, %v5618_v15 }
 0xbe8   : > { %2672 = vperm.xlu1 %3804, %v2670_v45  }
 0xbf2   : > { %v3988_v42 = vpop.eup %3987 }
 0xbf3   : > { %v2400_v51 = vadd.f32 1.0, %v3988_v42 }
 0xbf4   : > { %v3990_v24 = vpop.eup %3989 }
 0xbf5   : > { %3991 = vrcp.f32 %v2400_v51  ;;  %v2407_v63 = vadd.f32 1.0, %v3990_v24 }
 0xbf7   : > { %3993 = vrcp.f32 %v2407_v63 }
 0xc02   : > { %v3992_v3 = vpop.eup %3991 }
 0xc03   : > { %v2411_v36 = vmul.f32 %v3992_v3, %v2410_v18 }
 0xc04   : > { %v3994_v49 = vpop.eup %3993 }
 0xc05   : > { %v2412_v43 = vadd.f32 %v2411_v36, %v5633_v52  ;;  %v2414_v26 = vsub.f32 1.0, %v3994_v49  ;;  %v2416_v22 = vmul.f32 %v3994_v49, %v5231_v9  ;;  %v5635_v36 = vld [vmem:[#allocation25_spill] sm:$0xff] }
 0xc07   : > { %3995 = vtanh.f32 %v2412_v43 }
 0xc14   : > { %v3996_v5 = vpop.eup %3995 }
 0xc15   : > { %v2415_v37 = vmul.f32 %v3996_v5, %v2414_v26 }
 0xc17   : > { %v5308_v55 = vadd.f32 %v2416_v22, %v2415_v37 }
 0xc19   : > { %v3260_v54 = vpack.c.bf16 %v5308_v55, %v5231_v9  ;;  %v2437_v57 = vpack.c.bf16 %v5308_v55, %v5308_v55 }
 0xc1b   : > { %3276 = vst [vmem:[%s4159_s11 + $0x28] sm:$0xff] %v3260_v54   ;;  %2471 = vmatmul.mubr.bf16.vlgmr.msra.gmra.mxu1 %v2437_v57  ;;  %3728 = vmatmul.mubr.bf16.vlgmr.msra.gmra.mxu0 %v2437_v57 }
 0xc1c   : > { %2562 = vmatpush1.bf16.msra.mxu1 %v5238_v32  ;;  %3732 = vmatpush3.bf16.msra.mxu0 %v5244_v34 }
 0xc1d   : > { %2563 = vmatprep.subr.bf16.mxu1 %v5250_v35  ;;  %3733 = vmatprep.subr.bf16.mxu0 %v5617_v8 }
 0xc1e   : > { %2593 = vmatprep.mubr.bf16.mxu1 %v5618_v15  ;;  %3747 = vmatprep.mubr.msk.bf16.mxu0 %vm4098_vm1, %v5617_v8 }
 0xc20   : > { %2564 = vmatpush1.bf16.msra.mxu1 %v5260_v12  ;;  %3734 = vmatpush3.bf16.msra.mxu0 %v5266_v27 }
 0xc21   : > { %2565 = vmatprep.subr.bf16.mxu1 %v5327_v58  ;;  %3735 = vmatprep.subr.bf16.mxu0 %v5617_v8 }
 0xc24   : > { %2566 = vmatpush1.bf16.msra.mxu1 %v5334_v59  ;;  %3736 = vmatpush3.bf16.msra.mxu0 %v5340_v0 }
 0xc25   : > { %2567 = vmatprep.subr.bf16.mxu1 %v5346_v60  ;;  %3737 = vmatprep.subr.bf16.mxu0 %v5617_v8 }
 0xc28   : > { %2568 = vmatpush1.bf16.msra.mxu1 %v5353_v19  ;;  %3738 = vmatpush3.bf16.msra.mxu0 %v5359_v10 }
 0xc29   : > { %2569 = vmatprep.subr.bf16.mxu1 %v5365_v14  ;;  %3739 = vmatprep.subr.bf16.mxu0 %v5617_v8 }
 0xc2c   : > { %2570 = vmatpush1.bf16.msra.mxu1 %v5372_v28  ;;  %3740 = vmatpush3.bf16.msra.mxu0 %v5378_v21 }
 0xc2d   : > { %2571 = vmatprep.subr.bf16.mxu1 %v5384_v25  ;;  %3741 = vmatprep.subr.bf16.mxu0 %v5617_v8 }
 0xc30   : > { %2572 = vmatpush1.bf16.msra.mxu1 %v5391_v33  ;;  %3742 = vmatpush3.bf16.msra.mxu0 %v5397_v56 }
 0xc31   : > { %2573 = vmatprep.subr.bf16.mxu1 %v5403_v6  ;;  %3743 = vmatprep.subr.bf16.mxu0 %v5617_v8 }
 0xc34   : > { %2574 = vmatpush1.bf16.msra.mxu1 %v5410_v2  ;;  %3744 = vmatpush3.bf16.msra.mxu0 %v5416_v17 }
 0xc35   : > { %2575 = vmatprep.subr.bf16.mxu1 %v5422_v1  ;;  %3745 = vmatprep.subr.bf16.mxu0 %v5617_v8 }
 0xc38   : > { %2576 = vmatpush1.bf16.msra.mxu1 %v5429_v20  ;;  %3746 = vmatpush3.bf16.msra.mxu0 %v5435_v11 }
 0xc39   : > { %2684 = vmatprep.subr.bf16.mxu1 %v5296_v48  ;;  %3751 = vmatprep.subr.bf16.mxu0 %v5617_v8 }
 0xcdb   : > { %v2472_v29 = vpop.f32.mrf.mxu1  ;;  %v2513_v30 = vpop.f32.mrf.mxu0 }
 0xcdc   : > { %v2519_v39 = vadd.f32 %v2472_v29, %v5634_v38  ;;  %v2533_v22 = vadd.f32 %v5079_v7, %v2513_v30  ;;  %v2790_v30 = vstv %s2789_s10 }
 0xcdd   : > { %v2474_v41 = vpop.f32.mrf.mxu1  ;;  %v3729_v42 = vpop.f32.mrf.mxu0  ;;  %vm2791_vm15 = vcmp.eq.s32.totalorder %v4328_v47, %v2790_v30  ;;  %v5639_v30 = vld [vmem:[#allocation15_spill] sm:$0xff] }
 0xcde   : > { %v3190_v51 = vmul.f32 -1.442695, %v2519_v39  ;;  %v2526_v52 = vadd.f32 %v2474_v41, %v5635_v36  ;;  %v5637_v36 = vld [vmem:[#allocation26_spill] sm:$0xff] }
 0xcdf   : > { %v2476_v24 = vpop.f32.mrf.mxu1  ;;  %v2516_v63 = vpop.f32.mrf.mxu0 }
 0xce0   : > { %3997 = vpow2.f32 %v3190_v51  ;;  %v3191_v43 = vmul.f32 -1.442695, %v2526_v52  ;;  %v2793_v63 = vsel %vm2791_vm15, 1, %v5618_v15 }
 0xce1   : > { %v2477_v18 = vpop.f32.mrf.mxu1  ;;  %v3730_v3 = vpop.f32.mrf.mxu0  ;;  %2795 = vperm.xlu0 %3803, %v2793_v63  }
 0xce2   : > { %3999 = vpow2.f32 %v3191_v43 }
 0xced   : > { %v3998_v49 = vpop.eup %3997 }
 0xcee   : > { %v2523_v26 = vadd.f32 1.0, %v3998_v49 }
 0xcef   : > { %v4000_v5 = vpop.eup %3999 }
 0xcf0   : > { %4001 = vrcp.f32 %v2523_v26  ;;  %v2530_v37 = vadd.f32 1.0, %v4000_v5 }
 0xcf2   : > { %4003 = vrcp.f32 %v2530_v37 }
 0xcfd   : > { %v4002_v54 = vpop.eup %4001 }
 0xcfe   : > { %v2534_v57 = vmul.f32 %v4002_v54, %v2533_v22  ;;  %v5638_v54 = vld [vmem:[#allocation27_spill] sm:$0xff] }
 0xcff   : > { %v4004_v29 = vpop.eup %4003 }
 0xd00   : > { %v2535_v45 = vadd.f32 %v2534_v57, %v5636_v4  ;;  %v2537_v38 = vsub.f32 1.0, %v4004_v29  ;;  %v2539_v41 = vmul.f32 %v4004_v29, %v5308_v55 }
 0xd02   : > { %4005 = vtanh.f32 %v2535_v45 }
 0xd0f   : > { %v4006_v39 = vpop.eup %4005 }
 0xd10   : > { %v2538_v42 = vmul.f32 %v4006_v39, %v2537_v38 }
 0xd12   : > { %v5448_v51 = vadd.f32 %v2539_v41, %v2538_v42 }
 0xd14   : > { %v2560_v24 = vpack.c.bf16 %v5448_v51, %v5448_v51 }
 0xd16   : > { %2594 = vmatmul.mubr.bf16.vlgmr.msra.gmra.mxu1 %v2560_v24  ;;  %3748 = vmatmul.mubr.bf16.vlgmr.msra.gmra.mxu0 %v2560_v24 }
 0xd17   : > { %2685 = vmatpush1.bf16.msra.mxu1 %v5238_v32  ;;  %3752 = vmatpush3.bf16.msra.mxu0 %v5244_v34 }
 0xd18   : > { %2686 = vmatprep.subr.bf16.mxu1 %v5250_v35  ;;  %3753 = vmatprep.subr.bf16.mxu0 %v5617_v8 }
 0xd19   : > { %2716 = vmatprep.mubr.bf16.mxu1 %v5618_v15  ;;  %3767 = vmatprep.mubr.msk.bf16.mxu0 %vm4098_vm1, %v5617_v8 }
 0xd1b   : > { %2687 = vmatpush1.bf16.msra.mxu1 %v5260_v12  ;;  %3754 = vmatpush3.bf16.msra.mxu0 %v5266_v27 }
 0xd1c   : > { %2688 = vmatprep.subr.bf16.mxu1 %v5327_v58  ;;  %3755 = vmatprep.subr.bf16.mxu0 %v5617_v8 }
 0xd1f   : > { %2689 = vmatpush1.bf16.msra.mxu1 %v5334_v59  ;;  %3756 = vmatpush3.bf16.msra.mxu0 %v5340_v0 }
 0xd20   : > { %2690 = vmatprep.subr.bf16.mxu1 %v5346_v60  ;;  %3757 = vmatprep.subr.bf16.mxu0 %v5617_v8 }
 0xd23   : > { %2691 = vmatpush1.bf16.msra.mxu1 %v5353_v19  ;;  %3758 = vmatpush3.bf16.msra.mxu0 %v5359_v10 }
 0xd24   : > { %2692 = vmatprep.subr.bf16.mxu1 %v5365_v14  ;;  %3759 = vmatprep.subr.bf16.mxu0 %v5617_v8 }
 0xd27   : > { %2693 = vmatpush1.bf16.msra.mxu1 %v5372_v28  ;;  %3760 = vmatpush3.bf16.msra.mxu0 %v5378_v21 }
 0xd28   : > { %2694 = vmatprep.subr.bf16.mxu1 %v5384_v25  ;;  %3761 = vmatprep.subr.bf16.mxu0 %v5617_v8 }
 0xd2b   : > { %2695 = vmatpush1.bf16.msra.mxu1 %v5391_v33  ;;  %3762 = vmatpush3.bf16.msra.mxu0 %v5397_v56 }
 0xd2c   : > { %2696 = vmatprep.subr.bf16.mxu1 %v5403_v6  ;;  %3763 = vmatprep.subr.bf16.mxu0 %v5617_v8 }
 0xd2f   : > { %2697 = vmatpush1.bf16.msra.mxu1 %v5410_v2  ;;  %3764 = vmatpush3.bf16.msra.mxu0 %v5416_v17 }
 0xd30   : > { %2698 = vmatprep.subr.bf16.mxu1 %v5422_v1  ;;  %3765 = vmatprep.subr.bf16.mxu0 %v5617_v8 }
 0xd33   : > { %2699 = vmatpush1.bf16.msra.mxu1 %v5429_v20  ;;  %3766 = vmatpush3.bf16.msra.mxu0 %v5435_v11 }
 0xd34   : > { %2807 = vmatprep.subr.bf16.mxu1 %v5296_v48  ;;  %3771 = vmatprep.subr.bf16.mxu0 %v5617_v8 }
 0xdd6   : > { %v2595_v18 = vpop.f32.mrf.mxu1  ;;  %v2636_v3 = vpop.f32.mrf.mxu0 }
 0xdd7   : > { %v2642_v52 = vadd.f32 %v2595_v18, %v5637_v36  ;;  %v2656_v42 = vadd.f32 %v5079_v7, %v2636_v3 }
 0xdd8   : > { %v2597_v43 = vpop.f32.mrf.mxu1  ;;  %v3749_v49 = vpop.f32.mrf.mxu0 }
 0xdd9   : > { %v3192_v26 = vmul.f32 -1.442695, %v2642_v52  ;;  %v2649_v57 = vadd.f32 %v2597_v43, %v5638_v54 }
 0xdda   : > { %v2599_v5 = vpop.f32.mrf.mxu1  ;;  %v2639_v37 = vpop.f32.mrf.mxu0 }
 0xddb   : > { %4007 = vpow2.f32 %v3192_v26  ;;  %v3193_v4 = vmul.f32 -1.442695, %v2649_v57 }
 0xddc   : > { %v2600_v48 = vpop.f32.mrf.mxu1  ;;  %v3750_v22 = vpop.f32.mrf.mxu0 }
 0xddd   : > { %4009 = vpow2.f32 %v3193_v4 }
 0xde8   : > { %v4008_v45 = vpop.eup %4007 }
 0xde9   : > { %v2646_v29 = vadd.f32 1.0, %v4008_v45 }
 0xdea   : > { %v4010_v38 = vpop.eup %4009 }
 0xdeb   : > { %4011 = vrcp.f32 %v2646_v29  ;;  %v2653_v39 = vadd.f32 1.0, %v4010_v38  ;;  %v5643_v38 = vld [vmem:[#allocation30_spill] sm:$0xff] }
 0xded   : > { %4013 = vrcp.f32 %v2653_v39 }
 0xdf8   : > { %v4012_v41 = vpop.eup %4011 }
 0xdf9   : > { %v2657_v24 = vmul.f32 %v4012_v41, %v2656_v42 }
 0xdfa   : > { %v4014_v18 = vpop.eup %4013 }
 0xdfb   : > { %v2658_v63 = vadd.f32 %v2657_v24, %v5639_v30  ;;  %v2660_v36 = vsub.f32 1.0, %v4014_v18  ;;  %v2662_v49 = vmul.f32 %v4014_v18, %v5448_v51 }
 0xdfd   : > { %4015 = vtanh.f32 %v2658_v63 }
 0xe0a   : > { %v4016_v52 = vpop.eup %4015 }
 0xe0b   : > { %v2661_v43 = vmul.f32 %v4016_v52, %v2660_v36 }
 0xe0d   : > { %v5495_v26 = vadd.f32 %v2662_v49, %v2661_v43 }
 0xe0f   : > { %v3265_v5 = vpack.c.bf16 %v5495_v26, %v5448_v51  ;;  %v2683_v7 = vpack.c.bf16 %v5495_v26, %v5495_v26 }
 0xe11   : > { %3277 = vst [vmem:[%s4159_s11 + $0x30] sm:$0xff] %v3265_v5   ;;  %2717 = vmatmul.mubr.bf16.vlgmr.msra.gmra.mxu1 %v2683_v7  ;;  %3768 = vmatmul.mubr.bf16.vlgmr.msra.gmra.mxu0 %v2683_v7  ;;  %v1074_v7 = vpop.permute.xlu0 %1073 }
 0xe12   : > { %2808 = vmatpush1.bf16.msra.mxu1 %v5238_v32  ;;  %3772 = vmatpush3.bf16.msra.mxu0 %v5244_v34  ;;  %v2913_v32 = vstv %s2912_s12 }
 0xe13   : > { %2809 = vmatprep.subr.bf16.mxu1 %v5250_v35  ;;  %3773 = vmatprep.subr.bf16.mxu0 %v5617_v8  ;;  %vm2914_vm0 = vcmp.eq.s32.totalorder %v4328_v47, %v2913_v32  ;;  %v1320_v32 = vpop.permute.xlu1 %1319 }
 0xe14   : > { %2839 = vmatprep.mubr.bf16.mxu1 %v5618_v15  ;;  %3787 = vmatprep.mubr.msk.bf16.mxu0 %vm4098_vm1, %v5617_v8  ;;  %v2916_v34 = vsel %vm2914_vm0, 1, %v5618_v15  ;;  %vm1075_vm1 = vcmp.eq.s32.totalorder %v1074_v7, 1  ;;  %vm1321_vm3 = vcmp.eq.s32.totalorder %v1320_v32, 1 }
 0xe15   : > { %2918 = vperm.xlu1 %3804, %v2916_v34   ;;  %v1197_v34 = vpop.permute.xlu0 %1196 }
 0xe16   : > { %2810 = vmatpush1.bf16.msra.mxu1 %v5260_v12  ;;  %3774 = vmatpush3.bf16.msra.mxu0 %v5266_v27  ;;  %v5640_v27 = vld [vmem:[#allocation28_spill] sm:$0xff]  ;;  %vm1198_vm2 = vcmp.eq.s32.totalorder %v1197_v34, 1 }
 0xe17   : > { %2811 = vmatprep.subr.bf16.mxu1 %v5327_v58  ;;  %3775 = vmatprep.subr.bf16.mxu0 %v5617_v8 }
 0xe1a   : > { %2812 = vmatpush1.bf16.msra.mxu1 %v5334_v59  ;;  %3776 = vmatpush3.bf16.msra.mxu0 %v5340_v0 }
 0xe1b   : > { %2813 = vmatprep.subr.bf16.mxu1 %v5346_v60  ;;  %3777 = vmatprep.subr.bf16.mxu0 %v5617_v8 }
 0xe1e   : > { %2814 = vmatpush1.bf16.msra.mxu1 %v5353_v19  ;;  %3778 = vmatpush3.bf16.msra.mxu0 %v5359_v10 }
 0xe1f   : > { %2815 = vmatprep.subr.bf16.mxu1 %v5365_v14  ;;  %3779 = vmatprep.subr.bf16.mxu0 %v5617_v8 }
 0xe22   : > { %2816 = vmatpush1.bf16.msra.mxu1 %v5372_v28  ;;  %3780 = vmatpush3.bf16.msra.mxu0 %v5378_v21  ;;  %v5641_v28 = vld [vmem:[#allocation29_spill] sm:$0xff] }
 0xe23   : > { %2817 = vmatprep.subr.bf16.mxu1 %v5384_v25  ;;  %3781 = vmatprep.subr.bf16.mxu0 %v5617_v8 }
 0xe26   : > { %2818 = vmatpush1.bf16.msra.mxu1 %v5391_v33  ;;  %3782 = vmatpush3.bf16.msra.mxu0 %v5397_v56 }
 0xe27   : > { %2819 = vmatprep.subr.bf16.mxu1 %v5403_v6  ;;  %3783 = vmatprep.subr.bf16.mxu0 %v5617_v8  ;;  %v4086_v6 = vld [vmem:[%s5584_s5] ss:$0 sm:$0xff] }
 0xe2a   : > { %2820 = vmatpush1.bf16.msra.mxu1 %v5410_v2  ;;  %3784 = vmatpush3.bf16.msra.mxu0 %v5416_v17 }
 0xe2b   : > { %2821 = vmatprep.subr.bf16.mxu1 %v5422_v1  ;;  %3785 = vmatprep.subr.bf16.mxu0 %v5617_v8 }
 0xe2e   : > { %2822 = vmatpush1.bf16.msra.mxu1 %v5429_v20  ;;  %3786 = vmatpush3.bf16.msra.mxu0 %v5435_v11  ;;  %v5642_v20 = vld [vmem:[#allocation10_spill] sm:$0xff] }
 0xed1   : > { %v2718_v35 = vpop.f32.mrf.mxu1  ;;  %v2759_v12 = vpop.f32.mrf.mxu0 }
 0xed2   : > { %v2765_v58 = vadd.f32 %v2718_v35, %v5640_v27  ;;  %v2779_v2 = vadd.f32 %v4086_v6, %v2759_v12  ;;  %v1443_v12 = vpop.permute.xlu1 %1442  ;;  %v1566_v27 = vpop.permute.xlu0 %1565 }
 0xed3   : > { %v2720_v59 = vpop.f32.mrf.mxu1  ;;  %v3769_v0 = vpop.f32.mrf.mxu0  ;;  %vm1444_vm4 = vcmp.eq.s32.totalorder %v1443_v12, 1  ;;  %vm1567_vm5 = vcmp.eq.s32.totalorder %v1566_v27, 1 }
 0xed4   : > { %v3194_v60 = vmul.f32 -1.442695, %v2765_v58  ;;  %v2772_v21 = vadd.f32 %v2720_v59, %v5641_v28 }
 0xed5   : > { %v2722_v19 = vpop.f32.mrf.mxu1  ;;  %v2762_v8 = vpop.f32.mrf.mxu0 }
 0xed6   : > { %4017 = vpow2.f32 %v3194_v60  ;;  %v3195_v25 = vmul.f32 -1.442695, %v2772_v21  ;;  %v1689_v59 = vpop.permute.xlu1 %1688  ;;  %v1812_v19 = vpop.permute.xlu0 %1811  ;;  %v1070_v21 = vld [vmem:[%s5586_s7] sm:$0xff] }
 0xed7   : > { %v2723_v10 = vpop.f32.mrf.mxu1  ;;  %v3770_v14 = vpop.f32.mrf.mxu0  ;;  %vm1690_vm6 = vcmp.eq.s32.totalorder %v1689_v59, 1  ;;  %vm1813_vm7 = vcmp.eq.s32.totalorder %v1812_v19, 1 }
 0xed8   : > { %4019 = vpow2.f32 %v3195_v25 }
 0xeda   : > { %v1935_v10 = vpop.permute.xlu1 %1934  ;;  %v2058_v28 = vpop.permute.xlu0 %2057 }
 0xedb   : > { %vm1936_vm8 = vcmp.eq.s32.totalorder %v1935_v10, 1  ;;  %vm2059_vm9 = vcmp.eq.s32.totalorder %v2058_v28, 1 }
 0xede   : > { %v2181_v25 = vpop.permute.xlu1 %2180 }
 0xedf   : > { %vm2182_vm10 = vcmp.eq.s32.totalorder %v2181_v25, 1 }
 0xee3   : > { %v4018_v47 = vpop.eup %4017 }
 0xee4   : > { %v2769_v33 = vadd.f32 1.0, %v4018_v47  ;;  %v1076_v47 = vsel %vm1075_vm1, %v4621_v44, %v1070_v21 }
 0xee5   : > { %v4020_v15 = vpop.eup %4019 }
 0xee6   : > { %4021 = vrcp.f32 %v2769_v33  ;;  %v2776_v56 = vadd.f32 1.0, %v4020_v15  ;;  %v2304_v33 = vpop.permute.xlu0 %2303  ;;  %v1199_v15 = vsel %vm1198_vm2, %v4668_v13, %v1076_v47 }
 0xee7   : > { %vm2305_vm11 = vcmp.eq.s32.totalorder %v2304_v33, 1 }
 0xee8   : > { %4023 = vrcp.f32 %v2776_v56  ;;  %v1322_v56 = vsel %vm1321_vm3, %v4718_v61, %v1199_v15 }
 0xef3   : > { %v4022_v17 = vpop.eup %4021 }
 0xef4   : > { %v2780_v1 = vmul.f32 %v4022_v17, %v2779_v2  ;;  %v2427_v2 = vpop.permute.xlu1 %2426 }
 0xef5   : > { %v4024_v3 = vpop.eup %4023  ;;  %vm2428_vm12 = vcmp.eq.s32.totalorder %v2427_v2, 1 }
 0xef6   : > { %v2781_v11 = vadd.f32 %v2780_v1, %v5642_v20  ;;  %v2783_v37 = vsub.f32 1.0, %v4024_v3  ;;  %v2785_v54 = vmul.f32 %v4024_v3, %v5495_v26  ;;  %v2550_v1 = vpop.permute.xlu0 %2549 }
 0xef7   : > { %vm2551_vm13 = vcmp.eq.s32.totalorder %v2550_v1, 1 }
 0xef8   : > { %4025 = vtanh.f32 %v2781_v11  ;;  %v2673_v61 = vpop.permute.xlu1 %2672 }
 0xef9   : > { %vm2674_vm14 = vcmp.eq.s32.totalorder %v2673_v61, 1 }
 0xf05   : > { %v4026_v48 = vpop.eup %4025 }
 0xf06   : > { %v2784_v22 = vmul.f32 %v4026_v48, %v2783_v37 }
 0xf08   : > { %v5545_v57 = vadd.f32 %v2785_v54, %v2784_v22  ;;  %v2919_v22 = vpop.permute.xlu1 %2918 }
 0xf09   : > { %vm2920_vm0 = vcmp.eq.s32.totalorder %v2919_v22, 1 }
 0xf0a   : > { %v2806_v4 = vpack.c.bf16 %v5545_v57, %v5545_v57 }
 0xf0c   : > { %2840 = vmatmul.mubr.bf16.vlgmr.msra.gmra.mxu1 %v2806_v4  ;;  %3788 = vmatmul.mubr.bf16.vlgmr.msra.gmra.mxu0 %v2806_v4 }
 0xfcc   : > { %v2841_v45 = vpop.f32.mrf.mxu1  ;;  %v2882_v29 = vpop.f32.mrf.mxu0 }
 0xfcd   : > { %v2888_v39 = vadd.f32 %v2841_v45, %v5643_v38  ;;  %v2902_v0 = vadd.f32 %v4086_v6, %v2882_v29  ;;  %v1445_v6 = vsel %vm1444_vm4, %v4765_v23, %v1322_v56  ;;  %v2796_v23 = vpop.permute.xlu0 %2795 }
 0xfce   : > { %v2843_v42 = vpop.f32.mrf.mxu1  ;;  %v3789_v41 = vpop.f32.mrf.mxu0  ;;  %v1568_v17 = vsel %vm1567_vm5, %v4845_v16, %v1445_v6  ;;  %vm2797_vm15 = vcmp.eq.s32.totalorder %v2796_v23, 1 }
 0xfcf   : > { %v3196_v24 = vmul.f32 -1.442695, %v2888_v39  ;;  %v2895_v52 = vadd.f32 %v2843_v42, %v4615_v40  ;;  %v5644_v40 = vld [vmem:[#allocation13_spill] sm:$0xff]  ;;  %v1691_v20 = vsel %vm1690_vm6, %v4982_v46, %v1568_v17 }
 0xfd0   : > { %v2845_v30 = vpop.f32.mrf.mxu1  ;;  %v2885_v63 = vpop.f32.mrf.mxu0  ;;  %v1814_v11 = vsel %vm1813_vm7, %v5032_v50, %v1691_v20 }
 0xfd1   : > { %4027 = vpow2.f32 %v3196_v24  ;;  %v3197_v43 = vmul.f32 -1.442695, %v2895_v52  ;;  %v1937_v13 = vsel %vm1936_vm8, %v5084_v53, %v1814_v11 }
 0xfd2   : > { %v2846_v18 = vpop.f32.mrf.mxu1  ;;  %v3790_v36 = vpop.f32.mrf.mxu0  ;;  %v2060_v3 = vsel %vm2059_vm9, %v5134_v62, %v1937_v13 }
 0xfd3   : > { %4029 = vpow2.f32 %v3197_v43  ;;  %v2183_v37 = vsel %vm2182_vm10, %v5181_v31, %v2060_v3 }
 0xfd4   : > { %v2306_v46 = vsel %vm2305_vm11, %v5231_v9, %v2183_v37 }
 0xfd5   : > { %v2429_v50 = vsel %vm2428_vm12, %v5308_v55, %v2306_v46 }
 0xfd6   : > { %v2552_v62 = vsel %vm2551_vm13, %v5448_v51, %v2429_v50 }
 0xfd7   : > { %v2675_v4 = vsel %vm2674_vm14, %v5495_v26, %v2552_v62 }
 0xfd8   : > { %v2798_v31 = vsel %vm2797_vm15, %v5545_v57, %v2675_v4 }
 0xfde   : > { %v4028_v49 = vpop.eup %4027 }
 0xfdf   : > { %v2892_v5 = vadd.f32 1.0, %v4028_v49 }
 0xfe0   : > { %v4030_v35 = vpop.eup %4029 }
 0xfe1   : > { %4031 = vrcp.f32 %v2892_v5  ;;  %v2899_v58 = vadd.f32 1.0, %v4030_v35 }
 0xfe3   : > { %4033 = vrcp.f32 %v2899_v58 }
 0xfee   : > { %v4032_v60 = vpop.eup %4031 }
 0xfef   : > { %v2903_v8 = vmul.f32 %v4032_v60, %v2902_v0 }
 0xff0   : > { %v4034_v44 = vpop.eup %4033 }
 0xff1   : > { %v2904_v14 = vadd.f32 %v2903_v8, %v5644_v40  ;;  %v2906_v16 = vsub.f32 1.0, %v4034_v44  ;;  %v2908_v54 = vmul.f32 %v4034_v44, %v5545_v57 }
 0xff3   : > { %4035 = vtanh.f32 %v2904_v14 }
0x1000   : > { %v4036_v48 = vpop.eup %4035 }
0x1001   : > { %v2907_v53 = vmul.f32 %v4036_v48, %v2906_v16 }
0x1003   : > { %v2909_v45 = vadd.f32 %v2908_v54, %v2907_v53 }
0x1005   : > { %v2921_v29 = vsel %vm2920_vm0, %v2909_v45, %v2798_v31  ;;  %2923 = vst [vmem:[#allocation2] sm:$0xff] %v2909_v45  ;;  %v3270_v9 = vpack.c.bf16 %v2909_v45, %v5545_v57 }
0x1006   : > { %2922 = vst [vmem:[%s5586_s7] sm:$0xff] %v2921_v29 }
0x1007   : > { %3278 = vst [vmem:[%s4159_s11 + $0x38] sm:$0xff] %v3270_v9  }
0x1008 PF: > { %s18_s24 = sadd.s32 1, %s4093_s24  }
0x1009   : > { %p15_p5 = scmp.ge.s32.totalorder %s18_s24, 4  }
0x100b   :  { %17 = sbr.rel (!%p15_p5) target bundleno = 1 (0x1), region = 117 }

</bundles_post_ra>
